<compile_context>
chip_gen: v7x
topology: tpu7x:2x2x1
jax: 0.10.0
libtpu: 0.0.40
codegen_flags: <defaults>
</compile_context>

<pallas_src>
import jax
import jax.numpy as jnp
from jax.experimental import pallas as pl
from jax.experimental.pallas import tpu as pltpu

# Small, module-consistent hyper-parameters (PyTorch defaults are 2700/25/3/20/1;
# here we shrink input_size/hidden_dim but keep the hard-coded seq len of 20,
# 3 LSTM layers and a 1-class linear head).
HIDDEN = 32
SEQ_LEN = 20          # hard-coded `reshape(batchsize, 20, -1)` in the module
NUM_LAYERS = 3
N_CLASS = 1

_VMEM_SPEC = pl.BlockSpec(memory_space=pltpu.MemorySpace.VMEM)


def _sigmoid(x):
    # Logistic via tanh: numerically stable and lands on the EUP slot.
    return 0.5 * jnp.tanh(0.5 * x) + 0.5


def _fused_lstm_kernel(x_ref, *refs):
    """Fused 3-layer LSTM + Linear head (wavefront over layer x time).

    Args (all VMEM):
      x_ref:  (T*Bp, IN0)  bf16, time-major flattened layer-0 input
      per layer l: wih_t (IN_l, 4H) bf16, whh_t (H, 4H) bf16, b (1, 4H) f32
      w_out:  (T, 1, H)    f32   final Linear weight, reshaped per-step rows
      b_out:  (1, 1)       f32
      out:    (Bp, 1)      f32   output
      gin_sc: (T*Bp, 4H)   f32   scratch for the hoisted layer-0 projection
    """
    n_layer_refs = 3 * NUM_LAYERS
    layer_refs = refs[:n_layer_refs]
    w_out_ref, b_out_ref, out_ref, gin_sc = refs[n_layer_refs:]

    TB = x_ref.shape[0]
    B = TB // SEQ_LEN          # padded batch (multiple of 8)
    H = HIDDEN
    G = 4 * H                  # 128 gate lanes: [i | f | g | o]

    # Lane constants for the fused gate nonlinearity:
    #   sigmoid(x) = 0.5*tanh(0.5*x) + 0.5   on the i/f/o lanes
    #   tanh(x)                              on the g lanes
    # i.e. act = tanh(gates * pre) * pre + post_b with pre in {0.5, 1.0}.
    lane = jax.lax.broadcasted_iota(jnp.int32, (B, G), 1)
    is_g = (lane >= 2 * H) & (lane < 3 * H)
    pre = jnp.where(is_g, 1.0, 0.5).astype(jnp.float32)
    post_b = jnp.where(is_g, 0.0, 0.5).astype(jnp.float32)

    wih = [layer_refs[3 * l][...] for l in range(NUM_LAYERS)]        # (IN_l, 4H) bf16
    whh = [layer_refs[3 * l + 1][...] for l in range(NUM_LAYERS)]    # (H, 4H)    bf16
    bias = [layer_refs[3 * l + 2][...] for l in range(NUM_LAYERS)]   # (1, 4H)    f32

    # Hoisted layer-0 input projection (+bias) over ALL timesteps: one MXU op.
    # Parked in VMEM scratch to bound vreg live ranges across the unroll.
    gin_sc[...] = jnp.dot(x_ref[...], wih[0],
                          preferred_element_type=jnp.float32) + bias[0]

    h = [jnp.zeros((B, H), jnp.float32) for _ in range(NUM_LAYERS)]
    c = [jnp.zeros((B, H), jnp.float32) for _ in range(NUM_LAYERS)]
    h_bf = [v.astype(jnp.bfloat16) for v in h]
    acc = jnp.zeros((B, H), jnp.float32)     # Linear-head per-lane accumulator

    def gate_step(gates, c_prev):
        # ONE full-vreg tanh (EUP) + lane-constant affine; XLU rolls align
        # f/g/o with the i/c lanes (no 4x quarter-vreg sigmoid/tanh pushes).
        act = jnp.tanh(gates * pre) * pre + post_b            # (B, 4H)
        i = act[:, 0:H]
        f = pltpu.roll(act, shift=G - H, axis=1)[:, 0:H]
        g = pltpu.roll(act, shift=G - 2 * H, axis=1)[:, 0:H]
        o = pltpu.roll(act, shift=G - 3 * H, axis=1)[:, 0:H]
        c_new = f * c_prev + i * g
        h_new = o * jnp.tanh(c_new)
        return h_new, c_new

    # Wavefront: the fully unrolled trace exposes layer l's step t as soon as
    # layer l-1's step t is ready, so the 3 recurrent chains overlap.
    for t in range(SEQ_LEN):                                  # static T -> unrolled
        # Layer 0: hoisted projection slice + recurrent matmul.
        g0 = gin_sc[t * B:(t + 1) * B, :] + jnp.dot(
            h_bf[0], whh[0], preferred_element_type=jnp.float32)
        h[0], c[0] = gate_step(g0, c[0])
        h_bf[0] = h[0].astype(jnp.bfloat16)

        # Layers 1..L-1: per-step input projection from the fresh previous-layer h.
        for l in range(1, NUM_LAYERS):
            gl = (jnp.dot(h_bf[l - 1], wih[l], preferred_element_type=jnp.float32)
                  + jnp.dot(h_bf[l], whh[l], preferred_element_type=jnp.float32)
                  + bias[l])
            h[l], c[l] = gate_step(gl, c[l])
            h_bf[l] = h[l].astype(jnp.bfloat16)

        # Linear head folded as a VPU broadcast-FMA (no N=1 MXU matmul).
        acc = acc + h[NUM_LAYERS - 1] * w_out_ref[t]          # (B,H) * (1,H)

    # Single cross-lane reduction (XLU) outside the serial loop.
    out_ref[...] = jnp.sum(acc, axis=1, keepdims=True) + b_out_ref[...]


def model_forward(x, params):
    """Mirrors LSTM.forward: Flatten(2,4) -> reshape(B,20,-1) -> LSTM -> Flatten(1,2) -> Linear."""
    B = x.shape[0]
    x = x.reshape(B, x.shape[1], -1)                       # nn.Flatten(2, 4)
    x = x.reshape(B, SEQ_LEN, -1).astype(jnp.float32)      # x.reshape(batchsize, 20, -1)

    # Time-major, zero-pad batch to a multiple of 8 sublanes, flatten to (T*Bp, IN).
    Bp = ((B + 7) // 8) * 8
    x_tm = jnp.transpose(x, (1, 0, 2))                     # (T, B, IN)
    x_tm = jnp.pad(x_tm, ((0, 0), (0, Bp - B), (0, 0)))    # (T, Bp, IN)
    x_flat = x_tm.reshape(SEQ_LEN * Bp, -1).astype(jnp.bfloat16)

    args = [x_flat]
    for (w_ih, w_hh, b_ih, b_hh) in params["lstm"]:
        args.append(jnp.transpose(w_ih).astype(jnp.bfloat16))          # (IN, 4H)
        args.append(jnp.transpose(w_hh).astype(jnp.bfloat16))          # (H, 4H)
        args.append((b_ih + b_hh).reshape(1, -1).astype(jnp.float32))  # (1, 4H)
    # Linear head weight: flat index t*H + h  ->  (T, 1, H) per-step rows.
    args.append(params["w_out"].reshape(SEQ_LEN, 1, HIDDEN).astype(jnp.float32))
    args.append(params["b_out"].reshape(1, 1).astype(jnp.float32))     # (1, 1)

    out = pl.pallas_call(
        _fused_lstm_kernel,
        out_shape=jax.ShapeDtypeStruct((Bp, N_CLASS), jnp.float32),
        in_specs=[_VMEM_SPEC] * len(args),
        out_specs=_VMEM_SPEC,
        scratch_shapes=[pltpu.VMEM((SEQ_LEN * Bp, 4 * HIDDEN), jnp.float32)],
    )(*args)
    return out[:B]


def reference_forward(x, params):
    """Pure-JAX f32 reference of the same forward pass (for correctness check)."""
    B = x.shape[0]
    x = x.reshape(B, x.shape[1], -1).reshape(B, SEQ_LEN, -1).astype(jnp.float32)
    h_seq = x
    H = HIDDEN
    for (w_ih, w_hh, b_ih, b_hh) in params["lstm"]:
        h = jnp.zeros((B, H), jnp.float32)
        c = jnp.zeros((B, H), jnp.float32)
        outs = []
        for t in range(SEQ_LEN):
            gates = h_seq[:, t, :] @ w_ih.T + h @ w_hh.T + b_ih + b_hh
            i = _sigmoid(gates[:, 0 * H:1 * H])
            f = _sigmoid(gates[:, 1 * H:2 * H])
            g = jnp.tanh(gates[:, 2 * H:3 * H])
            o = _sigmoid(gates[:, 3 * H:4 * H])
            c = f * c + i * g
            h = o * jnp.tanh(c)
            outs.append(h)
        h_seq = jnp.stack(outs, axis=1)
    flat = h_seq.reshape(B, -1)
    return flat @ params["w_out"].T + params["b_out"]


def init_params(key, input_size):
    """Deterministic init matching PyTorch shapes (uniform(-1/sqrt(H), 1/sqrt(H)))."""
    keys = jax.random.split(key, NUM_LAYERS * 4 + 2)
    bound = 1.0 / jnp.sqrt(jnp.float32(HIDDEN))
    layers = []
    k = 0
    in_size = input_size
    for _ in range(NUM_LAYERS):
        w_ih = jax.random.uniform(keys[k], (4 * HIDDEN, in_size), jnp.float32, -bound, bound); k += 1
        w_hh = jax.random.uniform(keys[k], (4 * HIDDEN, HIDDEN), jnp.float32, -bound, bound); k += 1
        b_ih = jax.random.uniform(keys[k], (4 * HIDDEN,), jnp.float32, -bound, bound); k += 1
        b_hh = jax.random.uniform(keys[k], (4 * HIDDEN,), jnp.float32, -bound, bound); k += 1
        layers.append((w_ih, w_hh, b_ih, b_hh))
        in_size = HIDDEN
    lin_bound = 1.0 / jnp.sqrt(jnp.float32(HIDDEN * SEQ_LEN))
    w_out = jax.random.uniform(keys[k], (N_CLASS, HIDDEN * SEQ_LEN), jnp.float32, -lin_bound, lin_bound); k += 1
    b_out = jax.random.uniform(keys[k], (N_CLASS,), jnp.float32, -lin_bound, lin_bound)
    return {"lstm": layers, "w_out": w_out, "b_out": b_out}


if __name__ == "__main__":
    key = jax.random.PRNGKey(0)
    k_x, k_p = jax.random.split(key)

    # 5-D input so that Flatten(2,4) applies: (B=2, 5, 2, 4, 8)
    # -> flatten(2,4): (2, 5, 64) -> reshape: (2, 20, 16)  => per-step input_size = 16
    x = jax.random.normal(k_x, (2, 5, 2, 4, 8), dtype=jnp.float32)
    input_size = (5 * 2 * 4 * 8) // SEQ_LEN  # 16
    params = init_params(k_p, input_size)

    fwd = jax.jit(model_forward)
    out = jax.block_until_ready(fwd(x, params))
    ref = jax.block_until_ready(reference_forward(x, params))

    assert out.shape == (2, N_CLASS), f"unexpected output shape {out.shape}"
    # Kernel uses bf16 matmul operands (f32 accumulation); compare to f32 ref
    # with a tolerance that comfortably covers bf16 rounding at these sizes.
    assert jnp.allclose(out, ref, rtol=2e-2, atol=2e-2), (out, ref)
    print("KERNEL_OK")
</pallas_src>

<mosaic_0001>
module attributes {stable_mosaic.version = 11 : i64} {
  func.func @_fused_lstm_kernel(%arg0: memref<160x16xbf16, #tpu.memory_space<vmem>>, %arg1: memref<16x128xbf16, #tpu.memory_space<vmem>>, %arg2: memref<32x128xbf16, #tpu.memory_space<vmem>>, %arg3: memref<1x128xf32, #tpu.memory_space<vmem>>, %arg4: memref<32x128xbf16, #tpu.memory_space<vmem>>, %arg5: memref<32x128xbf16, #tpu.memory_space<vmem>>, %arg6: memref<1x128xf32, #tpu.memory_space<vmem>>, %arg7: memref<32x128xbf16, #tpu.memory_space<vmem>>, %arg8: memref<32x128xbf16, #tpu.memory_space<vmem>>, %arg9: memref<1x128xf32, #tpu.memory_space<vmem>>, %arg10: memref<20x1x32xf32, #tpu.memory_space<vmem>>, %arg11: memref<1x1xf32, #tpu.memory_space<vmem>>, %arg12: memref<8x1xf32, #tpu.memory_space<vmem>>, %arg13: memref<160x128xf32, #tpu.memory_space<vmem>>) attributes {dimension_semantics = [], scalar_prefetch = 0 : i64, scratch_operands = 1 : i64, tpu.core_type = #tpu.core_type<tc>} {
    %0 = tpu.iota {dimensions = array<i32: 1>} : vector<8x128xi32>
    %c64_i32 = arith.constant 64 : i32
    %1 = vector.broadcast %c64_i32 : i32 to vector<8x128xi32>
    %2 = arith.cmpi sge, %0, %1 : vector<8x128xi32>
    %c96_i32 = arith.constant 96 : i32
    %3 = vector.broadcast %c96_i32 : i32 to vector<8x128xi32>
    %4 = arith.cmpi slt, %0, %3 : vector<8x128xi32>
    %5 = arith.andi %2, %4 : vector<8x128xi1>
    %cst = arith.constant 1.000000e+00 : f32
    %cst_0 = arith.constant 5.000000e-01 : f32
    %6 = vector.broadcast %cst : f32 to vector<8x128xf32>
    %7 = vector.broadcast %cst_0 : f32 to vector<8x128xf32>
    %8 = arith.select %5, %6, %7 : vector<8x128xi1>, vector<8x128xf32>
    %cst_1 = arith.constant 0.000000e+00 : f32
    %cst_2 = arith.constant 5.000000e-01 : f32
    %9 = vector.broadcast %cst_1 : f32 to vector<8x128xf32>
    %10 = vector.broadcast %cst_2 : f32 to vector<8x128xf32>
    %11 = arith.select %5, %9, %10 : vector<8x128xi1>, vector<8x128xf32>
    %c0 = arith.constant 0 : index
    %c0_3 = arith.constant 0 : index
    %12 = vector.load %arg1[%c0, %c0_3] : memref<16x128xbf16, #tpu.memory_space<vmem>>, vector<16x128xbf16>
    %c0_4 = arith.constant 0 : index
    %c0_5 = arith.constant 0 : index
    %13 = vector.load %arg4[%c0_4, %c0_5] : memref<32x128xbf16, #tpu.memory_space<vmem>>, vector<32x128xbf16>
    %c0_6 = arith.constant 0 : index
    %c0_7 = arith.constant 0 : index
    %14 = vector.load %arg7[%c0_6, %c0_7] : memref<32x128xbf16, #tpu.memory_space<vmem>>, vector<32x128xbf16>
    %c0_8 = arith.constant 0 : index
    %c0_9 = arith.constant 0 : index
    %15 = vector.load %arg2[%c0_8, %c0_9] : memref<32x128xbf16, #tpu.memory_space<vmem>>, vector<32x128xbf16>
    %c0_10 = arith.constant 0 : index
    %c0_11 = arith.constant 0 : index
    %16 = vector.load %arg5[%c0_10, %c0_11] : memref<32x128xbf16, #tpu.memory_space<vmem>>, vector<32x128xbf16>
    %c0_12 = arith.constant 0 : index
    %c0_13 = arith.constant 0 : index
    %17 = vector.load %arg8[%c0_12, %c0_13] : memref<32x128xbf16, #tpu.memory_space<vmem>>, vector<32x128xbf16>
    %c0_14 = arith.constant 0 : index
    %c0_15 = arith.constant 0 : index
    %18 = vector.load %arg3[%c0_14, %c0_15] : memref<1x128xf32, #tpu.memory_space<vmem>>, vector<1x128xf32>
    %c0_16 = arith.constant 0 : index
    %c0_17 = arith.constant 0 : index
    %19 = vector.load %arg6[%c0_16, %c0_17] : memref<1x128xf32, #tpu.memory_space<vmem>>, vector<1x128xf32>
    %c0_18 = arith.constant 0 : index
    %c0_19 = arith.constant 0 : index
    %20 = vector.load %arg9[%c0_18, %c0_19] : memref<1x128xf32, #tpu.memory_space<vmem>>, vector<1x128xf32>
    %c0_20 = arith.constant 0 : index
    %c0_21 = arith.constant 0 : index
    %21 = vector.load %arg0[%c0_20, %c0_21] : memref<160x16xbf16, #tpu.memory_space<vmem>>, vector<160x16xbf16>
    %cst_22 = arith.constant dense<0.000000e+00> : vector<160x128xf32>
    %22 = tpu.matmul %21, %12, %cst_22 {dimension_numbers = #tpu.dot_dimension_numbers<[1], [0], [0], [1], [0, 0, 1, 1], [], []>} : vector<160x16xbf16>, vector<16x128xbf16>, vector<160x128xf32> -> vector<160x128xf32>
    %23 = vector.broadcast %18 : vector<1x128xf32> to vector<160x128xf32>
    %24 = arith.addf %22, %23 : vector<160x128xf32>
    %c0_23 = arith.constant 0 : index
    %c0_24 = arith.constant 0 : index
    %25 = vector.load %arg13[%c0_23, %c0_24] : memref<160x128xf32, #tpu.memory_space<vmem>>, vector<160x128xf32>
    tpu.vector_store %arg13[%c0_23, %c0_24], %24 {strides = array<i32>} : memref<160x128xf32, #tpu.memory_space<vmem>>, vector<160x128xf32>,
    %cst_25 = arith.constant 0.000000e+00 : f32
    %26 = vector.broadcast %cst_25 : f32 to vector<8x32xf32>
    %cst_26 = arith.constant 0.000000e+00 : f32
    %27 = vector.broadcast %cst_26 : f32 to vector<8x32xf32>
    %cst_27 = arith.constant 0.000000e+00 : f32
    %28 = vector.broadcast %cst_27 : f32 to vector<8x32xf32>
    %cst_28 = arith.constant 0.000000e+00 : f32
    %29 = vector.broadcast %cst_28 : f32 to vector<8x32xf32>
    %cst_29 = arith.constant 0.000000e+00 : f32
    %30 = vector.broadcast %cst_29 : f32 to vector<8x32xf32>
    %cst_30 = arith.constant 0.000000e+00 : f32
    %31 = vector.broadcast %cst_30 : f32 to vector<8x32xf32>
    %32 = arith.truncf %26 : vector<8x32xf32> to vector<8x32xbf16>
    %33 = arith.truncf %27 : vector<8x32xf32> to vector<8x32xbf16>
    %34 = arith.truncf %28 : vector<8x32xf32> to vector<8x32xbf16>
    %cst_31 = arith.constant 0.000000e+00 : f32
    %35 = vector.broadcast %cst_31 : f32 to vector<8x32xf32>
    %c0_32 = arith.constant 0 : index
    %c0_33 = arith.constant 0 : index
    %36 = vector.load %arg13[%c0_32, %c0_33] : memref<160x128xf32, #tpu.memory_space<vmem>>, vector<8x128xf32>
    %cst_34 = arith.constant dense<0.000000e+00> : vector<8x128xf32>
    %37 = tpu.matmul %32, %15, %cst_34 {dimension_numbers = #tpu.dot_dimension_numbers<[1], [0], [0], [1], [0, 0, 1, 1], [], []>} : vector<8x32xbf16>, vector<32x128xbf16>, vector<8x128xf32> -> vector<8x128xf32>
    %38 = arith.addf %36, %37 : vector<8x128xf32>
    %39 = arith.mulf %38, %8 : vector<8x128xf32>
    %40 = math.tanh %39 : vector<8x128xf32>
    %41 = arith.mulf %40, %8 : vector<8x128xf32>
    %42 = arith.addf %41, %11 : vector<8x128xf32>
    %43 = vector.extract_strided_slice %42 {offsets = [0, 0], sizes = [8, 32], strides = [1, 1]} : vector<8x128xf32> to vector<8x32xf32>
    %c96_i32_35 = arith.constant 96 : i32
    %44 = tpu.dynamic_rotate %42 by %c96_i32_35 dim 1 : vector<8x128xf32>, i32 -> vector<8x128xf32>
    %45 = vector.extract_strided_slice %44 {offsets = [0, 0], sizes = [8, 32], strides = [1, 1]} : vector<8x128xf32> to vector<8x32xf32>
    %c64_i32_36 = arith.constant 64 : i32
    %46 = tpu.dynamic_rotate %42 by %c64_i32_36 dim 1 : vector<8x128xf32>, i32 -> vector<8x128xf32>
    %47 = vector.extract_strided_slice %46 {offsets = [0, 0], sizes = [8, 32], strides = [1, 1]} : vector<8x128xf32> to vector<8x32xf32>
    %c32_i32 = arith.constant 32 : i32
    %48 = tpu.dynamic_rotate %42 by %c32_i32 dim 1 : vector<8x128xf32>, i32 -> vector<8x128xf32>
    %49 = vector.extract_strided_slice %48 {offsets = [0, 0], sizes = [8, 32], strides = [1, 1]} : vector<8x128xf32> to vector<8x32xf32>
    %50 = arith.mulf %45, %29 : vector<8x32xf32>
    %51 = arith.mulf %43, %47 : vector<8x32xf32>
    %52 = arith.addf %50, %51 : vector<8x32xf32>
    %53 = math.tanh %52 : vector<8x32xf32>
    %54 = arith.mulf %49, %53 : vector<8x32xf32>
    %55 = arith.truncf %54 : vector<8x32xf32> to vector<8x32xbf16>
    %cst_37 = arith.constant dense<0.000000e+00> : vector<8x128xf32>
    %56 = tpu.matmul %55, %13, %cst_37 {dimension_numbers = #tpu.dot_dimension_numbers<[1], [0], [0], [1], [0, 0, 1, 1], [], []>} : vector<8x32xbf16>, vector<32x128xbf16>, vector<8x128xf32> -> vector<8x128xf32>
    %cst_38 = arith.constant dense<0.000000e+00> : vector<8x128xf32>
    %57 = tpu.matmul %33, %16, %cst_38 {dimension_numbers = #tpu.dot_dimension_numbers<[1], [0], [0], [1], [0, 0, 1, 1], [], []>} : vector<8x32xbf16>, vector<32x128xbf16>, vector<8x128xf32> -> vector<8x128xf32>
    %58 = arith.addf %56, %57 : vector<8x128xf32>
    %59 = vector.broadcast %19 : vector<1x128xf32> to vector<8x128xf32>
    %60 = arith.addf %58, %59 : vector<8x128xf32>
    %61 = arith.mulf %60, %8 : vector<8x128xf32>
    %62 = math.tanh %61 : vector<8x128xf32>
    %63 = arith.mulf %62, %8 : vector<8x128xf32>
    %64 = arith.addf %63, %11 : vector<8x128xf32>
    %65 = vector.extract_strided_slice %64 {offsets = [0, 0], sizes = [8, 32], strides = [1, 1]} : vector<8x128xf32> to vector<8x32xf32>
    %c96_i32_39 = arith.constant 96 : i32
    %66 = tpu.dynamic_rotate %64 by %c96_i32_39 dim 1 : vector<8x128xf32>, i32 -> vector<8x128xf32>
    %67 = vector.extract_strided_slice %66 {offsets = [0, 0], sizes = [8, 32], strides = [1, 1]} : vector<8x128xf32> to vector<8x32xf32>
    %c64_i32_40 = arith.constant 64 : i32
    %68 = tpu.dynamic_rotate %64 by %c64_i32_40 dim 1 : vector<8x128xf32>, i32 -> vector<8x128xf32>
    %69 = vector.extract_strided_slice %68 {offsets = [0, 0], sizes = [8, 32], strides = [1, 1]} : vector<8x128xf32> to vector<8x32xf32>
    %c32_i32_41 = arith.constant 32 : i32
    %70 = tpu.dynamic_rotate %64 by %c32_i32_41 dim 1 : vector<8x128xf32>, i32 -> vector<8x128xf32>
    %71 = vector.extract_strided_slice %70 {offsets = [0, 0], sizes = [8, 32], strides = [1, 1]} : vector<8x128xf32> to vector<8x32xf32>
    %72 = arith.mulf %67, %30 : vector<8x32xf32>
    %73 = arith.mulf %65, %69 : vector<8x32xf32>
    %74 = arith.addf %72, %73 : vector<8x32xf32>
    %75 = math.tanh %74 : vector<8x32xf32>
    %76 = arith.mulf %71, %75 : vector<8x32xf32>
    %77 = arith.truncf %76 : vector<8x32xf32> to vector<8x32xbf16>
    %cst_42 = arith.constant dense<0.000000e+00> : vector<8x128xf32>
    %78 = tpu.matmul %77, %14, %cst_42 {dimension_numbers = #tpu.dot_dimension_numbers<[1], [0], [0], [1], [0, 0, 1, 1], [], []>} : vector<8x32xbf16>, vector<32x128xbf16>, vector<8x128xf32> -> vector<8x128xf32>
    %cst_43 = arith.constant dense<0.000000e+00> : vector<8x128xf32>
    %79 = tpu.matmul %34, %17, %cst_43 {dimension_numbers = #tpu.dot_dimension_numbers<[1], [0], [0], [1], [0, 0, 1, 1], [], []>} : vector<8x32xbf16>, vector<32x128xbf16>, vector<8x128xf32> -> vector<8x128xf32>
    %80 = arith.addf %78, %79 : vector<8x128xf32>
    %81 = vector.broadcast %20 : vector<1x128xf32> to vector<8x128xf32>
    %82 = arith.addf %80, %81 : vector<8x128xf32>
    %83 = arith.mulf %82, %8 : vector<8x128xf32>
    %84 = math.tanh %83 : vector<8x128xf32>
    %85 = arith.mulf %84, %8 : vector<8x128xf32>
    %86 = arith.addf %85, %11 : vector<8x128xf32>
    %87 = vector.extract_strided_slice %86 {offsets = [0, 0], sizes = [8, 32], strides = [1, 1]} : vector<8x128xf32> to vector<8x32xf32>
    %c96_i32_44 = arith.constant 96 : i32
    %88 = tpu.dynamic_rotate %86 by %c96_i32_44 dim 1 : vector<8x128xf32>, i32 -> vector<8x128xf32>
    %89 = vector.extract_strided_slice %88 {offsets = [0, 0], sizes = [8, 32], strides = [1, 1]} : vector<8x128xf32> to vector<8x32xf32>
    %c64_i32_45 = arith.constant 64 : i32
    %90 = tpu.dynamic_rotate %86 by %c64_i32_45 dim 1 : vector<8x128xf32>, i32 -> vector<8x128xf32>
    %91 = vector.extract_strided_slice %90 {offsets = [0, 0], sizes = [8, 32], strides = [1, 1]} : vector<8x128xf32> to vector<8x32xf32>
    %c32_i32_46 = arith.constant 32 : i32
    %92 = tpu.dynamic_rotate %86 by %c32_i32_46 dim 1 : vector<8x128xf32>, i32 -> vector<8x128xf32>
    %93 = vector.extract_strided_slice %92 {offsets = [0, 0], sizes = [8, 32], strides = [1, 1]} : vector<8x128xf32> to vector<8x32xf32>
    %94 = arith.mulf %89, %31 : vector<8x32xf32>
    %95 = arith.mulf %87, %91 : vector<8x32xf32>
    %96 = arith.addf %94, %95 : vector<8x32xf32>
    %97 = math.tanh %96 : vector<8x32xf32>
    %98 = arith.mulf %93, %97 : vector<8x32xf32>
    %99 = arith.truncf %98 : vector<8x32xf32> to vector<8x32xbf16>
    %c0_47 = arith.constant 0 : index
    %c0_48 = arith.constant 0 : index
    %c0_49 = arith.constant 0 : index
    %100 = vector.load %arg10[%c0_47, %c0_48, %c0_49] : memref<20x1x32xf32, #tpu.memory_space<vmem>>, vector<1x1x32xf32>
    %101 = vector.shape_cast %100 : vector<1x1x32xf32> to vector<1x32xf32>
    %102 = vector.broadcast %101 : vector<1x32xf32> to vector<8x32xf32>
    %103 = arith.mulf %98, %102 : vector<8x32xf32>
    %104 = arith.addf %35, %103 : vector<8x32xf32>
    %c8 = arith.constant 8 : index
    %c0_50 = arith.constant 0 : index
    %105 = vector.load %arg13[%c8, %c0_50] : memref<160x128xf32, #tpu.memory_space<vmem>>, vector<8x128xf32>
    %cst_51 = arith.constant dense<0.000000e+00> : vector<8x128xf32>
    %106 = tpu.matmul %55, %15, %cst_51 {dimension_numbers = #tpu.dot_dimension_numbers<[1], [0], [0], [1], [0, 0, 1, 1], [], []>} : vector<8x32xbf16>, vector<32x128xbf16>, vector<8x128xf32> -> vector<8x128xf32>
    %107 = arith.addf %105, %106 : vector<8x128xf32>
    %108 = arith.mulf %107, %8 : vector<8x128xf32>
    %109 = math.tanh %108 : vector<8x128xf32>
    %110 = arith.mulf %109, %8 : vector<8x128xf32>
    %111 = arith.addf %110, %11 : vector<8x128xf32>
    %112 = vector.extract_strided_slice %111 {offsets = [0, 0], sizes = [8, 32], strides = [1, 1]} : vector<8x128xf32> to vector<8x32xf32>
    %c96_i32_52 = arith.constant 96 : i32
    %113 = tpu.dynamic_rotate %111 by %c96_i32_52 dim 1 : vector<8x128xf32>, i32 -> vector<8x128xf32>
    %114 = vector.extract_strided_slice %113 {offsets = [0, 0], sizes = [8, 32], strides = [1, 1]} : vector<8x128xf32> to vector<8x32xf32>
    %c64_i32_53 = arith.constant 64 : i32
    %115 = tpu.dynamic_rotate %111 by %c64_i32_53 dim 1 : vector<8x128xf32>, i32 -> vector<8x128xf32>
    %116 = vector.extract_strided_slice %115 {offsets = [0, 0], sizes = [8, 32], strides = [1, 1]} : vector<8x128xf32> to vector<8x32xf32>
    %c32_i32_54 = arith.constant 32 : i32
    %117 = tpu.dynamic_rotate %111 by %c32_i32_54 dim 1 : vector<8x128xf32>, i32 -> vector<8x128xf32>
    %118 = vector.extract_strided_slice %117 {offsets = [0, 0], sizes = [8, 32], strides = [1, 1]} : vector<8x128xf32> to vector<8x32xf32>
    %119 = arith.mulf %114, %52 : vector<8x32xf32>
    %120 = arith.mulf %112, %116 : vector<8x32xf32>
    %121 = arith.addf %119, %120 : vector<8x32xf32>
    %122 = math.tanh %121 : vector<8x32xf32>
    %123 = arith.mulf %118, %122 : vector<8x32xf32>
    %124 = arith.truncf %123 : vector<8x32xf32> to vector<8x32xbf16>
    %cst_55 = arith.constant dense<0.000000e+00> : vector<8x128xf32>
    %125 = tpu.matmul %124, %13, %cst_55 {dimension_numbers = #tpu.dot_dimension_numbers<[1], [0], [0], [1], [0, 0, 1, 1], [], []>} : vector<8x32xbf16>, vector<32x128xbf16>, vector<8x128xf32> -> vector<8x128xf32>
    %cst_56 = arith.constant dense<0.000000e+00> : vector<8x128xf32>
    %126 = tpu.matmul %77, %16, %cst_56 {dimension_numbers = #tpu.dot_dimension_numbers<[1], [0], [0], [1], [0, 0, 1, 1], [], []>} : vector<8x32xbf16>, vector<32x128xbf16>, vector<8x128xf32> -> vector<8x128xf32>
    %127 = arith.addf %125, %126 : vector<8x128xf32>
    %128 = vector.broadcast %19 : vector<1x128xf32> to vector<8x128xf32>
    %129 = arith.addf %127, %128 : vector<8x128xf32>
    %130 = arith.mulf %129, %8 : vector<8x128xf32>
    %131 = math.tanh %130 : vector<8x128xf32>
    %132 = arith.mulf %131, %8 : vector<8x128xf32>
    %133 = arith.addf %132, %11 : vector<8x128xf32>
    %134 = vector.extract_strided_slice %133 {offsets = [0, 0], sizes = [8, 32], strides = [1, 1]} : vector<8x128xf32> to vector<8x32xf32>
    %c96_i32_57 = arith.constant 96 : i32
    %135 = tpu.dynamic_rotate %133 by %c96_i32_57 dim 1 : vector<8x128xf32>, i32 -> vector<8x128xf32>
    %136 = vector.extract_strided_slice %135 {offsets = [0, 0], sizes = [8, 32], strides = [1, 1]} : vector<8x128xf32> to vector<8x32xf32>
    %c64_i32_58 = arith.constant 64 : i32
    %137 = tpu.dynamic_rotate %133 by %c64_i32_58 dim 1 : vector<8x128xf32>, i32 -> vector<8x128xf32>
    %138 = vector.extract_strided_slice %137 {offsets = [0, 0], sizes = [8, 32], strides = [1, 1]} : vector<8x128xf32> to vector<8x32xf32>
    %c32_i32_59 = arith.constant 32 : i32
    %139 = tpu.dynamic_rotate %133 by %c32_i32_59 dim 1 : vector<8x128xf32>, i32 -> vector<8x128xf32>
    %140 = vector.extract_strided_slice %139 {offsets = [0, 0], sizes = [8, 32], strides = [1, 1]} : vector<8x128xf32> to vector<8x32xf32>
    %141 = arith.mulf %136, %74 : vector<8x32xf32>
    %142 = arith.mulf %134, %138 : vector<8x32xf32>
    %143 = arith.addf %141, %142 : vector<8x32xf32>
    %144 = math.tanh %143 : vector<8x32xf32>
    %145 = arith.mulf %140, %144 : vector<8x32xf32>
    %146 = arith.truncf %145 : vector<8x32xf32> to vector<8x32xbf16>
    %cst_60 = arith.constant dense<0.000000e+00> : vector<8x128xf32>
    %147 = tpu.matmul %146, %14, %cst_60 {dimension_numbers = #tpu.dot_dimension_numbers<[1], [0], [0], [1], [0, 0, 1, 1], [], []>} : vector<8x32xbf16>, vector<32x128xbf16>, vector<8x128xf32> -> vector<8x128xf32>
    %cst_61 = arith.constant dense<0.000000e+00> : vector<8x128xf32>
    %148 = tpu.matmul %99, %17, %cst_61 {dimension_numbers = #tpu.dot_dimension_numbers<[1], [0], [0], [1], [0, 0, 1, 1], [], []>} : vector<8x32xbf16>, vector<32x128xbf16>, vector<8x128xf32> -> vector<8x128xf32>
    %149 = arith.addf %147, %148 : vector<8x128xf32>
    %150 = vector.broadcast %20 : vector<1x128xf32> to vector<8x128xf32>
    %151 = arith.addf %149, %150 : vector<8x128xf32>
    %152 = arith.mulf %151, %8 : vector<8x128xf32>
    %153 = math.tanh %152 : vector<8x128xf32>
    %154 = arith.mulf %153, %8 : vector<8x128xf32>
    %155 = arith.addf %154, %11 : vector<8x128xf32>
    %156 = vector.extract_strided_slice %155 {offsets = [0, 0], sizes = [8, 32], strides = [1, 1]} : vector<8x128xf32> to vector<8x32xf32>
    %c96_i32_62 = arith.constant 96 : i32
    %157 = tpu.dynamic_rotate %155 by %c96_i32_62 dim 1 : vector<8x128xf32>, i32 -> vector<8x128xf32>
    %158 = vector.extract_strided_slice %157 {offsets = [0, 0], sizes = [8, 32], strides = [1, 1]} : vector<8x128xf32> to vector<8x32xf32>
    %c64_i32_63 = arith.constant 64 : i32
    %159 = tpu.dynamic_rotate %155 by %c64_i32_63 dim 1 : vector<8x128xf32>, i32 -> vector<8x128xf32>
    %160 = vector.extract_strided_slice %159 {offsets = [0, 0], sizes = [8, 32], strides = [1, 1]} : vector<8x128xf32> to vector<8x32xf32>
    %c32_i32_64 = arith.constant 32 : i32
    %161 = tpu.dynamic_rotate %155 by %c32_i32_64 dim 1 : vector<8x128xf32>, i32 -> vector<8x128xf32>
    %162 = vector.extract_strided_slice %161 {offsets = [0, 0], sizes = [8, 32], strides = [1, 1]} : vector<8x128xf32> to vector<8x32xf32>
    %163 = arith.mulf %158, %96 : vector<8x32xf32>
    %164 = arith.mulf %156, %160 : vector<8x32xf32>
    %165 = arith.addf %163, %164 : vector<8x32xf32>
    %166 = math.tanh %165 : vector<8x32xf32>
    %167 = arith.mulf %162, %166 : vector<8x32xf32>
    %168 = arith.truncf %167 : vector<8x32xf32> to vector<8x32xbf16>
    %c1 = arith.constant 1 : index
    %c0_65 = arith.constant 0 : index
    %c0_66 = arith.constant 0 : index
    %169 = vector.load %arg10[%c1, %c0_65, %c0_66] : memref<20x1x32xf32, #tpu.memory_space<vmem>>, vector<1x1x32xf32>
    %170 = vector.shape_cast %169 : vector<1x1x32xf32> to vector<1x32xf32>
    %171 = vector.broadcast %170 : vector<1x32xf32> to vector<8x32xf32>
    %172 = arith.mulf %167, %171 : vector<8x32xf32>
    %173 = arith.addf %104, %172 : vector<8x32xf32>
    %c16 = arith.constant 16 : index
    %c0_67 = arith.constant 0 : index
    %174 = vector.load %arg13[%c16, %c0_67] : memref<160x128xf32, #tpu.memory_space<vmem>>, vector<8x128xf32>
    %cst_68 = arith.constant dense<0.000000e+00> : vector<8x128xf32>
    %175 = tpu.matmul %124, %15, %cst_68 {dimension_numbers = #tpu.dot_dimension_numbers<[1], [0], [0], [1], [0, 0, 1, 1], [], []>} : vector<8x32xbf16>, vector<32x128xbf16>, vector<8x128xf32> -> vector<8x128xf32>
    %176 = arith.addf %174, %175 : vector<8x128xf32>
    %177 = arith.mulf %176, %8 : vector<8x128xf32>
    %178 = math.tanh %177 : vector<8x128xf32>
    %179 = arith.mulf %178, %8 : vector<8x128xf32>
    %180 = arith.addf %179, %11 : vector<8x128xf32>
    %181 = vector.extract_strided_slice %180 {offsets = [0, 0], sizes = [8, 32], strides = [1, 1]} : vector<8x128xf32> to vector<8x32xf32>
    %c96_i32_69 = arith.constant 96 : i32
    %182 = tpu.dynamic_rotate %180 by %c96_i32_69 dim 1 : vector<8x128xf32>, i32 -> vector<8x128xf32>
    %183 = vector.extract_strided_slice %182 {offsets = [0, 0], sizes = [8, 32], strides = [1, 1]} : vector<8x128xf32> to vector<8x32xf32>
    %c64_i32_70 = arith.constant 64 : i32
    %184 = tpu.dynamic_rotate %180 by %c64_i32_70 dim 1 : vector<8x128xf32>, i32 -> vector<8x128xf32>
    %185 = vector.extract_strided_slice %184 {offsets = [0, 0], sizes = [8, 32], strides = [1, 1]} : vector<8x128xf32> to vector<8x32xf32>
    %c32_i32_71 = arith.constant 32 : i32
    %186 = tpu.dynamic_rotate %180 by %c32_i32_71 dim 1 : vector<8x128xf32>, i32 -> vector<8x128xf32>
    %187 = vector.extract_strided_slice %186 {offsets = [0, 0], sizes = [8, 32], strides = [1, 1]} : vector<8x128xf32> to vector<8x32xf32>
    %188 = arith.mulf %183, %121 : vector<8x32xf32>
    %189 = arith.mulf %181, %185 : vector<8x32xf32>
    %190 = arith.addf %188, %189 : vector<8x32xf32>
    %191 = math.tanh %190 : vector<8x32xf32>
    %192 = arith.mulf %187, %191 : vector<8x32xf32>
    %193 = arith.truncf %192 : vector<8x32xf32> to vector<8x32xbf16>
    %cst_72 = arith.constant dense<0.000000e+00> : vector<8x128xf32>
    %194 = tpu.matmul %193, %13, %cst_72 {dimension_numbers = #tpu.dot_dimension_numbers<[1], [0], [0], [1], [0, 0, 1, 1], [], []>} : vector<8x32xbf16>, vector<32x128xbf16>, vector<8x128xf32> -> vector<8x128xf32>
    %cst_73 = arith.constant dense<0.000000e+00> : vector<8x128xf32>
    %195 = tpu.matmul %146, %16, %cst_73 {dimension_numbers = #tpu.dot_dimension_numbers<[1], [0], [0], [1], [0, 0, 1, 1], [], []>} : vector<8x32xbf16>, vector<32x128xbf16>, vector<8x128xf32> -> vector<8x128xf32>
    %196 = arith.addf %194, %195 : vector<8x128xf32>
    %197 = vector.broadcast %19 : vector<1x128xf32> to vector<8x128xf32>
    %198 = arith.addf %196, %197 : vector<8x128xf32>
    %199 = arith.mulf %198, %8 : vector<8x128xf32>
    %200 = math.tanh %199 : vector<8x128xf32>
    %201 = arith.mulf %200, %8 : vector<8x128xf32>
    %202 = arith.addf %201, %11 : vector<8x128xf32>
    %203 = vector.extract_strided_slice %202 {offsets = [0, 0], sizes = [8, 32], strides = [1, 1]} : vector<8x128xf32> to vector<8x32xf32>
    %c96_i32_74 = arith.constant 96 : i32
    %204 = tpu.dynamic_rotate %202 by %c96_i32_74 dim 1 : vector<8x128xf32>, i32 -> vector<8x128xf32>
    %205 = vector.extract_strided_slice %204 {offsets = [0, 0], sizes = [8, 32], strides = [1, 1]} : vector<8x128xf32> to vector<8x32xf32>
    %c64_i32_75 = arith.constant 64 : i32
    %206 = tpu.dynamic_rotate %202 by %c64_i32_75 dim 1 : vector<8x128xf32>, i32 -> vector<8x128xf32>
    %207 = vector.extract_strided_slice %206 {offsets = [0, 0], sizes = [8, 32], strides = [1, 1]} : vector<8x128xf32> to vector<8x32xf32>
    %c32_i32_76 = arith.constant 32 : i32
    %208 = tpu.dynamic_rotate %202 by %c32_i32_76 dim 1 : vector<8x128xf32>, i32 -> vector<8x128xf32>
    %209 = vector.extract_strided_slice %208 {offsets = [0, 0], sizes = [8, 32], strides = [1, 1]} : vector<8x128xf32> to vector<8x32xf32>
    %210 = arith.mulf %205, %143 : vector<8x32xf32>
    %211 = arith.mulf %203, %207 : vector<8x32xf32>
    %212 = arith.addf %210, %211 : vector<8x32xf32>
    %213 = math.tanh %212 : vector<8x32xf32>
    %214 = arith.mulf %209, %213 : vector<8x32xf32>
    %215 = arith.truncf %214 : vector<8x32xf32> to vector<8x32xbf16>
    %cst_77 = arith.constant dense<0.000000e+00> : vector<8x128xf32>
    %216 = tpu.matmul %215, %14, %cst_77 {dimension_numbers = #tpu.dot_dimension_numbers<[1], [0], [0], [1], [0, 0, 1, 1], [], []>} : vector<8x32xbf16>, vector<32x128xbf16>, vector<8x128xf32> -> vector<8x128xf32>
    %cst_78 = arith.constant dense<0.000000e+00> : vector<8x128xf32>
    %217 = tpu.matmul %168, %17, %cst_78 {dimension_numbers = #tpu.dot_dimension_numbers<[1], [0], [0], [1], [0, 0, 1, 1], [], []>} : vector<8x32xbf16>, vector<32x128xbf16>, vector<8x128xf32> -> vector<8x128xf32>
    %218 = arith.addf %216, %217 : vector<8x128xf32>
    %219 = vector.broadcast %20 : vector<1x128xf32> to vector<8x128xf32>
    %220 = arith.addf %218, %219 : vector<8x128xf32>
    %221 = arith.mulf %220, %8 : vector<8x128xf32>
    %222 = math.tanh %221 : vector<8x128xf32>
    %223 = arith.mulf %222, %8 : vector<8x128xf32>
    %224 = arith.addf %223, %11 : vector<8x128xf32>
    %225 = vector.extract_strided_slice %224 {offsets = [0, 0], sizes = [8, 32], strides = [1, 1]} : vector<8x128xf32> to vector<8x32xf32>
    %c96_i32_79 = arith.constant 96 : i32
    %226 = tpu.dynamic_rotate %224 by %c96_i32_79 dim 1 : vector<8x128xf32>, i32 -> vector<8x128xf32>
    %227 = vector.extract_strided_slice %226 {offsets = [0, 0], sizes = [8, 32], strides = [1, 1]} : vector<8x128xf32> to vector<8x32xf32>
    %c64_i32_80 = arith.constant 64 : i32
    %228 = tpu.dynamic_rotate %224 by %c64_i32_80 dim 1 : vector<8x128xf32>, i32 -> vector<8x128xf32>
    %229 = vector.extract_strided_slice %228 {offsets = [0, 0], sizes = [8, 32], strides = [1, 1]} : vector<8x128xf32> to vector<8x32xf32>
    %c32_i32_81 = arith.constant 32 : i32
    %230 = tpu.dynamic_rotate %224 by %c32_i32_81 dim 1 : vector<8x128xf32>, i32 -> vector<8x128xf32>
    %231 = vector.extract_strided_slice %230 {offsets = [0, 0], sizes = [8, 32], strides = [1, 1]} : vector<8x128xf32> to vector<8x32xf32>
    %232 = arith.mulf %227, %165 : vector<8x32xf32>
    %233 = arith.mulf %225, %229 : vector<8x32xf32>
    %234 = arith.addf %232, %233 : vector<8x32xf32>
    %235 = math.tanh %234 : vector<8x32xf32>
    %236 = arith.mulf %231, %235 : vector<8x32xf32>
    %237 = arith.truncf %236 : vector<8x32xf32> to vector<8x32xbf16>
    %c2 = arith.constant 2 : index
    %c0_82 = arith.constant 0 : index
    %c0_83 = arith.constant 0 : index
    %238 = vector.load %arg10[%c2, %c0_82, %c0_83] : memref<20x1x32xf32, #tpu.memory_space<vmem>>, vector<1x1x32xf32>
    %239 = vector.shape_cast %238 : vector<1x1x32xf32> to vector<1x32xf32>
    %240 = vector.broadcast %239 : vector<1x32xf32> to vector<8x32xf32>
    %241 = arith.mulf %236, %240 : vector<8x32xf32>
    %242 = arith.addf %173, %241 : vector<8x32xf32>
    %c24 = arith.constant 24 : index
    %c0_84 = arith.constant 0 : index
    %243 = vector.load %arg13[%c24, %c0_84] : memref<160x128xf32, #tpu.memory_space<vmem>>, vector<8x128xf32>
    %cst_85 = arith.constant dense<0.000000e+00> : vector<8x128xf32>
    %244 = tpu.matmul %193, %15, %cst_85 {dimension_numbers = #tpu.dot_dimension_numbers<[1], [0], [0], [1], [0, 0, 1, 1], [], []>} : vector<8x32xbf16>, vector<32x128xbf16>, vector<8x128xf32> -> vector<8x128xf32>
    %245 = arith.addf %243, %244 : vector<8x128xf32>
    %246 = arith.mulf %245, %8 : vector<8x128xf32>
    %247 = math.tanh %246 : vector<8x128xf32>
    %248 = arith.mulf %247, %8 : vector<8x128xf32>
    %249 = arith.addf %248, %11 : vector<8x128xf32>
    %250 = vector.extract_strided_slice %249 {offsets = [0, 0], sizes = [8, 32], strides = [1, 1]} : vector<8x128xf32> to vector<8x32xf32>
    %c96_i32_86 = arith.constant 96 : i32
    %251 = tpu.dynamic_rotate %249 by %c96_i32_86 dim 1 : vector<8x128xf32>, i32 -> vector<8x128xf32>
    %252 = vector.extract_strided_slice %251 {offsets = [0, 0], sizes = [8, 32], strides = [1, 1]} : vector<8x128xf32> to vector<8x32xf32>
    %c64_i32_87 = arith.constant 64 : i32
    %253 = tpu.dynamic_rotate %249 by %c64_i32_87 dim 1 : vector<8x128xf32>, i32 -> vector<8x128xf32>
    %254 = vector.extract_strided_slice %253 {offsets = [0, 0], sizes = [8, 32], strides = [1, 1]} : vector<8x128xf32> to vector<8x32xf32>
    %c32_i32_88 = arith.constant 32 : i32
    %255 = tpu.dynamic_rotate %249 by %c32_i32_88 dim 1 : vector<8x128xf32>, i32 -> vector<8x128xf32>
    %256 = vector.extract_strided_slice %255 {offsets = [0, 0], sizes = [8, 32], strides = [1, 1]} : vector<8x128xf32> to vector<8x32xf32>
    %257 = arith.mulf %252, %190 : vector<8x32xf32>
    %258 = arith.mulf %250, %254 : vector<8x32xf32>
    %259 = arith.addf %257, %258 : vector<8x32xf32>
    %260 = math.tanh %259 : vector<8x32xf32>
    %261 = arith.mulf %256, %260 : vector<8x32xf32>
    %262 = arith.truncf %261 : vector<8x32xf32> to vector<8x32xbf16>
    %cst_89 = arith.constant dense<0.000000e+00> : vector<8x128xf32>
    %263 = tpu.matmul %262, %13, %cst_89 {dimension_numbers = #tpu.dot_dimension_numbers<[1], [0], [0], [1], [0, 0, 1, 1], [], []>} : vector<8x32xbf16>, vector<32x128xbf16>, vector<8x128xf32> -> vector<8x128xf32>
    %cst_90 = arith.constant dense<0.000000e+00> : vector<8x128xf32>
    %264 = tpu.matmul %215, %16, %cst_90 {dimension_numbers = #tpu.dot_dimension_numbers<[1], [0], [0], [1], [0, 0, 1, 1], [], []>} : vector<8x32xbf16>, vector<32x128xbf16>, vector<8x128xf32> -> vector<8x128xf32>
    %265 = arith.addf %263, %264 : vector<8x128xf32>
    %266 = vector.broadcast %19 : vector<1x128xf32> to vector<8x128xf32>
    %267 = arith.addf %265, %266 : vector<8x128xf32>
    %268 = arith.mulf %267, %8 : vector<8x128xf32>
    %269 = math.tanh %268 : vector<8x128xf32>
    %270 = arith.mulf %269, %8 : vector<8x128xf32>
    %271 = arith.addf %270, %11 : vector<8x128xf32>
    %272 = vector.extract_strided_slice %271 {offsets = [0, 0], sizes = [8, 32], strides = [1, 1]} : vector<8x128xf32> to vector<8x32xf32>
    %c96_i32_91 = arith.constant 96 : i32
    %273 = tpu.dynamic_rotate %271 by %c96_i32_91 dim 1 : vector<8x128xf32>, i32 -> vector<8x128xf32>
    %274 = vector.extract_strided_slice %273 {offsets = [0, 0], sizes = [8, 32], strides = [1, 1]} : vector<8x128xf32> to vector<8x32xf32>
    %c64_i32_92 = arith.constant 64 : i32
    %275 = tpu.dynamic_rotate %271 by %c64_i32_92 dim 1 : vector<8x128xf32>, i32 -> vector<8x128xf32>
    %276 = vector.extract_strided_slice %275 {offsets = [0, 0], sizes = [8, 32], strides = [1, 1]} : vector<8x128xf32> to vector<8x32xf32>
    %c32_i32_93 = arith.constant 32 : i32
    %277 = tpu.dynamic_rotate %271 by %c32_i32_93 dim 1 : vector<8x128xf32>, i32 -> vector<8x128xf32>
    %278 = vector.extract_strided_slice %277 {offsets = [0, 0], sizes = [8, 32], strides = [1, 1]} : vector<8x128xf32> to vector<8x32xf32>
    %279 = arith.mulf %274, %212 : vector<8x32xf32>
    %280 = arith.mulf %272, %276 : vector<8x32xf32>
    %281 = arith.addf %279, %280 : vector<8x32xf32>
    %282 = math.tanh %281 : vector<8x32xf32>
    %283 = arith.mulf %278, %282 : vector<8x32xf32>
    %284 = arith.truncf %283 : vector<8x32xf32> to vector<8x32xbf16>
    %cst_94 = arith.constant dense<0.000000e+00> : vector<8x128xf32>
    %285 = tpu.matmul %284, %14, %cst_94 {dimension_numbers = #tpu.dot_dimension_numbers<[1], [0], [0], [1], [0, 0, 1, 1], [], []>} : vector<8x32xbf16>, vector<32x128xbf16>, vector<8x128xf32> -> vector<8x128xf32>
    %cst_95 = arith.constant dense<0.000000e+00> : vector<8x128xf32>
    %286 = tpu.matmul %237, %17, %cst_95 {dimension_numbers = #tpu.dot_dimension_numbers<[1], [0], [0], [1], [0, 0, 1, 1], [], []>} : vector<8x32xbf16>, vector<32x128xbf16>, vector<8x128xf32> -> vector<8x128xf32>
    %287 = arith.addf %285, %286 : vector<8x128xf32>
    %288 = vector.broadcast %20 : vector<1x128xf32> to vector<8x128xf32>
    %289 = arith.addf %287, %288 : vector<8x128xf32>
    %290 = arith.mulf %289, %8 : vector<8x128xf32>
    %291 = math.tanh %290 : vector<8x128xf32>
    %292 = arith.mulf %291, %8 : vector<8x128xf32>
    %293 = arith.addf %292, %11 : vector<8x128xf32>
    %294 = vector.extract_strided_slice %293 {offsets = [0, 0], sizes = [8, 32], strides = [1, 1]} : vector<8x128xf32> to vector<8x32xf32>
    %c96_i32_96 = arith.constant 96 : i32
    %295 = tpu.dynamic_rotate %293 by %c96_i32_96 dim 1 : vector<8x128xf32>, i32 -> vector<8x128xf32>
    %296 = vector.extract_strided_slice %295 {offsets = [0, 0], sizes = [8, 32], strides = [1, 1]} : vector<8x128xf32> to vector<8x32xf32>
    %c64_i32_97 = arith.constant 64 : i32
    %297 = tpu.dynamic_rotate %293 by %c64_i32_97 dim 1 : vector<8x128xf32>, i32 -> vector<8x128xf32>
    %298 = vector.extract_strided_slice %297 {offsets = [0, 0], sizes = [8, 32], strides = [1, 1]} : vector<8x128xf32> to vector<8x32xf32>
    %c32_i32_98 = arith.constant 32 : i32
    %299 = tpu.dynamic_rotate %293 by %c32_i32_98 dim 1 : vector<8x128xf32>, i32 -> vector<8x128xf32>
    %300 = vector.extract_strided_slice %299 {offsets = [0, 0], sizes = [8, 32], strides = [1, 1]} : vector<8x128xf32> to vector<8x32xf32>
    %301 = arith.mulf %296, %234 : vector<8x32xf32>
    %302 = arith.mulf %294, %298 : vector<8x32xf32>
    %303 = arith.addf %301, %302 : vector<8x32xf32>
    %304 = math.tanh %303 : vector<8x32xf32>
    %305 = arith.mulf %300, %304 : vector<8x32xf32>
    %306 = arith.truncf %305 : vector<8x32xf32> to vector<8x32xbf16>
    %c3 = arith.constant 3 : index
    %c0_99 = arith.constant 0 : index
    %c0_100 = arith.constant 0 : index
    %307 = vector.load %arg10[%c3, %c0_99, %c0_100] : memref<20x1x32xf32, #tpu.memory_space<vmem>>, vector<1x1x32xf32>
    %308 = vector.shape_cast %307 : vector<1x1x32xf32> to vector<1x32xf32>
    %309 = vector.broadcast %308 : vector<1x32xf32> to vector<8x32xf32>
    %310 = arith.mulf %305, %309 : vector<8x32xf32>
    %311 = arith.addf %242, %310 : vector<8x32xf32>
    %c32 = arith.constant 32 : index
    %c0_101 = arith.constant 0 : index
    %312 = vector.load %arg13[%c32, %c0_101] : memref<160x128xf32, #tpu.memory_space<vmem>>, vector<8x128xf32>
    %cst_102 = arith.constant dense<0.000000e+00> : vector<8x128xf32>
    %313 = tpu.matmul %262, %15, %cst_102 {dimension_numbers = #tpu.dot_dimension_numbers<[1], [0], [0], [1], [0, 0, 1, 1], [], []>} : vector<8x32xbf16>, vector<32x128xbf16>, vector<8x128xf32> -> vector<8x128xf32>
    %314 = arith.addf %312, %313 : vector<8x128xf32>
    %315 = arith.mulf %314, %8 : vector<8x128xf32>
    %316 = math.tanh %315 : vector<8x128xf32>
    %317 = arith.mulf %316, %8 : vector<8x128xf32>
    %318 = arith.addf %317, %11 : vector<8x128xf32>
    %319 = vector.extract_strided_slice %318 {offsets = [0, 0], sizes = [8, 32], strides = [1, 1]} : vector<8x128xf32> to vector<8x32xf32>
    %c96_i32_103 = arith.constant 96 : i32
    %320 = tpu.dynamic_rotate %318 by %c96_i32_103 dim 1 : vector<8x128xf32>, i32 -> vector<8x128xf32>
    %321 = vector.extract_strided_slice %320 {offsets = [0, 0], sizes = [8, 32], strides = [1, 1]} : vector<8x128xf32> to vector<8x32xf32>
    %c64_i32_104 = arith.constant 64 : i32
    %322 = tpu.dynamic_rotate %318 by %c64_i32_104 dim 1 : vector<8x128xf32>, i32 -> vector<8x128xf32>
    %323 = vector.extract_strided_slice %322 {offsets = [0, 0], sizes = [8, 32], strides = [1, 1]} : vector<8x128xf32> to vector<8x32xf32>
    %c32_i32_105 = arith.constant 32 : i32
    %324 = tpu.dynamic_rotate %318 by %c32_i32_105 dim 1 : vector<8x128xf32>, i32 -> vector<8x128xf32>
    %325 = vector.extract_strided_slice %324 {offsets = [0, 0], sizes = [8, 32], strides = [1, 1]} : vector<8x128xf32> to vector<8x32xf32>
    %326 = arith.mulf %321, %259 : vector<8x32xf32>
    %327 = arith.mulf %319, %323 : vector<8x32xf32>
    %328 = arith.addf %326, %327 : vector<8x32xf32>
    %329 = math.tanh %328 : vector<8x32xf32>
    %330 = arith.mulf %325, %329 : vector<8x32xf32>
    %331 = arith.truncf %330 : vector<8x32xf32> to vector<8x32xbf16>
    %cst_106 = arith.constant dense<0.000000e+00> : vector<8x128xf32>
    %332 = tpu.matmul %331, %13, %cst_106 {dimension_numbers = #tpu.dot_dimension_numbers<[1], [0], [0], [1], [0, 0, 1, 1], [], []>} : vector<8x32xbf16>, vector<32x128xbf16>, vector<8x128xf32> -> vector<8x128xf32>
    %cst_107 = arith.constant dense<0.000000e+00> : vector<8x128xf32>
    %333 = tpu.matmul %284, %16, %cst_107 {dimension_numbers = #tpu.dot_dimension_numbers<[1], [0], [0], [1], [0, 0, 1, 1], [], []>} : vector<8x32xbf16>, vector<32x128xbf16>, vector<8x128xf32> -> vector<8x128xf32>
    %334 = arith.addf %332, %333 : vector<8x128xf32>
    %335 = vector.broadcast %19 : vector<1x128xf32> to vector<8x128xf32>
    %336 = arith.addf %334, %335 : vector<8x128xf32>
    %337 = arith.mulf %336, %8 : vector<8x128xf32>
    %338 = math.tanh %337 : vector<8x128xf32>
    %339 = arith.mulf %338, %8 : vector<8x128xf32>
    %340 = arith.addf %339, %11 : vector<8x128xf32>
    %341 = vector.extract_strided_slice %340 {offsets = [0, 0], sizes = [8, 32], strides = [1, 1]} : vector<8x128xf32> to vector<8x32xf32>
    %c96_i32_108 = arith.constant 96 : i32
    %342 = tpu.dynamic_rotate %340 by %c96_i32_108 dim 1 : vector<8x128xf32>, i32 -> vector<8x128xf32>
    %343 = vector.extract_strided_slice %342 {offsets = [0, 0], sizes = [8, 32], strides = [1, 1]} : vector<8x128xf32> to vector<8x32xf32>
    %c64_i32_109 = arith.constant 64 : i32
    %344 = tpu.dynamic_rotate %340 by %c64_i32_109 dim 1 : vector<8x128xf32>, i32 -> vector<8x128xf32>
    %345 = vector.extract_strided_slice %344 {offsets = [0, 0], sizes = [8, 32], strides = [1, 1]} : vector<8x128xf32> to vector<8x32xf32>
    %c32_i32_110 = arith.constant 32 : i32
    %346 = tpu.dynamic_rotate %340 by %c32_i32_110 dim 1 : vector<8x128xf32>, i32 -> vector<8x128xf32>
    %347 = vector.extract_strided_slice %346 {offsets = [0, 0], sizes = [8, 32], strides = [1, 1]} : vector<8x128xf32> to vector<8x32xf32>
    %348 = arith.mulf %343, %281 : vector<8x32xf32>
    %349 = arith.mulf %341, %345 : vector<8x32xf32>
    %350 = arith.addf %348, %349 : vector<8x32xf32>
    %351 = math.tanh %350 : vector<8x32xf32>
    %352 = arith.mulf %347, %351 : vector<8x32xf32>
    %353 = arith.truncf %352 : vector<8x32xf32> to vector<8x32xbf16>
    %cst_111 = arith.constant dense<0.000000e+00> : vector<8x128xf32>
    %354 = tpu.matmul %353, %14, %cst_111 {dimension_numbers = #tpu.dot_dimension_numbers<[1], [0], [0], [1], [0, 0, 1, 1], [], []>} : vector<8x32xbf16>, vector<32x128xbf16>, vector<8x128xf32> -> vector<8x128xf32>
    %cst_112 = arith.constant dense<0.000000e+00> : vector<8x128xf32>
    %355 = tpu.matmul %306, %17, %cst_112 {dimension_numbers = #tpu.dot_dimension_numbers<[1], [0], [0], [1], [0, 0, 1, 1], [], []>} : vector<8x32xbf16>, vector<32x128xbf16>, vector<8x128xf32> -> vector<8x128xf32>
    %356 = arith.addf %354, %355 : vector<8x128xf32>
    %357 = vector.broadcast %20 : vector<1x128xf32> to vector<8x128xf32>
    %358 = arith.addf %356, %357 : vector<8x128xf32>
    %359 = arith.mulf %358, %8 : vector<8x128xf32>
    %360 = math.tanh %359 : vector<8x128xf32>
    %361 = arith.mulf %360, %8 : vector<8x128xf32>
    %362 = arith.addf %361, %11 : vector<8x128xf32>
    %363 = vector.extract_strided_slice %362 {offsets = [0, 0], sizes = [8, 32], strides = [1, 1]} : vector<8x128xf32> to vector<8x32xf32>
    %c96_i32_113 = arith.constant 96 : i32
    %364 = tpu.dynamic_rotate %362 by %c96_i32_113 dim 1 : vector<8x128xf32>, i32 -> vector<8x128xf32>
    %365 = vector.extract_strided_slice %364 {offsets = [0, 0], sizes = [8, 32], strides = [1, 1]} : vector<8x128xf32> to vector<8x32xf32>
    %c64_i32_114 = arith.constant 64 : i32
    %366 = tpu.dynamic_rotate %362 by %c64_i32_114 dim 1 : vector<8x128xf32>, i32 -> vector<8x128xf32>
    %367 = vector.extract_strided_slice %366 {offsets = [0, 0], sizes = [8, 32], strides = [1, 1]} : vector<8x128xf32> to vector<8x32xf32>
    %c32_i32_115 = arith.constant 32 : i32
    %368 = tpu.dynamic_rotate %362 by %c32_i32_115 dim 1 : vector<8x128xf32>, i32 -> vector<8x128xf32>
    %369 = vector.extract_strided_slice %368 {offsets = [0, 0], sizes = [8, 32], strides = [1, 1]} : vector<8x128xf32> to vector<8x32xf32>
    %370 = arith.mulf %365, %303 : vector<8x32xf32>
    %371 = arith.mulf %363, %367 : vector<8x32xf32>
    %372 = arith.addf %370, %371 : vector<8x32xf32>
    %373 = math.tanh %372 : vector<8x32xf32>
    %374 = arith.mulf %369, %373 : vector<8x32xf32>
    %375 = arith.truncf %374 : vector<8x32xf32> to vector<8x32xbf16>
    %c4 = arith.constant 4 : index
    %c0_116 = arith.constant 0 : index
    %c0_117 = arith.constant 0 : index
    %376 = vector.load %arg10[%c4, %c0_116, %c0_117] : memref<20x1x32xf32, #tpu.memory_space<vmem>>, vector<1x1x32xf32>
    %377 = vector.shape_cast %376 : vector<1x1x32xf32> to vector<1x32xf32>
    %378 = vector.broadcast %377 : vector<1x32xf32> to vector<8x32xf32>
    %379 = arith.mulf %374, %378 : vector<8x32xf32>
    %380 = arith.addf %311, %379 : vector<8x32xf32>
    %c40 = arith.constant 40 : index
    %c0_118 = arith.constant 0 : index
    %381 = vector.load %arg13[%c40, %c0_118] : memref<160x128xf32, #tpu.memory_space<vmem>>, vector<8x128xf32>
    %cst_119 = arith.constant dense<0.000000e+00> : vector<8x128xf32>
    %382 = tpu.matmul %331, %15, %cst_119 {dimension_numbers = #tpu.dot_dimension_numbers<[1], [0], [0], [1], [0, 0, 1, 1], [], []>} : vector<8x32xbf16>, vector<32x128xbf16>, vector<8x128xf32> -> vector<8x128xf32>
    %383 = arith.addf %381, %382 : vector<8x128xf32>
    %384 = arith.mulf %383, %8 : vector<8x128xf32>
    %385 = math.tanh %384 : vector<8x128xf32>
    %386 = arith.mulf %385, %8 : vector<8x128xf32>
    %387 = arith.addf %386, %11 : vector<8x128xf32>
    %388 = vector.extract_strided_slice %387 {offsets = [0, 0], sizes = [8, 32], strides = [1, 1]} : vector<8x128xf32> to vector<8x32xf32>
    %c96_i32_120 = arith.constant 96 : i32
    %389 = tpu.dynamic_rotate %387 by %c96_i32_120 dim 1 : vector<8x128xf32>, i32 -> vector<8x128xf32>
    %390 = vector.extract_strided_slice %389 {offsets = [0, 0], sizes = [8, 32], strides = [1, 1]} : vector<8x128xf32> to vector<8x32xf32>
    %c64_i32_121 = arith.constant 64 : i32
    %391 = tpu.dynamic_rotate %387 by %c64_i32_121 dim 1 : vector<8x128xf32>, i32 -> vector<8x128xf32>
    %392 = vector.extract_strided_slice %391 {offsets = [0, 0], sizes = [8, 32], strides = [1, 1]} : vector<8x128xf32> to vector<8x32xf32>
    %c32_i32_122 = arith.constant 32 : i32
    %393 = tpu.dynamic_rotate %387 by %c32_i32_122 dim 1 : vector<8x128xf32>, i32 -> vector<8x128xf32>
    %394 = vector.extract_strided_slice %393 {offsets = [0, 0], sizes = [8, 32], strides = [1, 1]} : vector<8x128xf32> to vector<8x32xf32>
    %395 = arith.mulf %390, %328 : vector<8x32xf32>
    %396 = arith.mulf %388, %392 : vector<8x32xf32>
    %397 = arith.addf %395, %396 : vector<8x32xf32>
    %398 = math.tanh %397 : vector<8x32xf32>
    %399 = arith.mulf %394, %398 : vector<8x32xf32>
    %400 = arith.truncf %399 : vector<8x32xf32> to vector<8x32xbf16>
    %cst_123 = arith.constant dense<0.000000e+00> : vector<8x128xf32>
    %401 = tpu.matmul %400, %13, %cst_123 {dimension_numbers = #tpu.dot_dimension_numbers<[1], [0], [0], [1], [0, 0, 1, 1], [], []>} : vector<8x32xbf16>, vector<32x128xbf16>, vector<8x128xf32> -> vector<8x128xf32>
    %cst_124 = arith.constant dense<0.000000e+00> : vector<8x128xf32>
    %402 = tpu.matmul %353, %16, %cst_124 {dimension_numbers = #tpu.dot_dimension_numbers<[1], [0], [0], [1], [0, 0, 1, 1], [], []>} : vector<8x32xbf16>, vector<32x128xbf16>, vector<8x128xf32> -> vector<8x128xf32>
    %403 = arith.addf %401, %402 : vector<8x128xf32>
    %404 = vector.broadcast %19 : vector<1x128xf32> to vector<8x128xf32>
    %405 = arith.addf %403, %404 : vector<8x128xf32>
    %406 = arith.mulf %405, %8 : vector<8x128xf32>
    %407 = math.tanh %406 : vector<8x128xf32>
    %408 = arith.mulf %407, %8 : vector<8x128xf32>
    %409 = arith.addf %408, %11 : vector<8x128xf32>
    %410 = vector.extract_strided_slice %409 {offsets = [0, 0], sizes = [8, 32], strides = [1, 1]} : vector<8x128xf32> to vector<8x32xf32>
    %c96_i32_125 = arith.constant 96 : i32
    %411 = tpu.dynamic_rotate %409 by %c96_i32_125 dim 1 : vector<8x128xf32>, i32 -> vector<8x128xf32>
    %412 = vector.extract_strided_slice %411 {offsets = [0, 0], sizes = [8, 32], strides = [1, 1]} : vector<8x128xf32> to vector<8x32xf32>
    %c64_i32_126 = arith.constant 64 : i32
    %413 = tpu.dynamic_rotate %409 by %c64_i32_126 dim 1 : vector<8x128xf32>, i32 -> vector<8x128xf32>
    %414 = vector.extract_strided_slice %413 {offsets = [0, 0], sizes = [8, 32], strides = [1, 1]} : vector<8x128xf32> to vector<8x32xf32>
    %c32_i32_127 = arith.constant 32 : i32
    %415 = tpu.dynamic_rotate %409 by %c32_i32_127 dim 1 : vector<8x128xf32>, i32 -> vector<8x128xf32>
    %416 = vector.extract_strided_slice %415 {offsets = [0, 0], sizes = [8, 32], strides = [1, 1]} : vector<8x128xf32> to vector<8x32xf32>
    %417 = arith.mulf %412, %350 : vector<8x32xf32>
    %418 = arith.mulf %410, %414 : vector<8x32xf32>
    %419 = arith.addf %417, %418 : vector<8x32xf32>
    %420 = math.tanh %419 : vector<8x32xf32>
    %421 = arith.mulf %416, %420 : vector<8x32xf32>
    %422 = arith.truncf %421 : vector<8x32xf32> to vector<8x32xbf16>
    %cst_128 = arith.constant dense<0.000000e+00> : vector<8x128xf32>
    %423 = tpu.matmul %422, %14, %cst_128 {dimension_numbers = #tpu.dot_dimension_numbers<[1], [0], [0], [1], [0, 0, 1, 1], [], []>} : vector<8x32xbf16>, vector<32x128xbf16>, vector<8x128xf32> -> vector<8x128xf32>
    %cst_129 = arith.constant dense<0.000000e+00> : vector<8x128xf32>
    %424 = tpu.matmul %375, %17, %cst_129 {dimension_numbers = #tpu.dot_dimension_numbers<[1], [0], [0], [1], [0, 0, 1, 1], [], []>} : vector<8x32xbf16>, vector<32x128xbf16>, vector<8x128xf32> -> vector<8x128xf32>
    %425 = arith.addf %423, %424 : vector<8x128xf32>
    %426 = vector.broadcast %20 : vector<1x128xf32> to vector<8x128xf32>
    %427 = arith.addf %425, %426 : vector<8x128xf32>
    %428 = arith.mulf %427, %8 : vector<8x128xf32>
    %429 = math.tanh %428 : vector<8x128xf32>
    %430 = arith.mulf %429, %8 : vector<8x128xf32>
    %431 = arith.addf %430, %11 : vector<8x128xf32>
    %432 = vector.extract_strided_slice %431 {offsets = [0, 0], sizes = [8, 32], strides = [1, 1]} : vector<8x128xf32> to vector<8x32xf32>
    %c96_i32_130 = arith.constant 96 : i32
    %433 = tpu.dynamic_rotate %431 by %c96_i32_130 dim 1 : vector<8x128xf32>, i32 -> vector<8x128xf32>
    %434 = vector.extract_strided_slice %433 {offsets = [0, 0], sizes = [8, 32], strides = [1, 1]} : vector<8x128xf32> to vector<8x32xf32>
    %c64_i32_131 = arith.constant 64 : i32
    %435 = tpu.dynamic_rotate %431 by %c64_i32_131 dim 1 : vector<8x128xf32>, i32 -> vector<8x128xf32>
    %436 = vector.extract_strided_slice %435 {offsets = [0, 0], sizes = [8, 32], strides = [1, 1]} : vector<8x128xf32> to vector<8x32xf32>
    %c32_i32_132 = arith.constant 32 : i32
    %437 = tpu.dynamic_rotate %431 by %c32_i32_132 dim 1 : vector<8x128xf32>, i32 -> vector<8x128xf32>
    %438 = vector.extract_strided_slice %437 {offsets = [0, 0], sizes = [8, 32], strides = [1, 1]} : vector<8x128xf32> to vector<8x32xf32>
    %439 = arith.mulf %434, %372 : vector<8x32xf32>
    %440 = arith.mulf %432, %436 : vector<8x32xf32>
    %441 = arith.addf %439, %440 : vector<8x32xf32>
    %442 = math.tanh %441 : vector<8x32xf32>
    %443 = arith.mulf %438, %442 : vector<8x32xf32>
    %444 = arith.truncf %443 : vector<8x32xf32> to vector<8x32xbf16>
    %c5 = arith.constant 5 : index
    %c0_133 = arith.constant 0 : index
    %c0_134 = arith.constant 0 : index
    %445 = vector.load %arg10[%c5, %c0_133, %c0_134] : memref<20x1x32xf32, #tpu.memory_space<vmem>>, vector<1x1x32xf32>
    %446 = vector.shape_cast %445 : vector<1x1x32xf32> to vector<1x32xf32>
    %447 = vector.broadcast %446 : vector<1x32xf32> to vector<8x32xf32>
    %448 = arith.mulf %443, %447 : vector<8x32xf32>
    %449 = arith.addf %380, %448 : vector<8x32xf32>
    %c48 = arith.constant 48 : index
    %c0_135 = arith.constant 0 : index
    %450 = vector.load %arg13[%c48, %c0_135] : memref<160x128xf32, #tpu.memory_space<vmem>>, vector<8x128xf32>
    %cst_136 = arith.constant dense<0.000000e+00> : vector<8x128xf32>
    %451 = tpu.matmul %400, %15, %cst_136 {dimension_numbers = #tpu.dot_dimension_numbers<[1], [0], [0], [1], [0, 0, 1, 1], [], []>} : vector<8x32xbf16>, vector<32x128xbf16>, vector<8x128xf32> -> vector<8x128xf32>
    %452 = arith.addf %450, %451 : vector<8x128xf32>
    %453 = arith.mulf %452, %8 : vector<8x128xf32>
    %454 = math.tanh %453 : vector<8x128xf32>
    %455 = arith.mulf %454, %8 : vector<8x128xf32>
    %456 = arith.addf %455, %11 : vector<8x128xf32>
    %457 = vector.extract_strided_slice %456 {offsets = [0, 0], sizes = [8, 32], strides = [1, 1]} : vector<8x128xf32> to vector<8x32xf32>
    %c96_i32_137 = arith.constant 96 : i32
    %458 = tpu.dynamic_rotate %456 by %c96_i32_137 dim 1 : vector<8x128xf32>, i32 -> vector<8x128xf32>
    %459 = vector.extract_strided_slice %458 {offsets = [0, 0], sizes = [8, 32], strides = [1, 1]} : vector<8x128xf32> to vector<8x32xf32>
    %c64_i32_138 = arith.constant 64 : i32
    %460 = tpu.dynamic_rotate %456 by %c64_i32_138 dim 1 : vector<8x128xf32>, i32 -> vector<8x128xf32>
    %461 = vector.extract_strided_slice %460 {offsets = [0, 0], sizes = [8, 32], strides = [1, 1]} : vector<8x128xf32> to vector<8x32xf32>
    %c32_i32_139 = arith.constant 32 : i32
    %462 = tpu.dynamic_rotate %456 by %c32_i32_139 dim 1 : vector<8x128xf32>, i32 -> vector<8x128xf32>
    %463 = vector.extract_strided_slice %462 {offsets = [0, 0], sizes = [8, 32], strides = [1, 1]} : vector<8x128xf32> to vector<8x32xf32>
    %464 = arith.mulf %459, %397 : vector<8x32xf32>
    %465 = arith.mulf %457, %461 : vector<8x32xf32>
    %466 = arith.addf %464, %465 : vector<8x32xf32>
    %467 = math.tanh %466 : vector<8x32xf32>
    %468 = arith.mulf %463, %467 : vector<8x32xf32>
    %469 = arith.truncf %468 : vector<8x32xf32> to vector<8x32xbf16>
    %cst_140 = arith.constant dense<0.000000e+00> : vector<8x128xf32>
    %470 = tpu.matmul %469, %13, %cst_140 {dimension_numbers = #tpu.dot_dimension_numbers<[1], [0], [0], [1], [0, 0, 1, 1], [], []>} : vector<8x32xbf16>, vector<32x128xbf16>, vector<8x128xf32> -> vector<8x128xf32>
    %cst_141 = arith.constant dense<0.000000e+00> : vector<8x128xf32>
    %471 = tpu.matmul %422, %16, %cst_141 {dimension_numbers = #tpu.dot_dimension_numbers<[1], [0], [0], [1], [0, 0, 1, 1], [], []>} : vector<8x32xbf16>, vector<32x128xbf16>, vector<8x128xf32> -> vector<8x128xf32>
    %472 = arith.addf %470, %471 : vector<8x128xf32>
    %473 = vector.broadcast %19 : vector<1x128xf32> to vector<8x128xf32>
    %474 = arith.addf %472, %473 : vector<8x128xf32>
    %475 = arith.mulf %474, %8 : vector<8x128xf32>
    %476 = math.tanh %475 : vector<8x128xf32>
    %477 = arith.mulf %476, %8 : vector<8x128xf32>
    %478 = arith.addf %477, %11 : vector<8x128xf32>
    %479 = vector.extract_strided_slice %478 {offsets = [0, 0], sizes = [8, 32], strides = [1, 1]} : vector<8x128xf32> to vector<8x32xf32>
    %c96_i32_142 = arith.constant 96 : i32
    %480 = tpu.dynamic_rotate %478 by %c96_i32_142 dim 1 : vector<8x128xf32>, i32 -> vector<8x128xf32>
    %481 = vector.extract_strided_slice %480 {offsets = [0, 0], sizes = [8, 32], strides = [1, 1]} : vector<8x128xf32> to vector<8x32xf32>
    %c64_i32_143 = arith.constant 64 : i32
    %482 = tpu.dynamic_rotate %478 by %c64_i32_143 dim 1 : vector<8x128xf32>, i32 -> vector<8x128xf32>
    %483 = vector.extract_strided_slice %482 {offsets = [0, 0], sizes = [8, 32], strides = [1, 1]} : vector<8x128xf32> to vector<8x32xf32>
    %c32_i32_144 = arith.constant 32 : i32
    %484 = tpu.dynamic_rotate %478 by %c32_i32_144 dim 1 : vector<8x128xf32>, i32 -> vector<8x128xf32>
    %485 = vector.extract_strided_slice %484 {offsets = [0, 0], sizes = [8, 32], strides = [1, 1]} : vector<8x128xf32> to vector<8x32xf32>
    %486 = arith.mulf %481, %419 : vector<8x32xf32>
    %487 = arith.mulf %479, %483 : vector<8x32xf32>
    %488 = arith.addf %486, %487 : vector<8x32xf32>
    %489 = math.tanh %488 : vector<8x32xf32>
    %490 = arith.mulf %485, %489 : vector<8x32xf32>
    %491 = arith.truncf %490 : vector<8x32xf32> to vector<8x32xbf16>
    %cst_145 = arith.constant dense<0.000000e+00> : vector<8x128xf32>
    %492 = tpu.matmul %491, %14, %cst_145 {dimension_numbers = #tpu.dot_dimension_numbers<[1], [0], [0], [1], [0, 0, 1, 1], [], []>} : vector<8x32xbf16>, vector<32x128xbf16>, vector<8x128xf32> -> vector<8x128xf32>
    %cst_146 = arith.constant dense<0.000000e+00> : vector<8x128xf32>
    %493 = tpu.matmul %444, %17, %cst_146 {dimension_numbers = #tpu.dot_dimension_numbers<[1], [0], [0], [1], [0, 0, 1, 1], [], []>} : vector<8x32xbf16>, vector<32x128xbf16>, vector<8x128xf32> -> vector<8x128xf32>
    %494 = arith.addf %492, %493 : vector<8x128xf32>
    %495 = vector.broadcast %20 : vector<1x128xf32> to vector<8x128xf32>
    %496 = arith.addf %494, %495 : vector<8x128xf32>
    %497 = arith.mulf %496, %8 : vector<8x128xf32>
    %498 = math.tanh %497 : vector<8x128xf32>
    %499 = arith.mulf %498, %8 : vector<8x128xf32>
    %500 = arith.addf %499, %11 : vector<8x128xf32>
    %501 = vector.extract_strided_slice %500 {offsets = [0, 0], sizes = [8, 32], strides = [1, 1]} : vector<8x128xf32> to vector<8x32xf32>
    %c96_i32_147 = arith.constant 96 : i32
    %502 = tpu.dynamic_rotate %500 by %c96_i32_147 dim 1 : vector<8x128xf32>, i32 -> vector<8x128xf32>
    %503 = vector.extract_strided_slice %502 {offsets = [0, 0], sizes = [8, 32], strides = [1, 1]} : vector<8x128xf32> to vector<8x32xf32>
    %c64_i32_148 = arith.constant 64 : i32
    %504 = tpu.dynamic_rotate %500 by %c64_i32_148 dim 1 : vector<8x128xf32>, i32 -> vector<8x128xf32>
    %505 = vector.extract_strided_slice %504 {offsets = [0, 0], sizes = [8, 32], strides = [1, 1]} : vector<8x128xf32> to vector<8x32xf32>
    %c32_i32_149 = arith.constant 32 : i32
    %506 = tpu.dynamic_rotate %500 by %c32_i32_149 dim 1 : vector<8x128xf32>, i32 -> vector<8x128xf32>
    %507 = vector.extract_strided_slice %506 {offsets = [0, 0], sizes = [8, 32], strides = [1, 1]} : vector<8x128xf32> to vector<8x32xf32>
    %508 = arith.mulf %503, %441 : vector<8x32xf32>
    %509 = arith.mulf %501, %505 : vector<8x32xf32>
    %510 = arith.addf %508, %509 : vector<8x32xf32>
    %511 = math.tanh %510 : vector<8x32xf32>
    %512 = arith.mulf %507, %511 : vector<8x32xf32>
    %513 = arith.truncf %512 : vector<8x32xf32> to vector<8x32xbf16>
    %c6 = arith.constant 6 : index
    %c0_150 = arith.constant 0 : index
    %c0_151 = arith.constant 0 : index
    %514 = vector.load %arg10[%c6, %c0_150, %c0_151] : memref<20x1x32xf32, #tpu.memory_space<vmem>>, vector<1x1x32xf32>
    %515 = vector.shape_cast %514 : vector<1x1x32xf32> to vector<1x32xf32>
    %516 = vector.broadcast %515 : vector<1x32xf32> to vector<8x32xf32>
    %517 = arith.mulf %512, %516 : vector<8x32xf32>
    %518 = arith.addf %449, %517 : vector<8x32xf32>
    %c56 = arith.constant 56 : index
    %c0_152 = arith.constant 0 : index
    %519 = vector.load %arg13[%c56, %c0_152] : memref<160x128xf32, #tpu.memory_space<vmem>>, vector<8x128xf32>
    %cst_153 = arith.constant dense<0.000000e+00> : vector<8x128xf32>
    %520 = tpu.matmul %469, %15, %cst_153 {dimension_numbers = #tpu.dot_dimension_numbers<[1], [0], [0], [1], [0, 0, 1, 1], [], []>} : vector<8x32xbf16>, vector<32x128xbf16>, vector<8x128xf32> -> vector<8x128xf32>
    %521 = arith.addf %519, %520 : vector<8x128xf32>
    %522 = arith.mulf %521, %8 : vector<8x128xf32>
    %523 = math.tanh %522 : vector<8x128xf32>
    %524 = arith.mulf %523, %8 : vector<8x128xf32>
    %525 = arith.addf %524, %11 : vector<8x128xf32>
    %526 = vector.extract_strided_slice %525 {offsets = [0, 0], sizes = [8, 32], strides = [1, 1]} : vector<8x128xf32> to vector<8x32xf32>
    %c96_i32_154 = arith.constant 96 : i32
    %527 = tpu.dynamic_rotate %525 by %c96_i32_154 dim 1 : vector<8x128xf32>, i32 -> vector<8x128xf32>
    %528 = vector.extract_strided_slice %527 {offsets = [0, 0], sizes = [8, 32], strides = [1, 1]} : vector<8x128xf32> to vector<8x32xf32>
    %c64_i32_155 = arith.constant 64 : i32
    %529 = tpu.dynamic_rotate %525 by %c64_i32_155 dim 1 : vector<8x128xf32>, i32 -> vector<8x128xf32>
    %530 = vector.extract_strided_slice %529 {offsets = [0, 0], sizes = [8, 32], strides = [1, 1]} : vector<8x128xf32> to vector<8x32xf32>
    %c32_i32_156 = arith.constant 32 : i32
    %531 = tpu.dynamic_rotate %525 by %c32_i32_156 dim 1 : vector<8x128xf32>, i32 -> vector<8x128xf32>
    %532 = vector.extract_strided_slice %531 {offsets = [0, 0], sizes = [8, 32], strides = [1, 1]} : vector<8x128xf32> to vector<8x32xf32>
    %533 = arith.mulf %528, %466 : vector<8x32xf32>
    %534 = arith.mulf %526, %530 : vector<8x32xf32>
    %535 = arith.addf %533, %534 : vector<8x32xf32>
    %536 = math.tanh %535 : vector<8x32xf32>
    %537 = arith.mulf %532, %536 : vector<8x32xf32>
    %538 = arith.truncf %537 : vector<8x32xf32> to vector<8x32xbf16>
    %cst_157 = arith.constant dense<0.000000e+00> : vector<8x128xf32>
    %539 = tpu.matmul %538, %13, %cst_157 {dimension_numbers = #tpu.dot_dimension_numbers<[1], [0], [0], [1], [0, 0, 1, 1], [], []>} : vector<8x32xbf16>, vector<32x128xbf16>, vector<8x128xf32> -> vector<8x128xf32>
    %cst_158 = arith.constant dense<0.000000e+00> : vector<8x128xf32>
    %540 = tpu.matmul %491, %16, %cst_158 {dimension_numbers = #tpu.dot_dimension_numbers<[1], [0], [0], [1], [0, 0, 1, 1], [], []>} : vector<8x32xbf16>, vector<32x128xbf16>, vector<8x128xf32> -> vector<8x128xf32>
    %541 = arith.addf %539, %540 : vector<8x128xf32>
    %542 = vector.broadcast %19 : vector<1x128xf32> to vector<8x128xf32>
    %543 = arith.addf %541, %542 : vector<8x128xf32>
    %544 = arith.mulf %543, %8 : vector<8x128xf32>
    %545 = math.tanh %544 : vector<8x128xf32>
    %546 = arith.mulf %545, %8 : vector<8x128xf32>
    %547 = arith.addf %546, %11 : vector<8x128xf32>
    %548 = vector.extract_strided_slice %547 {offsets = [0, 0], sizes = [8, 32], strides = [1, 1]} : vector<8x128xf32> to vector<8x32xf32>
    %c96_i32_159 = arith.constant 96 : i32
    %549 = tpu.dynamic_rotate %547 by %c96_i32_159 dim 1 : vector<8x128xf32>, i32 -> vector<8x128xf32>
    %550 = vector.extract_strided_slice %549 {offsets = [0, 0], sizes = [8, 32], strides = [1, 1]} : vector<8x128xf32> to vector<8x32xf32>
    %c64_i32_160 = arith.constant 64 : i32
    %551 = tpu.dynamic_rotate %547 by %c64_i32_160 dim 1 : vector<8x128xf32>, i32 -> vector<8x128xf32>
    %552 = vector.extract_strided_slice %551 {offsets = [0, 0], sizes = [8, 32], strides = [1, 1]} : vector<8x128xf32> to vector<8x32xf32>
    %c32_i32_161 = arith.constant 32 : i32
    %553 = tpu.dynamic_rotate %547 by %c32_i32_161 dim 1 : vector<8x128xf32>, i32 -> vector<8x128xf32>
    %554 = vector.extract_strided_slice %553 {offsets = [0, 0], sizes = [8, 32], strides = [1, 1]} : vector<8x128xf32> to vector<8x32xf32>
    %555 = arith.mulf %550, %488 : vector<8x32xf32>
    %556 = arith.mulf %548, %552 : vector<8x32xf32>
    %557 = arith.addf %555, %556 : vector<8x32xf32>
    %558 = math.tanh %557 : vector<8x32xf32>
    %559 = arith.mulf %554, %558 : vector<8x32xf32>
    %560 = arith.truncf %559 : vector<8x32xf32> to vector<8x32xbf16>
    %cst_162 = arith.constant dense<0.000000e+00> : vector<8x128xf32>
    %561 = tpu.matmul %560, %14, %cst_162 {dimension_numbers = #tpu.dot_dimension_numbers<[1], [0], [0], [1], [0, 0, 1, 1], [], []>} : vector<8x32xbf16>, vector<32x128xbf16>, vector<8x128xf32> -> vector<8x128xf32>
    %cst_163 = arith.constant dense<0.000000e+00> : vector<8x128xf32>
    %562 = tpu.matmul %513, %17, %cst_163 {dimension_numbers = #tpu.dot_dimension_numbers<[1], [0], [0], [1], [0, 0, 1, 1], [], []>} : vector<8x32xbf16>, vector<32x128xbf16>, vector<8x128xf32> -> vector<8x128xf32>
    %563 = arith.addf %561, %562 : vector<8x128xf32>
    %564 = vector.broadcast %20 : vector<1x128xf32> to vector<8x128xf32>
    %565 = arith.addf %563, %564 : vector<8x128xf32>
    %566 = arith.mulf %565, %8 : vector<8x128xf32>
    %567 = math.tanh %566 : vector<8x128xf32>
    %568 = arith.mulf %567, %8 : vector<8x128xf32>
    %569 = arith.addf %568, %11 : vector<8x128xf32>
    %570 = vector.extract_strided_slice %569 {offsets = [0, 0], sizes = [8, 32], strides = [1, 1]} : vector<8x128xf32> to vector<8x32xf32>
    %c96_i32_164 = arith.constant 96 : i32
    %571 = tpu.dynamic_rotate %569 by %c96_i32_164 dim 1 : vector<8x128xf32>, i32 -> vector<8x128xf32>
    %572 = vector.extract_strided_slice %571 {offsets = [0, 0], sizes = [8, 32], strides = [1, 1]} : vector<8x128xf32> to vector<8x32xf32>
    %c64_i32_165 = arith.constant 64 : i32
    %573 = tpu.dynamic_rotate %569 by %c64_i32_165 dim 1 : vector<8x128xf32>, i32 -> vector<8x128xf32>
    %574 = vector.extract_strided_slice %573 {offsets = [0, 0], sizes = [8, 32], strides = [1, 1]} : vector<8x128xf32> to vector<8x32xf32>
    %c32_i32_166 = arith.constant 32 : i32
    %575 = tpu.dynamic_rotate %569 by %c32_i32_166 dim 1 : vector<8x128xf32>, i32 -> vector<8x128xf32>
    %576 = vector.extract_strided_slice %575 {offsets = [0, 0], sizes = [8, 32], strides = [1, 1]} : vector<8x128xf32> to vector<8x32xf32>
    %577 = arith.mulf %572, %510 : vector<8x32xf32>
    %578 = arith.mulf %570, %574 : vector<8x32xf32>
    %579 = arith.addf %577, %578 : vector<8x32xf32>
    %580 = math.tanh %579 : vector<8x32xf32>
    %581 = arith.mulf %576, %580 : vector<8x32xf32>
    %582 = arith.truncf %581 : vector<8x32xf32> to vector<8x32xbf16>
    %c7 = arith.constant 7 : index
    %c0_167 = arith.constant 0 : index
    %c0_168 = arith.constant 0 : index
    %583 = vector.load %arg10[%c7, %c0_167, %c0_168] : memref<20x1x32xf32, #tpu.memory_space<vmem>>, vector<1x1x32xf32>
    %584 = vector.shape_cast %583 : vector<1x1x32xf32> to vector<1x32xf32>
    %585 = vector.broadcast %584 : vector<1x32xf32> to vector<8x32xf32>
    %586 = arith.mulf %581, %585 : vector<8x32xf32>
    %587 = arith.addf %518, %586 : vector<8x32xf32>
    %c64 = arith.constant 64 : index
    %c0_169 = arith.constant 0 : index
    %588 = vector.load %arg13[%c64, %c0_169] : memref<160x128xf32, #tpu.memory_space<vmem>>, vector<8x128xf32>
    %cst_170 = arith.constant dense<0.000000e+00> : vector<8x128xf32>
    %589 = tpu.matmul %538, %15, %cst_170 {dimension_numbers = #tpu.dot_dimension_numbers<[1], [0], [0], [1], [0, 0, 1, 1], [], []>} : vector<8x32xbf16>, vector<32x128xbf16>, vector<8x128xf32> -> vector<8x128xf32>
    %590 = arith.addf %588, %589 : vector<8x128xf32>
    %591 = arith.mulf %590, %8 : vector<8x128xf32>
    %592 = math.tanh %591 : vector<8x128xf32>
    %593 = arith.mulf %592, %8 : vector<8x128xf32>
    %594 = arith.addf %593, %11 : vector<8x128xf32>
    %595 = vector.extract_strided_slice %594 {offsets = [0, 0], sizes = [8, 32], strides = [1, 1]} : vector<8x128xf32> to vector<8x32xf32>
    %c96_i32_171 = arith.constant 96 : i32
    %596 = tpu.dynamic_rotate %594 by %c96_i32_171 dim 1 : vector<8x128xf32>, i32 -> vector<8x128xf32>
    %597 = vector.extract_strided_slice %596 {offsets = [0, 0], sizes = [8, 32], strides = [1, 1]} : vector<8x128xf32> to vector<8x32xf32>
    %c64_i32_172 = arith.constant 64 : i32
    %598 = tpu.dynamic_rotate %594 by %c64_i32_172 dim 1 : vector<8x128xf32>, i32 -> vector<8x128xf32>
    %599 = vector.extract_strided_slice %598 {offsets = [0, 0], sizes = [8, 32], strides = [1, 1]} : vector<8x128xf32> to vector<8x32xf32>
    %c32_i32_173 = arith.constant 32 : i32
    %600 = tpu.dynamic_rotate %594 by %c32_i32_173 dim 1 : vector<8x128xf32>, i32 -> vector<8x128xf32>
    %601 = vector.extract_strided_slice %600 {offsets = [0, 0], sizes = [8, 32], strides = [1, 1]} : vector<8x128xf32> to vector<8x32xf32>
    %602 = arith.mulf %597, %535 : vector<8x32xf32>
    %603 = arith.mulf %595, %599 : vector<8x32xf32>
    %604 = arith.addf %602, %603 : vector<8x32xf32>
    %605 = math.tanh %604 : vector<8x32xf32>
    %606 = arith.mulf %601, %605 : vector<8x32xf32>
    %607 = arith.truncf %606 : vector<8x32xf32> to vector<8x32xbf16>
    %cst_174 = arith.constant dense<0.000000e+00> : vector<8x128xf32>
    %608 = tpu.matmul %607, %13, %cst_174 {dimension_numbers = #tpu.dot_dimension_numbers<[1], [0], [0], [1], [0, 0, 1, 1], [], []>} : vector<8x32xbf16>, vector<32x128xbf16>, vector<8x128xf32> -> vector<8x128xf32>
    %cst_175 = arith.constant dense<0.000000e+00> : vector<8x128xf32>
    %609 = tpu.matmul %560, %16, %cst_175 {dimension_numbers = #tpu.dot_dimension_numbers<[1], [0], [0], [1], [0, 0, 1, 1], [], []>} : vector<8x32xbf16>, vector<32x128xbf16>, vector<8x128xf32> -> vector<8x128xf32>
    %610 = arith.addf %608, %609 : vector<8x128xf32>
    %611 = vector.broadcast %19 : vector<1x128xf32> to vector<8x128xf32>
    %612 = arith.addf %610, %611 : vector<8x128xf32>
    %613 = arith.mulf %612, %8 : vector<8x128xf32>
    %614 = math.tanh %613 : vector<8x128xf32>
    %615 = arith.mulf %614, %8 : vector<8x128xf32>
    %616 = arith.addf %615, %11 : vector<8x128xf32>
    %617 = vector.extract_strided_slice %616 {offsets = [0, 0], sizes = [8, 32], strides = [1, 1]} : vector<8x128xf32> to vector<8x32xf32>
    %c96_i32_176 = arith.constant 96 : i32
    %618 = tpu.dynamic_rotate %616 by %c96_i32_176 dim 1 : vector<8x128xf32>, i32 -> vector<8x128xf32>
    %619 = vector.extract_strided_slice %618 {offsets = [0, 0], sizes = [8, 32], strides = [1, 1]} : vector<8x128xf32> to vector<8x32xf32>
    %c64_i32_177 = arith.constant 64 : i32
    %620 = tpu.dynamic_rotate %616 by %c64_i32_177 dim 1 : vector<8x128xf32>, i32 -> vector<8x128xf32>
    %621 = vector.extract_strided_slice %620 {offsets = [0, 0], sizes = [8, 32], strides = [1, 1]} : vector<8x128xf32> to vector<8x32xf32>
    %c32_i32_178 = arith.constant 32 : i32
    %622 = tpu.dynamic_rotate %616 by %c32_i32_178 dim 1 : vector<8x128xf32>, i32 -> vector<8x128xf32>
    %623 = vector.extract_strided_slice %622 {offsets = [0, 0], sizes = [8, 32], strides = [1, 1]} : vector<8x128xf32> to vector<8x32xf32>
    %624 = arith.mulf %619, %557 : vector<8x32xf32>
    %625 = arith.mulf %617, %621 : vector<8x32xf32>
    %626 = arith.addf %624, %625 : vector<8x32xf32>
    %627 = math.tanh %626 : vector<8x32xf32>
    %628 = arith.mulf %623, %627 : vector<8x32xf32>
    %629 = arith.truncf %628 : vector<8x32xf32> to vector<8x32xbf16>
    %cst_179 = arith.constant dense<0.000000e+00> : vector<8x128xf32>
    %630 = tpu.matmul %629, %14, %cst_179 {dimension_numbers = #tpu.dot_dimension_numbers<[1], [0], [0], [1], [0, 0, 1, 1], [], []>} : vector<8x32xbf16>, vector<32x128xbf16>, vector<8x128xf32> -> vector<8x128xf32>
    %cst_180 = arith.constant dense<0.000000e+00> : vector<8x128xf32>
    %631 = tpu.matmul %582, %17, %cst_180 {dimension_numbers = #tpu.dot_dimension_numbers<[1], [0], [0], [1], [0, 0, 1, 1], [], []>} : vector<8x32xbf16>, vector<32x128xbf16>, vector<8x128xf32> -> vector<8x128xf32>
    %632 = arith.addf %630, %631 : vector<8x128xf32>
    %633 = vector.broadcast %20 : vector<1x128xf32> to vector<8x128xf32>
    %634 = arith.addf %632, %633 : vector<8x128xf32>
    %635 = arith.mulf %634, %8 : vector<8x128xf32>
    %636 = math.tanh %635 : vector<8x128xf32>
    %637 = arith.mulf %636, %8 : vector<8x128xf32>
    %638 = arith.addf %637, %11 : vector<8x128xf32>
    %639 = vector.extract_strided_slice %638 {offsets = [0, 0], sizes = [8, 32], strides = [1, 1]} : vector<8x128xf32> to vector<8x32xf32>
    %c96_i32_181 = arith.constant 96 : i32
    %640 = tpu.dynamic_rotate %638 by %c96_i32_181 dim 1 : vector<8x128xf32>, i32 -> vector<8x128xf32>
    %641 = vector.extract_strided_slice %640 {offsets = [0, 0], sizes = [8, 32], strides = [1, 1]} : vector<8x128xf32> to vector<8x32xf32>
    %c64_i32_182 = arith.constant 64 : i32
    %642 = tpu.dynamic_rotate %638 by %c64_i32_182 dim 1 : vector<8x128xf32>, i32 -> vector<8x128xf32>
    %643 = vector.extract_strided_slice %642 {offsets = [0, 0], sizes = [8, 32], strides = [1, 1]} : vector<8x128xf32> to vector<8x32xf32>
    %c32_i32_183 = arith.constant 32 : i32
    %644 = tpu.dynamic_rotate %638 by %c32_i32_183 dim 1 : vector<8x128xf32>, i32 -> vector<8x128xf32>
    %645 = vector.extract_strided_slice %644 {offsets = [0, 0], sizes = [8, 32], strides = [1, 1]} : vector<8x128xf32> to vector<8x32xf32>
    %646 = arith.mulf %641, %579 : vector<8x32xf32>
    %647 = arith.mulf %639, %643 : vector<8x32xf32>
    %648 = arith.addf %646, %647 : vector<8x32xf32>
    %649 = math.tanh %648 : vector<8x32xf32>
    %650 = arith.mulf %645, %649 : vector<8x32xf32>
    %651 = arith.truncf %650 : vector<8x32xf32> to vector<8x32xbf16>
    %c8_184 = arith.constant 8 : index
    %c0_185 = arith.constant 0 : index
    %c0_186 = arith.constant 0 : index
    %652 = vector.load %arg10[%c8_184, %c0_185, %c0_186] : memref<20x1x32xf32, #tpu.memory_space<vmem>>, vector<1x1x32xf32>
    %653 = vector.shape_cast %652 : vector<1x1x32xf32> to vector<1x32xf32>
    %654 = vector.broadcast %653 : vector<1x32xf32> to vector<8x32xf32>
    %655 = arith.mulf %650, %654 : vector<8x32xf32>
    %656 = arith.addf %587, %655 : vector<8x32xf32>
    %c72 = arith.constant 72 : index
    %c0_187 = arith.constant 0 : index
    %657 = vector.load %arg13[%c72, %c0_187] : memref<160x128xf32, #tpu.memory_space<vmem>>, vector<8x128xf32>
    %cst_188 = arith.constant dense<0.000000e+00> : vector<8x128xf32>
    %658 = tpu.matmul %607, %15, %cst_188 {dimension_numbers = #tpu.dot_dimension_numbers<[1], [0], [0], [1], [0, 0, 1, 1], [], []>} : vector<8x32xbf16>, vector<32x128xbf16>, vector<8x128xf32> -> vector<8x128xf32>
    %659 = arith.addf %657, %658 : vector<8x128xf32>
    %660 = arith.mulf %659, %8 : vector<8x128xf32>
    %661 = math.tanh %660 : vector<8x128xf32>
    %662 = arith.mulf %661, %8 : vector<8x128xf32>
    %663 = arith.addf %662, %11 : vector<8x128xf32>
    %664 = vector.extract_strided_slice %663 {offsets = [0, 0], sizes = [8, 32], strides = [1, 1]} : vector<8x128xf32> to vector<8x32xf32>
    %c96_i32_189 = arith.constant 96 : i32
    %665 = tpu.dynamic_rotate %663 by %c96_i32_189 dim 1 : vector<8x128xf32>, i32 -> vector<8x128xf32>
    %666 = vector.extract_strided_slice %665 {offsets = [0, 0], sizes = [8, 32], strides = [1, 1]} : vector<8x128xf32> to vector<8x32xf32>
    %c64_i32_190 = arith.constant 64 : i32
    %667 = tpu.dynamic_rotate %663 by %c64_i32_190 dim 1 : vector<8x128xf32>, i32 -> vector<8x128xf32>
    %668 = vector.extract_strided_slice %667 {offsets = [0, 0], sizes = [8, 32], strides = [1, 1]} : vector<8x128xf32> to vector<8x32xf32>
    %c32_i32_191 = arith.constant 32 : i32
    %669 = tpu.dynamic_rotate %663 by %c32_i32_191 dim 1 : vector<8x128xf32>, i32 -> vector<8x128xf32>
    %670 = vector.extract_strided_slice %669 {offsets = [0, 0], sizes = [8, 32], strides = [1, 1]} : vector<8x128xf32> to vector<8x32xf32>
    %671 = arith.mulf %666, %604 : vector<8x32xf32>
    %672 = arith.mulf %664, %668 : vector<8x32xf32>
    %673 = arith.addf %671, %672 : vector<8x32xf32>
    %674 = math.tanh %673 : vector<8x32xf32>
    %675 = arith.mulf %670, %674 : vector<8x32xf32>
    %676 = arith.truncf %675 : vector<8x32xf32> to vector<8x32xbf16>
    %cst_192 = arith.constant dense<0.000000e+00> : vector<8x128xf32>
    %677 = tpu.matmul %676, %13, %cst_192 {dimension_numbers = #tpu.dot_dimension_numbers<[1], [0], [0], [1], [0, 0, 1, 1], [], []>} : vector<8x32xbf16>, vector<32x128xbf16>, vector<8x128xf32> -> vector<8x128xf32>
    %cst_193 = arith.constant dense<0.000000e+00> : vector<8x128xf32>
    %678 = tpu.matmul %629, %16, %cst_193 {dimension_numbers = #tpu.dot_dimension_numbers<[1], [0], [0], [1], [0, 0, 1, 1], [], []>} : vector<8x32xbf16>, vector<32x128xbf16>, vector<8x128xf32> -> vector<8x128xf32>
    %679 = arith.addf %677, %678 : vector<8x128xf32>
    %680 = vector.broadcast %19 : vector<1x128xf32> to vector<8x128xf32>
    %681 = arith.addf %679, %680 : vector<8x128xf32>
    %682 = arith.mulf %681, %8 : vector<8x128xf32>
    %683 = math.tanh %682 : vector<8x128xf32>
    %684 = arith.mulf %683, %8 : vector<8x128xf32>
    %685 = arith.addf %684, %11 : vector<8x128xf32>
    %686 = vector.extract_strided_slice %685 {offsets = [0, 0], sizes = [8, 32], strides = [1, 1]} : vector<8x128xf32> to vector<8x32xf32>
    %c96_i32_194 = arith.constant 96 : i32
    %687 = tpu.dynamic_rotate %685 by %c96_i32_194 dim 1 : vector<8x128xf32>, i32 -> vector<8x128xf32>
    %688 = vector.extract_strided_slice %687 {offsets = [0, 0], sizes = [8, 32], strides = [1, 1]} : vector<8x128xf32> to vector<8x32xf32>
    %c64_i32_195 = arith.constant 64 : i32
    %689 = tpu.dynamic_rotate %685 by %c64_i32_195 dim 1 : vector<8x128xf32>, i32 -> vector<8x128xf32>
    %690 = vector.extract_strided_slice %689 {offsets = [0, 0], sizes = [8, 32], strides = [1, 1]} : vector<8x128xf32> to vector<8x32xf32>
    %c32_i32_196 = arith.constant 32 : i32
    %691 = tpu.dynamic_rotate %685 by %c32_i32_196 dim 1 : vector<8x128xf32>, i32 -> vector<8x128xf32>
    %692 = vector.extract_strided_slice %691 {offsets = [0, 0], sizes = [8, 32], strides = [1, 1]} : vector<8x128xf32> to vector<8x32xf32>
    %693 = arith.mulf %688, %626 : vector<8x32xf32>
    %694 = arith.mulf %686, %690 : vector<8x32xf32>
    %695 = arith.addf %693, %694 : vector<8x32xf32>
    %696 = math.tanh %695 : vector<8x32xf32>
    %697 = arith.mulf %692, %696 : vector<8x32xf32>
    %698 = arith.truncf %697 : vector<8x32xf32> to vector<8x32xbf16>
    %cst_197 = arith.constant dense<0.000000e+00> : vector<8x128xf32>
    %699 = tpu.matmul %698, %14, %cst_197 {dimension_numbers = #tpu.dot_dimension_numbers<[1], [0], [0], [1], [0, 0, 1, 1], [], []>} : vector<8x32xbf16>, vector<32x128xbf16>, vector<8x128xf32> -> vector<8x128xf32>
    %cst_198 = arith.constant dense<0.000000e+00> : vector<8x128xf32>
    %700 = tpu.matmul %651, %17, %cst_198 {dimension_numbers = #tpu.dot_dimension_numbers<[1], [0], [0], [1], [0, 0, 1, 1], [], []>} : vector<8x32xbf16>, vector<32x128xbf16>, vector<8x128xf32> -> vector<8x128xf32>
    %701 = arith.addf %699, %700 : vector<8x128xf32>
    %702 = vector.broadcast %20 : vector<1x128xf32> to vector<8x128xf32>
    %703 = arith.addf %701, %702 : vector<8x128xf32>
    %704 = arith.mulf %703, %8 : vector<8x128xf32>
    %705 = math.tanh %704 : vector<8x128xf32>
    %706 = arith.mulf %705, %8 : vector<8x128xf32>
    %707 = arith.addf %706, %11 : vector<8x128xf32>
    %708 = vector.extract_strided_slice %707 {offsets = [0, 0], sizes = [8, 32], strides = [1, 1]} : vector<8x128xf32> to vector<8x32xf32>
    %c96_i32_199 = arith.constant 96 : i32
    %709 = tpu.dynamic_rotate %707 by %c96_i32_199 dim 1 : vector<8x128xf32>, i32 -> vector<8x128xf32>
    %710 = vector.extract_strided_slice %709 {offsets = [0, 0], sizes = [8, 32], strides = [1, 1]} : vector<8x128xf32> to vector<8x32xf32>
    %c64_i32_200 = arith.constant 64 : i32
    %711 = tpu.dynamic_rotate %707 by %c64_i32_200 dim 1 : vector<8x128xf32>, i32 -> vector<8x128xf32>
    %712 = vector.extract_strided_slice %711 {offsets = [0, 0], sizes = [8, 32], strides = [1, 1]} : vector<8x128xf32> to vector<8x32xf32>
    %c32_i32_201 = arith.constant 32 : i32
    %713 = tpu.dynamic_rotate %707 by %c32_i32_201 dim 1 : vector<8x128xf32>, i32 -> vector<8x128xf32>
    %714 = vector.extract_strided_slice %713 {offsets = [0, 0], sizes = [8, 32], strides = [1, 1]} : vector<8x128xf32> to vector<8x32xf32>
    %715 = arith.mulf %710, %648 : vector<8x32xf32>
    %716 = arith.mulf %708, %712 : vector<8x32xf32>
    %717 = arith.addf %715, %716 : vector<8x32xf32>
    %718 = math.tanh %717 : vector<8x32xf32>
    %719 = arith.mulf %714, %718 : vector<8x32xf32>
    %720 = arith.truncf %719 : vector<8x32xf32> to vector<8x32xbf16>
    %c9 = arith.constant 9 : index
    %c0_202 = arith.constant 0 : index
    %c0_203 = arith.constant 0 : index
    %721 = vector.load %arg10[%c9, %c0_202, %c0_203] : memref<20x1x32xf32, #tpu.memory_space<vmem>>, vector<1x1x32xf32>
    %722 = vector.shape_cast %721 : vector<1x1x32xf32> to vector<1x32xf32>
    %723 = vector.broadcast %722 : vector<1x32xf32> to vector<8x32xf32>
    %724 = arith.mulf %719, %723 : vector<8x32xf32>
    %725 = arith.addf %656, %724 : vector<8x32xf32>
    %c80 = arith.constant 80 : index
    %c0_204 = arith.constant 0 : index
    %726 = vector.load %arg13[%c80, %c0_204] : memref<160x128xf32, #tpu.memory_space<vmem>>, vector<8x128xf32>
    %cst_205 = arith.constant dense<0.000000e+00> : vector<8x128xf32>
    %727 = tpu.matmul %676, %15, %cst_205 {dimension_numbers = #tpu.dot_dimension_numbers<[1], [0], [0], [1], [0, 0, 1, 1], [], []>} : vector<8x32xbf16>, vector<32x128xbf16>, vector<8x128xf32> -> vector<8x128xf32>
    %728 = arith.addf %726, %727 : vector<8x128xf32>
    %729 = arith.mulf %728, %8 : vector<8x128xf32>
    %730 = math.tanh %729 : vector<8x128xf32>
    %731 = arith.mulf %730, %8 : vector<8x128xf32>
    %732 = arith.addf %731, %11 : vector<8x128xf32>
    %733 = vector.extract_strided_slice %732 {offsets = [0, 0], sizes = [8, 32], strides = [1, 1]} : vector<8x128xf32> to vector<8x32xf32>
    %c96_i32_206 = arith.constant 96 : i32
    %734 = tpu.dynamic_rotate %732 by %c96_i32_206 dim 1 : vector<8x128xf32>, i32 -> vector<8x128xf32>
    %735 = vector.extract_strided_slice %734 {offsets = [0, 0], sizes = [8, 32], strides = [1, 1]} : vector<8x128xf32> to vector<8x32xf32>
    %c64_i32_207 = arith.constant 64 : i32
    %736 = tpu.dynamic_rotate %732 by %c64_i32_207 dim 1 : vector<8x128xf32>, i32 -> vector<8x128xf32>
    %737 = vector.extract_strided_slice %736 {offsets = [0, 0], sizes = [8, 32], strides = [1, 1]} : vector<8x128xf32> to vector<8x32xf32>
    %c32_i32_208 = arith.constant 32 : i32
    %738 = tpu.dynamic_rotate %732 by %c32_i32_208 dim 1 : vector<8x128xf32>, i32 -> vector<8x128xf32>
    %739 = vector.extract_strided_slice %738 {offsets = [0, 0], sizes = [8, 32], strides = [1, 1]} : vector<8x128xf32> to vector<8x32xf32>
    %740 = arith.mulf %735, %673 : vector<8x32xf32>
    %741 = arith.mulf %733, %737 : vector<8x32xf32>
    %742 = arith.addf %740, %741 : vector<8x32xf32>
    %743 = math.tanh %742 : vector<8x32xf32>
    %744 = arith.mulf %739, %743 : vector<8x32xf32>
    %745 = arith.truncf %744 : vector<8x32xf32> to vector<8x32xbf16>
    %cst_209 = arith.constant dense<0.000000e+00> : vector<8x128xf32>
    %746 = tpu.matmul %745, %13, %cst_209 {dimension_numbers = #tpu.dot_dimension_numbers<[1], [0], [0], [1], [0, 0, 1, 1], [], []>} : vector<8x32xbf16>, vector<32x128xbf16>, vector<8x128xf32> -> vector<8x128xf32>
    %cst_210 = arith.constant dense<0.000000e+00> : vector<8x128xf32>
    %747 = tpu.matmul %698, %16, %cst_210 {dimension_numbers = #tpu.dot_dimension_numbers<[1], [0], [0], [1], [0, 0, 1, 1], [], []>} : vector<8x32xbf16>, vector<32x128xbf16>, vector<8x128xf32> -> vector<8x128xf32>
    %748 = arith.addf %746, %747 : vector<8x128xf32>
    %749 = vector.broadcast %19 : vector<1x128xf32> to vector<8x128xf32>
    %750 = arith.addf %748, %749 : vector<8x128xf32>
    %751 = arith.mulf %750, %8 : vector<8x128xf32>
    %752 = math.tanh %751 : vector<8x128xf32>
    %753 = arith.mulf %752, %8 : vector<8x128xf32>
    %754 = arith.addf %753, %11 : vector<8x128xf32>
    %755 = vector.extract_strided_slice %754 {offsets = [0, 0], sizes = [8, 32], strides = [1, 1]} : vector<8x128xf32> to vector<8x32xf32>
    %c96_i32_211 = arith.constant 96 : i32
    %756 = tpu.dynamic_rotate %754 by %c96_i32_211 dim 1 : vector<8x128xf32>, i32 -> vector<8x128xf32>
    %757 = vector.extract_strided_slice %756 {offsets = [0, 0], sizes = [8, 32], strides = [1, 1]} : vector<8x128xf32> to vector<8x32xf32>
    %c64_i32_212 = arith.constant 64 : i32
    %758 = tpu.dynamic_rotate %754 by %c64_i32_212 dim 1 : vector<8x128xf32>, i32 -> vector<8x128xf32>
    %759 = vector.extract_strided_slice %758 {offsets = [0, 0], sizes = [8, 32], strides = [1, 1]} : vector<8x128xf32> to vector<8x32xf32>
    %c32_i32_213 = arith.constant 32 : i32
    %760 = tpu.dynamic_rotate %754 by %c32_i32_213 dim 1 : vector<8x128xf32>, i32 -> vector<8x128xf32>
    %761 = vector.extract_strided_slice %760 {offsets = [0, 0], sizes = [8, 32], strides = [1, 1]} : vector<8x128xf32> to vector<8x32xf32>
    %762 = arith.mulf %757, %695 : vector<8x32xf32>
    %763 = arith.mulf %755, %759 : vector<8x32xf32>
    %764 = arith.addf %762, %763 : vector<8x32xf32>
    %765 = math.tanh %764 : vector<8x32xf32>
    %766 = arith.mulf %761, %765 : vector<8x32xf32>
    %767 = arith.truncf %766 : vector<8x32xf32> to vector<8x32xbf16>
    %cst_214 = arith.constant dense<0.000000e+00> : vector<8x128xf32>
    %768 = tpu.matmul %767, %14, %cst_214 {dimension_numbers = #tpu.dot_dimension_numbers<[1], [0], [0], [1], [0, 0, 1, 1], [], []>} : vector<8x32xbf16>, vector<32x128xbf16>, vector<8x128xf32> -> vector<8x128xf32>
    %cst_215 = arith.constant dense<0.000000e+00> : vector<8x128xf32>
    %769 = tpu.matmul %720, %17, %cst_215 {dimension_numbers = #tpu.dot_dimension_numbers<[1], [0], [0], [1], [0, 0, 1, 1], [], []>} : vector<8x32xbf16>, vector<32x128xbf16>, vector<8x128xf32> -> vector<8x128xf32>
    %770 = arith.addf %768, %769 : vector<8x128xf32>
    %771 = vector.broadcast %20 : vector<1x128xf32> to vector<8x128xf32>
    %772 = arith.addf %770, %771 : vector<8x128xf32>
    %773 = arith.mulf %772, %8 : vector<8x128xf32>
    %774 = math.tanh %773 : vector<8x128xf32>
    %775 = arith.mulf %774, %8 : vector<8x128xf32>
    %776 = arith.addf %775, %11 : vector<8x128xf32>
    %777 = vector.extract_strided_slice %776 {offsets = [0, 0], sizes = [8, 32], strides = [1, 1]} : vector<8x128xf32> to vector<8x32xf32>
    %c96_i32_216 = arith.constant 96 : i32
    %778 = tpu.dynamic_rotate %776 by %c96_i32_216 dim 1 : vector<8x128xf32>, i32 -> vector<8x128xf32>
    %779 = vector.extract_strided_slice %778 {offsets = [0, 0], sizes = [8, 32], strides = [1, 1]} : vector<8x128xf32> to vector<8x32xf32>
    %c64_i32_217 = arith.constant 64 : i32
    %780 = tpu.dynamic_rotate %776 by %c64_i32_217 dim 1 : vector<8x128xf32>, i32 -> vector<8x128xf32>
    %781 = vector.extract_strided_slice %780 {offsets = [0, 0], sizes = [8, 32], strides = [1, 1]} : vector<8x128xf32> to vector<8x32xf32>
    %c32_i32_218 = arith.constant 32 : i32
    %782 = tpu.dynamic_rotate %776 by %c32_i32_218 dim 1 : vector<8x128xf32>, i32 -> vector<8x128xf32>
    %783 = vector.extract_strided_slice %782 {offsets = [0, 0], sizes = [8, 32], strides = [1, 1]} : vector<8x128xf32> to vector<8x32xf32>
    %784 = arith.mulf %779, %717 : vector<8x32xf32>
    %785 = arith.mulf %777, %781 : vector<8x32xf32>
    %786 = arith.addf %784, %785 : vector<8x32xf32>
    %787 = math.tanh %786 : vector<8x32xf32>
    %788 = arith.mulf %783, %787 : vector<8x32xf32>
    %789 = arith.truncf %788 : vector<8x32xf32> to vector<8x32xbf16>
    %c10 = arith.constant 10 : index
    %c0_219 = arith.constant 0 : index
    %c0_220 = arith.constant 0 : index
    %790 = vector.load %arg10[%c10, %c0_219, %c0_220] : memref<20x1x32xf32, #tpu.memory_space<vmem>>, vector<1x1x32xf32>
    %791 = vector.shape_cast %790 : vector<1x1x32xf32> to vector<1x32xf32>
    %792 = vector.broadcast %791 : vector<1x32xf32> to vector<8x32xf32>
    %793 = arith.mulf %788, %792 : vector<8x32xf32>
    %794 = arith.addf %725, %793 : vector<8x32xf32>
    %c88 = arith.constant 88 : index
    %c0_221 = arith.constant 0 : index
    %795 = vector.load %arg13[%c88, %c0_221] : memref<160x128xf32, #tpu.memory_space<vmem>>, vector<8x128xf32>
    %cst_222 = arith.constant dense<0.000000e+00> : vector<8x128xf32>
    %796 = tpu.matmul %745, %15, %cst_222 {dimension_numbers = #tpu.dot_dimension_numbers<[1], [0], [0], [1], [0, 0, 1, 1], [], []>} : vector<8x32xbf16>, vector<32x128xbf16>, vector<8x128xf32> -> vector<8x128xf32>
    %797 = arith.addf %795, %796 : vector<8x128xf32>
    %798 = arith.mulf %797, %8 : vector<8x128xf32>
    %799 = math.tanh %798 : vector<8x128xf32>
    %800 = arith.mulf %799, %8 : vector<8x128xf32>
    %801 = arith.addf %800, %11 : vector<8x128xf32>
    %802 = vector.extract_strided_slice %801 {offsets = [0, 0], sizes = [8, 32], strides = [1, 1]} : vector<8x128xf32> to vector<8x32xf32>
    %c96_i32_223 = arith.constant 96 : i32
    %803 = tpu.dynamic_rotate %801 by %c96_i32_223 dim 1 : vector<8x128xf32>, i32 -> vector<8x128xf32>
    %804 = vector.extract_strided_slice %803 {offsets = [0, 0], sizes = [8, 32], strides = [1, 1]} : vector<8x128xf32> to vector<8x32xf32>
    %c64_i32_224 = arith.constant 64 : i32
    %805 = tpu.dynamic_rotate %801 by %c64_i32_224 dim 1 : vector<8x128xf32>, i32 -> vector<8x128xf32>
    %806 = vector.extract_strided_slice %805 {offsets = [0, 0], sizes = [8, 32], strides = [1, 1]} : vector<8x128xf32> to vector<8x32xf32>
    %c32_i32_225 = arith.constant 32 : i32
    %807 = tpu.dynamic_rotate %801 by %c32_i32_225 dim 1 : vector<8x128xf32>, i32 -> vector<8x128xf32>
    %808 = vector.extract_strided_slice %807 {offsets = [0, 0], sizes = [8, 32], strides = [1, 1]} : vector<8x128xf32> to vector<8x32xf32>
    %809 = arith.mulf %804, %742 : vector<8x32xf32>
    %810 = arith.mulf %802, %806 : vector<8x32xf32>
    %811 = arith.addf %809, %810 : vector<8x32xf32>
    %812 = math.tanh %811 : vector<8x32xf32>
    %813 = arith.mulf %808, %812 : vector<8x32xf32>
    %814 = arith.truncf %813 : vector<8x32xf32> to vector<8x32xbf16>
    %cst_226 = arith.constant dense<0.000000e+00> : vector<8x128xf32>
    %815 = tpu.matmul %814, %13, %cst_226 {dimension_numbers = #tpu.dot_dimension_numbers<[1], [0], [0], [1], [0, 0, 1, 1], [], []>} : vector<8x32xbf16>, vector<32x128xbf16>, vector<8x128xf32> -> vector<8x128xf32>
    %cst_227 = arith.constant dense<0.000000e+00> : vector<8x128xf32>
    %816 = tpu.matmul %767, %16, %cst_227 {dimension_numbers = #tpu.dot_dimension_numbers<[1], [0], [0], [1], [0, 0, 1, 1], [], []>} : vector<8x32xbf16>, vector<32x128xbf16>, vector<8x128xf32> -> vector<8x128xf32>
    %817 = arith.addf %815, %816 : vector<8x128xf32>
    %818 = vector.broadcast %19 : vector<1x128xf32> to vector<8x128xf32>
    %819 = arith.addf %817, %818 : vector<8x128xf32>
    %820 = arith.mulf %819, %8 : vector<8x128xf32>
    %821 = math.tanh %820 : vector<8x128xf32>
    %822 = arith.mulf %821, %8 : vector<8x128xf32>
    %823 = arith.addf %822, %11 : vector<8x128xf32>
    %824 = vector.extract_strided_slice %823 {offsets = [0, 0], sizes = [8, 32], strides = [1, 1]} : vector<8x128xf32> to vector<8x32xf32>
    %c96_i32_228 = arith.constant 96 : i32
    %825 = tpu.dynamic_rotate %823 by %c96_i32_228 dim 1 : vector<8x128xf32>, i32 -> vector<8x128xf32>
    %826 = vector.extract_strided_slice %825 {offsets = [0, 0], sizes = [8, 32], strides = [1, 1]} : vector<8x128xf32> to vector<8x32xf32>
    %c64_i32_229 = arith.constant 64 : i32
    %827 = tpu.dynamic_rotate %823 by %c64_i32_229 dim 1 : vector<8x128xf32>, i32 -> vector<8x128xf32>
    %828 = vector.extract_strided_slice %827 {offsets = [0, 0], sizes = [8, 32], strides = [1, 1]} : vector<8x128xf32> to vector<8x32xf32>
    %c32_i32_230 = arith.constant 32 : i32
    %829 = tpu.dynamic_rotate %823 by %c32_i32_230 dim 1 : vector<8x128xf32>, i32 -> vector<8x128xf32>
    %830 = vector.extract_strided_slice %829 {offsets = [0, 0], sizes = [8, 32], strides = [1, 1]} : vector<8x128xf32> to vector<8x32xf32>
    %831 = arith.mulf %826, %764 : vector<8x32xf32>
    %832 = arith.mulf %824, %828 : vector<8x32xf32>
    %833 = arith.addf %831, %832 : vector<8x32xf32>
    %834 = math.tanh %833 : vector<8x32xf32>
    %835 = arith.mulf %830, %834 : vector<8x32xf32>
    %836 = arith.truncf %835 : vector<8x32xf32> to vector<8x32xbf16>
    %cst_231 = arith.constant dense<0.000000e+00> : vector<8x128xf32>
    %837 = tpu.matmul %836, %14, %cst_231 {dimension_numbers = #tpu.dot_dimension_numbers<[1], [0], [0], [1], [0, 0, 1, 1], [], []>} : vector<8x32xbf16>, vector<32x128xbf16>, vector<8x128xf32> -> vector<8x128xf32>
    %cst_232 = arith.constant dense<0.000000e+00> : vector<8x128xf32>
    %838 = tpu.matmul %789, %17, %cst_232 {dimension_numbers = #tpu.dot_dimension_numbers<[1], [0], [0], [1], [0, 0, 1, 1], [], []>} : vector<8x32xbf16>, vector<32x128xbf16>, vector<8x128xf32> -> vector<8x128xf32>
    %839 = arith.addf %837, %838 : vector<8x128xf32>
    %840 = vector.broadcast %20 : vector<1x128xf32> to vector<8x128xf32>
    %841 = arith.addf %839, %840 : vector<8x128xf32>
    %842 = arith.mulf %841, %8 : vector<8x128xf32>
    %843 = math.tanh %842 : vector<8x128xf32>
    %844 = arith.mulf %843, %8 : vector<8x128xf32>
    %845 = arith.addf %844, %11 : vector<8x128xf32>
    %846 = vector.extract_strided_slice %845 {offsets = [0, 0], sizes = [8, 32], strides = [1, 1]} : vector<8x128xf32> to vector<8x32xf32>
    %c96_i32_233 = arith.constant 96 : i32
    %847 = tpu.dynamic_rotate %845 by %c96_i32_233 dim 1 : vector<8x128xf32>, i32 -> vector<8x128xf32>
    %848 = vector.extract_strided_slice %847 {offsets = [0, 0], sizes = [8, 32], strides = [1, 1]} : vector<8x128xf32> to vector<8x32xf32>
    %c64_i32_234 = arith.constant 64 : i32
    %849 = tpu.dynamic_rotate %845 by %c64_i32_234 dim 1 : vector<8x128xf32>, i32 -> vector<8x128xf32>
    %850 = vector.extract_strided_slice %849 {offsets = [0, 0], sizes = [8, 32], strides = [1, 1]} : vector<8x128xf32> to vector<8x32xf32>
    %c32_i32_235 = arith.constant 32 : i32
    %851 = tpu.dynamic_rotate %845 by %c32_i32_235 dim 1 : vector<8x128xf32>, i32 -> vector<8x128xf32>
    %852 = vector.extract_strided_slice %851 {offsets = [0, 0], sizes = [8, 32], strides = [1, 1]} : vector<8x128xf32> to vector<8x32xf32>
    %853 = arith.mulf %848, %786 : vector<8x32xf32>
    %854 = arith.mulf %846, %850 : vector<8x32xf32>
    %855 = arith.addf %853, %854 : vector<8x32xf32>
    %856 = math.tanh %855 : vector<8x32xf32>
    %857 = arith.mulf %852, %856 : vector<8x32xf32>
    %858 = arith.truncf %857 : vector<8x32xf32> to vector<8x32xbf16>
    %c11 = arith.constant 11 : index
    %c0_236 = arith.constant 0 : index
    %c0_237 = arith.constant 0 : index
    %859 = vector.load %arg10[%c11, %c0_236, %c0_237] : memref<20x1x32xf32, #tpu.memory_space<vmem>>, vector<1x1x32xf32>
    %860 = vector.shape_cast %859 : vector<1x1x32xf32> to vector<1x32xf32>
    %861 = vector.broadcast %860 : vector<1x32xf32> to vector<8x32xf32>
    %862 = arith.mulf %857, %861 : vector<8x32xf32>
    %863 = arith.addf %794, %862 : vector<8x32xf32>
    %c96 = arith.constant 96 : index
    %c0_238 = arith.constant 0 : index
    %864 = vector.load %arg13[%c96, %c0_238] : memref<160x128xf32, #tpu.memory_space<vmem>>, vector<8x128xf32>
    %cst_239 = arith.constant dense<0.000000e+00> : vector<8x128xf32>
    %865 = tpu.matmul %814, %15, %cst_239 {dimension_numbers = #tpu.dot_dimension_numbers<[1], [0], [0], [1], [0, 0, 1, 1], [], []>} : vector<8x32xbf16>, vector<32x128xbf16>, vector<8x128xf32> -> vector<8x128xf32>
    %866 = arith.addf %864, %865 : vector<8x128xf32>
    %867 = arith.mulf %866, %8 : vector<8x128xf32>
    %868 = math.tanh %867 : vector<8x128xf32>
    %869 = arith.mulf %868, %8 : vector<8x128xf32>
    %870 = arith.addf %869, %11 : vector<8x128xf32>
    %871 = vector.extract_strided_slice %870 {offsets = [0, 0], sizes = [8, 32], strides = [1, 1]} : vector<8x128xf32> to vector<8x32xf32>
    %c96_i32_240 = arith.constant 96 : i32
    %872 = tpu.dynamic_rotate %870 by %c96_i32_240 dim 1 : vector<8x128xf32>, i32 -> vector<8x128xf32>
    %873 = vector.extract_strided_slice %872 {offsets = [0, 0], sizes = [8, 32], strides = [1, 1]} : vector<8x128xf32> to vector<8x32xf32>
    %c64_i32_241 = arith.constant 64 : i32
    %874 = tpu.dynamic_rotate %870 by %c64_i32_241 dim 1 : vector<8x128xf32>, i32 -> vector<8x128xf32>
    %875 = vector.extract_strided_slice %874 {offsets = [0, 0], sizes = [8, 32], strides = [1, 1]} : vector<8x128xf32> to vector<8x32xf32>
    %c32_i32_242 = arith.constant 32 : i32
    %876 = tpu.dynamic_rotate %870 by %c32_i32_242 dim 1 : vector<8x128xf32>, i32 -> vector<8x128xf32>
    %877 = vector.extract_strided_slice %876 {offsets = [0, 0], sizes = [8, 32], strides = [1, 1]} : vector<8x128xf32> to vector<8x32xf32>
    %878 = arith.mulf %873, %811 : vector<8x32xf32>
    %879 = arith.mulf %871, %875 : vector<8x32xf32>
    %880 = arith.addf %878, %879 : vector<8x32xf32>
    %881 = math.tanh %880 : vector<8x32xf32>
    %882 = arith.mulf %877, %881 : vector<8x32xf32>
    %883 = arith.truncf %882 : vector<8x32xf32> to vector<8x32xbf16>
    %cst_243 = arith.constant dense<0.000000e+00> : vector<8x128xf32>
    %884 = tpu.matmul %883, %13, %cst_243 {dimension_numbers = #tpu.dot_dimension_numbers<[1], [0], [0], [1], [0, 0, 1, 1], [], []>} : vector<8x32xbf16>, vector<32x128xbf16>, vector<8x128xf32> -> vector<8x128xf32>
    %cst_244 = arith.constant dense<0.000000e+00> : vector<8x128xf32>
    %885 = tpu.matmul %836, %16, %cst_244 {dimension_numbers = #tpu.dot_dimension_numbers<[1], [0], [0], [1], [0, 0, 1, 1], [], []>} : vector<8x32xbf16>, vector<32x128xbf16>, vector<8x128xf32> -> vector<8x128xf32>
    %886 = arith.addf %884, %885 : vector<8x128xf32>
    %887 = vector.broadcast %19 : vector<1x128xf32> to vector<8x128xf32>
    %888 = arith.addf %886, %887 : vector<8x128xf32>
    %889 = arith.mulf %888, %8 : vector<8x128xf32>
    %890 = math.tanh %889 : vector<8x128xf32>
    %891 = arith.mulf %890, %8 : vector<8x128xf32>
    %892 = arith.addf %891, %11 : vector<8x128xf32>
    %893 = vector.extract_strided_slice %892 {offsets = [0, 0], sizes = [8, 32], strides = [1, 1]} : vector<8x128xf32> to vector<8x32xf32>
    %c96_i32_245 = arith.constant 96 : i32
    %894 = tpu.dynamic_rotate %892 by %c96_i32_245 dim 1 : vector<8x128xf32>, i32 -> vector<8x128xf32>
    %895 = vector.extract_strided_slice %894 {offsets = [0, 0], sizes = [8, 32], strides = [1, 1]} : vector<8x128xf32> to vector<8x32xf32>
    %c64_i32_246 = arith.constant 64 : i32
    %896 = tpu.dynamic_rotate %892 by %c64_i32_246 dim 1 : vector<8x128xf32>, i32 -> vector<8x128xf32>
    %897 = vector.extract_strided_slice %896 {offsets = [0, 0], sizes = [8, 32], strides = [1, 1]} : vector<8x128xf32> to vector<8x32xf32>
    %c32_i32_247 = arith.constant 32 : i32
    %898 = tpu.dynamic_rotate %892 by %c32_i32_247 dim 1 : vector<8x128xf32>, i32 -> vector<8x128xf32>
    %899 = vector.extract_strided_slice %898 {offsets = [0, 0], sizes = [8, 32], strides = [1, 1]} : vector<8x128xf32> to vector<8x32xf32>
    %900 = arith.mulf %895, %833 : vector<8x32xf32>
    %901 = arith.mulf %893, %897 : vector<8x32xf32>
    %902 = arith.addf %900, %901 : vector<8x32xf32>
    %903 = math.tanh %902 : vector<8x32xf32>
    %904 = arith.mulf %899, %903 : vector<8x32xf32>
    %905 = arith.truncf %904 : vector<8x32xf32> to vector<8x32xbf16>
    %cst_248 = arith.constant dense<0.000000e+00> : vector<8x128xf32>
    %906 = tpu.matmul %905, %14, %cst_248 {dimension_numbers = #tpu.dot_dimension_numbers<[1], [0], [0], [1], [0, 0, 1, 1], [], []>} : vector<8x32xbf16>, vector<32x128xbf16>, vector<8x128xf32> -> vector<8x128xf32>
    %cst_249 = arith.constant dense<0.000000e+00> : vector<8x128xf32>
    %907 = tpu.matmul %858, %17, %cst_249 {dimension_numbers = #tpu.dot_dimension_numbers<[1], [0], [0], [1], [0, 0, 1, 1], [], []>} : vector<8x32xbf16>, vector<32x128xbf16>, vector<8x128xf32> -> vector<8x128xf32>
    %908 = arith.addf %906, %907 : vector<8x128xf32>
    %909 = vector.broadcast %20 : vector<1x128xf32> to vector<8x128xf32>
    %910 = arith.addf %908, %909 : vector<8x128xf32>
    %911 = arith.mulf %910, %8 : vector<8x128xf32>
    %912 = math.tanh %911 : vector<8x128xf32>
    %913 = arith.mulf %912, %8 : vector<8x128xf32>
    %914 = arith.addf %913, %11 : vector<8x128xf32>
    %915 = vector.extract_strided_slice %914 {offsets = [0, 0], sizes = [8, 32], strides = [1, 1]} : vector<8x128xf32> to vector<8x32xf32>
    %c96_i32_250 = arith.constant 96 : i32
    %916 = tpu.dynamic_rotate %914 by %c96_i32_250 dim 1 : vector<8x128xf32>, i32 -> vector<8x128xf32>
    %917 = vector.extract_strided_slice %916 {offsets = [0, 0], sizes = [8, 32], strides = [1, 1]} : vector<8x128xf32> to vector<8x32xf32>
    %c64_i32_251 = arith.constant 64 : i32
    %918 = tpu.dynamic_rotate %914 by %c64_i32_251 dim 1 : vector<8x128xf32>, i32 -> vector<8x128xf32>
    %919 = vector.extract_strided_slice %918 {offsets = [0, 0], sizes = [8, 32], strides = [1, 1]} : vector<8x128xf32> to vector<8x32xf32>
    %c32_i32_252 = arith.constant 32 : i32
    %920 = tpu.dynamic_rotate %914 by %c32_i32_252 dim 1 : vector<8x128xf32>, i32 -> vector<8x128xf32>
    %921 = vector.extract_strided_slice %920 {offsets = [0, 0], sizes = [8, 32], strides = [1, 1]} : vector<8x128xf32> to vector<8x32xf32>
    %922 = arith.mulf %917, %855 : vector<8x32xf32>
    %923 = arith.mulf %915, %919 : vector<8x32xf32>
    %924 = arith.addf %922, %923 : vector<8x32xf32>
    %925 = math.tanh %924 : vector<8x32xf32>
    %926 = arith.mulf %921, %925 : vector<8x32xf32>
    %927 = arith.truncf %926 : vector<8x32xf32> to vector<8x32xbf16>
    %c12 = arith.constant 12 : index
    %c0_253 = arith.constant 0 : index
    %c0_254 = arith.constant 0 : index
    %928 = vector.load %arg10[%c12, %c0_253, %c0_254] : memref<20x1x32xf32, #tpu.memory_space<vmem>>, vector<1x1x32xf32>
    %929 = vector.shape_cast %928 : vector<1x1x32xf32> to vector<1x32xf32>
    %930 = vector.broadcast %929 : vector<1x32xf32> to vector<8x32xf32>
    %931 = arith.mulf %926, %930 : vector<8x32xf32>
    %932 = arith.addf %863, %931 : vector<8x32xf32>
    %c104 = arith.constant 104 : index
    %c0_255 = arith.constant 0 : index
    %933 = vector.load %arg13[%c104, %c0_255] : memref<160x128xf32, #tpu.memory_space<vmem>>, vector<8x128xf32>
    %cst_256 = arith.constant dense<0.000000e+00> : vector<8x128xf32>
    %934 = tpu.matmul %883, %15, %cst_256 {dimension_numbers = #tpu.dot_dimension_numbers<[1], [0], [0], [1], [0, 0, 1, 1], [], []>} : vector<8x32xbf16>, vector<32x128xbf16>, vector<8x128xf32> -> vector<8x128xf32>
    %935 = arith.addf %933, %934 : vector<8x128xf32>
    %936 = arith.mulf %935, %8 : vector<8x128xf32>
    %937 = math.tanh %936 : vector<8x128xf32>
    %938 = arith.mulf %937, %8 : vector<8x128xf32>
    %939 = arith.addf %938, %11 : vector<8x128xf32>
    %940 = vector.extract_strided_slice %939 {offsets = [0, 0], sizes = [8, 32], strides = [1, 1]} : vector<8x128xf32> to vector<8x32xf32>
    %c96_i32_257 = arith.constant 96 : i32
    %941 = tpu.dynamic_rotate %939 by %c96_i32_257 dim 1 : vector<8x128xf32>, i32 -> vector<8x128xf32>
    %942 = vector.extract_strided_slice %941 {offsets = [0, 0], sizes = [8, 32], strides = [1, 1]} : vector<8x128xf32> to vector<8x32xf32>
    %c64_i32_258 = arith.constant 64 : i32
    %943 = tpu.dynamic_rotate %939 by %c64_i32_258 dim 1 : vector<8x128xf32>, i32 -> vector<8x128xf32>
    %944 = vector.extract_strided_slice %943 {offsets = [0, 0], sizes = [8, 32], strides = [1, 1]} : vector<8x128xf32> to vector<8x32xf32>
    %c32_i32_259 = arith.constant 32 : i32
    %945 = tpu.dynamic_rotate %939 by %c32_i32_259 dim 1 : vector<8x128xf32>, i32 -> vector<8x128xf32>
    %946 = vector.extract_strided_slice %945 {offsets = [0, 0], sizes = [8, 32], strides = [1, 1]} : vector<8x128xf32> to vector<8x32xf32>
    %947 = arith.mulf %942, %880 : vector<8x32xf32>
    %948 = arith.mulf %940, %944 : vector<8x32xf32>
    %949 = arith.addf %947, %948 : vector<8x32xf32>
    %950 = math.tanh %949 : vector<8x32xf32>
    %951 = arith.mulf %946, %950 : vector<8x32xf32>
    %952 = arith.truncf %951 : vector<8x32xf32> to vector<8x32xbf16>
    %cst_260 = arith.constant dense<0.000000e+00> : vector<8x128xf32>
    %953 = tpu.matmul %952, %13, %cst_260 {dimension_numbers = #tpu.dot_dimension_numbers<[1], [0], [0], [1], [0, 0, 1, 1], [], []>} : vector<8x32xbf16>, vector<32x128xbf16>, vector<8x128xf32> -> vector<8x128xf32>
    %cst_261 = arith.constant dense<0.000000e+00> : vector<8x128xf32>
    %954 = tpu.matmul %905, %16, %cst_261 {dimension_numbers = #tpu.dot_dimension_numbers<[1], [0], [0], [1], [0, 0, 1, 1], [], []>} : vector<8x32xbf16>, vector<32x128xbf16>, vector<8x128xf32> -> vector<8x128xf32>
    %955 = arith.addf %953, %954 : vector<8x128xf32>
    %956 = vector.broadcast %19 : vector<1x128xf32> to vector<8x128xf32>
    %957 = arith.addf %955, %956 : vector<8x128xf32>
    %958 = arith.mulf %957, %8 : vector<8x128xf32>
    %959 = math.tanh %958 : vector<8x128xf32>
    %960 = arith.mulf %959, %8 : vector<8x128xf32>
    %961 = arith.addf %960, %11 : vector<8x128xf32>
    %962 = vector.extract_strided_slice %961 {offsets = [0, 0], sizes = [8, 32], strides = [1, 1]} : vector<8x128xf32> to vector<8x32xf32>
    %c96_i32_262 = arith.constant 96 : i32
    %963 = tpu.dynamic_rotate %961 by %c96_i32_262 dim 1 : vector<8x128xf32>, i32 -> vector<8x128xf32>
    %964 = vector.extract_strided_slice %963 {offsets = [0, 0], sizes = [8, 32], strides = [1, 1]} : vector<8x128xf32> to vector<8x32xf32>
    %c64_i32_263 = arith.constant 64 : i32
    %965 = tpu.dynamic_rotate %961 by %c64_i32_263 dim 1 : vector<8x128xf32>, i32 -> vector<8x128xf32>
    %966 = vector.extract_strided_slice %965 {offsets = [0, 0], sizes = [8, 32], strides = [1, 1]} : vector<8x128xf32> to vector<8x32xf32>
    %c32_i32_264 = arith.constant 32 : i32
    %967 = tpu.dynamic_rotate %961 by %c32_i32_264 dim 1 : vector<8x128xf32>, i32 -> vector<8x128xf32>
    %968 = vector.extract_strided_slice %967 {offsets = [0, 0], sizes = [8, 32], strides = [1, 1]} : vector<8x128xf32> to vector<8x32xf32>
    %969 = arith.mulf %964, %902 : vector<8x32xf32>
    %970 = arith.mulf %962, %966 : vector<8x32xf32>
    %971 = arith.addf %969, %970 : vector<8x32xf32>
    %972 = math.tanh %971 : vector<8x32xf32>
    %973 = arith.mulf %968, %972 : vector<8x32xf32>
    %974 = arith.truncf %973 : vector<8x32xf32> to vector<8x32xbf16>
    %cst_265 = arith.constant dense<0.000000e+00> : vector<8x128xf32>
    %975 = tpu.matmul %974, %14, %cst_265 {dimension_numbers = #tpu.dot_dimension_numbers<[1], [0], [0], [1], [0, 0, 1, 1], [], []>} : vector<8x32xbf16>, vector<32x128xbf16>, vector<8x128xf32> -> vector<8x128xf32>
    %cst_266 = arith.constant dense<0.000000e+00> : vector<8x128xf32>
    %976 = tpu.matmul %927, %17, %cst_266 {dimension_numbers = #tpu.dot_dimension_numbers<[1], [0], [0], [1], [0, 0, 1, 1], [], []>} : vector<8x32xbf16>, vector<32x128xbf16>, vector<8x128xf32> -> vector<8x128xf32>
    %977 = arith.addf %975, %976 : vector<8x128xf32>
    %978 = vector.broadcast %20 : vector<1x128xf32> to vector<8x128xf32>
    %979 = arith.addf %977, %978 : vector<8x128xf32>
    %980 = arith.mulf %979, %8 : vector<8x128xf32>
    %981 = math.tanh %980 : vector<8x128xf32>
    %982 = arith.mulf %981, %8 : vector<8x128xf32>
    %983 = arith.addf %982, %11 : vector<8x128xf32>
    %984 = vector.extract_strided_slice %983 {offsets = [0, 0], sizes = [8, 32], strides = [1, 1]} : vector<8x128xf32> to vector<8x32xf32>
    %c96_i32_267 = arith.constant 96 : i32
    %985 = tpu.dynamic_rotate %983 by %c96_i32_267 dim 1 : vector<8x128xf32>, i32 -> vector<8x128xf32>
    %986 = vector.extract_strided_slice %985 {offsets = [0, 0], sizes = [8, 32], strides = [1, 1]} : vector<8x128xf32> to vector<8x32xf32>
    %c64_i32_268 = arith.constant 64 : i32
    %987 = tpu.dynamic_rotate %983 by %c64_i32_268 dim 1 : vector<8x128xf32>, i32 -> vector<8x128xf32>
    %988 = vector.extract_strided_slice %987 {offsets = [0, 0], sizes = [8, 32], strides = [1, 1]} : vector<8x128xf32> to vector<8x32xf32>
    %c32_i32_269 = arith.constant 32 : i32
    %989 = tpu.dynamic_rotate %983 by %c32_i32_269 dim 1 : vector<8x128xf32>, i32 -> vector<8x128xf32>
    %990 = vector.extract_strided_slice %989 {offsets = [0, 0], sizes = [8, 32], strides = [1, 1]} : vector<8x128xf32> to vector<8x32xf32>
    %991 = arith.mulf %986, %924 : vector<8x32xf32>
    %992 = arith.mulf %984, %988 : vector<8x32xf32>
    %993 = arith.addf %991, %992 : vector<8x32xf32>
    %994 = math.tanh %993 : vector<8x32xf32>
    %995 = arith.mulf %990, %994 : vector<8x32xf32>
    %996 = arith.truncf %995 : vector<8x32xf32> to vector<8x32xbf16>
    %c13 = arith.constant 13 : index
    %c0_270 = arith.constant 0 : index
    %c0_271 = arith.constant 0 : index
    %997 = vector.load %arg10[%c13, %c0_270, %c0_271] : memref<20x1x32xf32, #tpu.memory_space<vmem>>, vector<1x1x32xf32>
    %998 = vector.shape_cast %997 : vector<1x1x32xf32> to vector<1x32xf32>
    %999 = vector.broadcast %998 : vector<1x32xf32> to vector<8x32xf32>
    %1000 = arith.mulf %995, %999 : vector<8x32xf32>
    %1001 = arith.addf %932, %1000 : vector<8x32xf32>
    %c112 = arith.constant 112 : index
    %c0_272 = arith.constant 0 : index
    %1002 = vector.load %arg13[%c112, %c0_272] : memref<160x128xf32, #tpu.memory_space<vmem>>, vector<8x128xf32>
    %cst_273 = arith.constant dense<0.000000e+00> : vector<8x128xf32>
    %1003 = tpu.matmul %952, %15, %cst_273 {dimension_numbers = #tpu.dot_dimension_numbers<[1], [0], [0], [1], [0, 0, 1, 1], [], []>} : vector<8x32xbf16>, vector<32x128xbf16>, vector<8x128xf32> -> vector<8x128xf32>
    %1004 = arith.addf %1002, %1003 : vector<8x128xf32>
    %1005 = arith.mulf %1004, %8 : vector<8x128xf32>
    %1006 = math.tanh %1005 : vector<8x128xf32>
    %1007 = arith.mulf %1006, %8 : vector<8x128xf32>
    %1008 = arith.addf %1007, %11 : vector<8x128xf32>
    %1009 = vector.extract_strided_slice %1008 {offsets = [0, 0], sizes = [8, 32], strides = [1, 1]} : vector<8x128xf32> to vector<8x32xf32>
    %c96_i32_274 = arith.constant 96 : i32
    %1010 = tpu.dynamic_rotate %1008 by %c96_i32_274 dim 1 : vector<8x128xf32>, i32 -> vector<8x128xf32>
    %1011 = vector.extract_strided_slice %1010 {offsets = [0, 0], sizes = [8, 32], strides = [1, 1]} : vector<8x128xf32> to vector<8x32xf32>
    %c64_i32_275 = arith.constant 64 : i32
    %1012 = tpu.dynamic_rotate %1008 by %c64_i32_275 dim 1 : vector<8x128xf32>, i32 -> vector<8x128xf32>
    %1013 = vector.extract_strided_slice %1012 {offsets = [0, 0], sizes = [8, 32], strides = [1, 1]} : vector<8x128xf32> to vector<8x32xf32>
    %c32_i32_276 = arith.constant 32 : i32
    %1014 = tpu.dynamic_rotate %1008 by %c32_i32_276 dim 1 : vector<8x128xf32>, i32 -> vector<8x128xf32>
    %1015 = vector.extract_strided_slice %1014 {offsets = [0, 0], sizes = [8, 32], strides = [1, 1]} : vector<8x128xf32> to vector<8x32xf32>
    %1016 = arith.mulf %1011, %949 : vector<8x32xf32>
    %1017 = arith.mulf %1009, %1013 : vector<8x32xf32>
    %1018 = arith.addf %1016, %1017 : vector<8x32xf32>
    %1019 = math.tanh %1018 : vector<8x32xf32>
    %1020 = arith.mulf %1015, %1019 : vector<8x32xf32>
    %1021 = arith.truncf %1020 : vector<8x32xf32> to vector<8x32xbf16>
    %cst_277 = arith.constant dense<0.000000e+00> : vector<8x128xf32>
    %1022 = tpu.matmul %1021, %13, %cst_277 {dimension_numbers = #tpu.dot_dimension_numbers<[1], [0], [0], [1], [0, 0, 1, 1], [], []>} : vector<8x32xbf16>, vector<32x128xbf16>, vector<8x128xf32> -> vector<8x128xf32>
    %cst_278 = arith.constant dense<0.000000e+00> : vector<8x128xf32>
    %1023 = tpu.matmul %974, %16, %cst_278 {dimension_numbers = #tpu.dot_dimension_numbers<[1], [0], [0], [1], [0, 0, 1, 1], [], []>} : vector<8x32xbf16>, vector<32x128xbf16>, vector<8x128xf32> -> vector<8x128xf32>
    %1024 = arith.addf %1022, %1023 : vector<8x128xf32>
    %1025 = vector.broadcast %19 : vector<1x128xf32> to vector<8x128xf32>
    %1026 = arith.addf %1024, %1025 : vector<8x128xf32>
    %1027 = arith.mulf %1026, %8 : vector<8x128xf32>
    %1028 = math.tanh %1027 : vector<8x128xf32>
    %1029 = arith.mulf %1028, %8 : vector<8x128xf32>
    %1030 = arith.addf %1029, %11 : vector<8x128xf32>
    %1031 = vector.extract_strided_slice %1030 {offsets = [0, 0], sizes = [8, 32], strides = [1, 1]} : vector<8x128xf32> to vector<8x32xf32>
    %c96_i32_279 = arith.constant 96 : i32
    %1032 = tpu.dynamic_rotate %1030 by %c96_i32_279 dim 1 : vector<8x128xf32>, i32 -> vector<8x128xf32>
    %1033 = vector.extract_strided_slice %1032 {offsets = [0, 0], sizes = [8, 32], strides = [1, 1]} : vector<8x128xf32> to vector<8x32xf32>
    %c64_i32_280 = arith.constant 64 : i32
    %1034 = tpu.dynamic_rotate %1030 by %c64_i32_280 dim 1 : vector<8x128xf32>, i32 -> vector<8x128xf32>
    %1035 = vector.extract_strided_slice %1034 {offsets = [0, 0], sizes = [8, 32], strides = [1, 1]} : vector<8x128xf32> to vector<8x32xf32>
    %c32_i32_281 = arith.constant 32 : i32
    %1036 = tpu.dynamic_rotate %1030 by %c32_i32_281 dim 1 : vector<8x128xf32>, i32 -> vector<8x128xf32>
    %1037 = vector.extract_strided_slice %1036 {offsets = [0, 0], sizes = [8, 32], strides = [1, 1]} : vector<8x128xf32> to vector<8x32xf32>
    %1038 = arith.mulf %1033, %971 : vector<8x32xf32>
    %1039 = arith.mulf %1031, %1035 : vector<8x32xf32>
    %1040 = arith.addf %1038, %1039 : vector<8x32xf32>
    %1041 = math.tanh %1040 : vector<8x32xf32>
    %1042 = arith.mulf %1037, %1041 : vector<8x32xf32>
    %1043 = arith.truncf %1042 : vector<8x32xf32> to vector<8x32xbf16>
    %cst_282 = arith.constant dense<0.000000e+00> : vector<8x128xf32>
    %1044 = tpu.matmul %1043, %14, %cst_282 {dimension_numbers = #tpu.dot_dimension_numbers<[1], [0], [0], [1], [0, 0, 1, 1], [], []>} : vector<8x32xbf16>, vector<32x128xbf16>, vector<8x128xf32> -> vector<8x128xf32>
    %cst_283 = arith.constant dense<0.000000e+00> : vector<8x128xf32>
    %1045 = tpu.matmul %996, %17, %cst_283 {dimension_numbers = #tpu.dot_dimension_numbers<[1], [0], [0], [1], [0, 0, 1, 1], [], []>} : vector<8x32xbf16>, vector<32x128xbf16>, vector<8x128xf32> -> vector<8x128xf32>
    %1046 = arith.addf %1044, %1045 : vector<8x128xf32>
    %1047 = vector.broadcast %20 : vector<1x128xf32> to vector<8x128xf32>
    %1048 = arith.addf %1046, %1047 : vector<8x128xf32>
    %1049 = arith.mulf %1048, %8 : vector<8x128xf32>
    %1050 = math.tanh %1049 : vector<8x128xf32>
    %1051 = arith.mulf %1050, %8 : vector<8x128xf32>
    %1052 = arith.addf %1051, %11 : vector<8x128xf32>
    %1053 = vector.extract_strided_slice %1052 {offsets = [0, 0], sizes = [8, 32], strides = [1, 1]} : vector<8x128xf32> to vector<8x32xf32>
    %c96_i32_284 = arith.constant 96 : i32
    %1054 = tpu.dynamic_rotate %1052 by %c96_i32_284 dim 1 : vector<8x128xf32>, i32 -> vector<8x128xf32>
    %1055 = vector.extract_strided_slice %1054 {offsets = [0, 0], sizes = [8, 32], strides = [1, 1]} : vector<8x128xf32> to vector<8x32xf32>
    %c64_i32_285 = arith.constant 64 : i32
    %1056 = tpu.dynamic_rotate %1052 by %c64_i32_285 dim 1 : vector<8x128xf32>, i32 -> vector<8x128xf32>
    %1057 = vector.extract_strided_slice %1056 {offsets = [0, 0], sizes = [8, 32], strides = [1, 1]} : vector<8x128xf32> to vector<8x32xf32>
    %c32_i32_286 = arith.constant 32 : i32
    %1058 = tpu.dynamic_rotate %1052 by %c32_i32_286 dim 1 : vector<8x128xf32>, i32 -> vector<8x128xf32>
    %1059 = vector.extract_strided_slice %1058 {offsets = [0, 0], sizes = [8, 32], strides = [1, 1]} : vector<8x128xf32> to vector<8x32xf32>
    %1060 = arith.mulf %1055, %993 : vector<8x32xf32>
    %1061 = arith.mulf %1053, %1057 : vector<8x32xf32>
    %1062 = arith.addf %1060, %1061 : vector<8x32xf32>
    %1063 = math.tanh %1062 : vector<8x32xf32>
    %1064 = arith.mulf %1059, %1063 : vector<8x32xf32>
    %1065 = arith.truncf %1064 : vector<8x32xf32> to vector<8x32xbf16>
    %c14 = arith.constant 14 : index
    %c0_287 = arith.constant 0 : index
    %c0_288 = arith.constant 0 : index
    %1066 = vector.load %arg10[%c14, %c0_287, %c0_288] : memref<20x1x32xf32, #tpu.memory_space<vmem>>, vector<1x1x32xf32>
    %1067 = vector.shape_cast %1066 : vector<1x1x32xf32> to vector<1x32xf32>
    %1068 = vector.broadcast %1067 : vector<1x32xf32> to vector<8x32xf32>
    %1069 = arith.mulf %1064, %1068 : vector<8x32xf32>
    %1070 = arith.addf %1001, %1069 : vector<8x32xf32>
    %c120 = arith.constant 120 : index
    %c0_289 = arith.constant 0 : index
    %1071 = vector.load %arg13[%c120, %c0_289] : memref<160x128xf32, #tpu.memory_space<vmem>>, vector<8x128xf32>
    %cst_290 = arith.constant dense<0.000000e+00> : vector<8x128xf32>
    %1072 = tpu.matmul %1021, %15, %cst_290 {dimension_numbers = #tpu.dot_dimension_numbers<[1], [0], [0], [1], [0, 0, 1, 1], [], []>} : vector<8x32xbf16>, vector<32x128xbf16>, vector<8x128xf32> -> vector<8x128xf32>
    %1073 = arith.addf %1071, %1072 : vector<8x128xf32>
    %1074 = arith.mulf %1073, %8 : vector<8x128xf32>
    %1075 = math.tanh %1074 : vector<8x128xf32>
    %1076 = arith.mulf %1075, %8 : vector<8x128xf32>
    %1077 = arith.addf %1076, %11 : vector<8x128xf32>
    %1078 = vector.extract_strided_slice %1077 {offsets = [0, 0], sizes = [8, 32], strides = [1, 1]} : vector<8x128xf32> to vector<8x32xf32>
    %c96_i32_291 = arith.constant 96 : i32
    %1079 = tpu.dynamic_rotate %1077 by %c96_i32_291 dim 1 : vector<8x128xf32>, i32 -> vector<8x128xf32>
    %1080 = vector.extract_strided_slice %1079 {offsets = [0, 0], sizes = [8, 32], strides = [1, 1]} : vector<8x128xf32> to vector<8x32xf32>
    %c64_i32_292 = arith.constant 64 : i32
    %1081 = tpu.dynamic_rotate %1077 by %c64_i32_292 dim 1 : vector<8x128xf32>, i32 -> vector<8x128xf32>
    %1082 = vector.extract_strided_slice %1081 {offsets = [0, 0], sizes = [8, 32], strides = [1, 1]} : vector<8x128xf32> to vector<8x32xf32>
    %c32_i32_293 = arith.constant 32 : i32
    %1083 = tpu.dynamic_rotate %1077 by %c32_i32_293 dim 1 : vector<8x128xf32>, i32 -> vector<8x128xf32>
    %1084 = vector.extract_strided_slice %1083 {offsets = [0, 0], sizes = [8, 32], strides = [1, 1]} : vector<8x128xf32> to vector<8x32xf32>
    %1085 = arith.mulf %1080, %1018 : vector<8x32xf32>
    %1086 = arith.mulf %1078, %1082 : vector<8x32xf32>
    %1087 = arith.addf %1085, %1086 : vector<8x32xf32>
    %1088 = math.tanh %1087 : vector<8x32xf32>
    %1089 = arith.mulf %1084, %1088 : vector<8x32xf32>
    %1090 = arith.truncf %1089 : vector<8x32xf32> to vector<8x32xbf16>
    %cst_294 = arith.constant dense<0.000000e+00> : vector<8x128xf32>
    %1091 = tpu.matmul %1090, %13, %cst_294 {dimension_numbers = #tpu.dot_dimension_numbers<[1], [0], [0], [1], [0, 0, 1, 1], [], []>} : vector<8x32xbf16>, vector<32x128xbf16>, vector<8x128xf32> -> vector<8x128xf32>
    %cst_295 = arith.constant dense<0.000000e+00> : vector<8x128xf32>
    %1092 = tpu.matmul %1043, %16, %cst_295 {dimension_numbers = #tpu.dot_dimension_numbers<[1], [0], [0], [1], [0, 0, 1, 1], [], []>} : vector<8x32xbf16>, vector<32x128xbf16>, vector<8x128xf32> -> vector<8x128xf32>
    %1093 = arith.addf %1091, %1092 : vector<8x128xf32>
    %1094 = vector.broadcast %19 : vector<1x128xf32> to vector<8x128xf32>
    %1095 = arith.addf %1093, %1094 : vector<8x128xf32>
    %1096 = arith.mulf %1095, %8 : vector<8x128xf32>
    %1097 = math.tanh %1096 : vector<8x128xf32>
    %1098 = arith.mulf %1097, %8 : vector<8x128xf32>
    %1099 = arith.addf %1098, %11 : vector<8x128xf32>
    %1100 = vector.extract_strided_slice %1099 {offsets = [0, 0], sizes = [8, 32], strides = [1, 1]} : vector<8x128xf32> to vector<8x32xf32>
    %c96_i32_296 = arith.constant 96 : i32
    %1101 = tpu.dynamic_rotate %1099 by %c96_i32_296 dim 1 : vector<8x128xf32>, i32 -> vector<8x128xf32>
    %1102 = vector.extract_strided_slice %1101 {offsets = [0, 0], sizes = [8, 32], strides = [1, 1]} : vector<8x128xf32> to vector<8x32xf32>
    %c64_i32_297 = arith.constant 64 : i32
    %1103 = tpu.dynamic_rotate %1099 by %c64_i32_297 dim 1 : vector<8x128xf32>, i32 -> vector<8x128xf32>
    %1104 = vector.extract_strided_slice %1103 {offsets = [0, 0], sizes = [8, 32], strides = [1, 1]} : vector<8x128xf32> to vector<8x32xf32>
    %c32_i32_298 = arith.constant 32 : i32
    %1105 = tpu.dynamic_rotate %1099 by %c32_i32_298 dim 1 : vector<8x128xf32>, i32 -> vector<8x128xf32>
    %1106 = vector.extract_strided_slice %1105 {offsets = [0, 0], sizes = [8, 32], strides = [1, 1]} : vector<8x128xf32> to vector<8x32xf32>
    %1107 = arith.mulf %1102, %1040 : vector<8x32xf32>
    %1108 = arith.mulf %1100, %1104 : vector<8x32xf32>
    %1109 = arith.addf %1107, %1108 : vector<8x32xf32>
    %1110 = math.tanh %1109 : vector<8x32xf32>
    %1111 = arith.mulf %1106, %1110 : vector<8x32xf32>
    %1112 = arith.truncf %1111 : vector<8x32xf32> to vector<8x32xbf16>
    %cst_299 = arith.constant dense<0.000000e+00> : vector<8x128xf32>
    %1113 = tpu.matmul %1112, %14, %cst_299 {dimension_numbers = #tpu.dot_dimension_numbers<[1], [0], [0], [1], [0, 0, 1, 1], [], []>} : vector<8x32xbf16>, vector<32x128xbf16>, vector<8x128xf32> -> vector<8x128xf32>
    %cst_300 = arith.constant dense<0.000000e+00> : vector<8x128xf32>
    %1114 = tpu.matmul %1065, %17, %cst_300 {dimension_numbers = #tpu.dot_dimension_numbers<[1], [0], [0], [1], [0, 0, 1, 1], [], []>} : vector<8x32xbf16>, vector<32x128xbf16>, vector<8x128xf32> -> vector<8x128xf32>
    %1115 = arith.addf %1113, %1114 : vector<8x128xf32>
    %1116 = vector.broadcast %20 : vector<1x128xf32> to vector<8x128xf32>
    %1117 = arith.addf %1115, %1116 : vector<8x128xf32>
    %1118 = arith.mulf %1117, %8 : vector<8x128xf32>
    %1119 = math.tanh %1118 : vector<8x128xf32>
    %1120 = arith.mulf %1119, %8 : vector<8x128xf32>
    %1121 = arith.addf %1120, %11 : vector<8x128xf32>
    %1122 = vector.extract_strided_slice %1121 {offsets = [0, 0], sizes = [8, 32], strides = [1, 1]} : vector<8x128xf32> to vector<8x32xf32>
    %c96_i32_301 = arith.constant 96 : i32
    %1123 = tpu.dynamic_rotate %1121 by %c96_i32_301 dim 1 : vector<8x128xf32>, i32 -> vector<8x128xf32>
    %1124 = vector.extract_strided_slice %1123 {offsets = [0, 0], sizes = [8, 32], strides = [1, 1]} : vector<8x128xf32> to vector<8x32xf32>
    %c64_i32_302 = arith.constant 64 : i32
    %1125 = tpu.dynamic_rotate %1121 by %c64_i32_302 dim 1 : vector<8x128xf32>, i32 -> vector<8x128xf32>
    %1126 = vector.extract_strided_slice %1125 {offsets = [0, 0], sizes = [8, 32], strides = [1, 1]} : vector<8x128xf32> to vector<8x32xf32>
    %c32_i32_303 = arith.constant 32 : i32
    %1127 = tpu.dynamic_rotate %1121 by %c32_i32_303 dim 1 : vector<8x128xf32>, i32 -> vector<8x128xf32>
    %1128 = vector.extract_strided_slice %1127 {offsets = [0, 0], sizes = [8, 32], strides = [1, 1]} : vector<8x128xf32> to vector<8x32xf32>
    %1129 = arith.mulf %1124, %1062 : vector<8x32xf32>
    %1130 = arith.mulf %1122, %1126 : vector<8x32xf32>
    %1131 = arith.addf %1129, %1130 : vector<8x32xf32>
    %1132 = math.tanh %1131 : vector<8x32xf32>
    %1133 = arith.mulf %1128, %1132 : vector<8x32xf32>
    %1134 = arith.truncf %1133 : vector<8x32xf32> to vector<8x32xbf16>
    %c15 = arith.constant 15 : index
    %c0_304 = arith.constant 0 : index
    %c0_305 = arith.constant 0 : index
    %1135 = vector.load %arg10[%c15, %c0_304, %c0_305] : memref<20x1x32xf32, #tpu.memory_space<vmem>>, vector<1x1x32xf32>
    %1136 = vector.shape_cast %1135 : vector<1x1x32xf32> to vector<1x32xf32>
    %1137 = vector.broadcast %1136 : vector<1x32xf32> to vector<8x32xf32>
    %1138 = arith.mulf %1133, %1137 : vector<8x32xf32>
    %1139 = arith.addf %1070, %1138 : vector<8x32xf32>
    %c128 = arith.constant 128 : index
    %c0_306 = arith.constant 0 : index
    %1140 = vector.load %arg13[%c128, %c0_306] : memref<160x128xf32, #tpu.memory_space<vmem>>, vector<8x128xf32>
    %cst_307 = arith.constant dense<0.000000e+00> : vector<8x128xf32>
    %1141 = tpu.matmul %1090, %15, %cst_307 {dimension_numbers = #tpu.dot_dimension_numbers<[1], [0], [0], [1], [0, 0, 1, 1], [], []>} : vector<8x32xbf16>, vector<32x128xbf16>, vector<8x128xf32> -> vector<8x128xf32>
    %1142 = arith.addf %1140, %1141 : vector<8x128xf32>
    %1143 = arith.mulf %1142, %8 : vector<8x128xf32>
    %1144 = math.tanh %1143 : vector<8x128xf32>
    %1145 = arith.mulf %1144, %8 : vector<8x128xf32>
    %1146 = arith.addf %1145, %11 : vector<8x128xf32>
    %1147 = vector.extract_strided_slice %1146 {offsets = [0, 0], sizes = [8, 32], strides = [1, 1]} : vector<8x128xf32> to vector<8x32xf32>
    %c96_i32_308 = arith.constant 96 : i32
    %1148 = tpu.dynamic_rotate %1146 by %c96_i32_308 dim 1 : vector<8x128xf32>, i32 -> vector<8x128xf32>
    %1149 = vector.extract_strided_slice %1148 {offsets = [0, 0], sizes = [8, 32], strides = [1, 1]} : vector<8x128xf32> to vector<8x32xf32>
    %c64_i32_309 = arith.constant 64 : i32
    %1150 = tpu.dynamic_rotate %1146 by %c64_i32_309 dim 1 : vector<8x128xf32>, i32 -> vector<8x128xf32>
    %1151 = vector.extract_strided_slice %1150 {offsets = [0, 0], sizes = [8, 32], strides = [1, 1]} : vector<8x128xf32> to vector<8x32xf32>
    %c32_i32_310 = arith.constant 32 : i32
    %1152 = tpu.dynamic_rotate %1146 by %c32_i32_310 dim 1 : vector<8x128xf32>, i32 -> vector<8x128xf32>
    %1153 = vector.extract_strided_slice %1152 {offsets = [0, 0], sizes = [8, 32], strides = [1, 1]} : vector<8x128xf32> to vector<8x32xf32>
    %1154 = arith.mulf %1149, %1087 : vector<8x32xf32>
    %1155 = arith.mulf %1147, %1151 : vector<8x32xf32>
    %1156 = arith.addf %1154, %1155 : vector<8x32xf32>
    %1157 = math.tanh %1156 : vector<8x32xf32>
    %1158 = arith.mulf %1153, %1157 : vector<8x32xf32>
    %1159 = arith.truncf %1158 : vector<8x32xf32> to vector<8x32xbf16>
    %cst_311 = arith.constant dense<0.000000e+00> : vector<8x128xf32>
    %1160 = tpu.matmul %1159, %13, %cst_311 {dimension_numbers = #tpu.dot_dimension_numbers<[1], [0], [0], [1], [0, 0, 1, 1], [], []>} : vector<8x32xbf16>, vector<32x128xbf16>, vector<8x128xf32> -> vector<8x128xf32>
    %cst_312 = arith.constant dense<0.000000e+00> : vector<8x128xf32>
    %1161 = tpu.matmul %1112, %16, %cst_312 {dimension_numbers = #tpu.dot_dimension_numbers<[1], [0], [0], [1], [0, 0, 1, 1], [], []>} : vector<8x32xbf16>, vector<32x128xbf16>, vector<8x128xf32> -> vector<8x128xf32>
    %1162 = arith.addf %1160, %1161 : vector<8x128xf32>
    %1163 = vector.broadcast %19 : vector<1x128xf32> to vector<8x128xf32>
    %1164 = arith.addf %1162, %1163 : vector<8x128xf32>
    %1165 = arith.mulf %1164, %8 : vector<8x128xf32>
    %1166 = math.tanh %1165 : vector<8x128xf32>
    %1167 = arith.mulf %1166, %8 : vector<8x128xf32>
    %1168 = arith.addf %1167, %11 : vector<8x128xf32>
    %1169 = vector.extract_strided_slice %1168 {offsets = [0, 0], sizes = [8, 32], strides = [1, 1]} : vector<8x128xf32> to vector<8x32xf32>
    %c96_i32_313 = arith.constant 96 : i32
    %1170 = tpu.dynamic_rotate %1168 by %c96_i32_313 dim 1 : vector<8x128xf32>, i32 -> vector<8x128xf32>
    %1171 = vector.extract_strided_slice %1170 {offsets = [0, 0], sizes = [8, 32], strides = [1, 1]} : vector<8x128xf32> to vector<8x32xf32>
    %c64_i32_314 = arith.constant 64 : i32
    %1172 = tpu.dynamic_rotate %1168 by %c64_i32_314 dim 1 : vector<8x128xf32>, i32 -> vector<8x128xf32>
    %1173 = vector.extract_strided_slice %1172 {offsets = [0, 0], sizes = [8, 32], strides = [1, 1]} : vector<8x128xf32> to vector<8x32xf32>
    %c32_i32_315 = arith.constant 32 : i32
    %1174 = tpu.dynamic_rotate %1168 by %c32_i32_315 dim 1 : vector<8x128xf32>, i32 -> vector<8x128xf32>
    %1175 = vector.extract_strided_slice %1174 {offsets = [0, 0], sizes = [8, 32], strides = [1, 1]} : vector<8x128xf32> to vector<8x32xf32>
    %1176 = arith.mulf %1171, %1109 : vector<8x32xf32>
    %1177 = arith.mulf %1169, %1173 : vector<8x32xf32>
    %1178 = arith.addf %1176, %1177 : vector<8x32xf32>
    %1179 = math.tanh %1178 : vector<8x32xf32>
    %1180 = arith.mulf %1175, %1179 : vector<8x32xf32>
    %1181 = arith.truncf %1180 : vector<8x32xf32> to vector<8x32xbf16>
    %cst_316 = arith.constant dense<0.000000e+00> : vector<8x128xf32>
    %1182 = tpu.matmul %1181, %14, %cst_316 {dimension_numbers = #tpu.dot_dimension_numbers<[1], [0], [0], [1], [0, 0, 1, 1], [], []>} : vector<8x32xbf16>, vector<32x128xbf16>, vector<8x128xf32> -> vector<8x128xf32>
    %cst_317 = arith.constant dense<0.000000e+00> : vector<8x128xf32>
    %1183 = tpu.matmul %1134, %17, %cst_317 {dimension_numbers = #tpu.dot_dimension_numbers<[1], [0], [0], [1], [0, 0, 1, 1], [], []>} : vector<8x32xbf16>, vector<32x128xbf16>, vector<8x128xf32> -> vector<8x128xf32>
    %1184 = arith.addf %1182, %1183 : vector<8x128xf32>
    %1185 = vector.broadcast %20 : vector<1x128xf32> to vector<8x128xf32>
    %1186 = arith.addf %1184, %1185 : vector<8x128xf32>
    %1187 = arith.mulf %1186, %8 : vector<8x128xf32>
    %1188 = math.tanh %1187 : vector<8x128xf32>
    %1189 = arith.mulf %1188, %8 : vector<8x128xf32>
    %1190 = arith.addf %1189, %11 : vector<8x128xf32>
    %1191 = vector.extract_strided_slice %1190 {offsets = [0, 0], sizes = [8, 32], strides = [1, 1]} : vector<8x128xf32> to vector<8x32xf32>
    %c96_i32_318 = arith.constant 96 : i32
    %1192 = tpu.dynamic_rotate %1190 by %c96_i32_318 dim 1 : vector<8x128xf32>, i32 -> vector<8x128xf32>
    %1193 = vector.extract_strided_slice %1192 {offsets = [0, 0], sizes = [8, 32], strides = [1, 1]} : vector<8x128xf32> to vector<8x32xf32>
    %c64_i32_319 = arith.constant 64 : i32
    %1194 = tpu.dynamic_rotate %1190 by %c64_i32_319 dim 1 : vector<8x128xf32>, i32 -> vector<8x128xf32>
    %1195 = vector.extract_strided_slice %1194 {offsets = [0, 0], sizes = [8, 32], strides = [1, 1]} : vector<8x128xf32> to vector<8x32xf32>
    %c32_i32_320 = arith.constant 32 : i32
    %1196 = tpu.dynamic_rotate %1190 by %c32_i32_320 dim 1 : vector<8x128xf32>, i32 -> vector<8x128xf32>
    %1197 = vector.extract_strided_slice %1196 {offsets = [0, 0], sizes = [8, 32], strides = [1, 1]} : vector<8x128xf32> to vector<8x32xf32>
    %1198 = arith.mulf %1193, %1131 : vector<8x32xf32>
    %1199 = arith.mulf %1191, %1195 : vector<8x32xf32>
    %1200 = arith.addf %1198, %1199 : vector<8x32xf32>
    %1201 = math.tanh %1200 : vector<8x32xf32>
    %1202 = arith.mulf %1197, %1201 : vector<8x32xf32>
    %1203 = arith.truncf %1202 : vector<8x32xf32> to vector<8x32xbf16>
    %c16_321 = arith.constant 16 : index
    %c0_322 = arith.constant 0 : index
    %c0_323 = arith.constant 0 : index
    %1204 = vector.load %arg10[%c16_321, %c0_322, %c0_323] : memref<20x1x32xf32, #tpu.memory_space<vmem>>, vector<1x1x32xf32>
    %1205 = vector.shape_cast %1204 : vector<1x1x32xf32> to vector<1x32xf32>
    %1206 = vector.broadcast %1205 : vector<1x32xf32> to vector<8x32xf32>
    %1207 = arith.mulf %1202, %1206 : vector<8x32xf32>
    %1208 = arith.addf %1139, %1207 : vector<8x32xf32>
    %c136 = arith.constant 136 : index
    %c0_324 = arith.constant 0 : index
    %1209 = vector.load %arg13[%c136, %c0_324] : memref<160x128xf32, #tpu.memory_space<vmem>>, vector<8x128xf32>
    %cst_325 = arith.constant dense<0.000000e+00> : vector<8x128xf32>
    %1210 = tpu.matmul %1159, %15, %cst_325 {dimension_numbers = #tpu.dot_dimension_numbers<[1], [0], [0], [1], [0, 0, 1, 1], [], []>} : vector<8x32xbf16>, vector<32x128xbf16>, vector<8x128xf32> -> vector<8x128xf32>
    %1211 = arith.addf %1209, %1210 : vector<8x128xf32>
    %1212 = arith.mulf %1211, %8 : vector<8x128xf32>
    %1213 = math.tanh %1212 : vector<8x128xf32>
    %1214 = arith.mulf %1213, %8 : vector<8x128xf32>
    %1215 = arith.addf %1214, %11 : vector<8x128xf32>
    %1216 = vector.extract_strided_slice %1215 {offsets = [0, 0], sizes = [8, 32], strides = [1, 1]} : vector<8x128xf32> to vector<8x32xf32>
    %c96_i32_326 = arith.constant 96 : i32
    %1217 = tpu.dynamic_rotate %1215 by %c96_i32_326 dim 1 : vector<8x128xf32>, i32 -> vector<8x128xf32>
    %1218 = vector.extract_strided_slice %1217 {offsets = [0, 0], sizes = [8, 32], strides = [1, 1]} : vector<8x128xf32> to vector<8x32xf32>
    %c64_i32_327 = arith.constant 64 : i32
    %1219 = tpu.dynamic_rotate %1215 by %c64_i32_327 dim 1 : vector<8x128xf32>, i32 -> vector<8x128xf32>
    %1220 = vector.extract_strided_slice %1219 {offsets = [0, 0], sizes = [8, 32], strides = [1, 1]} : vector<8x128xf32> to vector<8x32xf32>
    %c32_i32_328 = arith.constant 32 : i32
    %1221 = tpu.dynamic_rotate %1215 by %c32_i32_328 dim 1 : vector<8x128xf32>, i32 -> vector<8x128xf32>
    %1222 = vector.extract_strided_slice %1221 {offsets = [0, 0], sizes = [8, 32], strides = [1, 1]} : vector<8x128xf32> to vector<8x32xf32>
    %1223 = arith.mulf %1218, %1156 : vector<8x32xf32>
    %1224 = arith.mulf %1216, %1220 : vector<8x32xf32>
    %1225 = arith.addf %1223, %1224 : vector<8x32xf32>
    %1226 = math.tanh %1225 : vector<8x32xf32>
    %1227 = arith.mulf %1222, %1226 : vector<8x32xf32>
    %1228 = arith.truncf %1227 : vector<8x32xf32> to vector<8x32xbf16>
    %cst_329 = arith.constant dense<0.000000e+00> : vector<8x128xf32>
    %1229 = tpu.matmul %1228, %13, %cst_329 {dimension_numbers = #tpu.dot_dimension_numbers<[1], [0], [0], [1], [0, 0, 1, 1], [], []>} : vector<8x32xbf16>, vector<32x128xbf16>, vector<8x128xf32> -> vector<8x128xf32>
    %cst_330 = arith.constant dense<0.000000e+00> : vector<8x128xf32>
    %1230 = tpu.matmul %1181, %16, %cst_330 {dimension_numbers = #tpu.dot_dimension_numbers<[1], [0], [0], [1], [0, 0, 1, 1], [], []>} : vector<8x32xbf16>, vector<32x128xbf16>, vector<8x128xf32> -> vector<8x128xf32>
    %1231 = arith.addf %1229, %1230 : vector<8x128xf32>
    %1232 = vector.broadcast %19 : vector<1x128xf32> to vector<8x128xf32>
    %1233 = arith.addf %1231, %1232 : vector<8x128xf32>
    %1234 = arith.mulf %1233, %8 : vector<8x128xf32>
    %1235 = math.tanh %1234 : vector<8x128xf32>
    %1236 = arith.mulf %1235, %8 : vector<8x128xf32>
    %1237 = arith.addf %1236, %11 : vector<8x128xf32>
    %1238 = vector.extract_strided_slice %1237 {offsets = [0, 0], sizes = [8, 32], strides = [1, 1]} : vector<8x128xf32> to vector<8x32xf32>
    %c96_i32_331 = arith.constant 96 : i32
    %1239 = tpu.dynamic_rotate %1237 by %c96_i32_331 dim 1 : vector<8x128xf32>, i32 -> vector<8x128xf32>
    %1240 = vector.extract_strided_slice %1239 {offsets = [0, 0], sizes = [8, 32], strides = [1, 1]} : vector<8x128xf32> to vector<8x32xf32>
    %c64_i32_332 = arith.constant 64 : i32
    %1241 = tpu.dynamic_rotate %1237 by %c64_i32_332 dim 1 : vector<8x128xf32>, i32 -> vector<8x128xf32>
    %1242 = vector.extract_strided_slice %1241 {offsets = [0, 0], sizes = [8, 32], strides = [1, 1]} : vector<8x128xf32> to vector<8x32xf32>
    %c32_i32_333 = arith.constant 32 : i32
    %1243 = tpu.dynamic_rotate %1237 by %c32_i32_333 dim 1 : vector<8x128xf32>, i32 -> vector<8x128xf32>
    %1244 = vector.extract_strided_slice %1243 {offsets = [0, 0], sizes = [8, 32], strides = [1, 1]} : vector<8x128xf32> to vector<8x32xf32>
    %1245 = arith.mulf %1240, %1178 : vector<8x32xf32>
    %1246 = arith.mulf %1238, %1242 : vector<8x32xf32>
    %1247 = arith.addf %1245, %1246 : vector<8x32xf32>
    %1248 = math.tanh %1247 : vector<8x32xf32>
    %1249 = arith.mulf %1244, %1248 : vector<8x32xf32>
    %1250 = arith.truncf %1249 : vector<8x32xf32> to vector<8x32xbf16>
    %cst_334 = arith.constant dense<0.000000e+00> : vector<8x128xf32>
    %1251 = tpu.matmul %1250, %14, %cst_334 {dimension_numbers = #tpu.dot_dimension_numbers<[1], [0], [0], [1], [0, 0, 1, 1], [], []>} : vector<8x32xbf16>, vector<32x128xbf16>, vector<8x128xf32> -> vector<8x128xf32>
    %cst_335 = arith.constant dense<0.000000e+00> : vector<8x128xf32>
    %1252 = tpu.matmul %1203, %17, %cst_335 {dimension_numbers = #tpu.dot_dimension_numbers<[1], [0], [0], [1], [0, 0, 1, 1], [], []>} : vector<8x32xbf16>, vector<32x128xbf16>, vector<8x128xf32> -> vector<8x128xf32>
    %1253 = arith.addf %1251, %1252 : vector<8x128xf32>
    %1254 = vector.broadcast %20 : vector<1x128xf32> to vector<8x128xf32>
    %1255 = arith.addf %1253, %1254 : vector<8x128xf32>
    %1256 = arith.mulf %1255, %8 : vector<8x128xf32>
    %1257 = math.tanh %1256 : vector<8x128xf32>
    %1258 = arith.mulf %1257, %8 : vector<8x128xf32>
    %1259 = arith.addf %1258, %11 : vector<8x128xf32>
    %1260 = vector.extract_strided_slice %1259 {offsets = [0, 0], sizes = [8, 32], strides = [1, 1]} : vector<8x128xf32> to vector<8x32xf32>
    %c96_i32_336 = arith.constant 96 : i32
    %1261 = tpu.dynamic_rotate %1259 by %c96_i32_336 dim 1 : vector<8x128xf32>, i32 -> vector<8x128xf32>
    %1262 = vector.extract_strided_slice %1261 {offsets = [0, 0], sizes = [8, 32], strides = [1, 1]} : vector<8x128xf32> to vector<8x32xf32>
    %c64_i32_337 = arith.constant 64 : i32
    %1263 = tpu.dynamic_rotate %1259 by %c64_i32_337 dim 1 : vector<8x128xf32>, i32 -> vector<8x128xf32>
    %1264 = vector.extract_strided_slice %1263 {offsets = [0, 0], sizes = [8, 32], strides = [1, 1]} : vector<8x128xf32> to vector<8x32xf32>
    %c32_i32_338 = arith.constant 32 : i32
    %1265 = tpu.dynamic_rotate %1259 by %c32_i32_338 dim 1 : vector<8x128xf32>, i32 -> vector<8x128xf32>
    %1266 = vector.extract_strided_slice %1265 {offsets = [0, 0], sizes = [8, 32], strides = [1, 1]} : vector<8x128xf32> to vector<8x32xf32>
    %1267 = arith.mulf %1262, %1200 : vector<8x32xf32>
    %1268 = arith.mulf %1260, %1264 : vector<8x32xf32>
    %1269 = arith.addf %1267, %1268 : vector<8x32xf32>
    %1270 = math.tanh %1269 : vector<8x32xf32>
    %1271 = arith.mulf %1266, %1270 : vector<8x32xf32>
    %1272 = arith.truncf %1271 : vector<8x32xf32> to vector<8x32xbf16>
    %c17 = arith.constant 17 : index
    %c0_339 = arith.constant 0 : index
    %c0_340 = arith.constant 0 : index
    %1273 = vector.load %arg10[%c17, %c0_339, %c0_340] : memref<20x1x32xf32, #tpu.memory_space<vmem>>, vector<1x1x32xf32>
    %1274 = vector.shape_cast %1273 : vector<1x1x32xf32> to vector<1x32xf32>
    %1275 = vector.broadcast %1274 : vector<1x32xf32> to vector<8x32xf32>
    %1276 = arith.mulf %1271, %1275 : vector<8x32xf32>
    %1277 = arith.addf %1208, %1276 : vector<8x32xf32>
    %c144 = arith.constant 144 : index
    %c0_341 = arith.constant 0 : index
    %1278 = vector.load %arg13[%c144, %c0_341] : memref<160x128xf32, #tpu.memory_space<vmem>>, vector<8x128xf32>
    %cst_342 = arith.constant dense<0.000000e+00> : vector<8x128xf32>
    %1279 = tpu.matmul %1228, %15, %cst_342 {dimension_numbers = #tpu.dot_dimension_numbers<[1], [0], [0], [1], [0, 0, 1, 1], [], []>} : vector<8x32xbf16>, vector<32x128xbf16>, vector<8x128xf32> -> vector<8x128xf32>
    %1280 = arith.addf %1278, %1279 : vector<8x128xf32>
    %1281 = arith.mulf %1280, %8 : vector<8x128xf32>
    %1282 = math.tanh %1281 : vector<8x128xf32>
    %1283 = arith.mulf %1282, %8 : vector<8x128xf32>
    %1284 = arith.addf %1283, %11 : vector<8x128xf32>
    %1285 = vector.extract_strided_slice %1284 {offsets = [0, 0], sizes = [8, 32], strides = [1, 1]} : vector<8x128xf32> to vector<8x32xf32>
    %c96_i32_343 = arith.constant 96 : i32
    %1286 = tpu.dynamic_rotate %1284 by %c96_i32_343 dim 1 : vector<8x128xf32>, i32 -> vector<8x128xf32>
    %1287 = vector.extract_strided_slice %1286 {offsets = [0, 0], sizes = [8, 32], strides = [1, 1]} : vector<8x128xf32> to vector<8x32xf32>
    %c64_i32_344 = arith.constant 64 : i32
    %1288 = tpu.dynamic_rotate %1284 by %c64_i32_344 dim 1 : vector<8x128xf32>, i32 -> vector<8x128xf32>
    %1289 = vector.extract_strided_slice %1288 {offsets = [0, 0], sizes = [8, 32], strides = [1, 1]} : vector<8x128xf32> to vector<8x32xf32>
    %c32_i32_345 = arith.constant 32 : i32
    %1290 = tpu.dynamic_rotate %1284 by %c32_i32_345 dim 1 : vector<8x128xf32>, i32 -> vector<8x128xf32>
    %1291 = vector.extract_strided_slice %1290 {offsets = [0, 0], sizes = [8, 32], strides = [1, 1]} : vector<8x128xf32> to vector<8x32xf32>
    %1292 = arith.mulf %1287, %1225 : vector<8x32xf32>
    %1293 = arith.mulf %1285, %1289 : vector<8x32xf32>
    %1294 = arith.addf %1292, %1293 : vector<8x32xf32>
    %1295 = math.tanh %1294 : vector<8x32xf32>
    %1296 = arith.mulf %1291, %1295 : vector<8x32xf32>
    %1297 = arith.truncf %1296 : vector<8x32xf32> to vector<8x32xbf16>
    %cst_346 = arith.constant dense<0.000000e+00> : vector<8x128xf32>
    %1298 = tpu.matmul %1297, %13, %cst_346 {dimension_numbers = #tpu.dot_dimension_numbers<[1], [0], [0], [1], [0, 0, 1, 1], [], []>} : vector<8x32xbf16>, vector<32x128xbf16>, vector<8x128xf32> -> vector<8x128xf32>
    %cst_347 = arith.constant dense<0.000000e+00> : vector<8x128xf32>
    %1299 = tpu.matmul %1250, %16, %cst_347 {dimension_numbers = #tpu.dot_dimension_numbers<[1], [0], [0], [1], [0, 0, 1, 1], [], []>} : vector<8x32xbf16>, vector<32x128xbf16>, vector<8x128xf32> -> vector<8x128xf32>
    %1300 = arith.addf %1298, %1299 : vector<8x128xf32>
    %1301 = vector.broadcast %19 : vector<1x128xf32> to vector<8x128xf32>
    %1302 = arith.addf %1300, %1301 : vector<8x128xf32>
    %1303 = arith.mulf %1302, %8 : vector<8x128xf32>
    %1304 = math.tanh %1303 : vector<8x128xf32>
    %1305 = arith.mulf %1304, %8 : vector<8x128xf32>
    %1306 = arith.addf %1305, %11 : vector<8x128xf32>
    %1307 = vector.extract_strided_slice %1306 {offsets = [0, 0], sizes = [8, 32], strides = [1, 1]} : vector<8x128xf32> to vector<8x32xf32>
    %c96_i32_348 = arith.constant 96 : i32
    %1308 = tpu.dynamic_rotate %1306 by %c96_i32_348 dim 1 : vector<8x128xf32>, i32 -> vector<8x128xf32>
    %1309 = vector.extract_strided_slice %1308 {offsets = [0, 0], sizes = [8, 32], strides = [1, 1]} : vector<8x128xf32> to vector<8x32xf32>
    %c64_i32_349 = arith.constant 64 : i32
    %1310 = tpu.dynamic_rotate %1306 by %c64_i32_349 dim 1 : vector<8x128xf32>, i32 -> vector<8x128xf32>
    %1311 = vector.extract_strided_slice %1310 {offsets = [0, 0], sizes = [8, 32], strides = [1, 1]} : vector<8x128xf32> to vector<8x32xf32>
    %c32_i32_350 = arith.constant 32 : i32
    %1312 = tpu.dynamic_rotate %1306 by %c32_i32_350 dim 1 : vector<8x128xf32>, i32 -> vector<8x128xf32>
    %1313 = vector.extract_strided_slice %1312 {offsets = [0, 0], sizes = [8, 32], strides = [1, 1]} : vector<8x128xf32> to vector<8x32xf32>
    %1314 = arith.mulf %1309, %1247 : vector<8x32xf32>
    %1315 = arith.mulf %1307, %1311 : vector<8x32xf32>
    %1316 = arith.addf %1314, %1315 : vector<8x32xf32>
    %1317 = math.tanh %1316 : vector<8x32xf32>
    %1318 = arith.mulf %1313, %1317 : vector<8x32xf32>
    %1319 = arith.truncf %1318 : vector<8x32xf32> to vector<8x32xbf16>
    %cst_351 = arith.constant dense<0.000000e+00> : vector<8x128xf32>
    %1320 = tpu.matmul %1319, %14, %cst_351 {dimension_numbers = #tpu.dot_dimension_numbers<[1], [0], [0], [1], [0, 0, 1, 1], [], []>} : vector<8x32xbf16>, vector<32x128xbf16>, vector<8x128xf32> -> vector<8x128xf32>
    %cst_352 = arith.constant dense<0.000000e+00> : vector<8x128xf32>
    %1321 = tpu.matmul %1272, %17, %cst_352 {dimension_numbers = #tpu.dot_dimension_numbers<[1], [0], [0], [1], [0, 0, 1, 1], [], []>} : vector<8x32xbf16>, vector<32x128xbf16>, vector<8x128xf32> -> vector<8x128xf32>
    %1322 = arith.addf %1320, %1321 : vector<8x128xf32>
    %1323 = vector.broadcast %20 : vector<1x128xf32> to vector<8x128xf32>
    %1324 = arith.addf %1322, %1323 : vector<8x128xf32>
    %1325 = arith.mulf %1324, %8 : vector<8x128xf32>
    %1326 = math.tanh %1325 : vector<8x128xf32>
    %1327 = arith.mulf %1326, %8 : vector<8x128xf32>
    %1328 = arith.addf %1327, %11 : vector<8x128xf32>
    %1329 = vector.extract_strided_slice %1328 {offsets = [0, 0], sizes = [8, 32], strides = [1, 1]} : vector<8x128xf32> to vector<8x32xf32>
    %c96_i32_353 = arith.constant 96 : i32
    %1330 = tpu.dynamic_rotate %1328 by %c96_i32_353 dim 1 : vector<8x128xf32>, i32 -> vector<8x128xf32>
    %1331 = vector.extract_strided_slice %1330 {offsets = [0, 0], sizes = [8, 32], strides = [1, 1]} : vector<8x128xf32> to vector<8x32xf32>
    %c64_i32_354 = arith.constant 64 : i32
    %1332 = tpu.dynamic_rotate %1328 by %c64_i32_354 dim 1 : vector<8x128xf32>, i32 -> vector<8x128xf32>
    %1333 = vector.extract_strided_slice %1332 {offsets = [0, 0], sizes = [8, 32], strides = [1, 1]} : vector<8x128xf32> to vector<8x32xf32>
    %c32_i32_355 = arith.constant 32 : i32
    %1334 = tpu.dynamic_rotate %1328 by %c32_i32_355 dim 1 : vector<8x128xf32>, i32 -> vector<8x128xf32>
    %1335 = vector.extract_strided_slice %1334 {offsets = [0, 0], sizes = [8, 32], strides = [1, 1]} : vector<8x128xf32> to vector<8x32xf32>
    %1336 = arith.mulf %1331, %1269 : vector<8x32xf32>
    %1337 = arith.mulf %1329, %1333 : vector<8x32xf32>
    %1338 = arith.addf %1336, %1337 : vector<8x32xf32>
    %1339 = math.tanh %1338 : vector<8x32xf32>
    %1340 = arith.mulf %1335, %1339 : vector<8x32xf32>
    %1341 = arith.truncf %1340 : vector<8x32xf32> to vector<8x32xbf16>
    %c18 = arith.constant 18 : index
    %c0_356 = arith.constant 0 : index
    %c0_357 = arith.constant 0 : index
    %1342 = vector.load %arg10[%c18, %c0_356, %c0_357] : memref<20x1x32xf32, #tpu.memory_space<vmem>>, vector<1x1x32xf32>
    %1343 = vector.shape_cast %1342 : vector<1x1x32xf32> to vector<1x32xf32>
    %1344 = vector.broadcast %1343 : vector<1x32xf32> to vector<8x32xf32>
    %1345 = arith.mulf %1340, %1344 : vector<8x32xf32>
    %1346 = arith.addf %1277, %1345 : vector<8x32xf32>
    %c152 = arith.constant 152 : index
    %c0_358 = arith.constant 0 : index
    %1347 = vector.load %arg13[%c152, %c0_358] : memref<160x128xf32, #tpu.memory_space<vmem>>, vector<8x128xf32>
    %cst_359 = arith.constant dense<0.000000e+00> : vector<8x128xf32>
    %1348 = tpu.matmul %1297, %15, %cst_359 {dimension_numbers = #tpu.dot_dimension_numbers<[1], [0], [0], [1], [0, 0, 1, 1], [], []>} : vector<8x32xbf16>, vector<32x128xbf16>, vector<8x128xf32> -> vector<8x128xf32>
    %1349 = arith.addf %1347, %1348 : vector<8x128xf32>
    %1350 = arith.mulf %1349, %8 : vector<8x128xf32>
    %1351 = math.tanh %1350 : vector<8x128xf32>
    %1352 = arith.mulf %1351, %8 : vector<8x128xf32>
    %1353 = arith.addf %1352, %11 : vector<8x128xf32>
    %1354 = vector.extract_strided_slice %1353 {offsets = [0, 0], sizes = [8, 32], strides = [1, 1]} : vector<8x128xf32> to vector<8x32xf32>
    %c96_i32_360 = arith.constant 96 : i32
    %1355 = tpu.dynamic_rotate %1353 by %c96_i32_360 dim 1 : vector<8x128xf32>, i32 -> vector<8x128xf32>
    %1356 = vector.extract_strided_slice %1355 {offsets = [0, 0], sizes = [8, 32], strides = [1, 1]} : vector<8x128xf32> to vector<8x32xf32>
    %c64_i32_361 = arith.constant 64 : i32
    %1357 = tpu.dynamic_rotate %1353 by %c64_i32_361 dim 1 : vector<8x128xf32>, i32 -> vector<8x128xf32>
    %1358 = vector.extract_strided_slice %1357 {offsets = [0, 0], sizes = [8, 32], strides = [1, 1]} : vector<8x128xf32> to vector<8x32xf32>
    %c32_i32_362 = arith.constant 32 : i32
    %1359 = tpu.dynamic_rotate %1353 by %c32_i32_362 dim 1 : vector<8x128xf32>, i32 -> vector<8x128xf32>
    %1360 = vector.extract_strided_slice %1359 {offsets = [0, 0], sizes = [8, 32], strides = [1, 1]} : vector<8x128xf32> to vector<8x32xf32>
    %1361 = arith.mulf %1356, %1294 : vector<8x32xf32>
    %1362 = arith.mulf %1354, %1358 : vector<8x32xf32>
    %1363 = arith.addf %1361, %1362 : vector<8x32xf32>
    %1364 = math.tanh %1363 : vector<8x32xf32>
    %1365 = arith.mulf %1360, %1364 : vector<8x32xf32>
    %1366 = arith.truncf %1365 : vector<8x32xf32> to vector<8x32xbf16>
    %cst_363 = arith.constant dense<0.000000e+00> : vector<8x128xf32>
    %1367 = tpu.matmul %1366, %13, %cst_363 {dimension_numbers = #tpu.dot_dimension_numbers<[1], [0], [0], [1], [0, 0, 1, 1], [], []>} : vector<8x32xbf16>, vector<32x128xbf16>, vector<8x128xf32> -> vector<8x128xf32>
    %cst_364 = arith.constant dense<0.000000e+00> : vector<8x128xf32>
    %1368 = tpu.matmul %1319, %16, %cst_364 {dimension_numbers = #tpu.dot_dimension_numbers<[1], [0], [0], [1], [0, 0, 1, 1], [], []>} : vector<8x32xbf16>, vector<32x128xbf16>, vector<8x128xf32> -> vector<8x128xf32>
    %1369 = arith.addf %1367, %1368 : vector<8x128xf32>
    %1370 = vector.broadcast %19 : vector<1x128xf32> to vector<8x128xf32>
    %1371 = arith.addf %1369, %1370 : vector<8x128xf32>
    %1372 = arith.mulf %1371, %8 : vector<8x128xf32>
    %1373 = math.tanh %1372 : vector<8x128xf32>
    %1374 = arith.mulf %1373, %8 : vector<8x128xf32>
    %1375 = arith.addf %1374, %11 : vector<8x128xf32>
    %1376 = vector.extract_strided_slice %1375 {offsets = [0, 0], sizes = [8, 32], strides = [1, 1]} : vector<8x128xf32> to vector<8x32xf32>
    %c96_i32_365 = arith.constant 96 : i32
    %1377 = tpu.dynamic_rotate %1375 by %c96_i32_365 dim 1 : vector<8x128xf32>, i32 -> vector<8x128xf32>
    %1378 = vector.extract_strided_slice %1377 {offsets = [0, 0], sizes = [8, 32], strides = [1, 1]} : vector<8x128xf32> to vector<8x32xf32>
    %c64_i32_366 = arith.constant 64 : i32
    %1379 = tpu.dynamic_rotate %1375 by %c64_i32_366 dim 1 : vector<8x128xf32>, i32 -> vector<8x128xf32>
    %1380 = vector.extract_strided_slice %1379 {offsets = [0, 0], sizes = [8, 32], strides = [1, 1]} : vector<8x128xf32> to vector<8x32xf32>
    %c32_i32_367 = arith.constant 32 : i32
    %1381 = tpu.dynamic_rotate %1375 by %c32_i32_367 dim 1 : vector<8x128xf32>, i32 -> vector<8x128xf32>
    %1382 = vector.extract_strided_slice %1381 {offsets = [0, 0], sizes = [8, 32], strides = [1, 1]} : vector<8x128xf32> to vector<8x32xf32>
    %1383 = arith.mulf %1378, %1316 : vector<8x32xf32>
    %1384 = arith.mulf %1376, %1380 : vector<8x32xf32>
    %1385 = arith.addf %1383, %1384 : vector<8x32xf32>
    %1386 = math.tanh %1385 : vector<8x32xf32>
    %1387 = arith.mulf %1382, %1386 : vector<8x32xf32>
    %1388 = arith.truncf %1387 : vector<8x32xf32> to vector<8x32xbf16>
    %cst_368 = arith.constant dense<0.000000e+00> : vector<8x128xf32>
    %1389 = tpu.matmul %1388, %14, %cst_368 {dimension_numbers = #tpu.dot_dimension_numbers<[1], [0], [0], [1], [0, 0, 1, 1], [], []>} : vector<8x32xbf16>, vector<32x128xbf16>, vector<8x128xf32> -> vector<8x128xf32>
    %cst_369 = arith.constant dense<0.000000e+00> : vector<8x128xf32>
    %1390 = tpu.matmul %1341, %17, %cst_369 {dimension_numbers = #tpu.dot_dimension_numbers<[1], [0], [0], [1], [0, 0, 1, 1], [], []>} : vector<8x32xbf16>, vector<32x128xbf16>, vector<8x128xf32> -> vector<8x128xf32>
    %1391 = arith.addf %1389, %1390 : vector<8x128xf32>
    %1392 = vector.broadcast %20 : vector<1x128xf32> to vector<8x128xf32>
    %1393 = arith.addf %1391, %1392 : vector<8x128xf32>
    %1394 = arith.mulf %1393, %8 : vector<8x128xf32>
    %1395 = math.tanh %1394 : vector<8x128xf32>
    %1396 = arith.mulf %1395, %8 : vector<8x128xf32>
    %1397 = arith.addf %1396, %11 : vector<8x128xf32>
    %1398 = vector.extract_strided_slice %1397 {offsets = [0, 0], sizes = [8, 32], strides = [1, 1]} : vector<8x128xf32> to vector<8x32xf32>
    %c96_i32_370 = arith.constant 96 : i32
    %1399 = tpu.dynamic_rotate %1397 by %c96_i32_370 dim 1 : vector<8x128xf32>, i32 -> vector<8x128xf32>
    %1400 = vector.extract_strided_slice %1399 {offsets = [0, 0], sizes = [8, 32], strides = [1, 1]} : vector<8x128xf32> to vector<8x32xf32>
    %c64_i32_371 = arith.constant 64 : i32
    %1401 = tpu.dynamic_rotate %1397 by %c64_i32_371 dim 1 : vector<8x128xf32>, i32 -> vector<8x128xf32>
    %1402 = vector.extract_strided_slice %1401 {offsets = [0, 0], sizes = [8, 32], strides = [1, 1]} : vector<8x128xf32> to vector<8x32xf32>
    %c32_i32_372 = arith.constant 32 : i32
    %1403 = tpu.dynamic_rotate %1397 by %c32_i32_372 dim 1 : vector<8x128xf32>, i32 -> vector<8x128xf32>
    %1404 = vector.extract_strided_slice %1403 {offsets = [0, 0], sizes = [8, 32], strides = [1, 1]} : vector<8x128xf32> to vector<8x32xf32>
    %1405 = arith.mulf %1400, %1338 : vector<8x32xf32>
    %1406 = arith.mulf %1398, %1402 : vector<8x32xf32>
    %1407 = arith.addf %1405, %1406 : vector<8x32xf32>
    %1408 = math.tanh %1407 : vector<8x32xf32>
    %1409 = arith.mulf %1404, %1408 : vector<8x32xf32>
    %c19 = arith.constant 19 : index
    %c0_373 = arith.constant 0 : index
    %c0_374 = arith.constant 0 : index
    %1410 = vector.load %arg10[%c19, %c0_373, %c0_374] : memref<20x1x32xf32, #tpu.memory_space<vmem>>, vector<1x1x32xf32>
    %1411 = vector.shape_cast %1410 : vector<1x1x32xf32> to vector<1x32xf32>
    %1412 = vector.broadcast %1411 : vector<1x32xf32> to vector<8x32xf32>
    %1413 = arith.mulf %1409, %1412 : vector<8x32xf32>
    %1414 = arith.addf %1346, %1413 : vector<8x32xf32>
    %cst_375 = arith.constant dense<0.000000e+00> : vector<8xf32>
    %1415 = vector.multi_reduction <add>, %1414, %cst_375 [1] : vector<8x32xf32> to vector<8xf32>
    %1416 = vector.shape_cast %1415 : vector<8xf32> to vector<8x1xf32>
    %c0_376 = arith.constant 0 : index
    %c0_377 = arith.constant 0 : index
    %1417 = vector.load %arg11[%c0_376, %c0_377] : memref<1x1xf32, #tpu.memory_space<vmem>>, vector<1x1xf32>
    %1418 = vector.broadcast %1417 : vector<1x1xf32> to vector<8x1xf32>
    %1419 = arith.addf %1416, %1418 : vector<8x1xf32>
    %c0_378 = arith.constant 0 : index
    %c0_379 = arith.constant 0 : index
    %1420 = vector.load %arg12[%c0_378, %c0_379] : memref<8x1xf32, #tpu.memory_space<vmem>>, vector<8x1xf32>
    tpu.vector_store %arg12[%c0_378, %c0_379], %1419 {strides = array<i32>} : memref<8x1xf32, #tpu.memory_space<vmem>>, vector<8x1xf32>,
    return
  }
}

</mosaic_0001>

<bundles_post_ra>
// kernel: model_forward.1
= control target key start
LH: loop header
LB: loop body
LE: loop exit
PB: predicated region body
PF: predicated region fallthrough
CT: control target
= control target key end

     0   :  { %v7443_v0 = vmov 0.0   ;;  %vm7444_vm0 = vmmov 0   ;;  %vm158_vm1 = vcmask 130048   ;;  %v7445_v6 = vmov 0   ;;  %s7447_s17 = smov 32   ;;  %s7448_s18 = smov 96   ;;  %s9421_s1 = inlined_call_operand.vmem [shape: bf16[16,128], index: 1, kind: input, shape index: {}]   ;;  %s9422_s2 = inlined_call_operand.vmem [shape: bf16[32,128], index: 2, kind: input, shape index: {}]   ;;  %s9423_s0 = inlined_call_operand.vmem [shape: bf16[160,16], index: 0, kind: input, shape index: {}]   ;;  %s9424_s3 = inlined_call_operand.vmem [shape: f32[1,128], index: 3, kind: input, shape index: {}]   ;;  %s9425_s5 = inlined_call_operand.vmem [shape: bf16[32,128], index: 5, kind: input, shape index: {}]   ;;  %s9426_s4 = inlined_call_operand.vmem [shape: bf16[32,128], index: 4, kind: input, shape index: {}]   ;;  %s9427_s6 = inlined_call_operand.vmem [shape: f32[1,128], index: 6, kind: input, shape index: {}]   ;;  %s9428_s8 = inlined_call_operand.vmem [shape: bf16[32,128], index: 8, kind: input, shape index: {}]   ;;  %s9429_s7 = inlined_call_operand.vmem [shape: bf16[32,128], index: 7, kind: input, shape index: {}]   ;;  %s9430_s9 = inlined_call_operand.vmem [shape: f32[1,128], index: 9, kind: input, shape index: {}]   ;;  %s9431_s10 = inlined_call_operand.vmem [shape: f32[20,1,32], index: 10, kind: input, shape index: {}]   ;;  %s9432_s11 = inlined_call_operand.<no memory space> [shape: f32[1,1], index: 11, kind: input, shape index: {}]   ;;  %s9433_s12 = inlined_call_operand.vmem [shape: f32[8,1], index: 12, kind: output, shape index: {}]  }
   0x1   :  { %6334 = vmatprep.subr.bf16.mxu1 %v7443_v0  ;;  %v7141_v1 = vld [vmem:[%s9421_s1] sm:$0xff]   ;;  %6338 = vmatprep.mubr.msk.bf16.mxu1 %vm7444_vm0, %v7443_v0  ;;  %v7144_v4 = vld [vmem:[%s9423_s0 + $0x8] sm:$0xff]   ;;  %v7146_v7 = vld [vmem:[%s9423_s0 + $0x10] sm:$0xff]   ;;  %v44_v11 = vlaneseq  ;;  %v7446_v20 = vmov 0.5   ;;  %vm335_vm5 = vcmask 261120   ;;  %vm5824_vm6 = vcmask 7168  }
   0x2   :  { %v7524_v2 = vld [vmem:[%s9422_s2] sm:$0xff]   ;;  %6312 = vmatprep.subr.bf16.mxu0 %v7141_v1  ;;  %v7538_v5 = vld [vmem:[%s9422_s2 + $0x8] sm:$0xff]   ;;  %v7147_v8 = vld [vmem:[%s9423_s0 + $0x18] sm:$0xff]  }
   0x3   :  { %v7143_v3 = vld [vmem:[%s9423_s0] sm:$0xff]   ;;  %6335 = vmatpush3.bf16.msra.mxu1 %v7524_v2  ;;  %6313 = vmatpush3.bf16.msra.mxu0 %v7141_v1  ;;  %v7149_v10 = vld [vmem:[%s9423_s0 + $0x28] sm:$0xff]   ;;  %v45_v12 = vand.u32 127, %v44_v11  ;;  %v7151_v29 = vld [vmem:[%s9423_s0 + $0x30] sm:$0xff]  }
   0x4   :  { %6314 = vmatprep.mubr.msk.bf16.mxu0 %vm158_vm1, %v7143_v3  ;;  %6336 = vmatprep.subr.bf16.mxu1 %v7443_v0  ;;  %v7148_v9 = vld [vmem:[%s9423_s0 + $0x20] sm:$0xff]   ;;  %v7152_v30 = vld [vmem:[%s9423_s0 + $0x38] sm:$0xff]   ;;  %v7606_v31 = vld [vmem:[%s9425_s5 + $0x8] sm:$0xff]  }
   0x5   :  { %6374 = vmatprep.subr.bf16.mxu0 %v7443_v0  ;;  %vm46_vm2 = vcmp.ge.s32.totalorder %v45_v12, 64  ;;  %vm47_vm3 = vcmp.lt.s32.totalorder %v45_v12, 96  ;;  %v7570_v13 = vld [vmem:[%s9424_s3] ss:$0 sm:$0xff]  ;;  %v7155_v38 = vld [vmem:[%s9423_s0 + $0x48] sm:$0xff]  }
   0x6   :  { %6315 = vmatmul.mubr.msk.bf16.vlgmr.msra.gmra.mrb[0].mxu0 %vm158_vm1, %v7144_v4  ;;  %vm7574_vm4 = vmand %vm46_vm2, %vm47_vm3  ;;  %v7591_v28 = vld [vmem:[%s9425_s5] sm:$0xff]   ;;  %v7635_v39 = vld [vmem:[%s9426_s4 + $0x8] sm:$0xff]  }
   0x7   :  { %6337 = vmatpush3.bf16.msra.mxu1 %v7538_v5  ;;  %6375 = vmatpush3.bf16.msra.mxu0 %v7524_v2  ;;  %v7585_v21 = vsel %vm7574_vm4, 1.0, %v7446_v20  ;;  %v7610_v33 = vsel %vm7574_vm4, 0.0, %v7446_v20  ;;  %v7154_v34 = vld [vmem:[%s9423_s0 + $0x40] sm:$0xff]   ;;  %s7449_s0 = smov 64  }
   0x8   :  { %6342 = vmatprep.subr.bf16.mxu1 %v7443_v0  ;;  %6376 = vmatprep.subr.bf16.mxu0 %v7443_v0  ;;  %v7622_v36 = vld [vmem:[%s9426_s4] sm:$0xff]  }
   0x9   :  { %6318 = vmatprep.mubr.msk.bf16.mxu0 %vm158_vm1, %v7146_v7 }
   0xa   :  { %6339 = vmatmul.mubr.bf16.vlgmr.msra.gmra.mrb[0].mxu1 %v7445_v6 }
   0xb   :  { %6346 = vmatprep.mubr.msk.bf16.mxu1 %vm7444_vm0, %v7443_v0  ;;  %6377 = vmatpush3.bf16.msra.mxu0 %v7538_v5 }
   0xc   :  { %6390 = vmatprep.subr.bf16.mxu0 %v7443_v0  ;;  %6343 = vmatpush3.bf16.msra.mxu1 %v7591_v28 }
   0xd   :  { %6344 = vmatprep.subr.bf16.mxu1 %v7443_v0 }
   0xe   :  { %6319 = vmatmul.mubr.msk.bf16.gmra.mrb[4].mxu0 %vm158_vm1, %v7147_v8 }
   0xf   :  { %6322 = vmatprep.mubr.msk.bf16.mxu0 %vm158_vm1, %v7148_v9 }
  0x10   :  { %6345 = vmatpush3.bf16.msra.mxu1 %v7606_v31 }
  0x11   :  { %6350 = vmatprep.subr.bf16.mxu1 %v7443_v0 }
  0x13   :  { %6347 = vmatmul.mubr.bf16.vlgmr.msra.gmra.mrb[4].mxu1 %v7445_v6 }
  0x14   :  { %6351 = vmatpush3.bf16.msra.mxu1 %v7622_v36  ;;  %6354 = vmatprep.mubr.msk.bf16.mxu1 %vm7444_vm0, %v7443_v0 }
  0x15   :  { %6352 = vmatprep.subr.bf16.mxu1 %v7443_v0 }
  0x16   :  { %6323 = vmatmul.mubr.msk.bf16.gmra.mrb[8].mxu0 %vm158_vm1, %v7149_v10  ;;  %v7696_v10 = vld [vmem:[%s9427_s6] ss:$0 sm:$0xff] }
  0x17   :  { %6326 = vmatprep.mubr.msk.bf16.mxu0 %vm158_vm1, %v7151_v29  ;;  %v7704_v29 = vld [vmem:[%s9428_s8] sm:$0xff]  }
  0x18   :  { %6353 = vmatpush3.bf16.msra.mxu1 %v7635_v39 }
  0x19   :  { %6358 = vmatprep.subr.bf16.mxu1 %v7443_v0 }
  0x1e   :  { %6327 = vmatmul.mubr.msk.bf16.gmra.mrb[12].mxu0 %vm158_vm1, %v7152_v30  ;;  %v7711_v30 = vld [vmem:[%s9428_s8 + $0x8] sm:$0xff]  }
  0x1f   :  { %6330 = vmatprep.mubr.msk.bf16.mxu0 %vm158_vm1, %v7154_v34 }
  0x26   :  { %6331 = vmatmul.mubr.msk.bf16.gmra.mrb[16].mxu0 %vm158_vm1, %v7155_v38 }
  0x27   :  { %6378 = vmatprep.mubr.msk.bf16.mxu0 %vm7444_vm0, %v7443_v0 }
  0xd9   :  { %v7572_v14 = vpop.f32.mrb[0].mxu0 }
  0xda   :  { %v223_v15 = vpop.f32.mrb[1].mxu0 }
  0xdb   :  { %v224_v17 = vadd.f32 %v7570_v13, %v223_v15  ;;  %v7579_v18 = vpop.f32.mrb[2].mxu0 }
  0xdc   :  { %v7581_v19 = vpop.f32.mrb[3].mxu0 }
  0xdd   :  { %v373_v22 = vpop.f32.mrb[0].mxu1  ;;  %v227_v9 = vadd.f32 %v7570_v13, %v7581_v19 }
  0xde   :  { %v379_v23 = vadd.f32 %v373_v22, %v224_v17  ;;  %v6340_v24 = vpop.f32.mrb[1].mxu1 }
  0xdf   :  { %v376_v25 = vpop.f32.mrb[2].mxu1 }
  0xe0   :  { %v380_v26 = vmul.f32 %v379_v23, %v7585_v21  ;;  %v6341_v27 = vpop.f32.mrb[3].mxu1 }
  0xe1   :  { %v7646_v40 = vpop.f32.mrb[4].mxu0 }
  0xe2   :  { %7162 = vtanh.f32 %v380_v26  ;;  %v7648_v41 = vpop.f32.mrb[5].mxu0 }
  0xe3   :  { %v7650_v42 = vpop.f32.mrb[6].mxu0 }
  0xe4   :  { %v7652_v43 = vpop.f32.mrb[7].mxu0 }
  0xe6   :  { %v442_v61 = vpop.f32.mrb[4].mxu1 }
  0xe7   :  { %v6348_v62 = vpop.f32.mrb[5].mxu1 }
  0xe8   :  { %v445_v63 = vpop.f32.mrb[6].mxu1 }
  0xe9   :  { %v7654_v44 = vpop.f32.mrb[8].mxu0  ;;  %v6349_v1 = vpop.f32.mrb[7].mxu1 }
  0xea   :  { %v7656_v45 = vpop.f32.mrb[9].mxu0 }
  0xeb   :  { %v7658_v46 = vpop.f32.mrb[10].mxu0 }
  0xec   :  { %v7163_v32 = vpop.eup %7162  ;;  %v7660_v47 = vpop.f32.mrb[11].mxu0 }
  0xed   :  { %v382_v35 = vmul.f32 %v7163_v32, %v7585_v21 }
  0xef   :  { %v383_v37 = vadd.f32 %v382_v35, %v7610_v33 }
  0xf1   :  { %388 = vrot.lane.b32.xlu1 %v383_v37, %s7447_s17  ;;  %384 = vrot.lane.b32.xlu0 %v383_v37, %s7448_s18  ;;  %v7675_v57 = vpop.f32.mrb[12].mxu0 }
  0xf2   :  { %v7677_v58 = vpop.f32.mrb[13].mxu0 }
  0xf3   :  { %v7679_v59 = vpop.f32.mrb[14].mxu0 }
  0xf4   :  { %v7681_v60 = vpop.f32.mrb[15].mxu0 }
  0xf5   :  { %386 = vrot.lane.b32.xlu0 %v383_v37, %s7449_s0 }
  0xf9   :  { %v7683_v3 = vpop.f32.mrb[16].mxu0 }
  0xfa   :  { %v7685_v4 = vpop.f32.mrb[17].mxu0 }
  0xfb   :  { %v7687_v7 = vpop.f32.mrb[18].mxu0 }
  0xfc   :  { %v7689_v8 = vpop.f32.mrb[19].mxu0 }
 0x163   :  { %v385_v48 = vpop.permute.xlu0 %384  ;;  %v389_v54 = vpop.permute.xlu1 %388 }
 0x164   :  { %v390_v50 = vmul.f32 0.0, %v385_v48 }
 0x167   :  { %v387_v49 = vpop.permute.xlu0 %386 }
 0x168   :  { %v391_v51 = vmul.f32 %v387_v49, %v383_v37  ;;  %v7722_v37 = vld [vmem:[%s9429_s7] sm:$0xff]  }
 0x16a   :  { %v7662_v52 = vadd.f32 %v391_v51, %v390_v50 }
 0x16c   :  { %7164 = vtanh.f32 %v7662_v52 }
 0x176   :  { %v7165_v53 = vpop.eup %7164 }
 0x177   :  { %v394_v55 = vmul.f32 %v7165_v53, %v389_v54 }
 0x179   :  { %v395_v56 = vpack.c.bf16 %v394_v55, %v394_v55 }
 0x17b   :  { %6355 = vmatmul.mubr.msk.bf16.vlgmr.msra.gmra.mrb[8].mxu1 %vm335_vm5, %v395_v56  ;;  %6379 = vmatmul.mubr.msk.bf16.vlgmr.msra.gmra.mrb[20].mxu0 %vm335_vm5, %v395_v56 }
 0x17c   :  { %6362 = vmatprep.mubr.msk.bf16.mxu1 %vm7444_vm0, %v7443_v0  ;;  %6391 = vmatpush3.bf16.msra.mxu0 %v7622_v36 }
 0x17d   :  { %6392 = vmatprep.subr.bf16.mxu0 %v7443_v0  ;;  %6394 = vmatprep.mubr.msk.bf16.mxu0 %vm7444_vm0, %v7443_v0 }
 0x17e   :  { %6359 = vmatpush3.bf16.msra.mxu1 %v7704_v29 }
 0x17f   :  { %6360 = vmatprep.subr.bf16.mxu1 %v7443_v0 }
 0x180   :  { %6393 = vmatpush3.bf16.msra.mxu0 %v7635_v39 }
 0x181   :  { %6406 = vmatprep.subr.bf16.mxu0 %v7443_v0 }
 0x182   :  { %6361 = vmatpush3.bf16.msra.mxu1 %v7711_v30 }
 0x183   :  { %6366 = vmatprep.subr.bf16.mxu1 %v7443_v0 }
 0x185   :  { %6363 = vmatmul.mubr.bf16.vlgmr.msra.gmra.mrb[12].mxu1 %v7445_v6  ;;  %v7733_v6 = vld [vmem:[%s9429_s7 + $0x8] sm:$0xff]  }
 0x186   :  { %6370 = vmatprep.mubr.msk.bf16.mxu1 %vm7444_vm0, %v7443_v0  ;;  %6367 = vmatpush3.bf16.msra.mxu1 %v7722_v37 }
 0x187   :  { %6368 = vmatprep.subr.bf16.mxu1 %v7443_v0 }
 0x18a   :  { %6369 = vmatpush3.bf16.msra.mxu1 %v7733_v6 }
 0x18b   :  { %6382 = vmatprep.subr.bf16.mxu1 %v7443_v0 }
 0x24e   :  { %v497_v11 = vpop.f32.mrb[8].mxu1  ;;  %v700_v12 = vpop.f32.mrb[20].mxu0 }
 0x24f   :  { %v498_v15 = vadd.f32 %v497_v11, %v442_v61  ;;  %v706_v16 = vadd.f32 %v700_v12, %v227_v9  ;;  %v6356_v17 = vpop.f32.mrb[9].mxu1  ;;  %v6380_v20 = vpop.f32.mrb[21].mxu0 }
 0x250   :  { %v500_v22 = vpop.f32.mrb[10].mxu1  ;;  %v703_v23 = vpop.f32.mrb[22].mxu0 }
 0x251   :  { %v509_v24 = vadd.f32 %v7696_v10, %v498_v15  ;;  %v707_v25 = vmul.f32 %v706_v16, %v7585_v21  ;;  %v6357_v26 = vpop.f32.mrb[11].mxu1  ;;  %v6381_v27 = vpop.f32.mrb[23].mxu0 }
 0x252   :  { %v7776_v26 = vld [vmem:[%s9430_s9] ss:$0 sm:$0xff] }
 0x253   :  { %v510_v19 = vmul.f32 %v509_v24, %v7585_v21  ;;  %7166 = vtanh.f32 %v707_v25 }
 0x255   :  { %7168 = vtanh.f32 %v510_v19 }
 0x25d   :  { %v7167_v32 = vpop.eup %7166 }
 0x25e   :  { %v709_v48 = vmul.f32 %v7167_v32, %v7585_v21 }
 0x25f   :  { %v7169_v34 = vpop.eup %7168 }
 0x260   :  { %v512_v35 = vmul.f32 %v7169_v34, %v7585_v21  ;;  %v710_v49 = vadd.f32 %v709_v48, %v7610_v33 }
 0x262   :  { %v513_v38 = vadd.f32 %v512_v35, %v7610_v33 }
 0x264   :  { %516 = vrot.lane.b32.xlu0 %v513_v38, %s7449_s0  ;;  %514 = vrot.lane.b32.xlu1 %v513_v38, %s7448_s18 }
 0x268   :  { %713 = vrot.lane.b32.xlu0 %v710_v49, %s7449_s0  ;;  %711 = vrot.lane.b32.xlu1 %v710_v49, %s7448_s18 }
 0x26c   :  { %715 = vrot.lane.b32.xlu0 %v710_v49, %s7447_s17  ;;  %518 = vrot.lane.b32.xlu1 %v513_v38, %s7447_s17 }
 0x2d6   :  { %v517_v50 = vpop.permute.xlu0 %516  ;;  %v515_v51 = vpop.permute.xlu1 %514 }
 0x2d7   :  { %v521_v53 = vmul.f32 %v517_v50, %v513_v38  ;;  %v520_v54 = vmul.f32 0.0, %v515_v51 }
 0x2d9   :  { %v7742_v55 = vadd.f32 %v521_v53, %v520_v54 }
 0x2da   :  { %v714_v56 = vpop.permute.xlu0 %713  ;;  %v712_v61 = vpop.permute.xlu1 %711 }
 0x2db   :  { %7170 = vtanh.f32 %v7742_v55  ;;  %v718_v62 = vmul.f32 %v714_v56, %v710_v49  ;;  %v717_v63 = vmul.f32 %v712_v61, %v7662_v52  ;;  %v572_v52 = vpop.f32.mrb[12].mxu1 }
 0x2dc   :  { %v6364_v23 = vpop.f32.mrb[13].mxu1 }
 0x2dd   :  { %v7746_v1 = vadd.f32 %v718_v62, %v717_v63  ;;  %v575_v24 = vpop.f32.mrb[14].mxu1 }
 0x2de   :  { %v519_v11 = vpop.permute.xlu1 %518  ;;  %v716_v17 = vpop.permute.xlu0 %715 }
 0x2df   :  { %7172 = vtanh.f32 %v7746_v1  ;;  %v6365_v25 = vpop.f32.mrb[15].mxu1 }
 0x2e5   :  { %v7171_v9 = vpop.eup %7170 }
 0x2e6   :  { %v524_v12 = vmul.f32 %v7171_v9, %v519_v11 }
 0x2e8   :  { %v525_v15 = vpack.c.bf16 %v524_v12, %v524_v12 }
 0x2e9   :  { %v7173_v16 = vpop.eup %7172 }
 0x2ea   :  { %v721_v20 = vmul.f32 %v7173_v16, %v716_v17  ;;  %6371 = vmatmul.mubr.msk.bf16.vlgmr.msra.gmra.mrb[16].mxu1 %vm335_vm5, %v525_v15 }
 0x2eb   :  { %6383 = vmatpush3.bf16.msra.mxu1 %v7591_v28  ;;  %6386 = vmatprep.mubr.msk.bf16.mxu1 %vm7444_vm0, %v7443_v0 }
 0x2ec   :  { %v7753_v22 = vpack.c.bf16 %v721_v20, %v721_v20  ;;  %6384 = vmatprep.subr.bf16.mxu1 %v7443_v0 }
 0x2ee   :  { %6395 = vmatmul.mubr.msk.bf16.vlgmr.msra.gmra.mrb[24].mxu0 %vm335_vm5, %v7753_v22 }
 0x2ef   :  { %6385 = vmatpush3.bf16.msra.mxu1 %v7606_v31  ;;  %6407 = vmatpush3.bf16.msra.mxu0 %v7722_v37 }
 0x2f0   :  { %6398 = vmatprep.subr.bf16.mxu1 %v7443_v0  ;;  %6408 = vmatprep.subr.bf16.mxu0 %v7443_v0 }
 0x2f1   :  { %6410 = vmatprep.mubr.msk.bf16.mxu0 %vm7444_vm0, %v7443_v0 }
 0x2f2   :  { %6387 = vmatmul.mubr.msk.bf16.vlgmr.msra.gmra.mrb[20].mxu1 %vm335_vm5, %v525_v15 }
 0x2f3   :  { %6399 = vmatpush3.bf16.msra.mxu1 %v7704_v29  ;;  %6402 = vmatprep.mubr.msk.bf16.mxu1 %vm7444_vm0, %v7443_v0 }
 0x2f4   :  { %6400 = vmatprep.subr.bf16.mxu1 %v7443_v0  ;;  %6409 = vmatpush3.bf16.msra.mxu0 %v7733_v6 }
 0x2f5   :  { %6422 = vmatprep.subr.bf16.mxu0 %v7443_v0 }
 0x2f7   :  { %6401 = vmatpush3.bf16.msra.mxu1 %v7711_v30 }
 0x2f8   :  { %6414 = vmatprep.subr.bf16.mxu1 %v7443_v0 }
 0x3bd   :  { %v627_v27 = vpop.f32.mrb[16].mxu1 }
 0x3be   :  { %v628_v19 = vadd.f32 %v627_v27, %v572_v52  ;;  %v6372_v32 = vpop.f32.mrb[17].mxu1 }
 0x3bf   :  { %v630_v34 = vpop.f32.mrb[18].mxu1 }
 0x3c0   :  { %v639_v35 = vadd.f32 %v7776_v26, %v628_v19  ;;  %v6373_v38 = vpop.f32.mrb[19].mxu1 }
 0x3c1   :  { %v800_v48 = vpop.f32.mrb[24].mxu0 }
 0x3c2   :  { %v640_v49 = vmul.f32 %v639_v35, %v7585_v21  ;;  %v6396_v50 = vpop.f32.mrb[25].mxu0 }
 0x3c3   :  { %v803_v51 = vpop.f32.mrb[26].mxu0 }
 0x3c4   :  { %7174 = vtanh.f32 %v640_v49  ;;  %v6397_v53 = vpop.f32.mrb[27].mxu0 }
 0x3c5   :  { %v757_v54 = vpop.f32.mrb[20].mxu1 }
 0x3c6   :  { %v801_v56 = vadd.f32 %v800_v48, %v757_v54  ;;  %v6388_v61 = vpop.f32.mrb[21].mxu1 }
 0x3c7   :  { %v760_v62 = vpop.f32.mrb[22].mxu1 }
 0x3c8   :  { %v806_v63 = vadd.f32 %v7696_v10, %v801_v56  ;;  %v6389_v9 = vpop.f32.mrb[23].mxu1 }
 0x3ca   :  { %v807_v11 = vmul.f32 %v806_v63, %v7585_v21 }
 0x3cc   :  { %7176 = vtanh.f32 %v807_v11  ;;  %v232_v11 = vadd.f32 %v7572_v14, %v7570_v13 }
 0x3ce   :  { %v7175_v12 = vpop.eup %7174 }
 0x3cf   :  { %v642_v15 = vmul.f32 %v7175_v12, %v7585_v21 }
 0x3d1   :  { %v643_v16 = vadd.f32 %v642_v15, %v7610_v33 }
 0x3d3   :  { %646 = vrot.lane.b32.xlu0 %v643_v16, %s7449_s0  ;;  %644 = vrot.lane.b32.xlu1 %v643_v16, %s7448_s18 }
 0x3d6   :  { %v7177_v17 = vpop.eup %7176 }
 0x3d7   :  { %v809_v20 = vmul.f32 %v7177_v17, %v7585_v21 }
 0x3d9   :  { %v810_v52 = vadd.f32 %v809_v20, %v7610_v33 }
 0x3db   :  { %813 = vrot.lane.b32.xlu0 %v810_v52, %s7449_s0  ;;  %811 = vrot.lane.b32.xlu1 %v810_v52, %s7448_s18 }
 0x3df   :  { %815 = vrot.lane.b32.xlu0 %v810_v52, %s7447_s17  ;;  %648 = vrot.lane.b32.xlu1 %v643_v16, %s7447_s17 }
 0x445   :  { %v647_v23 = vpop.permute.xlu0 %646  ;;  %v645_v24 = vpop.permute.xlu1 %644 }
 0x446   :  { %v651_v25 = vmul.f32 %v647_v23, %v643_v16  ;;  %v650_v27 = vmul.f32 0.0, %v645_v24 }
 0x448   :  { %v7792_v19 = vadd.f32 %v651_v25, %v650_v27 }
 0x44a   :  { %7178 = vtanh.f32 %v7792_v19 }
 0x44d   :  { %v814_v32 = vpop.permute.xlu0 %813  ;;  %v812_v34 = vpop.permute.xlu1 %811 }
 0x44e   :  { %v818_v35 = vmul.f32 %v814_v32, %v810_v52  ;;  %v817_v38 = vmul.f32 %v812_v34, %v7742_v55 }
 0x450   :  { %v7796_v48 = vadd.f32 %v818_v35, %v817_v38 }
 0x451   :  { %v649_v50 = vpop.permute.xlu1 %648  ;;  %v816_v54 = vpop.permute.xlu0 %815 }
 0x452   :  { %7180 = vtanh.f32 %v7796_v48 }
 0x454   :  { %v7179_v49 = vpop.eup %7178 }
 0x455   :  { %v7799_v51 = vmul.f32 %v7179_v49, %v649_v50 }
 0x457   :  { %v655_v53 = vpack.c.bf16 %v7799_v51, %v7799_v51 }
 0x459   :  { %6403 = vmatmul.mubr.msk.bf16.vlgmr.msra.gmra.mrb[24].mxu1 %vm335_vm5, %v655_v53 }
 0x45a   :  { %6415 = vmatpush3.bf16.msra.mxu1 %v7524_v2  ;;  %6418 = vmatprep.mubr.msk.bf16.mxu1 %vm7444_vm0, %v7443_v0 }
 0x45b   :  { %6416 = vmatprep.subr.bf16.mxu1 %v7443_v0 }
 0x45c   :  { %v7181_v55 = vpop.eup %7180 }
 0x45d   :  { %v821_v56 = vmul.f32 %v7181_v55, %v816_v54 }
 0x45e   :  { %6417 = vmatpush3.bf16.msra.mxu1 %v7538_v5 }
 0x45f   :  { %v822_v61 = vpack.c.bf16 %v821_v56, %v821_v56  ;;  %6430 = vmatprep.subr.bf16.mxu1 %v7443_v0 }
 0x461   :  { %6411 = vmatmul.mubr.msk.bf16.vlgmr.msra.gmra.mrb[28].mxu0 %vm335_vm5, %v822_v61  ;;  %6419 = vmatmul.mubr.msk.bf16.vlgmr.msra.gmra.mrb[28].mxu1 %vm335_vm5, %v7753_v22 }
 0x462   :  { %6423 = vmatpush3.bf16.msra.mxu0 %v7591_v28  ;;  %6426 = vmatprep.mubr.msk.bf16.mxu0 %vm7444_vm0, %v7443_v0 }
 0x463   :  { %6424 = vmatprep.subr.bf16.mxu0 %v7443_v0  ;;  %6431 = vmatpush3.bf16.msra.mxu1 %v7622_v36 }
 0x464   :  { %6432 = vmatprep.subr.bf16.mxu1 %v7443_v0  ;;  %6434 = vmatprep.mubr.msk.bf16.mxu1 %vm7444_vm0, %v7443_v0 }
 0x466   :  { %6425 = vmatpush3.bf16.msra.mxu0 %v7606_v31 }
 0x467   :  { %6438 = vmatprep.subr.bf16.mxu0 %v7443_v0  ;;  %6433 = vmatpush3.bf16.msra.mxu1 %v7635_v39 }
 0x468   :  { %6446 = vmatprep.subr.bf16.mxu1 %v7443_v0 }
 0x469   :  { %6427 = vmatmul.mubr.msk.bf16.vlgmr.msra.gmra.mrb[32].mxu0 %vm335_vm5, %v822_v61 }
 0x46a   :  { %6439 = vmatpush3.bf16.msra.mxu0 %v7704_v29  ;;  %6442 = vmatprep.mubr.msk.bf16.mxu0 %vm7444_vm0, %v7443_v0 }
 0x46b   :  { %6440 = vmatprep.subr.bf16.mxu0 %v7443_v0 }
 0x46e   :  { %6441 = vmatpush3.bf16.msra.mxu0 %v7711_v30 }
 0x46f   :  { %6454 = vmatprep.subr.bf16.mxu0 %v7443_v0 }
 0x52c   :  { %v860_v22 = vpop.f32.mrb[24].mxu1 }
 0x52d   :  { %v6404_v62 = vpop.f32.mrb[25].mxu1 }
 0x52e   :  { %v863_v63 = vpop.f32.mrb[26].mxu1 }
 0x52f   :  { %v6405_v9 = vpop.f32.mrb[27].mxu1 }
 0x534   :  { %v903_v12 = vpop.f32.mrb[28].mxu0  ;;  %v971_v15 = vpop.f32.mrb[28].mxu1 }
 0x535   :  { %v904_v16 = vadd.f32 %v903_v12, %v860_v22  ;;  %v977_v17 = vadd.f32 %v971_v15, %v232_v11  ;;  %v6412_v20 = vpop.f32.mrb[29].mxu0  ;;  %v6420_v52 = vpop.f32.mrb[29].mxu1 }
 0x536   :  { %v906_v23 = vpop.f32.mrb[30].mxu0  ;;  %v974_v24 = vpop.f32.mrb[30].mxu1 }
 0x537   :  { %v909_v25 = vadd.f32 %v7776_v26, %v904_v16  ;;  %v978_v27 = vmul.f32 %v977_v17, %v7585_v21  ;;  %v6413_v32 = vpop.f32.mrb[31].mxu0  ;;  %v6421_v34 = vpop.f32.mrb[31].mxu1 }
 0x538   :  { %v5873_v34 = vld [vmem:[%s9431_s10 + $0x1] ss:$0 sm:$0xff] }
 0x539   :  { %v910_v35 = vmul.f32 %v909_v25, %v7585_v21  ;;  %7182 = vtanh.f32 %v978_v27 }
 0x53b   :  { %7184 = vtanh.f32 %v910_v35 }
 0x53c   :  { %v1028_v38 = vpop.f32.mrb[32].mxu0 }
 0x53d   :  { %v6428_v14 = vpop.f32.mrb[33].mxu0 }
 0x53e   :  { %v1031_v49 = vpop.f32.mrb[34].mxu0 }
 0x53f   :  { %v6429_v50 = vpop.f32.mrb[35].mxu0 }
 0x543   :  { %v7183_v53 = vpop.eup %7182 }
 0x544   :  { %v980_v55 = vmul.f32 %v7183_v53, %v7585_v21 }
 0x545   :  { %v7185_v54 = vpop.eup %7184 }
 0x546   :  { %v981_v56 = vadd.f32 %v980_v55, %v7610_v33  ;;  %v912_v61 = vmul.f32 %v7185_v54, %v7585_v21 }
 0x548   :  { %984 = vrot.lane.b32.xlu0 %v981_v56, %s7449_s0  ;;  %982 = vrot.lane.b32.xlu1 %v981_v56, %s7448_s18  ;;  %v913_v22 = vadd.f32 %v912_v61, %v7610_v33 }
 0x54c   :  { %916 = vrot.lane.b32.xlu0 %v913_v22, %s7449_s0  ;;  %914 = vrot.lane.b32.xlu1 %v913_v22, %s7448_s18 }
 0x550   :  { %918 = vrot.lane.b32.xlu0 %v913_v22, %s7447_s17  ;;  %986 = vrot.lane.b32.xlu1 %v981_v56, %s7447_s17 }
 0x5ba   :  { %v985_v62 = vpop.permute.xlu0 %984  ;;  %v983_v63 = vpop.permute.xlu1 %982 }
 0x5bb   :  { %v989_v9 = vmul.f32 %v985_v62, %v981_v56  ;;  %v988_v11 = vmul.f32 %v983_v63, %v7746_v1  ;;  %v5866_v1 = vld [vmem:[%s9431_s10] ss:$0 sm:$0xff] }
 0x5bd   :  { %v7848_v12 = vadd.f32 %v989_v9, %v988_v11  ;;  %v235_v11 = vadd.f32 %v7579_v18, %v7570_v13 }
 0x5be   :  { %v917_v15 = vpop.permute.xlu0 %916  ;;  %v915_v16 = vpop.permute.xlu1 %914 }
 0x5bf   :  { %7186 = vtanh.f32 %v7848_v12  ;;  %v921_v17 = vmul.f32 %v917_v15, %v913_v22  ;;  %v920_v20 = vmul.f32 %v915_v16, %v7792_v19  ;;  %v663_v19 = vmul.f32 %v5866_v1, %v7799_v51 }
 0x5c1   :  { %v7852_v52 = vadd.f32 %v921_v17, %v920_v20 }
 0x5c2   :  { %v987_v24 = vpop.permute.xlu1 %986  ;;  %v919_v35 = vpop.permute.xlu0 %918 }
 0x5c3   :  { %7188 = vtanh.f32 %v7852_v52 }
 0x5c9   :  { %v7187_v23 = vpop.eup %7186 }
 0x5ca   :  { %v992_v25 = vmul.f32 %v7187_v23, %v987_v24 }
 0x5cc   :  { %v993_v27 = vpack.c.bf16 %v992_v25, %v992_v25 }
 0x5cd   :  { %v7189_v32 = vpop.eup %7188 }
 0x5ce   :  { %v924_v14 = vmul.f32 %v7189_v32, %v919_v35  ;;  %6435 = vmatmul.mubr.msk.bf16.vlgmr.msra.gmra.mrb[32].mxu1 %vm335_vm5, %v993_v27 }
 0x5cf   :  { %6447 = vmatpush3.bf16.msra.mxu1 %v7722_v37  ;;  %6450 = vmatprep.mubr.msk.bf16.mxu1 %vm7444_vm0, %v7443_v0 }
 0x5d0   :  { %v925_v49 = vpack.c.bf16 %v924_v14, %v924_v14  ;;  %v934_v50 = vmul.f32 %v5873_v34, %v924_v14  ;;  %6448 = vmatprep.subr.bf16.mxu1 %v7443_v0 }
 0x5d2   :  { %v7867_v53 = vadd.f32 %v934_v50, %v663_v19  ;;  %6443 = vmatmul.mubr.msk.bf16.vlgmr.msra.gmra.mrb[36].mxu0 %vm335_vm5, %v925_v49 }
 0x5d3   :  { %6455 = vmatpush3.bf16.msra.mxu0 %v7524_v2  ;;  %6458 = vmatprep.mubr.msk.bf16.mxu0 %vm7444_vm0, %v7443_v0 }
 0x5d4   :  { %6456 = vmatprep.subr.bf16.mxu0 %v7443_v0  ;;  %6449 = vmatpush3.bf16.msra.mxu1 %v7733_v6 }
 0x5d5   :  { %6462 = vmatprep.subr.bf16.mxu1 %v7443_v0 }
 0x5d7   :  { %6457 = vmatpush3.bf16.msra.mxu0 %v7538_v5 }
 0x5d8   :  { %6470 = vmatprep.subr.bf16.mxu0 %v7443_v0 }
 0x5da   :  { %6459 = vmatmul.mubr.msk.bf16.vlgmr.msra.gmra.mrb[40].mxu0 %vm335_vm5, %v993_v27 }
 0x5db   :  { %6471 = vmatpush3.bf16.msra.mxu0 %v7622_v36  ;;  %6474 = vmatprep.mubr.msk.bf16.mxu0 %vm7444_vm0, %v7443_v0 }
 0x5dc   :  { %6472 = vmatprep.subr.bf16.mxu0 %v7443_v0 }
 0x5df   :  { %6473 = vmatpush3.bf16.msra.mxu0 %v7635_v39 }
 0x5e0   :  { %6486 = vmatprep.subr.bf16.mxu0 %v7443_v0 }
 0x6a1   :  { %v1071_v2 = vpop.f32.mrb[32].mxu1 }
 0x6a2   :  { %v1072_v51 = vadd.f32 %v1071_v2, %v1028_v38  ;;  %v6436_v55 = vpop.f32.mrb[33].mxu1 }
 0x6a3   :  { %v1074_v54 = vpop.f32.mrb[34].mxu1 }
 0x6a4   :  { %v1077_v5 = vadd.f32 %v7696_v10, %v1072_v51  ;;  %v6437_v56 = vpop.f32.mrb[35].mxu1 }
 0x6a5   :  { %v7886_v61 = vpop.f32.mrb[36].mxu0 }
 0x6a6   :  { %v1078_v22 = vmul.f32 %v1077_v5, %v7585_v21  ;;  %v6444_v62 = vpop.f32.mrb[37].mxu0 }
 0x6a7   :  { %v1134_v63 = vpop.f32.mrb[38].mxu0 }
 0x6a8   :  { %7190 = vtanh.f32 %v1078_v22  ;;  %v6445_v9 = vpop.f32.mrb[39].mxu0 }
 0x6ad   :  { %v1242_v15 = vpop.f32.mrb[40].mxu0 }
 0x6ae   :  { %v1248_v16 = vadd.f32 %v1242_v15, %v235_v11  ;;  %v6460_v17 = vpop.f32.mrb[41].mxu0 }
 0x6af   :  { %v1245_v38 = vpop.f32.mrb[42].mxu0 }
 0x6b0   :  { %v1249_v20 = vmul.f32 %v1248_v16, %v7585_v21  ;;  %v6461_v23 = vpop.f32.mrb[43].mxu0 }
 0x6b2   :  { %v7191_v24 = vpop.eup %7190  ;;  %7192 = vtanh.f32 %v1249_v20 }
 0x6b3   :  { %v1080_v25 = vmul.f32 %v7191_v24, %v7585_v21 }
 0x6b5   :  { %v1081_v27 = vadd.f32 %v1080_v25, %v7610_v33 }
 0x6b7   :  { %1084 = vrot.lane.b32.xlu0 %v1081_v27, %s7449_s0  ;;  %1082 = vrot.lane.b32.xlu1 %v1081_v27, %s7448_s18 }
 0x6bc   :  { %v7193_v32 = vpop.eup %7192 }
 0x6bd   :  { %v1251_v18 = vmul.f32 %v7193_v32, %v7585_v21 }
 0x6bf   :  { %v1252_v1 = vadd.f32 %v1251_v18, %v7610_v33 }
 0x6c1   :  { %1255 = vrot.lane.b32.xlu0 %v1252_v1, %s7449_s0  ;;  %1253 = vrot.lane.b32.xlu1 %v1252_v1, %s7448_s18 }
 0x6c5   :  { %1257 = vrot.lane.b32.xlu0 %v1252_v1, %s7447_s17  ;;  %1086 = vrot.lane.b32.xlu1 %v1081_v27, %s7447_s17 }
 0x729   :  { %v1085_v34 = vpop.permute.xlu0 %1084  ;;  %v1083_v35 = vpop.permute.xlu1 %1082 }
 0x72a   :  { %v1089_v14 = vmul.f32 %v1085_v34, %v1081_v27  ;;  %v1088_v19 = vmul.f32 %v1083_v35, %v7796_v48 }
 0x72c   :  { %v7903_v49 = vadd.f32 %v1089_v14, %v1088_v19 }
 0x72e   :  { %7194 = vtanh.f32 %v7903_v49 }
 0x733   :  { %v1256_v50 = vpop.permute.xlu0 %1255  ;;  %v1254_v2 = vpop.permute.xlu1 %1253 }
 0x734   :  { %v1260_v51 = vmul.f32 %v1256_v50, %v1252_v1  ;;  %v1259_v55 = vmul.f32 %v1254_v2, %v7848_v12 }
 0x736   :  { %v7907_v54 = vadd.f32 %v1260_v51, %v1259_v55 }
 0x737   :  { %v1087_v5 = vpop.permute.xlu1 %1086  ;;  %v1258_v63 = vpop.permute.xlu0 %1257 }
 0x738   :  { %v7195_v56 = vpop.eup %7194  ;;  %7196 = vtanh.f32 %v7907_v54 }
 0x739   :  { %v1092_v22 = vmul.f32 %v7195_v56, %v1087_v5 }
 0x73b   :  { %v1093_v62 = vpack.c.bf16 %v1092_v22, %v1092_v22 }
 0x73d   :  { %6451 = vmatmul.mubr.msk.bf16.vlgmr.msra.gmra.mrb[36].mxu1 %vm335_vm5, %v1093_v62 }
 0x73e   :  { %6463 = vmatpush3.bf16.msra.mxu1 %v7591_v28  ;;  %6466 = vmatprep.mubr.msk.bf16.mxu1 %vm7444_vm0, %v7443_v0 }
 0x73f   :  { %6464 = vmatprep.subr.bf16.mxu1 %v7443_v0 }
 0x742   :  { %v7197_v48 = vpop.eup %7196  ;;  %6465 = vmatpush3.bf16.msra.mxu1 %v7606_v31 }
 0x743   :  { %v1263_v12 = vmul.f32 %v7197_v48, %v1258_v63  ;;  %6478 = vmatprep.subr.bf16.mxu1 %v7443_v0 }
 0x745   :  { %v7917_v9 = vpack.c.bf16 %v1263_v12, %v1263_v12  ;;  %6467 = vmatmul.mubr.msk.bf16.vlgmr.msra.gmra.mrb[40].mxu1 %vm335_vm5, %v1093_v62 }
 0x746   :  { %6479 = vmatpush3.bf16.msra.mxu1 %v7704_v29  ;;  %6482 = vmatprep.mubr.msk.bf16.mxu1 %vm7444_vm0, %v7443_v0 }
 0x747   :  { %6475 = vmatmul.mubr.msk.bf16.vlgmr.msra.gmra.mrb[44].mxu0 %vm335_vm5, %v7917_v9  ;;  %6480 = vmatprep.subr.bf16.mxu1 %v7443_v0 }
 0x748   :  { %6487 = vmatpush3.bf16.msra.mxu0 %v7722_v37  ;;  %6490 = vmatprep.mubr.msk.bf16.mxu0 %vm7444_vm0, %v7443_v0 }
 0x749   :  { %6488 = vmatprep.subr.bf16.mxu0 %v7443_v0 }
 0x74a   :  { %6481 = vmatpush3.bf16.msra.mxu1 %v7711_v30 }
 0x74b   :  { %6494 = vmatprep.subr.bf16.mxu1 %v7443_v0 }
 0x74c   :  { %6489 = vmatpush3.bf16.msra.mxu0 %v7733_v6 }
 0x74d   :  { %6502 = vmatprep.subr.bf16.mxu0 %v7443_v0 }
 0x810   :  { %v1174_v11 = vpop.f32.mrb[36].mxu1 }
 0x811   :  { %v1175_v15 = vadd.f32 %v1174_v11, %v7886_v61  ;;  %v6452_v16 = vpop.f32.mrb[37].mxu1 }
 0x812   :  { %v1177_v17 = vpop.f32.mrb[38].mxu1 }
 0x813   :  { %v1180_v38 = vadd.f32 %v7776_v26, %v1175_v15  ;;  %v6453_v20 = vpop.f32.mrb[39].mxu1 }
 0x815   :  { %v1181_v23 = vmul.f32 %v1180_v38, %v7585_v21 }
 0x817   :  { %7198 = vtanh.f32 %v1181_v23 }
 0x818   :  { %v1299_v24 = vpop.f32.mrb[40].mxu1 }
 0x819   :  { %v6468_v25 = vpop.f32.mrb[41].mxu1 }
 0x81a   :  { %v1302_v27 = vpop.f32.mrb[42].mxu1  ;;  %v1342_v32 = vpop.f32.mrb[44].mxu0 }
 0x81b   :  { %v1343_v18 = vadd.f32 %v1342_v32, %v1299_v24  ;;  %v6469_v1 = vpop.f32.mrb[43].mxu1  ;;  %v6476_v34 = vpop.f32.mrb[45].mxu0  ;;  %v5880_v24 = vld [vmem:[%s9431_s10 + $0x2] ss:$0 sm:$0xff] }
 0x81c   :  { %v1345_v35 = vpop.f32.mrb[46].mxu0 }
 0x81d   :  { %v1348_v14 = vadd.f32 %v7696_v10, %v1343_v18  ;;  %v6477_v19 = vpop.f32.mrb[47].mxu0 }
 0x81f   :  { %v1349_v61 = vmul.f32 %v1348_v14, %v7585_v21 }
 0x821   :  { %v7199_v50 = vpop.eup %7198  ;;  %7200 = vtanh.f32 %v1349_v61 }
 0x822   :  { %v1183_v2 = vmul.f32 %v7199_v50, %v7585_v21 }
 0x824   :  { %v1184_v51 = vadd.f32 %v1183_v2, %v7610_v33 }
 0x826   :  { %1187 = vrot.lane.b32.xlu0 %v1184_v51, %s7449_s0  ;;  %1185 = vrot.lane.b32.xlu1 %v1184_v51, %s7448_s18 }
 0x82b   :  { %v7201_v55 = vpop.eup %7200 }
 0x82c   :  { %v1351_v5 = vmul.f32 %v7201_v55, %v7585_v21 }
 0x82e   :  { %v1352_v56 = vadd.f32 %v1351_v5, %v7610_v33 }
 0x830   :  { %1355 = vrot.lane.b32.xlu0 %v1352_v56, %s7449_s0  ;;  %1353 = vrot.lane.b32.xlu1 %v1352_v56, %s7448_s18 }
 0x834   :  { %1357 = vrot.lane.b32.xlu0 %v1352_v56, %s7447_s17  ;;  %1189 = vrot.lane.b32.xlu1 %v1184_v51, %s7447_s17 }
 0x898   :  { %v1188_v22 = vpop.permute.xlu0 %1187  ;;  %v1186_v62 = vpop.permute.xlu1 %1185 }
 0x899   :  { %v1192_v48 = vmul.f32 %v1188_v22, %v1184_v51  ;;  %v1191_v63 = vmul.f32 %v1186_v62, %v7852_v52 }
 0x89b   :  { %v7950_v12 = vadd.f32 %v1192_v48, %v1191_v63 }
 0x89d   :  { %7202 = vtanh.f32 %v7950_v12 }
 0x8a2   :  { %v1356_v11 = vpop.permute.xlu0 %1355  ;;  %v1354_v15 = vpop.permute.xlu1 %1353 }
 0x8a3   :  { %v1360_v16 = vmul.f32 %v1356_v11, %v1352_v56  ;;  %v1359_v17 = vmul.f32 %v1354_v15, %v7903_v49  ;;  %v7967_v49 = vld [vmem:[%s9422_s2] sm:$0xff]  }
 0x8a5   :  { %v7954_v38 = vadd.f32 %v1360_v16, %v1359_v17 }
 0x8a6   :  { %v1190_v20 = vpop.permute.xlu1 %1189  ;;  %v1358_v1 = vpop.permute.xlu0 %1357 }
 0x8a7   :  { %v7203_v23 = vpop.eup %7202  ;;  %7204 = vtanh.f32 %v7954_v38 }
 0x8a8   :  { %v1195_v52 = vmul.f32 %v7203_v23, %v1190_v20 }
 0x8aa   :  { %v1196_v25 = vpack.c.bf16 %v1195_v52, %v1195_v52  ;;  %v1205_v27 = vmul.f32 %v5880_v24, %v1195_v52 }
 0x8ac   :  { %v7961_v32 = vadd.f32 %v1205_v27, %v7867_v53  ;;  %6483 = vmatmul.mubr.msk.bf16.vlgmr.msra.gmra.mrb[44].mxu1 %vm335_vm5, %v1196_v25  ;;  %v7976_v53 = vld [vmem:[%s9422_s2 + $0x8] sm:$0xff]  }
 0x8ad   :  { %6495 = vmatpush3.bf16.msra.mxu1 %v7967_v49  ;;  %6498 = vmatprep.mubr.msk.bf16.mxu1 %vm7444_vm0, %v7443_v0 }
 0x8ae   :  { %6496 = vmatprep.subr.bf16.mxu1 %v7443_v0 }
 0x8b1   :  { %v7205_v18 = vpop.eup %7204  ;;  %6497 = vmatpush3.bf16.msra.mxu1 %v7976_v53 }
 0x8b2   :  { %v1363_v34 = vmul.f32 %v7205_v18, %v1358_v1  ;;  %6510 = vmatprep.subr.bf16.mxu1 %v7443_v0 }
 0x8b4   :  { %v1364_v35 = vpack.c.bf16 %v1363_v34, %v1363_v34  ;;  %6499 = vmatmul.mubr.msk.bf16.vlgmr.msra.gmra.mrb[48].mxu1 %vm335_vm5, %v7917_v9 }
 0x8b5   :  { %6511 = vmatpush3.bf16.msra.mxu1 %v7622_v36  ;;  %6514 = vmatprep.mubr.msk.bf16.mxu1 %vm7444_vm0, %v7443_v0 }
 0x8b6   :  { %6491 = vmatmul.mubr.msk.bf16.vlgmr.msra.gmra.mrb[48].mxu0 %vm335_vm5, %v1364_v35  ;;  %6512 = vmatprep.subr.bf16.mxu1 %v7443_v0 }
 0x8b7   :  { %6503 = vmatpush3.bf16.msra.mxu0 %v7591_v28  ;;  %6506 = vmatprep.mubr.msk.bf16.mxu0 %vm7444_vm0, %v7443_v0 }
 0x8b8   :  { %6504 = vmatprep.subr.bf16.mxu0 %v7443_v0 }
 0x8b9   :  { %6513 = vmatpush3.bf16.msra.mxu1 %v7635_v39 }
 0x8ba   :  { %6526 = vmatprep.subr.bf16.mxu1 %v7443_v0 }
 0x8bb   :  { %6505 = vmatpush3.bf16.msra.mxu0 %v7606_v31  ;;  %v240_v31 = vadd.f32 %v7570_v13, %v7648_v41 }
 0x8bc   :  { %6518 = vmatprep.subr.bf16.mxu0 %v7443_v0 }
 0x8be   :  { %6507 = vmatmul.mubr.msk.bf16.vlgmr.msra.gmra.mrb[52].mxu0 %vm335_vm5, %v1364_v35 }
 0x8bf   :  { %6519 = vmatpush3.bf16.msra.mxu0 %v7704_v29  ;;  %6522 = vmatprep.mubr.msk.bf16.mxu0 %vm7444_vm0, %v7443_v0 }
 0x8c0   :  { %6520 = vmatprep.subr.bf16.mxu0 %v7443_v0 }
 0x8c3   :  { %6521 = vmatpush3.bf16.msra.mxu0 %v7711_v30 }
 0x8c4   :  { %6534 = vmatprep.subr.bf16.mxu0 %v7443_v0 }
 0x97f   :  { %v1402_v28 = vpop.f32.mrb[44].mxu1 }
 0x980   :  { %v6484_v36 = vpop.f32.mrb[45].mxu1 }
 0x981   :  { %v1405_v39 = vpop.f32.mrb[46].mxu1 }
 0x982   :  { %v6485_v9 = vpop.f32.mrb[47].mxu1 }
 0x987   :  { %v1513_v14 = vpop.f32.mrb[48].mxu1 }
 0x988   :  { %v1519_v19 = vadd.f32 %v1513_v14, %v240_v31  ;;  %v6500_v61 = vpop.f32.mrb[49].mxu1 }
 0x989   :  { %v1445_v29 = vpop.f32.mrb[48].mxu0  ;;  %v1516_v50 = vpop.f32.mrb[50].mxu1 }
 0x98a   :  { %v1520_v2 = vmul.f32 %v1519_v19, %v7585_v21  ;;  %v1446_v51 = vadd.f32 %v1445_v29, %v1402_v28  ;;  %v6492_v55 = vpop.f32.mrb[49].mxu0  ;;  %v6501_v5 = vpop.f32.mrb[51].mxu1 }
 0x98b   :  { %v1448_v30 = vpop.f32.mrb[50].mxu0 }
 0x98c   :  { %7206 = vtanh.f32 %v1520_v2  ;;  %v1451_v56 = vadd.f32 %v7776_v26, %v1446_v51  ;;  %v6493_v22 = vpop.f32.mrb[51].mxu0  ;;  %v8058_v51 = vld [vmem:[%s9426_s4 + $0x8] sm:$0xff]  }
 0x98e   :  { %v1452_v62 = vmul.f32 %v1451_v56, %v7585_v21 }
 0x990   :  { %7208 = vtanh.f32 %v1452_v62 }
 0x991   :  { %v1570_v48 = vpop.f32.mrb[52].mxu0 }
 0x992   :  { %v6508_v13 = vpop.f32.mrb[53].mxu0 }
 0x993   :  { %v1573_v41 = vpop.f32.mrb[54].mxu0 }
 0x994   :  { %v6509_v63 = vpop.f32.mrb[55].mxu0 }
 0x996   :  { %v7207_v11 = vpop.eup %7206 }
 0x997   :  { %v1522_v15 = vmul.f32 %v7207_v11, %v7585_v21 }
 0x999   :  { %v1523_v16 = vadd.f32 %v1522_v15, %v7610_v33 }
 0x99a   :  { %v7209_v17 = vpop.eup %7208 }
 0x99b   :  { %1526 = vrot.lane.b32.xlu0 %v1523_v16, %s7449_s0  ;;  %1524 = vrot.lane.b32.xlu1 %v1523_v16, %s7448_s18  ;;  %v1454_v20 = vmul.f32 %v7209_v17, %v7585_v21 }
 0x99d   :  { %v1455_v23 = vadd.f32 %v1454_v20, %v7610_v33 }
 0x99f   :  { %1458 = vrot.lane.b32.xlu0 %v1455_v23, %s7449_s0  ;;  %1456 = vrot.lane.b32.xlu1 %v1455_v23, %s7448_s18 }
 0x9a3   :  { %1460 = vrot.lane.b32.xlu0 %v1455_v23, %s7447_s17  ;;  %1528 = vrot.lane.b32.xlu1 %v1523_v16, %s7447_s17 }
 0xa0d   :  { %v1527_v24 = vpop.permute.xlu0 %1526  ;;  %v1525_v52 = vpop.permute.xlu1 %1524 }
 0xa0e   :  { %v1531_v25 = vmul.f32 %v1527_v24, %v1523_v16  ;;  %v1530_v27 = vmul.f32 %v1525_v52, %v7907_v54  ;;  %v5887_v54 = vld [vmem:[%s9431_s10 + $0x3] ss:$0 sm:$0xff]  ;;  %v8069_v16 = vld [vmem:[%s9424_s3] ss:$0 sm:$0xff] }
 0xa10   :  { %v8018_v18 = vadd.f32 %v1531_v25, %v1530_v27 }
 0xa11   :  { %v1459_v1 = vpop.permute.xlu0 %1458  ;;  %v1457_v34 = vpop.permute.xlu1 %1456 }
 0xa12   :  { %7210 = vtanh.f32 %v8018_v18  ;;  %v1463_v35 = vmul.f32 %v1459_v1, %v1455_v23  ;;  %v1462_v28 = vmul.f32 %v1457_v34, %v7950_v12 }
 0xa14   :  { %v8022_v36 = vadd.f32 %v1463_v35, %v1462_v28 }
 0xa15   :  { %v1529_v9 = vpop.permute.xlu1 %1528  ;;  %v1461_v61 = vpop.permute.xlu0 %1460 }
 0xa16   :  { %7212 = vtanh.f32 %v8022_v36 }
 0xa1c   :  { %v7211_v39 = vpop.eup %7210 }
 0xa1d   :  { %v1534_v31 = vmul.f32 %v7211_v39, %v1529_v9 }
 0xa1f   :  { %v1535_v14 = vpack.c.bf16 %v1534_v31, %v1534_v31 }
 0xa20   :  { %v7213_v19 = vpop.eup %7212 }
 0xa21   :  { %v1466_v29 = vmul.f32 %v7213_v19, %v1461_v61  ;;  %6515 = vmatmul.mubr.msk.bf16.vlgmr.msra.gmra.mrb[52].mxu1 %vm335_vm5, %v1535_v14 }
 0xa22   :  { %6527 = vmatpush3.bf16.msra.mxu1 %v7722_v37  ;;  %6530 = vmatprep.mubr.msk.bf16.mxu1 %vm7444_vm0, %v7443_v0 }
 0xa23   :  { %v1467_v12 = vpack.c.bf16 %v1466_v29, %v1466_v29  ;;  %v1476_v50 = vmul.f32 %v5887_v54, %v1466_v29  ;;  %6528 = vmatprep.subr.bf16.mxu1 %v7443_v0 }
 0xa25   :  { %v8034_v2 = vadd.f32 %v1476_v50, %v7961_v32  ;;  %6523 = vmatmul.mubr.msk.bf16.vlgmr.msra.gmra.mrb[56].mxu0 %vm335_vm5, %v1467_v12  ;;  %v8049_v32 = vld [vmem:[%s9426_s4] sm:$0xff]  }
 0xa26   :  { %6535 = vmatpush3.bf16.msra.mxu0 %v7967_v49  ;;  %6538 = vmatprep.mubr.msk.bf16.mxu0 %vm7444_vm0, %v7443_v0 }
 0xa27   :  { %6536 = vmatprep.subr.bf16.mxu0 %v7443_v0  ;;  %6529 = vmatpush3.bf16.msra.mxu1 %v7733_v6 }
 0xa28   :  { %6542 = vmatprep.subr.bf16.mxu1 %v7443_v0 }
 0xa2a   :  { %6537 = vmatpush3.bf16.msra.mxu0 %v7976_v53 }
 0xa2b   :  { %6550 = vmatprep.subr.bf16.mxu0 %v7443_v0 }
 0xa2d   :  { %6539 = vmatmul.mubr.msk.bf16.vlgmr.msra.gmra.mrb[60].mxu0 %vm335_vm5, %v1535_v14 }
 0xa2e   :  { %6551 = vmatpush3.bf16.msra.mxu0 %v8049_v32  ;;  %6554 = vmatprep.mubr.msk.bf16.mxu0 %vm7444_vm0, %v7443_v0 }
 0xa2f   :  { %6552 = vmatprep.subr.bf16.mxu0 %v7443_v0 }
 0xa32   :  { %6553 = vmatpush3.bf16.msra.mxu0 %v8058_v51 }
 0xa33   :  { %6566 = vmatprep.subr.bf16.mxu0 %v7443_v0 }
 0xaf4   :  { %v1613_v55 = vpop.f32.mrb[52].mxu1 }
 0xaf5   :  { %v1614_v5 = vadd.f32 %v1613_v55, %v1570_v48  ;;  %v6516_v30 = vpop.f32.mrb[53].mxu1  ;;  %v243_v48 = vadd.f32 %v8069_v16, %v7652_v43 }
 0xaf6   :  { %v1616_v56 = vpop.f32.mrb[54].mxu1 }
 0xaf7   :  { %v1619_v22 = vadd.f32 %v7696_v10, %v1614_v5  ;;  %v6517_v62 = vpop.f32.mrb[55].mxu1 }
 0xaf8   :  { %v8063_v13 = vpop.f32.mrb[56].mxu0 }
 0xaf9   :  { %v1620_v41 = vmul.f32 %v1619_v22, %v7585_v21  ;;  %v6524_v63 = vpop.f32.mrb[57].mxu0  ;;  %v8105_v22 = vld [vmem:[%s9425_s5 + $0x8] sm:$0xff]  }
 0xafa   :  { %v1676_v11 = vpop.f32.mrb[58].mxu0  ;;  %v8115_v63 = vld [vmem:[%s9428_s8] sm:$0xff]  }
 0xafb   :  { %7214 = vtanh.f32 %v1620_v41  ;;  %v6525_v15 = vpop.f32.mrb[59].mxu0  ;;  %v8130_v11 = vld [vmem:[%s9428_s8 + $0x8] sm:$0xff]  }
 0xb00   :  { %v1784_v17 = vpop.f32.mrb[60].mxu0 }
 0xb01   :  { %v1790_v20 = vadd.f32 %v1784_v17, %v243_v48  ;;  %v6540_v10 = vpop.f32.mrb[61].mxu0 }
 0xb02   :  { %v1787_v23 = vpop.f32.mrb[62].mxu0 }
 0xb03   :  { %v1791_v24 = vmul.f32 %v1790_v20, %v7585_v21  ;;  %v6541_v52 = vpop.f32.mrb[63].mxu0 }
 0xb05   :  { %v7215_v25 = vpop.eup %7214  ;;  %7216 = vtanh.f32 %v1791_v24 }
 0xb06   :  { %v1622_v27 = vmul.f32 %v7215_v25, %v7585_v21 }
 0xb08   :  { %v1623_v1 = vadd.f32 %v1622_v27, %v7610_v33 }
 0xb0a   :  { %1626 = vrot.lane.b32.xlu0 %v1623_v1, %s7449_s0  ;;  %1624 = vrot.lane.b32.xlu1 %v1623_v1, %s7448_s18 }
 0xb0f   :  { %v7217_v34 = vpop.eup %7216 }
 0xb10   :  { %v1793_v43 = vmul.f32 %v7217_v34, %v7585_v21 }
 0xb12   :  { %v1794_v35 = vadd.f32 %v1793_v43, %v7610_v33 }
 0xb14   :  { %1797 = vrot.lane.b32.xlu0 %v1794_v35, %s7449_s0  ;;  %1795 = vrot.lane.b32.xlu1 %v1794_v35, %s7448_s18 }
 0xb18   :  { %1799 = vrot.lane.b32.xlu0 %v1794_v35, %s7447_s17  ;;  %1628 = vrot.lane.b32.xlu1 %v1623_v1, %s7447_s17 }
 0xb7c   :  { %v1627_v28 = vpop.permute.xlu0 %1626  ;;  %v1625_v39 = vpop.permute.xlu1 %1624 }
 0xb7d   :  { %v1631_v9 = vmul.f32 %v1627_v28, %v1623_v1  ;;  %v1630_v31 = vmul.f32 %v1625_v39, %v7954_v38  ;;  %v8096_v38 = vld [vmem:[%s9425_s5] sm:$0xff]  }
 0xb7f   :  { %v8085_v14 = vadd.f32 %v1631_v9, %v1630_v31 }
 0xb81   :  { %7218 = vtanh.f32 %v8085_v14 }
 0xb86   :  { %v1798_v19 = vpop.permute.xlu0 %1797  ;;  %v1796_v54 = vpop.permute.xlu1 %1795 }
 0xb87   :  { %v1802_v61 = vmul.f32 %v1798_v19, %v1794_v35  ;;  %v1801_v29 = vmul.f32 %v1796_v54, %v8018_v18 }
 0xb89   :  { %v8089_v12 = vadd.f32 %v1802_v61, %v1801_v29 }
 0xb8a   :  { %v1629_v50 = vpop.permute.xlu1 %1628  ;;  %v1800_v56 = vpop.permute.xlu0 %1799 }
 0xb8b   :  { %v7219_v55 = vpop.eup %7218  ;;  %7220 = vtanh.f32 %v8089_v12 }
 0xb8c   :  { %v1634_v5 = vmul.f32 %v7219_v55, %v1629_v50 }
 0xb8e   :  { %v1635_v30 = vpack.c.bf16 %v1634_v5, %v1634_v5 }
 0xb90   :  { %6531 = vmatmul.mubr.msk.bf16.vlgmr.msra.gmra.mrb[56].mxu1 %vm335_vm5, %v1635_v30 }
 0xb91   :  { %6543 = vmatpush3.bf16.msra.mxu1 %v8096_v38  ;;  %6546 = vmatprep.mubr.msk.bf16.mxu1 %vm7444_vm0, %v7443_v0 }
 0xb92   :  { %6544 = vmatprep.subr.bf16.mxu1 %v7443_v0 }
 0xb95   :  { %v7221_v18 = vpop.eup %7220  ;;  %6545 = vmatpush3.bf16.msra.mxu1 %v8105_v22 }
 0xb96   :  { %v1805_v62 = vmul.f32 %v7221_v18, %v1800_v56  ;;  %6558 = vmatprep.subr.bf16.mxu1 %v7443_v0 }
 0xb98   :  { %v8109_v41 = vpack.c.bf16 %v1805_v62, %v1805_v62  ;;  %6547 = vmatmul.mubr.msk.bf16.vlgmr.msra.gmra.mrb[60].mxu1 %vm335_vm5, %v1635_v30 }
 0xb99   :  { %6559 = vmatpush3.bf16.msra.mxu1 %v8115_v63  ;;  %6562 = vmatprep.mubr.msk.bf16.mxu1 %vm7444_vm0, %v7443_v0 }
 0xb9a   :  { %6555 = vmatmul.mubr.msk.bf16.vlgmr.msra.gmra.mrb[64].mxu0 %vm335_vm5, %v8109_v41  ;;  %6560 = vmatprep.subr.bf16.mxu1 %v7443_v0 }
 0xb9b   :  { %6567 = vmatpush3.bf16.msra.mxu0 %v7722_v37  ;;  %6570 = vmatprep.mubr.msk.bf16.mxu0 %vm7444_vm0, %v7443_v0 }
 0xb9c   :  { %6568 = vmatprep.subr.bf16.mxu0 %v7443_v0 }
 0xb9d   :  { %6561 = vmatpush3.bf16.msra.mxu1 %v8130_v11 }
 0xb9e   :  { %6574 = vmatprep.subr.bf16.mxu1 %v7443_v0 }
 0xb9f   :  { %6569 = vmatpush3.bf16.msra.mxu0 %v7733_v6 }
 0xba0   :  { %6582 = vmatprep.subr.bf16.mxu0 %v7443_v0 }
 0xc63   :  { %v1716_v15 = vpop.f32.mrb[56].mxu1 }
 0xc64   :  { %v1717_v37 = vadd.f32 %v1716_v15, %v8063_v13  ;;  %v6532_v48 = vpop.f32.mrb[57].mxu1  ;;  %v8142_v13 = vld [vmem:[%s9427_s6] ss:$0 sm:$0xff] }
 0xc65   :  { %v1719_v17 = vpop.f32.mrb[58].mxu1 }
 0xc66   :  { %v1722_v20 = vadd.f32 %v7776_v26, %v1717_v37  ;;  %v6533_v10 = vpop.f32.mrb[59].mxu1 }
 0xc68   :  { %v1723_v23 = vmul.f32 %v1722_v20, %v7585_v21  ;;  %v5894_v20 = vld [vmem:[%s9431_s10 + $0x4] ss:$0 sm:$0xff] }
 0xc6a   :  { %7222 = vtanh.f32 %v1723_v23 }
 0xc6b   :  { %v1841_v24 = vpop.f32.mrb[60].mxu1 }
 0xc6c   :  { %v6548_v52 = vpop.f32.mrb[61].mxu1 }
 0xc6d   :  { %v1844_v25 = vpop.f32.mrb[62].mxu1  ;;  %v1884_v27 = vpop.f32.mrb[64].mxu0 }
 0xc6e   :  { %v1885_v1 = vadd.f32 %v1884_v27, %v1841_v24  ;;  %v6549_v34 = vpop.f32.mrb[63].mxu1  ;;  %v6556_v6 = vpop.f32.mrb[65].mxu0 }
 0xc6f   :  { %v1887_v43 = vpop.f32.mrb[66].mxu0  ;;  %v248_v6 = vadd.f32 %v8069_v16, %v7646_v40 }
 0xc70   :  { %v1890_v35 = vadd.f32 %v8142_v13, %v1885_v1  ;;  %v6557_v26 = vpop.f32.mrb[67].mxu0 }
 0xc72   :  { %v1891_v28 = vmul.f32 %v1890_v35, %v7585_v21 }
 0xc74   :  { %v7223_v39 = vpop.eup %7222  ;;  %7224 = vtanh.f32 %v1891_v28 }
 0xc75   :  { %v1725_v9 = vmul.f32 %v7223_v39, %v7585_v21 }
 0xc77   :  { %v1726_v31 = vadd.f32 %v1725_v9, %v7610_v33 }
 0xc79   :  { %1729 = vrot.lane.b32.xlu0 %v1726_v31, %s7449_s0  ;;  %1727 = vrot.lane.b32.xlu1 %v1726_v31, %s7448_s18 }
 0xc7e   :  { %v7225_v19 = vpop.eup %7224 }
 0xc7f   :  { %v1893_v54 = vmul.f32 %v7225_v19, %v7585_v21 }
 0xc81   :  { %v1894_v61 = vadd.f32 %v1893_v54, %v7610_v33 }
 0xc83   :  { %1897 = vrot.lane.b32.xlu0 %v1894_v61, %s7449_s0  ;;  %1895 = vrot.lane.b32.xlu1 %v1894_v61, %s7448_s18 }
 0xc87   :  { %1899 = vrot.lane.b32.xlu0 %v1894_v61, %s7447_s17  ;;  %1731 = vrot.lane.b32.xlu1 %v1726_v31, %s7447_s17 }
 0xceb   :  { %v1730_v29 = vpop.permute.xlu0 %1729  ;;  %v1728_v50 = vpop.permute.xlu1 %1727 }
 0xcec   :  { %v1734_v55 = vmul.f32 %v1730_v29, %v1726_v31  ;;  %v1733_v5 = vmul.f32 %v1728_v50, %v8022_v36  ;;  %v8205_v29 = vld [vmem:[%s9430_s9] ss:$0 sm:$0xff] }
 0xcee   :  { %v8157_v30 = vadd.f32 %v1734_v55, %v1733_v5 }
 0xcf0   :  { %7226 = vtanh.f32 %v8157_v30 }
 0xcf5   :  { %v1898_v18 = vpop.permute.xlu0 %1897  ;;  %v1896_v56 = vpop.permute.xlu1 %1895 }
 0xcf6   :  { %v1902_v62 = vmul.f32 %v1898_v18, %v1894_v61  ;;  %v1901_v15 = vmul.f32 %v1896_v56, %v8085_v14 }
 0xcf8   :  { %v8161_v37 = vadd.f32 %v1902_v62, %v1901_v15 }
 0xcf9   :  { %v1732_v48 = vpop.permute.xlu1 %1731  ;;  %v1900_v52 = vpop.permute.xlu0 %1899 }
 0xcfa   :  { %v7227_v17 = vpop.eup %7226  ;;  %7228 = vtanh.f32 %v8161_v37 }
 0xcfb   :  { %v1737_v36 = vmul.f32 %v7227_v17, %v1732_v48 }
 0xcfd   :  { %v1738_v10 = vpack.c.bf16 %v1737_v36, %v1737_v36  ;;  %v1747_v23 = vmul.f32 %v5894_v20, %v1737_v36 }
 0xcff   :  { %v8168_v24 = vadd.f32 %v1747_v23, %v8034_v2  ;;  %6563 = vmatmul.mubr.msk.bf16.vlgmr.msra.gmra.mrb[64].mxu1 %vm335_vm5, %v1738_v10 }
 0xd00   :  { %6575 = vmatpush3.bf16.msra.mxu1 %v7967_v49  ;;  %6578 = vmatprep.mubr.msk.bf16.mxu1 %vm7444_vm0, %v7443_v0 }
 0xd01   :  { %6576 = vmatprep.subr.bf16.mxu1 %v7443_v0 }
 0xd04   :  { %v7229_v14 = vpop.eup %7228  ;;  %6577 = vmatpush3.bf16.msra.mxu1 %v7976_v53 }
 0xd05   :  { %v1905_v25 = vmul.f32 %v7229_v14, %v1900_v52  ;;  %6590 = vmatprep.subr.bf16.mxu1 %v7443_v0 }
 0xd07   :  { %v1906_v27 = vpack.c.bf16 %v1905_v25, %v1905_v25  ;;  %6579 = vmatmul.mubr.msk.bf16.vlgmr.msra.gmra.mrb[68].mxu1 %vm335_vm5, %v8109_v41 }
 0xd08   :  { %6591 = vmatpush3.bf16.msra.mxu1 %v8049_v32  ;;  %6594 = vmatprep.mubr.msk.bf16.mxu1 %vm7444_vm0, %v7443_v0 }
 0xd09   :  { %6571 = vmatmul.mubr.msk.bf16.vlgmr.msra.gmra.mrb[68].mxu0 %vm335_vm5, %v1906_v27  ;;  %6592 = vmatprep.subr.bf16.mxu1 %v7443_v0 }
 0xd0a   :  { %6583 = vmatpush3.bf16.msra.mxu0 %v8096_v38  ;;  %6586 = vmatprep.mubr.msk.bf16.mxu0 %vm7444_vm0, %v7443_v0 }
 0xd0b   :  { %6584 = vmatprep.subr.bf16.mxu0 %v7443_v0 }
 0xd0c   :  { %6593 = vmatpush3.bf16.msra.mxu1 %v8058_v51 }
 0xd0d   :  { %6606 = vmatprep.subr.bf16.mxu1 %v7443_v0 }
 0xd0e   :  { %6585 = vmatpush3.bf16.msra.mxu0 %v8105_v22 }
 0xd0f   :  { %6598 = vmatprep.subr.bf16.mxu0 %v7443_v0 }
 0xd11   :  { %6587 = vmatmul.mubr.msk.bf16.vlgmr.msra.gmra.mrb[72].mxu0 %vm335_vm5, %v1906_v27 }
 0xd12   :  { %6599 = vmatpush3.bf16.msra.mxu0 %v8115_v63  ;;  %6602 = vmatprep.mubr.msk.bf16.mxu0 %vm7444_vm0, %v7443_v0 }
 0xd13   :  { %6600 = vmatprep.subr.bf16.mxu0 %v7443_v0 }
 0xd16   :  { %6601 = vmatpush3.bf16.msra.mxu0 %v8130_v11 }
 0xd17   :  { %6614 = vmatprep.subr.bf16.mxu0 %v7443_v0 }
 0xdd2   :  { %v1944_v2 = vpop.f32.mrb[64].mxu1 }
 0xdd3   :  { %v6564_v41 = vpop.f32.mrb[65].mxu1 }
 0xdd4   :  { %v1947_v1 = vpop.f32.mrb[66].mxu1 }
 0xdd5   :  { %v6565_v34 = vpop.f32.mrb[67].mxu1 }
 0xdda   :  { %v2055_v43 = vpop.f32.mrb[68].mxu1 }
 0xddb   :  { %v2061_v35 = vadd.f32 %v2055_v43, %v248_v6  ;;  %v6580_v26 = vpop.f32.mrb[69].mxu1 }
 0xddc   :  { %v1987_v28 = vpop.f32.mrb[68].mxu0  ;;  %v2058_v39 = vpop.f32.mrb[70].mxu1 }
 0xddd   :  { %v2062_v9 = vmul.f32 %v2061_v35, %v7585_v21  ;;  %v1988_v31 = vadd.f32 %v1987_v28, %v1944_v2  ;;  %v6572_v19 = vpop.f32.mrb[69].mxu0  ;;  %v6581_v54 = vpop.f32.mrb[71].mxu1 }
 0xdde   :  { %v1990_v61 = vpop.f32.mrb[70].mxu0 }
 0xddf   :  { %7230 = vtanh.f32 %v2062_v9  ;;  %v1993_v50 = vadd.f32 %v8205_v29, %v1988_v31  ;;  %v6573_v40 = vpop.f32.mrb[71].mxu0 }
 0xde1   :  { %v1994_v55 = vmul.f32 %v1993_v50, %v7585_v21  ;;  %v8251_v50 = vld [vmem:[%s9429_s7 + $0x8] sm:$0xff]  }
 0xde3   :  { %7232 = vtanh.f32 %v1994_v55 }
 0xde4   :  { %v2112_v5 = vpop.f32.mrb[72].mxu0 }
 0xde5   :  { %v6588_v18 = vpop.f32.mrb[73].mxu0 }
 0xde6   :  { %v2115_v56 = vpop.f32.mrb[74].mxu0 }
 0xde7   :  { %v6589_v62 = vpop.f32.mrb[75].mxu0 }
 0xde9   :  { %v7231_v15 = vpop.eup %7230 }
 0xdea   :  { %v2064_v48 = vmul.f32 %v7231_v15, %v7585_v21 }
 0xdec   :  { %v2065_v17 = vadd.f32 %v2064_v48, %v7610_v33 }
 0xded   :  { %v7233_v20 = vpop.eup %7232 }
 0xdee   :  { %2068 = vrot.lane.b32.xlu0 %v2065_v17, %s7449_s0  ;;  %2066 = vrot.lane.b32.xlu1 %v2065_v17, %s7448_s18  ;;  %v1996_v36 = vmul.f32 %v7233_v20, %v7585_v21 }
 0xdf0   :  { %v1997_v10 = vadd.f32 %v1996_v36, %v7610_v33 }
 0xdf2   :  { %2000 = vrot.lane.b32.xlu0 %v1997_v10, %s7449_s0  ;;  %1998 = vrot.lane.b32.xlu1 %v1997_v10, %s7448_s18 }
 0xdf6   :  { %2002 = vrot.lane.b32.xlu0 %v1997_v10, %s7447_s17  ;;  %2070 = vrot.lane.b32.xlu1 %v2065_v17, %s7447_s17 }
 0xe60   :  { %v2069_v23 = vpop.permute.xlu0 %2068  ;;  %v2067_v14 = vpop.permute.xlu1 %2066 }
 0xe61   :  { %v2073_v52 = vmul.f32 %v2069_v23, %v2065_v17  ;;  %v2072_v25 = vmul.f32 %v2067_v14, %v8089_v12  ;;  %v5901_v12 = vld [vmem:[%s9431_s10 + $0x5] ss:$0 sm:$0xff] }
 0xe63   :  { %v8220_v27 = vadd.f32 %v2073_v52, %v2072_v25 }
 0xe64   :  { %v2001_v2 = vpop.permute.xlu0 %2000  ;;  %v1999_v41 = vpop.permute.xlu1 %1998 }
 0xe65   :  { %7234 = vtanh.f32 %v8220_v27  ;;  %v2005_v1 = vmul.f32 %v2001_v2, %v1997_v10  ;;  %v2004_v34 = vmul.f32 %v1999_v41, %v8157_v30  ;;  %v8234_v30 = vld [vmem:[%s9429_s7] sm:$0xff]   ;;  %v251_v10 = vadd.f32 %v8069_v16, %v7650_v42 }
 0xe67   :  { %v8224_v6 = vadd.f32 %v2005_v1, %v2004_v34 }
 0xe68   :  { %v2071_v35 = vpop.permute.xlu1 %2070  ;;  %v2003_v9 = vpop.permute.xlu0 %2002 }
 0xe69   :  { %7236 = vtanh.f32 %v8224_v6 }
 0xe6f   :  { %v7235_v43 = vpop.eup %7234 }
 0xe70   :  { %v2076_v26 = vmul.f32 %v7235_v43, %v2071_v35 }
 0xe72   :  { %v2077_v28 = vpack.c.bf16 %v2076_v26, %v2076_v26 }
 0xe73   :  { %v7237_v39 = vpop.eup %7236 }
 0xe74   :  { %v2008_v31 = vmul.f32 %v7237_v39, %v2003_v9  ;;  %6595 = vmatmul.mubr.msk.bf16.vlgmr.msra.gmra.mrb[72].mxu1 %vm335_vm5, %v2077_v28 }
 0xe75   :  { %6607 = vmatpush3.bf16.msra.mxu1 %v8234_v30  ;;  %6610 = vmatprep.mubr.msk.bf16.mxu1 %vm7444_vm0, %v7443_v0 }
 0xe76   :  { %v2009_v19 = vpack.c.bf16 %v2008_v31, %v2008_v31  ;;  %v2018_v54 = vmul.f32 %v5901_v12, %v2008_v31  ;;  %6608 = vmatprep.subr.bf16.mxu1 %v7443_v0 }
 0xe78   :  { %v8241_v61 = vadd.f32 %v2018_v54, %v8168_v24  ;;  %6603 = vmatmul.mubr.msk.bf16.vlgmr.msra.gmra.mrb[76].mxu0 %vm335_vm5, %v2009_v19 }
 0xe79   :  { %6615 = vmatpush3.bf16.msra.mxu0 %v7967_v49  ;;  %6618 = vmatprep.mubr.msk.bf16.mxu0 %vm7444_vm0, %v7443_v0 }
 0xe7a   :  { %6616 = vmatprep.subr.bf16.mxu0 %v7443_v0  ;;  %6609 = vmatpush3.bf16.msra.mxu1 %v8251_v50 }
 0xe7b   :  { %6622 = vmatprep.subr.bf16.mxu1 %v7443_v0 }
 0xe7d   :  { %6617 = vmatpush3.bf16.msra.mxu0 %v7976_v53 }
 0xe7e   :  { %6630 = vmatprep.subr.bf16.mxu0 %v7443_v0 }
 0xe80   :  { %6619 = vmatmul.mubr.msk.bf16.vlgmr.msra.gmra.mrb[80].mxu0 %vm335_vm5, %v2077_v28 }
 0xe81   :  { %6631 = vmatpush3.bf16.msra.mxu0 %v8049_v32  ;;  %6634 = vmatprep.mubr.msk.bf16.mxu0 %vm7444_vm0, %v7443_v0 }
 0xe82   :  { %6632 = vmatprep.subr.bf16.mxu0 %v7443_v0 }
 0xe85   :  { %6633 = vmatpush3.bf16.msra.mxu0 %v8058_v51 }
 0xe86   :  { %6646 = vmatprep.subr.bf16.mxu0 %v7443_v0 }
 0xf47   :  { %v2155_v24 = vpop.f32.mrb[72].mxu1 }
 0xf48   :  { %v2156_v40 = vadd.f32 %v2155_v24, %v2112_v5  ;;  %v6596_v55 = vpop.f32.mrb[73].mxu1 }
 0xf49   :  { %v2158_v18 = vpop.f32.mrb[74].mxu1 }
 0xf4a   :  { %v2161_v56 = vadd.f32 %v8142_v13, %v2156_v40  ;;  %v6597_v62 = vpop.f32.mrb[75].mxu1 }
 0xf4b   :  { %v8265_v15 = vpop.f32.mrb[76].mxu0 }
 0xf4c   :  { %v2162_v48 = vmul.f32 %v2161_v56, %v7585_v21  ;;  %v6604_v17 = vpop.f32.mrb[77].mxu0 }
 0xf4d   :  { %v2218_v20 = vpop.f32.mrb[78].mxu0 }
 0xf4e   :  { %7238 = vtanh.f32 %v2162_v48  ;;  %v6605_v36 = vpop.f32.mrb[79].mxu0 }
 0xf53   :  { %v2326_v23 = vpop.f32.mrb[80].mxu0 }
 0xf54   :  { %v2332_v14 = vadd.f32 %v2326_v23, %v251_v10  ;;  %v6620_v52 = vpop.f32.mrb[81].mxu0 }
 0xf55   :  { %v2329_v5 = vpop.f32.mrb[82].mxu0 }
 0xf56   :  { %v2333_v25 = vmul.f32 %v2332_v14, %v7585_v21  ;;  %v6621_v2 = vpop.f32.mrb[83].mxu0 }
 0xf58   :  { %v7239_v41 = vpop.eup %7238  ;;  %7240 = vtanh.f32 %v2333_v25 }
 0xf59   :  { %v2164_v1 = vmul.f32 %v7239_v41, %v7585_v21 }
 0xf5b   :  { %v2165_v34 = vadd.f32 %v2164_v1, %v7610_v33 }
 0xf5d   :  { %2168 = vrot.lane.b32.xlu0 %v2165_v34, %s7449_s0  ;;  %2166 = vrot.lane.b32.xlu1 %v2165_v34, %s7448_s18 }
 0xf62   :  { %v7241_v43 = vpop.eup %7240 }
 0xf63   :  { %v2335_v42 = vmul.f32 %v7241_v43, %v7585_v21 }
 0xf65   :  { %v2336_v35 = vadd.f32 %v2335_v42, %v7610_v33 }
 0xf67   :  { %2339 = vrot.lane.b32.xlu0 %v2336_v35, %s7449_s0  ;;  %2337 = vrot.lane.b32.xlu1 %v2336_v35, %s7448_s18 }
 0xf6b   :  { %2341 = vrot.lane.b32.xlu0 %v2336_v35, %s7447_s17  ;;  %2170 = vrot.lane.b32.xlu1 %v2165_v34, %s7447_s17 }
 0xfcf   :  { %v2169_v26 = vpop.permute.xlu0 %2168  ;;  %v2167_v28 = vpop.permute.xlu1 %2166 }
 0xfd0   :  { %v2173_v39 = vmul.f32 %v2169_v26, %v2165_v34  ;;  %v2172_v12 = vmul.f32 %v2167_v28, %v8161_v37 }
 0xfd2   :  { %v8282_v9 = vadd.f32 %v2173_v39, %v2172_v12 }
 0xfd4   :  { %7242 = vtanh.f32 %v8282_v9 }
 0xfd9   :  { %v2340_v31 = vpop.permute.xlu0 %2339  ;;  %v2338_v19 = vpop.permute.xlu1 %2337 }
 0xfda   :  { %v2344_v54 = vmul.f32 %v2340_v31, %v2336_v35  ;;  %v2343_v24 = vmul.f32 %v2338_v19, %v8220_v27 }
 0xfdc   :  { %v8286_v40 = vadd.f32 %v2344_v54, %v2343_v24 }
 0xfdd   :  { %v2171_v55 = vpop.permute.xlu1 %2170  ;;  %v2342_v48 = vpop.permute.xlu0 %2341 }
 0xfde   :  { %v7243_v18 = vpop.eup %7242  ;;  %7244 = vtanh.f32 %v8286_v40 }
 0xfdf   :  { %v2176_v56 = vmul.f32 %v7243_v18, %v2171_v55 }
 0xfe1   :  { %v2177_v62 = vpack.c.bf16 %v2176_v56, %v2176_v56 }
 0xfe3   :  { %6611 = vmatmul.mubr.msk.bf16.vlgmr.msra.gmra.mrb[76].mxu1 %vm335_vm5, %v2177_v62 }
 0xfe4   :  { %6623 = vmatpush3.bf16.msra.mxu1 %v8096_v38  ;;  %6626 = vmatprep.mubr.msk.bf16.mxu1 %vm7444_vm0, %v7443_v0 }
 0xfe5   :  { %6624 = vmatprep.subr.bf16.mxu1 %v7443_v0 }
 0xfe8   :  { %v7245_v37 = vpop.eup %7244  ;;  %6625 = vmatpush3.bf16.msra.mxu1 %v8105_v22 }
 0xfe9   :  { %v2347_v27 = vmul.f32 %v7245_v37, %v2342_v48  ;;  %6638 = vmatprep.subr.bf16.mxu1 %v7443_v0 }
 0xfeb   :  { %v8296_v17 = vpack.c.bf16 %v2347_v27, %v2347_v27  ;;  %6627 = vmatmul.mubr.msk.bf16.vlgmr.msra.gmra.mrb[80].mxu1 %vm335_vm5, %v2177_v62 }
 0xfec   :  { %6639 = vmatpush3.bf16.msra.mxu1 %v8115_v63  ;;  %6642 = vmatprep.mubr.msk.bf16.mxu1 %vm7444_vm0, %v7443_v0 }
 0xfed   :  { %6635 = vmatmul.mubr.msk.bf16.vlgmr.msra.gmra.mrb[84].mxu0 %vm335_vm5, %v8296_v17  ;;  %6640 = vmatprep.subr.bf16.mxu1 %v7443_v0 }
 0xfee   :  { %6647 = vmatpush3.bf16.msra.mxu0 %v8234_v30  ;;  %6650 = vmatprep.mubr.msk.bf16.mxu0 %vm7444_vm0, %v7443_v0 }
 0xfef   :  { %6648 = vmatprep.subr.bf16.mxu0 %v7443_v0 }
 0xff0   :  { %6641 = vmatpush3.bf16.msra.mxu1 %v8130_v11 }
 0xff1   :  { %6654 = vmatprep.subr.bf16.mxu1 %v7443_v0 }
 0xff2   :  { %6649 = vmatpush3.bf16.msra.mxu0 %v8251_v50 }
 0xff3   :  { %6662 = vmatprep.subr.bf16.mxu0 %v7443_v0 }
0x10b6   :  { %v2258_v20 = vpop.f32.mrb[76].mxu1 }
0x10b7   :  { %v2259_v36 = vadd.f32 %v2258_v20, %v8265_v15  ;;  %v6612_v10 = vpop.f32.mrb[77].mxu1 }
0x10b8   :  { %v2261_v23 = vpop.f32.mrb[78].mxu1 }
0x10b9   :  { %v2264_v14 = vadd.f32 %v8205_v29, %v2259_v36  ;;  %v6613_v52 = vpop.f32.mrb[79].mxu1 }
0x10ba   :  { %v5908_v52 = vld [vmem:[%s9431_s10 + $0x6] ss:$0 sm:$0xff] }
0x10bb   :  { %v2265_v5 = vmul.f32 %v2264_v14, %v7585_v21 }
0x10bd   :  { %7246 = vtanh.f32 %v2265_v5 }
0x10be   :  { %v2383_v25 = vpop.f32.mrb[80].mxu1 }
0x10bf   :  { %v6628_v2 = vpop.f32.mrb[81].mxu1 }
0x10c0   :  { %v2386_v41 = vpop.f32.mrb[82].mxu1  ;;  %v2426_v1 = vpop.f32.mrb[84].mxu0 }
0x10c1   :  { %v2427_v34 = vadd.f32 %v2426_v1, %v2383_v25  ;;  %v6629_v43 = vpop.f32.mrb[83].mxu1  ;;  %v6636_v42 = vpop.f32.mrb[85].mxu0 }
0x10c2   :  { %v2429_v35 = vpop.f32.mrb[86].mxu0  ;;  %v256_v43 = vadd.f32 %v8069_v16, %v7656_v45 }
0x10c3   :  { %v2432_v26 = vadd.f32 %v8142_v13, %v2427_v34  ;;  %v6637_v28 = vpop.f32.mrb[87].mxu0 }
0x10c5   :  { %v2433_v15 = vmul.f32 %v2432_v26, %v7585_v21 }
0x10c7   :  { %v7247_v39 = vpop.eup %7246  ;;  %7248 = vtanh.f32 %v2433_v15 }
0x10c8   :  { %v2267_v12 = vmul.f32 %v7247_v39, %v7585_v21 }
0x10ca   :  { %v2268_v31 = vadd.f32 %v2267_v12, %v7610_v33 }
0x10cc   :  { %2271 = vrot.lane.b32.xlu0 %v2268_v31, %s7449_s0  ;;  %2269 = vrot.lane.b32.xlu1 %v2268_v31, %s7448_s18 }
0x10d1   :  { %v7249_v19 = vpop.eup %7248 }
0x10d2   :  { %v2435_v54 = vmul.f32 %v7249_v19, %v7585_v21 }
0x10d4   :  { %v2436_v24 = vadd.f32 %v2435_v54, %v7610_v33 }
0x10d6   :  { %2439 = vrot.lane.b32.xlu0 %v2436_v24, %s7449_s0  ;;  %2437 = vrot.lane.b32.xlu1 %v2436_v24, %s7448_s18 }
0x10da   :  { %2441 = vrot.lane.b32.xlu0 %v2436_v24, %s7447_s17  ;;  %2273 = vrot.lane.b32.xlu1 %v2268_v31, %s7447_s17 }
0x113e   :  { %v2272_v55 = vpop.permute.xlu0 %2271  ;;  %v2270_v18 = vpop.permute.xlu1 %2269 }
0x113f   :  { %v2276_v56 = vmul.f32 %v2272_v55, %v2268_v31  ;;  %v2275_v62 = vmul.f32 %v2270_v18, %v8224_v6 }
0x1141   :  { %v8329_v37 = vadd.f32 %v2276_v56, %v2275_v62 }
0x1143   :  { %7250 = vtanh.f32 %v8329_v37 }
0x1148   :  { %v2440_v48 = vpop.permute.xlu0 %2439  ;;  %v2438_v27 = vpop.permute.xlu1 %2437 }
0x1149   :  { %v2444_v20 = vmul.f32 %v2440_v48, %v2436_v24  ;;  %v2443_v36 = vmul.f32 %v2438_v27, %v8282_v9 }
0x114b   :  { %v8333_v10 = vadd.f32 %v2444_v20, %v2443_v36 }
0x114c   :  { %v2274_v23 = vpop.permute.xlu1 %2273  ;;  %v2442_v41 = vpop.permute.xlu0 %2441 }
0x114d   :  { %v7251_v14 = vpop.eup %7250  ;;  %7252 = vtanh.f32 %v8333_v10 }
0x114e   :  { %v2279_v6 = vmul.f32 %v7251_v14, %v2274_v23 }
0x1150   :  { %v2280_v5 = vpack.c.bf16 %v2279_v6, %v2279_v6  ;;  %v2289_v25 = vmul.f32 %v5908_v52, %v2279_v6 }
0x1152   :  { %v8340_v2 = vadd.f32 %v2289_v25, %v8241_v61  ;;  %6643 = vmatmul.mubr.msk.bf16.vlgmr.msra.gmra.mrb[84].mxu1 %vm335_vm5, %v2280_v5 }
0x1153   :  { %6655 = vmatpush3.bf16.msra.mxu1 %v7967_v49  ;;  %6658 = vmatprep.mubr.msk.bf16.mxu1 %vm7444_vm0, %v7443_v0 }
0x1154   :  { %6656 = vmatprep.subr.bf16.mxu1 %v7443_v0 }
0x1157   :  { %v7253_v9 = vpop.eup %7252  ;;  %6657 = vmatpush3.bf16.msra.mxu1 %v7976_v53 }
0x1158   :  { %v2447_v1 = vmul.f32 %v7253_v9, %v2442_v41  ;;  %6670 = vmatprep.subr.bf16.mxu1 %v7443_v0 }
0x115a   :  { %v2448_v34 = vpack.c.bf16 %v2447_v1, %v2447_v1  ;;  %6659 = vmatmul.mubr.msk.bf16.vlgmr.msra.gmra.mrb[88].mxu1 %vm335_vm5, %v8296_v17 }
0x115b   :  { %6671 = vmatpush3.bf16.msra.mxu1 %v8049_v32  ;;  %6674 = vmatprep.mubr.msk.bf16.mxu1 %vm7444_vm0, %v7443_v0 }
0x115c   :  { %6651 = vmatmul.mubr.msk.bf16.vlgmr.msra.gmra.mrb[88].mxu0 %vm335_vm5, %v2448_v34  ;;  %6672 = vmatprep.subr.bf16.mxu1 %v7443_v0 }
0x115d   :  { %6663 = vmatpush3.bf16.msra.mxu0 %v8096_v38  ;;  %6666 = vmatprep.mubr.msk.bf16.mxu0 %vm7444_vm0, %v7443_v0 }
0x115e   :  { %6664 = vmatprep.subr.bf16.mxu0 %v7443_v0 }
0x115f   :  { %6673 = vmatpush3.bf16.msra.mxu1 %v8058_v51 }
0x1160   :  { %6686 = vmatprep.subr.bf16.mxu1 %v7443_v0 }
0x1161   :  { %6665 = vmatpush3.bf16.msra.mxu0 %v8105_v22 }
0x1162   :  { %6678 = vmatprep.subr.bf16.mxu0 %v7443_v0 }
0x1164   :  { %6667 = vmatmul.mubr.msk.bf16.vlgmr.msra.gmra.mrb[92].mxu0 %vm335_vm5, %v2448_v34 }
0x1165   :  { %6679 = vmatpush3.bf16.msra.mxu0 %v8115_v63  ;;  %6682 = vmatprep.mubr.msk.bf16.mxu0 %vm7444_vm0, %v7443_v0 }
0x1166   :  { %6680 = vmatprep.subr.bf16.mxu0 %v7443_v0 }
0x1169   :  { %6681 = vmatpush3.bf16.msra.mxu0 %v8130_v11 }
0x116a   :  { %6694 = vmatprep.subr.bf16.mxu0 %v7443_v0 }
0x1225   :  { %v2486_v49 = vpop.f32.mrb[84].mxu1 }
0x1226   :  { %v6644_v53 = vpop.f32.mrb[85].mxu1 }
0x1227   :  { %v2489_v61 = vpop.f32.mrb[86].mxu1 }
0x1228   :  { %v6645_v17 = vpop.f32.mrb[87].mxu1 }
0x122d   :  { %v2597_v42 = vpop.f32.mrb[88].mxu1 }
0x122e   :  { %v2603_v35 = vadd.f32 %v2597_v42, %v256_v43  ;;  %v6660_v26 = vpop.f32.mrb[89].mxu1 }
0x122f   :  { %v2529_v28 = vpop.f32.mrb[88].mxu0  ;;  %v2600_v15 = vpop.f32.mrb[90].mxu1 }
0x1230   :  { %v2604_v39 = vmul.f32 %v2603_v35, %v7585_v21  ;;  %v2530_v12 = vadd.f32 %v2529_v28, %v2486_v49  ;;  %v6652_v31 = vpop.f32.mrb[89].mxu0  ;;  %v6661_v19 = vpop.f32.mrb[91].mxu1 }
0x1231   :  { %v2532_v54 = vpop.f32.mrb[90].mxu0  ;;  %v8409_v31 = vld [vmem:[%s9422_s2] sm:$0xff]  }
0x1232   :  { %7254 = vtanh.f32 %v2604_v39  ;;  %v2535_v24 = vadd.f32 %v8205_v29, %v2530_v12  ;;  %v6653_v55 = vpop.f32.mrb[91].mxu0 }
0x1234   :  { %v2536_v18 = vmul.f32 %v2535_v24, %v7585_v21 }
0x1236   :  { %7256 = vtanh.f32 %v2536_v18 }
0x1237   :  { %v2654_v56 = vpop.f32.mrb[92].mxu0 }
0x1238   :  { %v6668_v45 = vpop.f32.mrb[93].mxu0 }
0x1239   :  { %v2657_v62 = vpop.f32.mrb[94].mxu0 }
0x123a   :  { %v6669_v48 = vpop.f32.mrb[95].mxu0 }
0x123c   :  { %v7255_v27 = vpop.eup %7254 }
0x123d   :  { %v2606_v20 = vmul.f32 %v7255_v27, %v7585_v21 }
0x123f   :  { %v2607_v36 = vadd.f32 %v2606_v20, %v7610_v33 }
0x1240   :  { %v7257_v23 = vpop.eup %7256 }
0x1241   :  { %2610 = vrot.lane.b32.xlu0 %v2607_v36, %s7449_s0  ;;  %2608 = vrot.lane.b32.xlu1 %v2607_v36, %s7448_s18  ;;  %v2538_v14 = vmul.f32 %v7257_v23, %v7585_v21 }
0x1243   :  { %v2539_v52 = vadd.f32 %v2538_v14, %v7610_v33 }
0x1245   :  { %2542 = vrot.lane.b32.xlu0 %v2539_v52, %s7449_s0  ;;  %2540 = vrot.lane.b32.xlu1 %v2539_v52, %s7448_s18 }
0x1249   :  { %2544 = vrot.lane.b32.xlu0 %v2539_v52, %s7447_s17  ;;  %2612 = vrot.lane.b32.xlu1 %v2607_v36, %s7447_s17 }
0x12b3   :  { %v2611_v6 = vpop.permute.xlu0 %2610  ;;  %v2609_v5 = vpop.permute.xlu1 %2608 }
0x12b4   :  { %v2615_v25 = vmul.f32 %v2611_v6, %v2607_v36  ;;  %v2614_v9 = vmul.f32 %v2609_v5, %v8286_v40  ;;  %v5915_v40 = vld [vmem:[%s9431_s10 + $0x7] ss:$0 sm:$0xff] }
0x12b6   :  { %v8387_v41 = vadd.f32 %v2615_v25, %v2614_v9 }
0x12b7   :  { %v2543_v1 = vpop.permute.xlu0 %2542  ;;  %v2541_v34 = vpop.permute.xlu1 %2540 }
0x12b8   :  { %7258 = vtanh.f32 %v8387_v41  ;;  %v2547_v49 = vmul.f32 %v2543_v1, %v2539_v52  ;;  %v2546_v53 = vmul.f32 %v2541_v34, %v8329_v37 }
0x12ba   :  { %v8391_v61 = vadd.f32 %v2547_v49, %v2546_v53 }
0x12bb   :  { %v2613_v43 = vpop.permute.xlu1 %2612  ;;  %v2545_v28 = vpop.permute.xlu0 %2544 }
0x12bc   :  { %7260 = vtanh.f32 %v8391_v61 }
0x12c2   :  { %v7259_v17 = vpop.eup %7258 }
0x12c3   :  { %v2618_v42 = vmul.f32 %v7259_v17, %v2613_v43 }
0x12c5   :  { %v2619_v35 = vpack.c.bf16 %v2618_v42, %v2618_v42 }
0x12c6   :  { %v7261_v26 = vpop.eup %7260 }
0x12c7   :  { %v2550_v15 = vmul.f32 %v7261_v26, %v2545_v28  ;;  %6675 = vmatmul.mubr.msk.bf16.vlgmr.msra.gmra.mrb[92].mxu1 %vm335_vm5, %v2619_v35 }
0x12c8   :  { %6687 = vmatpush3.bf16.msra.mxu1 %v8234_v30  ;;  %6690 = vmatprep.mubr.msk.bf16.mxu1 %vm7444_vm0, %v7443_v0 }
0x12c9   :  { %v2551_v37 = vpack.c.bf16 %v2550_v15, %v2550_v15  ;;  %v2560_v39 = vmul.f32 %v5915_v40, %v2550_v15  ;;  %6688 = vmatprep.subr.bf16.mxu1 %v7443_v0 }
0x12cb   :  { %v8403_v12 = vadd.f32 %v2560_v39, %v8340_v2  ;;  %6683 = vmatmul.mubr.msk.bf16.vlgmr.msra.gmra.mrb[96].mxu0 %vm335_vm5, %v2551_v37  ;;  %v8420_v2 = vld [vmem:[%s9422_s2 + $0x8] sm:$0xff]  }
0x12cc   :  { %6695 = vmatpush3.bf16.msra.mxu0 %v8409_v31  ;;  %6698 = vmatprep.mubr.msk.bf16.mxu0 %vm7444_vm0, %v7443_v0 }
0x12cd   :  { %6696 = vmatprep.subr.bf16.mxu0 %v7443_v0  ;;  %6689 = vmatpush3.bf16.msra.mxu1 %v8251_v50 }
0x12ce   :  { %6702 = vmatprep.subr.bf16.mxu1 %v7443_v0 }
0x12d0   :  { %6697 = vmatpush3.bf16.msra.mxu0 %v8420_v2 }
0x12d1   :  { %6710 = vmatprep.subr.bf16.mxu0 %v7443_v0 }
0x12d3   :  { %6699 = vmatmul.mubr.msk.bf16.vlgmr.msra.gmra.mrb[100].mxu0 %vm335_vm5, %v2619_v35 }
0x12d4   :  { %6711 = vmatpush3.bf16.msra.mxu0 %v8049_v32  ;;  %6714 = vmatprep.mubr.msk.bf16.mxu0 %vm7444_vm0, %v7443_v0 }
0x12d5   :  { %6712 = vmatprep.subr.bf16.mxu0 %v7443_v0 }
0x12d8   :  { %6713 = vmatpush3.bf16.msra.mxu0 %v8058_v51  ;;  %v259_v51 = vadd.f32 %v8069_v16, %v7660_v47 }
0x12d9   :  { %6726 = vmatprep.subr.bf16.mxu0 %v7443_v0 }
0x139a   :  { %v2697_v19 = vpop.f32.mrb[92].mxu1 }
0x139b   :  { %v2698_v54 = vadd.f32 %v2697_v19, %v2654_v56  ;;  %v6676_v24 = vpop.f32.mrb[93].mxu1 }
0x139c   :  { %v2700_v55 = vpop.f32.mrb[94].mxu1 }
0x139d   :  { %v2703_v18 = vadd.f32 %v8142_v13, %v2698_v54  ;;  %v6677_v45 = vpop.f32.mrb[95].mxu1 }
0x139e   :  { %v8432_v62 = vpop.f32.mrb[96].mxu0 }
0x139f   :  { %v2704_v32 = vmul.f32 %v2703_v18, %v7585_v21  ;;  %v6684_v48 = vpop.f32.mrb[97].mxu0 }
0x13a0   :  { %v2760_v27 = vpop.f32.mrb[98].mxu0 }
0x13a1   :  { %7262 = vtanh.f32 %v2704_v32  ;;  %v6685_v20 = vpop.f32.mrb[99].mxu0 }
0x13a6   :  { %v2868_v36 = vpop.f32.mrb[100].mxu0 }
0x13a7   :  { %v2874_v23 = vadd.f32 %v2868_v36, %v259_v51  ;;  %v6700_v14 = vpop.f32.mrb[101].mxu0 }
0x13a8   :  { %v2871_v56 = vpop.f32.mrb[102].mxu0 }
0x13a9   :  { %v2875_v52 = vmul.f32 %v2874_v23, %v7585_v21  ;;  %v6701_v6 = vpop.f32.mrb[103].mxu0 }
0x13ab   :  { %v7263_v5 = vpop.eup %7262  ;;  %7264 = vtanh.f32 %v2875_v52 }
0x13ac   :  { %v2706_v25 = vmul.f32 %v7263_v5, %v7585_v21 }
0x13ae   :  { %v2707_v9 = vadd.f32 %v2706_v25, %v7610_v33 }
0x13b0   :  { %2710 = vrot.lane.b32.xlu0 %v2707_v9, %s7449_s0  ;;  %2708 = vrot.lane.b32.xlu1 %v2707_v9, %s7448_s18 }
0x13b5   :  { %v7265_v1 = vpop.eup %7264 }
0x13b6   :  { %v2877_v47 = vmul.f32 %v7265_v1, %v7585_v21 }
0x13b8   :  { %v2878_v16 = vadd.f32 %v2877_v47, %v7610_v33 }
0x13ba   :  { %2881 = vrot.lane.b32.xlu0 %v2878_v16, %s7449_s0  ;;  %2879 = vrot.lane.b32.xlu1 %v2878_v16, %s7448_s18 }
0x13be   :  { %2883 = vrot.lane.b32.xlu0 %v2878_v16, %s7447_s17  ;;  %2712 = vrot.lane.b32.xlu1 %v2707_v9, %s7447_s17 }
0x1422   :  { %v2711_v34 = vpop.permute.xlu0 %2710  ;;  %v2709_v49 = vpop.permute.xlu1 %2708 }
0x1423   :  { %v2715_v53 = vmul.f32 %v2711_v34, %v2707_v9  ;;  %v2714_v17 = vmul.f32 %v2709_v49, %v8333_v10 }
0x1425   :  { %v8449_v43 = vadd.f32 %v2715_v53, %v2714_v17 }
0x1427   :  { %7266 = vtanh.f32 %v8449_v43 }
0x142c   :  { %v2882_v42 = vpop.permute.xlu0 %2881  ;;  %v2880_v35 = vpop.permute.xlu1 %2879 }
0x142d   :  { %v2886_v26 = vmul.f32 %v2882_v42, %v2878_v16  ;;  %v2885_v40 = vmul.f32 %v2880_v35, %v8387_v41 }
0x142f   :  { %v8453_v28 = vadd.f32 %v2886_v26, %v2885_v40 }
0x1430   :  { %v2713_v15 = vpop.permute.xlu1 %2712  ;;  %v2884_v54 = vpop.permute.xlu0 %2883 }
0x1431   :  { %v7267_v37 = vpop.eup %7266  ;;  %7268 = vtanh.f32 %v8453_v28 }
0x1432   :  { %v2718_v39 = vmul.f32 %v7267_v37, %v2713_v15 }
0x1434   :  { %v2719_v19 = vpack.c.bf16 %v2718_v39, %v2718_v39  ;;  %v5922_v39 = vld [vmem:[%s9431_s10 + $0x8] ss:$0 sm:$0xff] }
0x1436   :  { %6691 = vmatmul.mubr.msk.bf16.vlgmr.msra.gmra.mrb[96].mxu1 %vm335_vm5, %v2719_v19 }
0x1437   :  { %6703 = vmatpush3.bf16.msra.mxu1 %v8096_v38  ;;  %6706 = vmatprep.mubr.msk.bf16.mxu1 %vm7444_vm0, %v7443_v0 }
0x1438   :  { %6704 = vmatprep.subr.bf16.mxu1 %v7443_v0 }
0x143b   :  { %v7269_v10 = vpop.eup %7268  ;;  %6705 = vmatpush3.bf16.msra.mxu1 %v8105_v22 }
0x143c   :  { %v2889_v41 = vmul.f32 %v7269_v10, %v2884_v54  ;;  %6718 = vmatprep.subr.bf16.mxu1 %v7443_v0 }
0x143e   :  { %v8463_v24 = vpack.c.bf16 %v2889_v41, %v2889_v41  ;;  %6707 = vmatmul.mubr.msk.bf16.vlgmr.msra.gmra.mrb[100].mxu1 %vm335_vm5, %v2719_v19 }
0x143f   :  { %6719 = vmatpush3.bf16.msra.mxu1 %v8115_v63  ;;  %6722 = vmatprep.mubr.msk.bf16.mxu1 %vm7444_vm0, %v7443_v0 }
0x1440   :  { %6715 = vmatmul.mubr.msk.bf16.vlgmr.msra.gmra.mrb[104].mxu0 %vm335_vm5, %v8463_v24  ;;  %6720 = vmatprep.subr.bf16.mxu1 %v7443_v0 }
0x1441   :  { %6727 = vmatpush3.bf16.msra.mxu0 %v8234_v30  ;;  %6730 = vmatprep.mubr.msk.bf16.mxu0 %vm7444_vm0, %v7443_v0 }
0x1442   :  { %6728 = vmatprep.subr.bf16.mxu0 %v7443_v0 }
0x1443   :  { %6721 = vmatpush3.bf16.msra.mxu1 %v8130_v11 }
0x1444   :  { %6734 = vmatprep.subr.bf16.mxu1 %v7443_v0 }
0x1445   :  { %6729 = vmatpush3.bf16.msra.mxu0 %v8251_v50 }
0x1446   :  { %6742 = vmatprep.subr.bf16.mxu0 %v7443_v0 }
0x1509   :  { %v2800_v38 = vpop.f32.mrb[96].mxu1 }
0x150a   :  { %v2801_v22 = vadd.f32 %v2800_v38, %v8432_v62  ;;  %v6692_v63 = vpop.f32.mrb[97].mxu1 }
0x150b   :  { %v2803_v55 = vpop.f32.mrb[98].mxu1  ;;  %v8531_v63 = vld [vmem:[%s9425_s5] sm:$0xff]  }
0x150c   :  { %v2806_v18 = vadd.f32 %v8205_v29, %v2801_v22  ;;  %v6693_v45 = vpop.f32.mrb[99].mxu1  ;;  %v8547_v55 = vld [vmem:[%s9425_s5 + $0x8] sm:$0xff]  }
0x150d   :  { %v8564_v45 = vld [vmem:[%s9428_s8 + $0x8] sm:$0xff]  }
0x150e   :  { %v2807_v32 = vmul.f32 %v2806_v18, %v7585_v21  ;;  %v8555_v18 = vld [vmem:[%s9428_s8] sm:$0xff]  }
0x1510   :  { %7270 = vtanh.f32 %v2807_v32 }
0x1511   :  { %v2925_v48 = vpop.f32.mrb[100].mxu1 }
0x1512   :  { %v6708_v27 = vpop.f32.mrb[101].mxu1 }
0x1513   :  { %v2928_v11 = vpop.f32.mrb[102].mxu1  ;;  %v2968_v20 = vpop.f32.mrb[104].mxu0 }
0x1514   :  { %v2969_v51 = vadd.f32 %v2968_v20, %v2925_v48  ;;  %v6709_v36 = vpop.f32.mrb[103].mxu1  ;;  %v6716_v23 = vpop.f32.mrb[105].mxu0  ;;  %v8571_v20 = vld [vmem:[%s9424_s3] ss:$0 sm:$0xff] }
0x1515   :  { %v2971_v14 = vpop.f32.mrb[106].mxu0 }
0x1516   :  { %v2974_v56 = vadd.f32 %v8142_v13, %v2969_v51  ;;  %v6717_v52 = vpop.f32.mrb[107].mxu0  ;;  %v264_v51 = vadd.f32 %v8571_v20, %v7654_v44 }
0x1518   :  { %v2975_v62 = vmul.f32 %v2974_v56, %v7585_v21 }
0x151a   :  { %v7271_v6 = vpop.eup %7270  ;;  %7272 = vtanh.f32 %v2975_v62 }
0x151b   :  { %v2809_v5 = vmul.f32 %v7271_v6, %v7585_v21 }
0x151d   :  { %v2810_v25 = vadd.f32 %v2809_v5, %v7610_v33 }
0x151f   :  { %2813 = vrot.lane.b32.xlu0 %v2810_v25, %s7449_s0  ;;  %2811 = vrot.lane.b32.xlu1 %v2810_v25, %s7448_s18 }
0x1524   :  { %v7273_v9 = vpop.eup %7272 }
0x1525   :  { %v2977_v1 = vmul.f32 %v7273_v9, %v7585_v21 }
0x1527   :  { %v2978_v47 = vadd.f32 %v2977_v1, %v7610_v33 }
0x1529   :  { %2981 = vrot.lane.b32.xlu0 %v2978_v47, %s7449_s0  ;;  %2979 = vrot.lane.b32.xlu1 %v2978_v47, %s7448_s18 }
0x152d   :  { %2983 = vrot.lane.b32.xlu0 %v2978_v47, %s7447_s17  ;;  %2815 = vrot.lane.b32.xlu1 %v2810_v25, %s7447_s17 }
0x1591   :  { %v2814_v13 = vpop.permute.xlu0 %2813  ;;  %v2812_v16 = vpop.permute.xlu1 %2811 }
0x1592   :  { %v2818_v34 = vmul.f32 %v2814_v13, %v2810_v25  ;;  %v2817_v49 = vmul.f32 %v2812_v16, %v8391_v61 }
0x1594   :  { %v8496_v53 = vadd.f32 %v2818_v34, %v2817_v49 }
0x1596   :  { %7274 = vtanh.f32 %v8496_v53 }
0x159b   :  { %v2982_v17 = vpop.permute.xlu0 %2981  ;;  %v2980_v42 = vpop.permute.xlu1 %2979 }
0x159c   :  { %v2986_v35 = vmul.f32 %v2982_v17, %v2978_v47  ;;  %v2985_v26 = vmul.f32 %v2980_v42, %v8449_v43 }
0x159e   :  { %v8500_v40 = vadd.f32 %v2986_v35, %v2985_v26 }
0x159f   :  { %v2816_v15 = vpop.permute.xlu1 %2815  ;;  %v2984_v41 = vpop.permute.xlu0 %2983 }
0x15a0   :  { %v7275_v37 = vpop.eup %7274  ;;  %7276 = vtanh.f32 %v8500_v40 }
0x15a1   :  { %v2821_v61 = vmul.f32 %v7275_v37, %v2816_v15 }
0x15a3   :  { %v2822_v19 = vpack.c.bf16 %v2821_v61, %v2821_v61  ;;  %v2831_v10 = vmul.f32 %v5922_v39, %v2821_v61 }
0x15a5   :  { %v8507_v54 = vadd.f32 %v2831_v10, %v8403_v12  ;;  %6723 = vmatmul.mubr.msk.bf16.vlgmr.msra.gmra.mrb[104].mxu1 %vm335_vm5, %v2822_v19  ;;  %v8521_v12 = vld [vmem:[%s9426_s4] sm:$0xff]  }
0x15a6   :  { %6735 = vmatpush3.bf16.msra.mxu1 %v8409_v31  ;;  %6738 = vmatprep.mubr.msk.bf16.mxu1 %vm7444_vm0, %v7443_v0 }
0x15a7   :  { %6736 = vmatprep.subr.bf16.mxu1 %v7443_v0 }
0x15aa   :  { %v7277_v43 = vpop.eup %7276  ;;  %6737 = vmatpush3.bf16.msra.mxu1 %v8420_v2 }
0x15ab   :  { %v2989_v38 = vmul.f32 %v7277_v43, %v2984_v41  ;;  %6750 = vmatprep.subr.bf16.mxu1 %v7443_v0 }
0x15ad   :  { %v2990_v22 = vpack.c.bf16 %v2989_v38, %v2989_v38  ;;  %6739 = vmatmul.mubr.msk.bf16.vlgmr.msra.gmra.mrb[108].mxu1 %vm335_vm5, %v8463_v24  ;;  %v8540_v24 = vld [vmem:[%s9426_s4 + $0x8] sm:$0xff]  }
0x15ae   :  { %6751 = vmatpush3.bf16.msra.mxu1 %v8521_v12  ;;  %6754 = vmatprep.mubr.msk.bf16.mxu1 %vm7444_vm0, %v7443_v0 }
0x15af   :  { %6731 = vmatmul.mubr.msk.bf16.vlgmr.msra.gmra.mrb[108].mxu0 %vm335_vm5, %v2990_v22  ;;  %6752 = vmatprep.subr.bf16.mxu1 %v7443_v0 }
0x15b0   :  { %6743 = vmatpush3.bf16.msra.mxu0 %v8531_v63  ;;  %6746 = vmatprep.mubr.msk.bf16.mxu0 %vm7444_vm0, %v7443_v0 }
0x15b1   :  { %6744 = vmatprep.subr.bf16.mxu0 %v7443_v0 }
0x15b2   :  { %6753 = vmatpush3.bf16.msra.mxu1 %v8540_v24 }
0x15b3   :  { %6766 = vmatprep.subr.bf16.mxu1 %v7443_v0 }
0x15b4   :  { %6745 = vmatpush3.bf16.msra.mxu0 %v8547_v55 }
0x15b5   :  { %6758 = vmatprep.subr.bf16.mxu0 %v7443_v0 }
0x15b7   :  { %6747 = vmatmul.mubr.msk.bf16.vlgmr.msra.gmra.mrb[112].mxu0 %vm335_vm5, %v2990_v22 }
0x15b8   :  { %6759 = vmatpush3.bf16.msra.mxu0 %v8555_v18  ;;  %6762 = vmatprep.mubr.msk.bf16.mxu0 %vm7444_vm0, %v7443_v0 }
0x15b9   :  { %6760 = vmatprep.subr.bf16.mxu0 %v7443_v0 }
0x15bc   :  { %6761 = vmatpush3.bf16.msra.mxu0 %v8564_v45 }
0x15bd   :  { %6774 = vmatprep.subr.bf16.mxu0 %v7443_v0 }
0x1678   :  { %v3028_v32 = vpop.f32.mrb[104].mxu1 }
0x1679   :  { %v6724_v48 = vpop.f32.mrb[105].mxu1 }
0x167a   :  { %v3031_v27 = vpop.f32.mrb[106].mxu1 }
0x167b   :  { %v6725_v11 = vpop.f32.mrb[107].mxu1 }
0x1680   :  { %v3139_v36 = vpop.f32.mrb[108].mxu1 }
0x1681   :  { %v3145_v23 = vadd.f32 %v3139_v36, %v264_v51  ;;  %v6740_v14 = vpop.f32.mrb[109].mxu1 }
0x1682   :  { %v3071_v56 = vpop.f32.mrb[108].mxu0  ;;  %v3142_v52 = vpop.f32.mrb[110].mxu1 }
0x1683   :  { %v3146_v62 = vmul.f32 %v3145_v23, %v7585_v21  ;;  %v3072_v6 = vadd.f32 %v3071_v56, %v3028_v32  ;;  %v6732_v5 = vpop.f32.mrb[109].mxu0  ;;  %v6741_v25 = vpop.f32.mrb[111].mxu1 }
0x1684   :  { %v3074_v9 = vpop.f32.mrb[110].mxu0 }
0x1685   :  { %7278 = vtanh.f32 %v3146_v62  ;;  %v3077_v1 = vadd.f32 %v8205_v29, %v3072_v6  ;;  %v6733_v47 = vpop.f32.mrb[111].mxu0  ;;  %v8626_v6 = vld [vmem:[%s9427_s6] ss:$0 sm:$0xff] }
0x1687   :  { %v3078_v13 = vmul.f32 %v3077_v1, %v7585_v21 }
0x1689   :  { %7280 = vtanh.f32 %v3078_v13 }
0x168a   :  { %v3196_v16 = vpop.f32.mrb[112].mxu0 }
0x168b   :  { %v6748_v44 = vpop.f32.mrb[113].mxu0 }
0x168c   :  { %v3199_v34 = vpop.f32.mrb[114].mxu0 }
0x168d   :  { %v6749_v49 = vpop.f32.mrb[115].mxu0 }
0x168f   :  { %v7279_v17 = vpop.eup %7278 }
0x1690   :  { %v3148_v42 = vmul.f32 %v7279_v17, %v7585_v21 }
0x1692   :  { %v3149_v35 = vadd.f32 %v3148_v42, %v7610_v33 }
0x1693   :  { %v7281_v26 = vpop.eup %7280 }
0x1694   :  { %3152 = vrot.lane.b32.xlu0 %v3149_v35, %s7449_s0  ;;  %3150 = vrot.lane.b32.xlu1 %v3149_v35, %s7448_s18  ;;  %v3080_v29 = vmul.f32 %v7281_v26, %v7585_v21 }
0x1696   :  { %v3081_v15 = vadd.f32 %v3080_v29, %v7610_v33 }
0x1698   :  { %3084 = vrot.lane.b32.xlu0 %v3081_v15, %s7449_s0  ;;  %3082 = vrot.lane.b32.xlu1 %v3081_v15, %s7448_s18 }
0x169c   :  { %3086 = vrot.lane.b32.xlu0 %v3081_v15, %s7447_s17  ;;  %3154 = vrot.lane.b32.xlu1 %v3149_v35, %s7447_s17 }
0x1706   :  { %v3153_v37 = vpop.permute.xlu0 %3152  ;;  %v3151_v39 = vpop.permute.xlu1 %3150 }
0x1707   :  { %v3157_v61 = vmul.f32 %v3153_v37, %v3149_v35  ;;  %v3156_v19 = vmul.f32 %v3151_v39, %v8453_v28  ;;  %v5929_v28 = vld [vmem:[%s9431_s10 + $0x9] ss:$0 sm:$0xff] }
0x1709   :  { %v8589_v10 = vadd.f32 %v3157_v61, %v3156_v19 }
0x170a   :  { %v3085_v43 = vpop.permute.xlu0 %3084  ;;  %v3083_v41 = vpop.permute.xlu1 %3082 }
0x170b   :  { %7282 = vtanh.f32 %v8589_v10  ;;  %v3089_v38 = vmul.f32 %v3085_v43, %v3081_v15  ;;  %v3088_v22 = vmul.f32 %v3083_v41, %v8496_v53 }
0x170d   :  { %v8593_v32 = vadd.f32 %v3089_v38, %v3088_v22 }
0x170e   :  { %v3155_v27 = vpop.permute.xlu1 %3154  ;;  %v3087_v23 = vpop.permute.xlu0 %3086 }
0x170f   :  { %7284 = vtanh.f32 %v8593_v32 }
0x1715   :  { %v7283_v48 = vpop.eup %7282 }
0x1716   :  { %v3160_v11 = vmul.f32 %v7283_v48, %v3155_v27 }
0x1718   :  { %v3161_v51 = vpack.c.bf16 %v3160_v11, %v3160_v11 }
0x1719   :  { %v7285_v36 = vpop.eup %7284 }
0x171a   :  { %v3092_v14 = vmul.f32 %v7285_v36, %v3087_v23  ;;  %6755 = vmatmul.mubr.msk.bf16.vlgmr.msra.gmra.mrb[112].mxu1 %vm335_vm5, %v3161_v51 }
0x171b   :  { %6767 = vmatpush3.bf16.msra.mxu1 %v8234_v30  ;;  %6770 = vmatprep.mubr.msk.bf16.mxu1 %vm7444_vm0, %v7443_v0 }
0x171c   :  { %v3093_v53 = vpack.c.bf16 %v3092_v14, %v3092_v14  ;;  %v3102_v56 = vmul.f32 %v5929_v28, %v3092_v14  ;;  %6768 = vmatprep.subr.bf16.mxu1 %v7443_v0 }
0x171e   :  { %v8605_v52 = vadd.f32 %v3102_v56, %v8507_v54  ;;  %6763 = vmatmul.mubr.msk.bf16.vlgmr.msra.gmra.mrb[116].mxu0 %vm335_vm5, %v3093_v53 }
0x171f   :  { %6775 = vmatpush3.bf16.msra.mxu0 %v8409_v31  ;;  %6778 = vmatprep.mubr.msk.bf16.mxu0 %vm7444_vm0, %v7443_v0 }
0x1720   :  { %6776 = vmatprep.subr.bf16.mxu0 %v7443_v0  ;;  %6769 = vmatpush3.bf16.msra.mxu1 %v8251_v50 }
0x1721   :  { %6782 = vmatprep.subr.bf16.mxu1 %v7443_v0 }
0x1723   :  { %6777 = vmatpush3.bf16.msra.mxu0 %v8420_v2 }
0x1724   :  { %6790 = vmatprep.subr.bf16.mxu0 %v7443_v0 }
0x1726   :  { %6779 = vmatmul.mubr.msk.bf16.vlgmr.msra.gmra.mrb[120].mxu0 %vm335_vm5, %v3161_v51 }
0x1727   :  { %6791 = vmatpush3.bf16.msra.mxu0 %v8521_v12  ;;  %6794 = vmatprep.mubr.msk.bf16.mxu0 %vm7444_vm0, %v7443_v0 }
0x1728   :  { %6792 = vmatprep.subr.bf16.mxu0 %v7443_v0 }
0x172b   :  { %6793 = vmatpush3.bf16.msra.mxu0 %v8540_v24 }
0x172c   :  { %6806 = vmatprep.subr.bf16.mxu0 %v7443_v0 }
0x17ed   :  { %v3239_v30 = vpop.f32.mrb[112].mxu1 }
0x17ee   :  { %v3240_v50 = vadd.f32 %v3239_v30, %v3196_v16  ;;  %v6756_v54 = vpop.f32.mrb[113].mxu1  ;;  %v267_v16 = vadd.f32 %v8571_v20, %v7658_v46 }
0x17ef   :  { %v3242_v62 = vpop.f32.mrb[114].mxu1  ;;  %v8683_v54 = vld [vmem:[%s9429_s7 + $0x8] sm:$0xff]  }
0x17f0   :  { %v3245_v5 = vadd.f32 %v8626_v6, %v3240_v50  ;;  %v6757_v25 = vpop.f32.mrb[115].mxu1  ;;  %v8672_v50 = vld [vmem:[%s9429_s7] sm:$0xff]  }
0x17f1   :  { %v8629_v9 = vpop.f32.mrb[116].mxu0 }
0x17f2   :  { %v3246_v1 = vmul.f32 %v3245_v5, %v7585_v21  ;;  %v6764_v47 = vpop.f32.mrb[117].mxu0 }
0x17f3   :  { %v3302_v13 = vpop.f32.mrb[118].mxu0  ;;  %v8691_v47 = vld [vmem:[%s9430_s9] ss:$0 sm:$0xff] }
0x17f4   :  { %7286 = vtanh.f32 %v3246_v1  ;;  %v6765_v44 = vpop.f32.mrb[119].mxu0 }
0x17f9   :  { %v3410_v34 = vpop.f32.mrb[120].mxu0 }
0x17fa   :  { %v3416_v49 = vadd.f32 %v3410_v34, %v267_v16  ;;  %v6780_v17 = vpop.f32.mrb[121].mxu0 }
0x17fb   :  { %v3413_v42 = vpop.f32.mrb[122].mxu0 }
0x17fc   :  { %v3417_v35 = vmul.f32 %v3416_v49, %v7585_v21  ;;  %v6781_v26 = vpop.f32.mrb[123].mxu0 }
0x17fe   :  { %v7287_v29 = vpop.eup %7286  ;;  %7288 = vtanh.f32 %v3417_v35 }
0x17ff   :  { %v3248_v15 = vmul.f32 %v7287_v29, %v7585_v21 }
0x1801   :  { %v3249_v37 = vadd.f32 %v3248_v15, %v7610_v33 }
0x1803   :  { %3252 = vrot.lane.b32.xlu0 %v3249_v37, %s7449_s0  ;;  %3250 = vrot.lane.b32.xlu1 %v3249_v37, %s7448_s18 }
0x1808   :  { %v7289_v39 = vpop.eup %7288 }
0x1809   :  { %v3419_v46 = vmul.f32 %v7289_v39, %v7585_v21 }
0x180b   :  { %v3420_v61 = vadd.f32 %v3419_v46, %v7610_v33 }
0x180d   :  { %3423 = vrot.lane.b32.xlu0 %v3420_v61, %s7449_s0  ;;  %3421 = vrot.lane.b32.xlu1 %v3420_v61, %s7448_s18 }
0x1811   :  { %3425 = vrot.lane.b32.xlu0 %v3420_v61, %s7447_s17  ;;  %3254 = vrot.lane.b32.xlu1 %v3249_v37, %s7447_s17 }
0x1875   :  { %v3253_v19 = vpop.permute.xlu0 %3252  ;;  %v3251_v43 = vpop.permute.xlu1 %3250 }
0x1876   :  { %v3257_v41 = vmul.f32 %v3253_v19, %v3249_v37  ;;  %v3256_v38 = vmul.f32 %v3251_v43, %v8500_v40 }
0x1878   :  { %v8646_v22 = vadd.f32 %v3257_v41, %v3256_v38 }
0x187a   :  { %7290 = vtanh.f32 %v8646_v22 }
0x187f   :  { %v3424_v48 = vpop.permute.xlu0 %3423  ;;  %v3422_v27 = vpop.permute.xlu1 %3421 }
0x1880   :  { %v3428_v11 = vmul.f32 %v3424_v48, %v3420_v61  ;;  %v3427_v51 = vmul.f32 %v3422_v27, %v8589_v10 }
0x1882   :  { %v8650_v36 = vadd.f32 %v3428_v11, %v3427_v51 }
0x1883   :  { %v3255_v28 = vpop.permute.xlu1 %3254  ;;  %v3426_v56 = vpop.permute.xlu0 %3425 }
0x1884   :  { %v7291_v23 = vpop.eup %7290  ;;  %7292 = vtanh.f32 %v8650_v36 }
0x1885   :  { %v3260_v14 = vmul.f32 %v7291_v23, %v3255_v28 }
0x1887   :  { %v3261_v53 = vpack.c.bf16 %v3260_v14, %v3260_v14 }
0x1889   :  { %6771 = vmatmul.mubr.msk.bf16.vlgmr.msra.gmra.mrb[116].mxu1 %vm335_vm5, %v3261_v53 }
0x188a   :  { %6783 = vmatpush3.bf16.msra.mxu1 %v8531_v63  ;;  %6786 = vmatprep.mubr.msk.bf16.mxu1 %vm7444_vm0, %v7443_v0 }
0x188b   :  { %6784 = vmatprep.subr.bf16.mxu1 %v7443_v0 }
0x188e   :  { %v7293_v40 = vpop.eup %7292  ;;  %6785 = vmatpush3.bf16.msra.mxu1 %v8547_v55 }
0x188f   :  { %v3431_v10 = vmul.f32 %v7293_v40, %v3426_v56  ;;  %6798 = vmatprep.subr.bf16.mxu1 %v7443_v0 }
0x1891   :  { %v8660_v30 = vpack.c.bf16 %v3431_v10, %v3431_v10  ;;  %6787 = vmatmul.mubr.msk.bf16.vlgmr.msra.gmra.mrb[120].mxu1 %vm335_vm5, %v3261_v53 }
0x1892   :  { %6799 = vmatpush3.bf16.msra.mxu1 %v8555_v18  ;;  %6802 = vmatprep.mubr.msk.bf16.mxu1 %vm7444_vm0, %v7443_v0 }
0x1893   :  { %6795 = vmatmul.mubr.msk.bf16.vlgmr.msra.gmra.mrb[124].mxu0 %vm335_vm5, %v8660_v30  ;;  %6800 = vmatprep.subr.bf16.mxu1 %v7443_v0 }
0x1894   :  { %6807 = vmatpush3.bf16.msra.mxu0 %v8672_v50  ;;  %6810 = vmatprep.mubr.msk.bf16.mxu0 %vm7444_vm0, %v7443_v0 }
0x1895   :  { %6808 = vmatprep.subr.bf16.mxu0 %v7443_v0 }
0x1896   :  { %6801 = vmatpush3.bf16.msra.mxu1 %v8564_v45 }
0x1897   :  { %6814 = vmatprep.subr.bf16.mxu1 %v7443_v0 }
0x1898   :  { %6809 = vmatpush3.bf16.msra.mxu0 %v8683_v54 }
0x1899   :  { %6822 = vmatprep.subr.bf16.mxu0 %v7443_v0 }
0x195c   :  { %v3342_v62 = vpop.f32.mrb[116].mxu1 }
0x195d   :  { %v3343_v5 = vadd.f32 %v3342_v62, %v8629_v9  ;;  %v6772_v25 = vpop.f32.mrb[117].mxu1 }
0x195e   :  { %v3345_v1 = vpop.f32.mrb[118].mxu1 }
0x195f   :  { %v3348_v13 = vadd.f32 %v8691_v47, %v3343_v5  ;;  %v6773_v44 = vpop.f32.mrb[119].mxu1  ;;  %v5936_v5 = vld [vmem:[%s9431_s10 + $0xa] ss:$0 sm:$0xff] }
0x1961   :  { %v3349_v16 = vmul.f32 %v3348_v13, %v7585_v21 }
0x1963   :  { %7294 = vtanh.f32 %v3349_v16 }
0x1964   :  { %v3467_v34 = vpop.f32.mrb[120].mxu1 }
0x1965   :  { %v6788_v49 = vpop.f32.mrb[121].mxu1 }
0x1966   :  { %v3470_v17 = vpop.f32.mrb[122].mxu1  ;;  %v3510_v42 = vpop.f32.mrb[124].mxu0 }
0x1967   :  { %v3511_v35 = vadd.f32 %v3510_v42, %v3467_v34  ;;  %v6789_v26 = vpop.f32.mrb[123].mxu1  ;;  %v6796_v9 = vpop.f32.mrb[125].mxu0  ;;  %v272_v42 = vadd.f32 %v8571_v20, %v7677_v58 }
0x1968   :  { %v3513_v29 = vpop.f32.mrb[126].mxu0 }
0x1969   :  { %v3516_v15 = vadd.f32 %v8626_v6, %v3511_v35  ;;  %v6797_v37 = vpop.f32.mrb[127].mxu0 }
0x196b   :  { %v3517_v39 = vmul.f32 %v3516_v15, %v7585_v21 }
0x196d   :  { %v7295_v46 = vpop.eup %7294  ;;  %7296 = vtanh.f32 %v3517_v39 }
0x196e   :  { %v3351_v61 = vmul.f32 %v7295_v46, %v7585_v21 }
0x1970   :  { %v3352_v19 = vadd.f32 %v3351_v61, %v7610_v33 }
0x1972   :  { %3355 = vrot.lane.b32.xlu0 %v3352_v19, %s7449_s0  ;;  %3353 = vrot.lane.b32.xlu1 %v3352_v19, %s7448_s18 }
0x1977   :  { %v7297_v43 = vpop.eup %7296 }
0x1978   :  { %v3519_v41 = vmul.f32 %v7297_v43, %v7585_v21 }
0x197a   :  { %v3520_v38 = vadd.f32 %v3519_v41, %v7610_v33 }
0x197c   :  { %3523 = vrot.lane.b32.xlu0 %v3520_v38, %s7449_s0  ;;  %3521 = vrot.lane.b32.xlu1 %v3520_v38, %s7448_s18 }
0x1980   :  { %3525 = vrot.lane.b32.xlu0 %v3520_v38, %s7447_s17  ;;  %3357 = vrot.lane.b32.xlu1 %v3352_v19, %s7447_s17 }
0x19e4   :  { %v3356_v48 = vpop.permute.xlu0 %3355  ;;  %v3354_v27 = vpop.permute.xlu1 %3353 }
0x19e5   :  { %v3360_v11 = vmul.f32 %v3356_v48, %v3352_v19  ;;  %v3359_v51 = vmul.f32 %v3354_v27, %v8593_v32 }
0x19e7   :  { %v8708_v28 = vadd.f32 %v3360_v11, %v3359_v51 }
0x19e9   :  { %7298 = vtanh.f32 %v8708_v28 }
0x19ee   :  { %v3524_v23 = vpop.permute.xlu0 %3523  ;;  %v3522_v14 = vpop.permute.xlu1 %3521 }
0x19ef   :  { %v3528_v53 = vmul.f32 %v3524_v23, %v3520_v38  ;;  %v3527_v40 = vmul.f32 %v3522_v14, %v8646_v22 }
0x19f1   :  { %v8712_v56 = vadd.f32 %v3528_v53, %v3527_v40 }
0x19f2   :  { %v3358_v10 = vpop.permute.xlu1 %3357  ;;  %v3526_v44 = vpop.permute.xlu0 %3525 }
0x19f3   :  { %v7299_v62 = vpop.eup %7298  ;;  %7300 = vtanh.f32 %v8712_v56 }
0x19f4   :  { %v3363_v32 = vmul.f32 %v7299_v62, %v3358_v10 }
0x19f6   :  { %v3364_v25 = vpack.c.bf16 %v3363_v32, %v3363_v32  ;;  %v3373_v1 = vmul.f32 %v5936_v5, %v3363_v32 }
0x19f8   :  { %v8719_v13 = vadd.f32 %v3373_v1, %v8605_v52  ;;  %6803 = vmatmul.mubr.msk.bf16.vlgmr.msra.gmra.mrb[124].mxu1 %vm335_vm5, %v3364_v25 }
0x19f9   :  { %6815 = vmatpush3.bf16.msra.mxu1 %v8409_v31  ;;  %6818 = vmatprep.mubr.msk.bf16.mxu1 %vm7444_vm0, %v7443_v0 }
0x19fa   :  { %6816 = vmatprep.subr.bf16.mxu1 %v7443_v0 }
0x19fd   :  { %v7301_v22 = vpop.eup %7300  ;;  %6817 = vmatpush3.bf16.msra.mxu1 %v8420_v2 }
0x19fe   :  { %v3531_v16 = vmul.f32 %v7301_v22, %v3526_v44  ;;  %6830 = vmatprep.subr.bf16.mxu1 %v7443_v0 }
0x1a00   :  { %v3532_v34 = vpack.c.bf16 %v3531_v16, %v3531_v16  ;;  %6819 = vmatmul.mubr.msk.bf16.vlgmr.msra.gmra.mrb[128].mxu1 %vm335_vm5, %v8660_v30 }
0x1a01   :  { %6831 = vmatpush3.bf16.msra.mxu1 %v8521_v12  ;;  %6834 = vmatprep.mubr.msk.bf16.mxu1 %vm7444_vm0, %v7443_v0 }
0x1a02   :  { %6811 = vmatmul.mubr.msk.bf16.vlgmr.msra.gmra.mrb[128].mxu0 %vm335_vm5, %v3532_v34  ;;  %6832 = vmatprep.subr.bf16.mxu1 %v7443_v0 }
0x1a03   :  { %6823 = vmatpush3.bf16.msra.mxu0 %v8531_v63  ;;  %6826 = vmatprep.mubr.msk.bf16.mxu0 %vm7444_vm0, %v7443_v0 }
0x1a04   :  { %6824 = vmatprep.subr.bf16.mxu0 %v7443_v0 }
0x1a05   :  { %6833 = vmatpush3.bf16.msra.mxu1 %v8540_v24 }
0x1a06   :  { %6846 = vmatprep.subr.bf16.mxu1 %v7443_v0 }
0x1a07   :  { %6825 = vmatpush3.bf16.msra.mxu0 %v8547_v55 }
0x1a08   :  { %6838 = vmatprep.subr.bf16.mxu0 %v7443_v0 }
0x1a0a   :  { %6827 = vmatmul.mubr.msk.bf16.vlgmr.msra.gmra.mrb[132].mxu0 %vm335_vm5, %v3532_v34 }
0x1a0b   :  { %6839 = vmatpush3.bf16.msra.mxu0 %v8555_v18  ;;  %6842 = vmatprep.mubr.msk.bf16.mxu0 %vm7444_vm0, %v7443_v0 }
0x1a0c   :  { %6840 = vmatprep.subr.bf16.mxu0 %v7443_v0 }
0x1a0f   :  { %6841 = vmatpush3.bf16.msra.mxu0 %v8564_v45 }
0x1a10   :  { %6854 = vmatprep.subr.bf16.mxu0 %v7443_v0 }
0x1acb   :  { %v3570_v52 = vpop.f32.mrb[124].mxu1 }
0x1acc   :  { %v6804_v30 = vpop.f32.mrb[125].mxu1 }
0x1acd   :  { %v3573_v49 = vpop.f32.mrb[126].mxu1 }
0x1ace   :  { %v6805_v17 = vpop.f32.mrb[127].mxu1 }
0x1ad3   :  { %v3681_v35 = vpop.f32.mrb[128].mxu1 }
0x1ad4   :  { %v3687_v26 = vadd.f32 %v3681_v35, %v272_v42  ;;  %v6820_v9 = vpop.f32.mrb[129].mxu1 }
0x1ad5   :  { %v3613_v29 = vpop.f32.mrb[128].mxu0  ;;  %v3684_v15 = vpop.f32.mrb[130].mxu1 }
0x1ad6   :  { %v3688_v37 = vmul.f32 %v3687_v26, %v7585_v21  ;;  %v3614_v39 = vadd.f32 %v3613_v29, %v3570_v52  ;;  %v6812_v46 = vpop.f32.mrb[129].mxu0  ;;  %v6821_v61 = vpop.f32.mrb[131].mxu1 }
0x1ad7   :  { %v3616_v19 = vpop.f32.mrb[130].mxu0 }
0x1ad8   :  { %7302 = vtanh.f32 %v3688_v37  ;;  %v3619_v43 = vadd.f32 %v8691_v47, %v3614_v39  ;;  %v6813_v41 = vpop.f32.mrb[131].mxu0 }
0x1ada   :  { %v3620_v38 = vmul.f32 %v3619_v43, %v7585_v21 }
0x1adc   :  { %7304 = vtanh.f32 %v3620_v38 }
0x1add   :  { %v3738_v48 = vpop.f32.mrb[132].mxu0 }
0x1ade   :  { %v6828_v58 = vpop.f32.mrb[133].mxu0 }
0x1adf   :  { %v3741_v27 = vpop.f32.mrb[134].mxu0  ;;  %v275_v58 = vadd.f32 %v8571_v20, %v7681_v60 }
0x1ae0   :  { %v6829_v11 = vpop.f32.mrb[135].mxu0 }
0x1ae2   :  { %v7303_v51 = vpop.eup %7302 }
0x1ae3   :  { %v3690_v23 = vmul.f32 %v7303_v51, %v7585_v21 }
0x1ae5   :  { %v3691_v14 = vadd.f32 %v3690_v23, %v7610_v33 }
0x1ae6   :  { %v7305_v53 = vpop.eup %7304 }
0x1ae7   :  { %3694 = vrot.lane.b32.xlu0 %v3691_v14, %s7449_s0  ;;  %3692 = vrot.lane.b32.xlu1 %v3691_v14, %s7448_s18  ;;  %v3622_v40 = vmul.f32 %v7305_v53, %v7585_v21 }
0x1ae9   :  { %v3623_v10 = vadd.f32 %v3622_v40, %v7610_v33 }
0x1aeb   :  { %3626 = vrot.lane.b32.xlu0 %v3623_v10, %s7449_s0  ;;  %3624 = vrot.lane.b32.xlu1 %v3623_v10, %s7448_s18 }
0x1aef   :  { %3628 = vrot.lane.b32.xlu0 %v3623_v10, %s7447_s17  ;;  %3696 = vrot.lane.b32.xlu1 %v3691_v14, %s7447_s17 }
0x1b59   :  { %v3695_v62 = vpop.permute.xlu0 %3694  ;;  %v3693_v5 = vpop.permute.xlu1 %3692 }
0x1b5a   :  { %v3699_v32 = vmul.f32 %v3695_v62, %v3691_v14  ;;  %v3698_v25 = vmul.f32 %v3693_v5, %v8650_v36  ;;  %v5943_v36 = vld [vmem:[%s9431_s10 + $0xb] ss:$0 sm:$0xff] }
0x1b5c   :  { %v8766_v1 = vadd.f32 %v3699_v32, %v3698_v25 }
0x1b5d   :  { %v3627_v22 = vpop.permute.xlu0 %3626  ;;  %v3625_v44 = vpop.permute.xlu1 %3624 }
0x1b5e   :  { %7306 = vtanh.f32 %v8766_v1  ;;  %v3631_v16 = vmul.f32 %v3627_v22, %v3623_v10  ;;  %v3630_v34 = vmul.f32 %v3625_v44, %v8708_v28 }
0x1b60   :  { %v8770_v52 = vadd.f32 %v3631_v16, %v3630_v34 }
0x1b61   :  { %v3697_v49 = vpop.permute.xlu1 %3696  ;;  %v3629_v26 = vpop.permute.xlu0 %3628 }
0x1b62   :  { %7308 = vtanh.f32 %v8770_v52 }
0x1b68   :  { %v7307_v30 = vpop.eup %7306 }
0x1b69   :  { %v3702_v17 = vmul.f32 %v7307_v30, %v3697_v49 }
0x1b6b   :  { %v3703_v42 = vpack.c.bf16 %v3702_v17, %v3702_v17 }
0x1b6c   :  { %v7309_v35 = vpop.eup %7308 }
0x1b6d   :  { %v3634_v9 = vmul.f32 %v7309_v35, %v3629_v26  ;;  %6835 = vmatmul.mubr.msk.bf16.vlgmr.msra.gmra.mrb[132].mxu1 %vm335_vm5, %v3703_v42 }
0x1b6e   :  { %6847 = vmatpush3.bf16.msra.mxu1 %v8672_v50  ;;  %6850 = vmatprep.mubr.msk.bf16.mxu1 %vm7444_vm0, %v7443_v0 }
0x1b6f   :  { %v3635_v28 = vpack.c.bf16 %v3634_v9, %v3634_v9  ;;  %v3644_v29 = vmul.f32 %v5943_v36, %v3634_v9  ;;  %6848 = vmatprep.subr.bf16.mxu1 %v7443_v0 }
0x1b71   :  { %v8782_v15 = vadd.f32 %v3644_v29, %v8719_v13  ;;  %6843 = vmatmul.mubr.msk.bf16.vlgmr.msra.gmra.mrb[136].mxu0 %vm335_vm5, %v3635_v28 }
0x1b72   :  { %6855 = vmatpush3.bf16.msra.mxu0 %v8409_v31  ;;  %6858 = vmatprep.mubr.msk.bf16.mxu0 %vm7444_vm0, %v7443_v0 }
0x1b73   :  { %6856 = vmatprep.subr.bf16.mxu0 %v7443_v0  ;;  %6849 = vmatpush3.bf16.msra.mxu1 %v8683_v54 }
0x1b74   :  { %6862 = vmatprep.subr.bf16.mxu1 %v7443_v0 }
0x1b76   :  { %6857 = vmatpush3.bf16.msra.mxu0 %v8420_v2 }
0x1b77   :  { %6870 = vmatprep.subr.bf16.mxu0 %v7443_v0 }
0x1b79   :  { %6859 = vmatmul.mubr.msk.bf16.vlgmr.msra.gmra.mrb[140].mxu0 %vm335_vm5, %v3703_v42 }
0x1b7a   :  { %6871 = vmatpush3.bf16.msra.mxu0 %v8521_v12  ;;  %6874 = vmatprep.mubr.msk.bf16.mxu0 %vm7444_vm0, %v7443_v0 }
0x1b7b   :  { %6872 = vmatprep.subr.bf16.mxu0 %v7443_v0 }
0x1b7e   :  { %6873 = vmatpush3.bf16.msra.mxu0 %v8540_v24 }
0x1b7f   :  { %6886 = vmatprep.subr.bf16.mxu0 %v7443_v0 }
0x1c40   :  { %v3781_v31 = vpop.f32.mrb[132].mxu1 }
0x1c41   :  { %v3782_v13 = vadd.f32 %v3781_v31, %v3738_v48  ;;  %v6836_v37 = vpop.f32.mrb[133].mxu1 }
0x1c42   :  { %v3784_v39 = vpop.f32.mrb[134].mxu1 }
0x1c43   :  { %v3787_v2 = vadd.f32 %v8626_v6, %v3782_v13  ;;  %v6837_v46 = vpop.f32.mrb[135].mxu1 }
0x1c44   :  { %v8801_v61 = vpop.f32.mrb[136].mxu0 }
0x1c45   :  { %v3788_v19 = vmul.f32 %v3787_v2, %v7585_v21  ;;  %v6844_v43 = vpop.f32.mrb[137].mxu0 }
0x1c46   :  { %v3844_v41 = vpop.f32.mrb[138].mxu0 }
0x1c47   :  { %7310 = vtanh.f32 %v3788_v19  ;;  %v6845_v38 = vpop.f32.mrb[139].mxu0 }
0x1c4c   :  { %v3952_v27 = vpop.f32.mrb[140].mxu0 }
0x1c4d   :  { %v3958_v11 = vadd.f32 %v3952_v27, %v275_v58  ;;  %v6860_v51 = vpop.f32.mrb[141].mxu0 }
0x1c4e   :  { %v3955_v48 = vpop.f32.mrb[142].mxu0 }
0x1c4f   :  { %v3959_v23 = vmul.f32 %v3958_v11, %v7585_v21  ;;  %v6861_v14 = vpop.f32.mrb[143].mxu0 }
0x1c51   :  { %v7311_v53 = vpop.eup %7310  ;;  %7312 = vtanh.f32 %v3959_v23 }
0x1c52   :  { %v3790_v40 = vmul.f32 %v7311_v53, %v7585_v21 }
0x1c54   :  { %v3791_v10 = vadd.f32 %v3790_v40, %v7610_v33 }
0x1c56   :  { %3794 = vrot.lane.b32.xlu0 %v3791_v10, %s7449_s0  ;;  %3792 = vrot.lane.b32.xlu1 %v3791_v10, %s7448_s18 }
0x1c5b   :  { %v7313_v62 = vpop.eup %7312 }
0x1c5c   :  { %v3961_v60 = vmul.f32 %v7313_v62, %v7585_v21 }
0x1c5e   :  { %v3962_v5 = vadd.f32 %v3961_v60, %v7610_v33 }
0x1c60   :  { %3965 = vrot.lane.b32.xlu0 %v3962_v5, %s7449_s0  ;;  %3963 = vrot.lane.b32.xlu1 %v3962_v5, %s7448_s18 }
0x1c64   :  { %3967 = vrot.lane.b32.xlu0 %v3962_v5, %s7447_s17  ;;  %3796 = vrot.lane.b32.xlu1 %v3791_v10, %s7447_s17 }
0x1cc8   :  { %v3795_v32 = vpop.permute.xlu0 %3794  ;;  %v3793_v25 = vpop.permute.xlu1 %3792 }
0x1cc9   :  { %v3799_v22 = vmul.f32 %v3795_v32, %v3791_v10  ;;  %v3798_v44 = vmul.f32 %v3793_v25, %v8712_v56 }
0x1ccb   :  { %v8818_v16 = vadd.f32 %v3799_v22, %v3798_v44 }
0x1ccd   :  { %7314 = vtanh.f32 %v8818_v16 }
0x1cd2   :  { %v3966_v34 = vpop.permute.xlu0 %3965  ;;  %v3964_v30 = vpop.permute.xlu1 %3963 }
0x1cd3   :  { %v3970_v49 = vmul.f32 %v3966_v34, %v3962_v5  ;;  %v3969_v17 = vmul.f32 %v3964_v30, %v8766_v1 }
0x1cd5   :  { %v8822_v42 = vadd.f32 %v3970_v49, %v3969_v17 }
0x1cd6   :  { %v3797_v35 = vpop.permute.xlu1 %3796  ;;  %v3968_v28 = vpop.permute.xlu0 %3967 }
0x1cd7   :  { %v7315_v36 = vpop.eup %7314  ;;  %7316 = vtanh.f32 %v8822_v42 }
0x1cd8   :  { %v3802_v26 = vmul.f32 %v7315_v36, %v3797_v35 }
0x1cda   :  { %v3803_v9 = vpack.c.bf16 %v3802_v26, %v3802_v26 }
0x1cdc   :  { %6851 = vmatmul.mubr.msk.bf16.vlgmr.msra.gmra.mrb[136].mxu1 %vm335_vm5, %v3803_v9 }
0x1cdd   :  { %6863 = vmatpush3.bf16.msra.mxu1 %v8531_v63  ;;  %6866 = vmatprep.mubr.msk.bf16.mxu1 %vm7444_vm0, %v7443_v0 }
0x1cde   :  { %6864 = vmatprep.subr.bf16.mxu1 %v7443_v0 }
0x1ce1   :  { %v7317_v56 = vpop.eup %7316  ;;  %6865 = vmatpush3.bf16.msra.mxu1 %v8547_v55 }
0x1ce2   :  { %v3973_v1 = vmul.f32 %v7317_v56, %v3968_v28  ;;  %6878 = vmatprep.subr.bf16.mxu1 %v7443_v0  ;;  %v5950_v56 = vld [vmem:[%s9431_s10 + $0xc] ss:$0 sm:$0xff] }
0x1ce4   :  { %v8832_v29 = vpack.c.bf16 %v3973_v1, %v3973_v1  ;;  %6867 = vmatmul.mubr.msk.bf16.vlgmr.msra.gmra.mrb[140].mxu1 %vm335_vm5, %v3803_v9 }
0x1ce5   :  { %6879 = vmatpush3.bf16.msra.mxu1 %v8555_v18  ;;  %6882 = vmatprep.mubr.msk.bf16.mxu1 %vm7444_vm0, %v7443_v0 }
0x1ce6   :  { %6875 = vmatmul.mubr.msk.bf16.vlgmr.msra.gmra.mrb[144].mxu0 %vm335_vm5, %v8832_v29  ;;  %6880 = vmatprep.subr.bf16.mxu1 %v7443_v0 }
0x1ce7   :  { %6887 = vmatpush3.bf16.msra.mxu0 %v8672_v50  ;;  %6890 = vmatprep.mubr.msk.bf16.mxu0 %vm7444_vm0, %v7443_v0 }
0x1ce8   :  { %6888 = vmatprep.subr.bf16.mxu0 %v7443_v0 }
0x1ce9   :  { %6881 = vmatpush3.bf16.msra.mxu1 %v8564_v45 }
0x1cea   :  { %6894 = vmatprep.subr.bf16.mxu1 %v7443_v0 }
0x1ceb   :  { %6889 = vmatpush3.bf16.msra.mxu0 %v8683_v54 }
0x1cec   :  { %6902 = vmatprep.subr.bf16.mxu0 %v7443_v0 }
0x1daf   :  { %v3884_v31 = vpop.f32.mrb[136].mxu1 }
0x1db0   :  { %v3885_v13 = vadd.f32 %v3884_v31, %v8801_v61  ;;  %v6852_v37 = vpop.f32.mrb[137].mxu1 }
0x1db1   :  { %v3887_v39 = vpop.f32.mrb[138].mxu1 }
0x1db2   :  { %v3890_v2 = vadd.f32 %v8691_v47, %v3885_v13  ;;  %v6853_v46 = vpop.f32.mrb[139].mxu1 }
0x1db4   :  { %v3891_v19 = vmul.f32 %v3890_v2, %v7585_v21 }
0x1db6   :  { %7318 = vtanh.f32 %v3891_v19 }
0x1db7   :  { %v4009_v43 = vpop.f32.mrb[140].mxu1 }
0x1db8   :  { %v6868_v41 = vpop.f32.mrb[141].mxu1 }
0x1db9   :  { %v4012_v38 = vpop.f32.mrb[142].mxu1  ;;  %v4052_v58 = vpop.f32.mrb[144].mxu0 }
0x1dba   :  { %v4053_v27 = vadd.f32 %v4052_v58, %v4009_v43  ;;  %v6869_v11 = vpop.f32.mrb[143].mxu1  ;;  %v6876_v51 = vpop.f32.mrb[145].mxu0 }
0x1dbb   :  { %v4055_v48 = vpop.f32.mrb[146].mxu0 }
0x1dbc   :  { %v4058_v23 = vadd.f32 %v8626_v6, %v4053_v27  ;;  %v6877_v14 = vpop.f32.mrb[147].mxu0 }
0x1dbe   :  { %v4059_v61 = vmul.f32 %v4058_v23, %v7585_v21 }
0x1dc0   :  { %v7319_v53 = vpop.eup %7318  ;;  %7320 = vtanh.f32 %v4059_v61 }
0x1dc1   :  { %v3893_v40 = vmul.f32 %v7319_v53, %v7585_v21 }
0x1dc3   :  { %v3894_v10 = vadd.f32 %v3893_v40, %v7610_v33 }
0x1dc5   :  { %3897 = vrot.lane.b32.xlu0 %v3894_v10, %s7449_s0  ;;  %3895 = vrot.lane.b32.xlu1 %v3894_v10, %s7448_s18 }
0x1dca   :  { %v7321_v62 = vpop.eup %7320 }
0x1dcb   :  { %v4061_v60 = vmul.f32 %v7321_v62, %v7585_v21 }
0x1dcd   :  { %v4062_v5 = vadd.f32 %v4061_v60, %v7610_v33 }
0x1dcf   :  { %4065 = vrot.lane.b32.xlu0 %v4062_v5, %s7449_s0  ;;  %4063 = vrot.lane.b32.xlu1 %v4062_v5, %s7448_s18 }
0x1dd3   :  { %4067 = vrot.lane.b32.xlu0 %v4062_v5, %s7447_s17  ;;  %3899 = vrot.lane.b32.xlu1 %v3894_v10, %s7447_s17 }
0x1e37   :  { %v3898_v32 = vpop.permute.xlu0 %3897  ;;  %v3896_v25 = vpop.permute.xlu1 %3895 }
0x1e38   :  { %v3902_v22 = vmul.f32 %v3898_v32, %v3894_v10  ;;  %v3901_v44 = vmul.f32 %v3896_v25, %v8770_v52 }
0x1e3a   :  { %v8865_v34 = vadd.f32 %v3902_v22, %v3901_v44 }
0x1e3c   :  { %7322 = vtanh.f32 %v8865_v34 }
0x1e41   :  { %v4066_v30 = vpop.permute.xlu0 %4065  ;;  %v4064_v49 = vpop.permute.xlu1 %4063 }
0x1e42   :  { %v4070_v17 = vmul.f32 %v4066_v30, %v4062_v5  ;;  %v4069_v35 = vmul.f32 %v4064_v49, %v8818_v16  ;;  %v8882_v16 = vld [vmem:[%s9422_s2] sm:$0xff]  }
0x1e44   :  { %v8869_v36 = vadd.f32 %v4070_v17, %v4069_v35 }
0x1e45   :  { %v3900_v26 = vpop.permute.xlu1 %3899  ;;  %v4068_v37 = vpop.permute.xlu0 %4067 }
0x1e46   :  { %v7323_v9 = vpop.eup %7322  ;;  %7324 = vtanh.f32 %v8869_v36 }
0x1e47   :  { %v3905_v52 = vmul.f32 %v7323_v9, %v3900_v26 }
0x1e49   :  { %v3906_v28 = vpack.c.bf16 %v3905_v52, %v3905_v52  ;;  %v3915_v1 = vmul.f32 %v5950_v56, %v3905_v52 }
0x1e4b   :  { %v8876_v31 = vadd.f32 %v3915_v1, %v8782_v15  ;;  %6883 = vmatmul.mubr.msk.bf16.vlgmr.msra.gmra.mrb[144].mxu1 %vm335_vm5, %v3906_v28  ;;  %v8891_v15 = vld [vmem:[%s9422_s2 + $0x8] sm:$0xff]  }
0x1e4c   :  { %6895 = vmatpush3.bf16.msra.mxu1 %v8882_v16  ;;  %6898 = vmatprep.mubr.msk.bf16.mxu1 %vm7444_vm0, %v7443_v0 }
0x1e4d   :  { %6896 = vmatprep.subr.bf16.mxu1 %v7443_v0 }
0x1e50   :  { %v7325_v13 = vpop.eup %7324  ;;  %6897 = vmatpush3.bf16.msra.mxu1 %v8891_v15 }
0x1e51   :  { %v4073_v39 = vmul.f32 %v7325_v13, %v4068_v37  ;;  %6910 = vmatprep.subr.bf16.mxu1 %v7443_v0 }
0x1e53   :  { %v4074_v2 = vpack.c.bf16 %v4073_v39, %v4073_v39  ;;  %6899 = vmatmul.mubr.msk.bf16.vlgmr.msra.gmra.mrb[148].mxu1 %vm335_vm5, %v8832_v29 }
0x1e54   :  { %6911 = vmatpush3.bf16.msra.mxu1 %v8521_v12  ;;  %6914 = vmatprep.mubr.msk.bf16.mxu1 %vm7444_vm0, %v7443_v0 }
0x1e55   :  { %6891 = vmatmul.mubr.msk.bf16.vlgmr.msra.gmra.mrb[148].mxu0 %vm335_vm5, %v4074_v2  ;;  %6912 = vmatprep.subr.bf16.mxu1 %v7443_v0 }
0x1e56   :  { %6903 = vmatpush3.bf16.msra.mxu0 %v8531_v63  ;;  %6906 = vmatprep.mubr.msk.bf16.mxu0 %vm7444_vm0, %v7443_v0 }
0x1e57   :  { %6904 = vmatprep.subr.bf16.mxu0 %v7443_v0 }
0x1e58   :  { %6913 = vmatpush3.bf16.msra.mxu1 %v8540_v24 }
0x1e59   :  { %6926 = vmatprep.subr.bf16.mxu1 %v7443_v0 }
0x1e5a   :  { %6905 = vmatpush3.bf16.msra.mxu0 %v8547_v55  ;;  %v280_v55 = vadd.f32 %v8571_v20, %v7675_v57 }
0x1e5b   :  { %6918 = vmatprep.subr.bf16.mxu0 %v7443_v0 }
0x1e5d   :  { %6907 = vmatmul.mubr.msk.bf16.vlgmr.msra.gmra.mrb[152].mxu0 %vm335_vm5, %v4074_v2 }
0x1e5e   :  { %6919 = vmatpush3.bf16.msra.mxu0 %v8555_v18  ;;  %6922 = vmatprep.mubr.msk.bf16.mxu0 %vm7444_vm0, %v7443_v0 }
0x1e5f   :  { %6920 = vmatprep.subr.bf16.mxu0 %v7443_v0 }
0x1e62   :  { %6921 = vmatpush3.bf16.msra.mxu0 %v8564_v45 }
0x1e63   :  { %6934 = vmatprep.subr.bf16.mxu0 %v7443_v0 }
0x1f1e   :  { %v4112_v12 = vpop.f32.mrb[144].mxu1 }
0x1f1f   :  { %v6884_v63 = vpop.f32.mrb[145].mxu1 }
0x1f20   :  { %v4115_v24 = vpop.f32.mrb[146].mxu1  ;;  %v8973_v63 = vld [vmem:[%s9426_s4 + $0x8] sm:$0xff]  }
0x1f21   :  { %v6885_v29 = vpop.f32.mrb[147].mxu1 }
0x1f26   :  { %v4223_v46 = vpop.f32.mrb[148].mxu1 }
0x1f27   :  { %v4229_v19 = vadd.f32 %v4223_v46, %v280_v55  ;;  %v6900_v43 = vpop.f32.mrb[149].mxu1 }
0x1f28   :  { %v4155_v18 = vpop.f32.mrb[148].mxu0  ;;  %v4226_v41 = vpop.f32.mrb[150].mxu1 }
0x1f29   :  { %v4230_v38 = vmul.f32 %v4229_v19, %v7585_v21  ;;  %v4156_v58 = vadd.f32 %v4155_v18, %v4112_v12  ;;  %v6892_v27 = vpop.f32.mrb[149].mxu0  ;;  %v6901_v11 = vpop.f32.mrb[151].mxu1 }
0x1f2a   :  { %v4158_v45 = vpop.f32.mrb[150].mxu0  ;;  %v8984_v11 = vld [vmem:[%s9424_s3] ss:$0 sm:$0xff] }
0x1f2b   :  { %7326 = vtanh.f32 %v4230_v38  ;;  %v4161_v51 = vadd.f32 %v8691_v47, %v4156_v58  ;;  %v6893_v48 = vpop.f32.mrb[151].mxu0  ;;  %v283_v45 = vadd.f32 %v8984_v11, %v7679_v59 }
0x1f2d   :  { %v4162_v23 = vmul.f32 %v4161_v51, %v7585_v21 }
0x1f2f   :  { %7328 = vtanh.f32 %v4162_v23 }
0x1f30   :  { %v4280_v14 = vpop.f32.mrb[152].mxu0 }
0x1f31   :  { %v6908_v57 = vpop.f32.mrb[153].mxu0 }
0x1f32   :  { %v4283_v20 = vpop.f32.mrb[154].mxu0 }
0x1f33   :  { %v6909_v61 = vpop.f32.mrb[155].mxu0 }
0x1f35   :  { %v7327_v53 = vpop.eup %7326 }
0x1f36   :  { %v4232_v40 = vmul.f32 %v7327_v53, %v7585_v21 }
0x1f38   :  { %v4233_v10 = vadd.f32 %v4232_v40, %v7610_v33 }
0x1f39   :  { %v7329_v62 = vpop.eup %7328 }
0x1f3a   :  { %4236 = vrot.lane.b32.xlu0 %v4233_v10, %s7449_s0  ;;  %4234 = vrot.lane.b32.xlu1 %v4233_v10, %s7448_s18  ;;  %v4164_v60 = vmul.f32 %v7329_v62, %v7585_v21 }
0x1f3c   :  { %v4165_v5 = vadd.f32 %v4164_v60, %v7610_v33 }
0x1f3e   :  { %4168 = vrot.lane.b32.xlu0 %v4165_v5, %s7449_s0  ;;  %4166 = vrot.lane.b32.xlu1 %v4165_v5, %s7448_s18 }
0x1f42   :  { %4170 = vrot.lane.b32.xlu0 %v4165_v5, %s7447_s17  ;;  %4238 = vrot.lane.b32.xlu1 %v4233_v10, %s7447_s17 }
0x1fac   :  { %v4237_v32 = vpop.permute.xlu0 %4236  ;;  %v4235_v25 = vpop.permute.xlu1 %4234 }
0x1fad   :  { %v4241_v22 = vmul.f32 %v4237_v32, %v4233_v10  ;;  %v4240_v44 = vmul.f32 %v4235_v25, %v8822_v42  ;;  %v5957_v42 = vld [vmem:[%s9431_s10 + $0xd] ss:$0 sm:$0xff] }
0x1faf   :  { %v8933_v30 = vadd.f32 %v4241_v22, %v4240_v44 }
0x1fb0   :  { %v4169_v49 = vpop.permute.xlu0 %4168  ;;  %v4167_v17 = vpop.permute.xlu1 %4166 }
0x1fb1   :  { %7330 = vtanh.f32 %v8933_v30  ;;  %v4173_v35 = vmul.f32 %v4169_v49, %v4165_v5  ;;  %v4172_v26 = vmul.f32 %v4167_v17, %v8865_v34 }
0x1fb3   :  { %v8937_v9 = vadd.f32 %v4173_v35, %v4172_v26 }
0x1fb4   :  { %v4239_v52 = vpop.permute.xlu1 %4238  ;;  %v4171_v37 = vpop.permute.xlu0 %4170 }
0x1fb5   :  { %7332 = vtanh.f32 %v8937_v9 }
0x1fbb   :  { %v7331_v56 = vpop.eup %7330 }
0x1fbc   :  { %v4244_v28 = vmul.f32 %v7331_v56, %v4239_v52 }
0x1fbe   :  { %v4245_v1 = vpack.c.bf16 %v4244_v28, %v4244_v28 }
0x1fbf   :  { %v7333_v13 = vpop.eup %7332 }
0x1fc0   :  { %v4176_v39 = vmul.f32 %v7333_v13, %v4171_v37  ;;  %6915 = vmatmul.mubr.msk.bf16.vlgmr.msra.gmra.mrb[152].mxu1 %vm335_vm5, %v4245_v1  ;;  %v9020_v13 = vld [vmem:[%s9425_s5 + $0x8] sm:$0xff]  }
0x1fc1   :  { %6927 = vmatpush3.bf16.msra.mxu1 %v8672_v50  ;;  %6930 = vmatprep.mubr.msk.bf16.mxu1 %vm7444_vm0, %v7443_v0 }
0x1fc2   :  { %v4177_v34 = vpack.c.bf16 %v4176_v39, %v4176_v39  ;;  %v4186_v2 = vmul.f32 %v5957_v42, %v4176_v39  ;;  %6928 = vmatprep.subr.bf16.mxu1 %v7443_v0  ;;  %v9030_v39 = vld [vmem:[%s9428_s8] sm:$0xff]  }
0x1fc4   :  { %v8949_v12 = vadd.f32 %v4186_v2, %v8876_v31  ;;  %6923 = vmatmul.mubr.msk.bf16.vlgmr.msra.gmra.mrb[156].mxu0 %vm335_vm5, %v4177_v34  ;;  %v8964_v31 = vld [vmem:[%s9426_s4] sm:$0xff]   ;;  %v9045_v34 = vld [vmem:[%s9428_s8 + $0x8] sm:$0xff]  }
0x1fc5   :  { %6935 = vmatpush3.bf16.msra.mxu0 %v8882_v16  ;;  %6938 = vmatprep.mubr.msk.bf16.mxu0 %vm7444_vm0, %v7443_v0 }
0x1fc6   :  { %6936 = vmatprep.subr.bf16.mxu0 %v7443_v0  ;;  %6929 = vmatpush3.bf16.msra.mxu1 %v8683_v54 }
0x1fc7   :  { %6942 = vmatprep.subr.bf16.mxu1 %v7443_v0 }
0x1fc9   :  { %6937 = vmatpush3.bf16.msra.mxu0 %v8891_v15 }
0x1fca   :  { %6950 = vmatprep.subr.bf16.mxu0 %v7443_v0 }
0x1fcc   :  { %6939 = vmatmul.mubr.msk.bf16.vlgmr.msra.gmra.mrb[160].mxu0 %vm335_vm5, %v4245_v1 }
0x1fcd   :  { %6951 = vmatpush3.bf16.msra.mxu0 %v8964_v31  ;;  %6954 = vmatprep.mubr.msk.bf16.mxu0 %vm7444_vm0, %v7443_v0 }
0x1fce   :  { %6952 = vmatprep.subr.bf16.mxu0 %v7443_v0 }
0x1fd1   :  { %6953 = vmatpush3.bf16.msra.mxu0 %v8973_v63 }
0x1fd2   :  { %6966 = vmatprep.subr.bf16.mxu0 %v7443_v0 }
0x2093   :  { %v4323_v24 = vpop.f32.mrb[152].mxu1 }
0x2094   :  { %v4324_v29 = vadd.f32 %v4323_v24, %v4280_v14  ;;  %v6916_v55 = vpop.f32.mrb[153].mxu1 }
0x2095   :  { %v4326_v46 = vpop.f32.mrb[154].mxu1 }
0x2096   :  { %v4329_v19 = vadd.f32 %v8626_v6, %v4324_v29  ;;  %v6917_v43 = vpop.f32.mrb[155].mxu1 }
0x2097   :  { %v8978_v18 = vpop.f32.mrb[156].mxu0 }
0x2098   :  { %v4330_v41 = vmul.f32 %v4329_v19, %v7585_v21  ;;  %v6924_v38 = vpop.f32.mrb[157].mxu0 }
0x2099   :  { %v4386_v58 = vpop.f32.mrb[158].mxu0 }
0x209a   :  { %7334 = vtanh.f32 %v4330_v41  ;;  %v6925_v27 = vpop.f32.mrb[159].mxu0 }
0x209f   :  { %v4494_v51 = vpop.f32.mrb[160].mxu0 }
0x20a0   :  { %v4500_v48 = vadd.f32 %v4494_v51, %v283_v45  ;;  %v6940_v6 = vpop.f32.mrb[161].mxu0 }
0x20a1   :  { %v4497_v23 = vpop.f32.mrb[162].mxu0 }
0x20a2   :  { %v4501_v14 = vmul.f32 %v4500_v48, %v7585_v21  ;;  %v6941_v57 = vpop.f32.mrb[163].mxu0 }
0x20a4   :  { %v7335_v20 = vpop.eup %7334  ;;  %7336 = vtanh.f32 %v4501_v14 }
0x20a5   :  { %v4332_v61 = vmul.f32 %v7335_v20, %v7585_v21 }
0x20a7   :  { %v4333_v53 = vadd.f32 %v4332_v61, %v7610_v33 }
0x20a9   :  { %4336 = vrot.lane.b32.xlu0 %v4333_v53, %s7449_s0  ;;  %4334 = vrot.lane.b32.xlu1 %v4333_v53, %s7448_s18 }
0x20ae   :  { %v7337_v40 = vpop.eup %7336 }
0x20af   :  { %v4503_v59 = vmul.f32 %v7337_v40, %v7585_v21 }
0x20b1   :  { %v4504_v10 = vadd.f32 %v4503_v59, %v7610_v33 }
0x20b3   :  { %4507 = vrot.lane.b32.xlu0 %v4504_v10, %s7449_s0  ;;  %4505 = vrot.lane.b32.xlu1 %v4504_v10, %s7448_s18 }
0x20b7   :  { %4509 = vrot.lane.b32.xlu0 %v4504_v10, %s7447_s17  ;;  %4338 = vrot.lane.b32.xlu1 %v4333_v53, %s7447_s17 }
0x211b   :  { %v4337_v62 = vpop.permute.xlu0 %4336  ;;  %v4335_v60 = vpop.permute.xlu1 %4334 }
0x211c   :  { %v4341_v5 = vmul.f32 %v4337_v62, %v4333_v53  ;;  %v4340_v32 = vmul.f32 %v4335_v60, %v8869_v36  ;;  %v9011_v36 = vld [vmem:[%s9425_s5] sm:$0xff]  }
0x211e   :  { %v9000_v25 = vadd.f32 %v4341_v5, %v4340_v32 }
0x2120   :  { %7338 = vtanh.f32 %v9000_v25 }
0x2125   :  { %v4508_v22 = vpop.permute.xlu0 %4507  ;;  %v4506_v44 = vpop.permute.xlu1 %4505 }
0x2126   :  { %v4512_v49 = vmul.f32 %v4508_v22, %v4504_v10  ;;  %v4511_v17 = vmul.f32 %v4506_v44, %v8933_v30 }
0x2128   :  { %v9004_v35 = vadd.f32 %v4512_v49, %v4511_v17 }
0x2129   :  { %v4339_v26 = vpop.permute.xlu1 %4338  ;;  %v4510_v1 = vpop.permute.xlu0 %4509 }
0x212a   :  { %v7339_v56 = vpop.eup %7338  ;;  %7340 = vtanh.f32 %v9004_v35 }
0x212b   :  { %v4344_v52 = vmul.f32 %v7339_v56, %v4339_v26  ;;  %v5964_v56 = vld [vmem:[%s9431_s10 + $0xe] ss:$0 sm:$0xff] }
0x212d   :  { %v4345_v28 = vpack.c.bf16 %v4344_v52, %v4344_v52 }
0x212f   :  { %6931 = vmatmul.mubr.msk.bf16.vlgmr.msra.gmra.mrb[156].mxu1 %vm335_vm5, %v4345_v28 }
0x2130   :  { %6943 = vmatpush3.bf16.msra.mxu1 %v9011_v36  ;;  %6946 = vmatprep.mubr.msk.bf16.mxu1 %vm7444_vm0, %v7443_v0 }
0x2131   :  { %6944 = vmatprep.subr.bf16.mxu1 %v7443_v0 }
0x2134   :  { %v7341_v30 = vpop.eup %7340  ;;  %6945 = vmatpush3.bf16.msra.mxu1 %v9020_v13 }
0x2135   :  { %v4515_v42 = vmul.f32 %v7341_v30, %v4510_v1  ;;  %6958 = vmatprep.subr.bf16.mxu1 %v7443_v0 }
0x2137   :  { %v9024_v37 = vpack.c.bf16 %v4515_v42, %v4515_v42  ;;  %6947 = vmatmul.mubr.msk.bf16.vlgmr.msra.gmra.mrb[160].mxu1 %vm335_vm5, %v4345_v28 }
0x2138   :  { %6959 = vmatpush3.bf16.msra.mxu1 %v9030_v39  ;;  %6962 = vmatprep.mubr.msk.bf16.mxu1 %vm7444_vm0, %v7443_v0 }
0x2139   :  { %6955 = vmatmul.mubr.msk.bf16.vlgmr.msra.gmra.mrb[164].mxu0 %vm335_vm5, %v9024_v37  ;;  %6960 = vmatprep.subr.bf16.mxu1 %v7443_v0 }
0x213a   :  { %6967 = vmatpush3.bf16.msra.mxu0 %v8672_v50  ;;  %6970 = vmatprep.mubr.msk.bf16.mxu0 %vm7444_vm0, %v7443_v0 }
0x213b   :  { %6968 = vmatprep.subr.bf16.mxu0 %v7443_v0 }
0x213c   :  { %6961 = vmatpush3.bf16.msra.mxu1 %v9045_v34 }
0x213d   :  { %6974 = vmatprep.subr.bf16.mxu1 %v7443_v0 }
0x213e   :  { %6969 = vmatpush3.bf16.msra.mxu0 %v8683_v54 }
0x213f   :  { %6982 = vmatprep.subr.bf16.mxu0 %v7443_v0 }
0x2202   :  { %v4426_v2 = vpop.f32.mrb[156].mxu1 }
0x2203   :  { %v4427_v50 = vadd.f32 %v4426_v2, %v8978_v18  ;;  %v6932_v24 = vpop.f32.mrb[157].mxu1  ;;  %v9057_v18 = vld [vmem:[%s9427_s6] ss:$0 sm:$0xff] }
0x2204   :  { %v4429_v29 = vpop.f32.mrb[158].mxu1 }
0x2205   :  { %v4432_v55 = vadd.f32 %v8691_v47, %v4427_v50  ;;  %v6933_v46 = vpop.f32.mrb[159].mxu1  ;;  %v288_v29 = vadd.f32 %v8984_v11, %v7685_v4 }
0x2207   :  { %v4433_v19 = vmul.f32 %v4432_v55, %v7585_v21 }
0x2209   :  { %7342 = vtanh.f32 %v4433_v19 }
0x220a   :  { %v4551_v43 = vpop.f32.mrb[160].mxu1 }
0x220b   :  { %v6948_v41 = vpop.f32.mrb[161].mxu1 }
0x220c   :  { %v4554_v38 = vpop.f32.mrb[162].mxu1  ;;  %v4594_v58 = vpop.f32.mrb[164].mxu0 }
0x220d   :  { %v4595_v27 = vadd.f32 %v4594_v58, %v4551_v43  ;;  %v6949_v45 = vpop.f32.mrb[163].mxu1  ;;  %v6956_v54 = vpop.f32.mrb[165].mxu0 }
0x220e   :  { %v4597_v51 = vpop.f32.mrb[166].mxu0 }
0x220f   :  { %v4600_v48 = vadd.f32 %v9057_v18, %v4595_v27  ;;  %v6957_v47 = vpop.f32.mrb[167].mxu0  ;;  %v9120_v51 = vld [vmem:[%s9430_s9] ss:$0 sm:$0xff] }
0x2211   :  { %v4601_v6 = vmul.f32 %v4600_v48, %v7585_v21 }
0x2213   :  { %v7343_v23 = vpop.eup %7342  ;;  %7344 = vtanh.f32 %v4601_v6 }
0x2214   :  { %v4435_v14 = vmul.f32 %v7343_v23, %v7585_v21 }
0x2216   :  { %v4436_v57 = vadd.f32 %v4435_v14, %v7610_v33 }
0x2218   :  { %4439 = vrot.lane.b32.xlu0 %v4436_v57, %s7449_s0  ;;  %4437 = vrot.lane.b32.xlu1 %v4436_v57, %s7448_s18 }
0x221d   :  { %v7345_v20 = vpop.eup %7344 }
0x221e   :  { %v4603_v61 = vmul.f32 %v7345_v20, %v7585_v21 }
0x2220   :  { %v4604_v53 = vadd.f32 %v4603_v61, %v7610_v33 }
0x2222   :  { %4607 = vrot.lane.b32.xlu0 %v4604_v53, %s7449_s0  ;;  %4605 = vrot.lane.b32.xlu1 %v4604_v53, %s7448_s18 }
0x2226   :  { %4609 = vrot.lane.b32.xlu0 %v4604_v53, %s7447_s17  ;;  %4441 = vrot.lane.b32.xlu1 %v4436_v57, %s7447_s17 }
0x228a   :  { %v4440_v40 = vpop.permute.xlu0 %4439  ;;  %v4438_v59 = vpop.permute.xlu1 %4437 }
0x228b   :  { %v4444_v10 = vmul.f32 %v4440_v40, %v4436_v57  ;;  %v4443_v62 = vmul.f32 %v4438_v59, %v8937_v9 }
0x228d   :  { %v9072_v60 = vadd.f32 %v4444_v10, %v4443_v62 }
0x228f   :  { %7346 = vtanh.f32 %v9072_v60 }
0x2294   :  { %v4608_v5 = vpop.permute.xlu0 %4607  ;;  %v4606_v32 = vpop.permute.xlu1 %4605 }
0x2295   :  { %v4612_v22 = vmul.f32 %v4608_v5, %v4604_v53  ;;  %v4611_v44 = vmul.f32 %v4606_v32, %v9000_v25 }
0x2297   :  { %v9076_v49 = vadd.f32 %v4612_v22, %v4611_v44 }
0x2298   :  { %v4442_v17 = vpop.permute.xlu1 %4441  ;;  %v4610_v1 = vpop.permute.xlu0 %4609 }
0x2299   :  { %v7347_v26 = vpop.eup %7346  ;;  %7348 = vtanh.f32 %v9076_v49 }
0x229a   :  { %v4447_v9 = vmul.f32 %v7347_v26, %v4442_v17 }
0x229c   :  { %v4448_v52 = vpack.c.bf16 %v4447_v9, %v4447_v9  ;;  %v4457_v28 = vmul.f32 %v5964_v56, %v4447_v9 }
0x229e   :  { %v9083_v30 = vadd.f32 %v4457_v28, %v8949_v12  ;;  %6963 = vmatmul.mubr.msk.bf16.vlgmr.msra.gmra.mrb[164].mxu1 %vm335_vm5, %v4448_v52 }
0x229f   :  { %6975 = vmatpush3.bf16.msra.mxu1 %v8882_v16  ;;  %6978 = vmatprep.mubr.msk.bf16.mxu1 %vm7444_vm0, %v7443_v0 }
0x22a0   :  { %6976 = vmatprep.subr.bf16.mxu1 %v7443_v0 }
0x22a3   :  { %v7349_v25 = vpop.eup %7348  ;;  %6977 = vmatpush3.bf16.msra.mxu1 %v8891_v15 }
0x22a4   :  { %v4615_v42 = vmul.f32 %v7349_v25, %v4610_v1  ;;  %6990 = vmatprep.subr.bf16.mxu1 %v7443_v0 }
0x22a6   :  { %v4616_v2 = vpack.c.bf16 %v4615_v42, %v4615_v42  ;;  %6979 = vmatmul.mubr.msk.bf16.vlgmr.msra.gmra.mrb[168].mxu1 %vm335_vm5, %v9024_v37 }
0x22a7   :  { %6991 = vmatpush3.bf16.msra.mxu1 %v8964_v31  ;;  %6994 = vmatprep.mubr.msk.bf16.mxu1 %vm7444_vm0, %v7443_v0 }
0x22a8   :  { %6971 = vmatmul.mubr.msk.bf16.vlgmr.msra.gmra.mrb[168].mxu0 %vm335_vm5, %v4616_v2  ;;  %6992 = vmatprep.subr.bf16.mxu1 %v7443_v0 }
0x22a9   :  { %6983 = vmatpush3.bf16.msra.mxu0 %v9011_v36  ;;  %6986 = vmatprep.mubr.msk.bf16.mxu0 %vm7444_vm0, %v7443_v0 }
0x22aa   :  { %6984 = vmatprep.subr.bf16.mxu0 %v7443_v0 }
0x22ab   :  { %6993 = vmatpush3.bf16.msra.mxu1 %v8973_v63 }
0x22ac   :  { %7006 = vmatprep.subr.bf16.mxu1 %v7443_v0 }
0x22ad   :  { %6985 = vmatpush3.bf16.msra.mxu0 %v9020_v13 }
0x22ae   :  { %6998 = vmatprep.subr.bf16.mxu0 %v7443_v0 }
0x22b0   :  { %6987 = vmatmul.mubr.msk.bf16.vlgmr.msra.gmra.mrb[172].mxu0 %vm335_vm5, %v4616_v2 }
0x22b1   :  { %6999 = vmatpush3.bf16.msra.mxu0 %v9030_v39  ;;  %7002 = vmatprep.mubr.msk.bf16.mxu0 %vm7444_vm0, %v7443_v0 }
0x22b2   :  { %7000 = vmatprep.subr.bf16.mxu0 %v7443_v0 }
0x22b5   :  { %7001 = vmatpush3.bf16.msra.mxu0 %v9045_v34 }
0x22b6   :  { %7014 = vmatprep.subr.bf16.mxu0 %v7443_v0 }
0x2371   :  { %v4654_v12 = vpop.f32.mrb[164].mxu1 }
0x2372   :  { %v6964_v37 = vpop.f32.mrb[165].mxu1 }
0x2373   :  { %v4657_v50 = vpop.f32.mrb[166].mxu1 }
0x2374   :  { %v6965_v24 = vpop.f32.mrb[167].mxu1 }
0x2379   :  { %v4765_v55 = vpop.f32.mrb[168].mxu1 }
0x237a   :  { %v4771_v46 = vadd.f32 %v4765_v55, %v288_v29  ;;  %v6980_v19 = vpop.f32.mrb[169].mxu1  ;;  %v9166_v55 = vld [vmem:[%s9429_s7 + $0x8] sm:$0xff]  }
0x237b   :  { %v4697_v43 = vpop.f32.mrb[168].mxu0  ;;  %v4768_v41 = vpop.f32.mrb[170].mxu1 }
0x237c   :  { %v4772_v38 = vmul.f32 %v4771_v46, %v7585_v21  ;;  %v4698_v58 = vadd.f32 %v4697_v43, %v4654_v12  ;;  %v6972_v27 = vpop.f32.mrb[169].mxu0  ;;  %v6981_v45 = vpop.f32.mrb[171].mxu1 }
0x237d   :  { %v4700_v54 = vpop.f32.mrb[170].mxu0 }
0x237e   :  { %7350 = vtanh.f32 %v4772_v38  ;;  %v4703_v48 = vadd.f32 %v9120_v51, %v4698_v58  ;;  %v6973_v4 = vpop.f32.mrb[171].mxu0 }
0x237f   :  { %v291_v4 = vadd.f32 %v8984_v11, %v7689_v8 }
0x2380   :  { %v4704_v47 = vmul.f32 %v4703_v48, %v7585_v21 }
0x2382   :  { %7352 = vtanh.f32 %v4704_v47 }
0x2383   :  { %v4822_v6 = vpop.f32.mrb[172].mxu0 }
0x2384   :  { %v6988_v23 = vpop.f32.mrb[173].mxu0 }
0x2385   :  { %v4825_v14 = vpop.f32.mrb[174].mxu0 }
0x2386   :  { %v6989_v57 = vpop.f32.mrb[175].mxu0 }
0x2388   :  { %v7351_v20 = vpop.eup %7350 }
0x2389   :  { %v4774_v61 = vmul.f32 %v7351_v20, %v7585_v21 }
0x238b   :  { %v4775_v53 = vadd.f32 %v4774_v61, %v7610_v33 }
0x238c   :  { %v7353_v40 = vpop.eup %7352 }
0x238d   :  { %4778 = vrot.lane.b32.xlu0 %v4775_v53, %s7449_s0  ;;  %4776 = vrot.lane.b32.xlu1 %v4775_v53, %s7448_s18  ;;  %v4706_v59 = vmul.f32 %v7353_v40, %v7585_v21 }
0x238f   :  { %v4707_v10 = vadd.f32 %v4706_v59, %v7610_v33 }
0x2391   :  { %4710 = vrot.lane.b32.xlu0 %v4707_v10, %s7449_s0  ;;  %4708 = vrot.lane.b32.xlu1 %v4707_v10, %s7448_s18 }
0x2395   :  { %4712 = vrot.lane.b32.xlu0 %v4707_v10, %s7447_s17  ;;  %4780 = vrot.lane.b32.xlu1 %v4775_v53, %s7447_s17 }
0x23ff   :  { %v4779_v62 = vpop.permute.xlu0 %4778  ;;  %v4777_v5 = vpop.permute.xlu1 %4776 }
0x2400   :  { %v4783_v32 = vmul.f32 %v4779_v62, %v4775_v53  ;;  %v4782_v22 = vmul.f32 %v4777_v5, %v9004_v35  ;;  %v5971_v35 = vld [vmem:[%s9431_s10 + $0xf] ss:$0 sm:$0xff] }
0x2402   :  { %v9135_v44 = vadd.f32 %v4783_v32, %v4782_v22 }
0x2403   :  { %v4711_v17 = vpop.permute.xlu0 %4710  ;;  %v4709_v26 = vpop.permute.xlu1 %4708 }
0x2404   :  { %7354 = vtanh.f32 %v9135_v44  ;;  %v4715_v56 = vmul.f32 %v4711_v17, %v4707_v10  ;;  %v4714_v9 = vmul.f32 %v4709_v26, %v9072_v60  ;;  %v9149_v60 = vld [vmem:[%s9429_s7] sm:$0xff]  }
0x2406   :  { %v9139_v52 = vadd.f32 %v4715_v56, %v4714_v9 }
0x2407   :  { %v4781_v25 = vpop.permute.xlu1 %4780  ;;  %v4713_v12 = vpop.permute.xlu0 %4712 }
0x2408   :  { %7356 = vtanh.f32 %v9139_v52 }
0x240e   :  { %v7355_v28 = vpop.eup %7354 }
0x240f   :  { %v4786_v1 = vmul.f32 %v7355_v28, %v4781_v25 }
0x2411   :  { %v4787_v42 = vpack.c.bf16 %v4786_v1, %v4786_v1 }
0x2412   :  { %v7357_v2 = vpop.eup %7356 }
0x2413   :  { %v4718_v37 = vmul.f32 %v7357_v2, %v4713_v12  ;;  %6995 = vmatmul.mubr.msk.bf16.vlgmr.msra.gmra.mrb[172].mxu1 %vm335_vm5, %v4787_v42 }
0x2414   :  { %7007 = vmatpush3.bf16.msra.mxu1 %v9149_v60  ;;  %7010 = vmatprep.mubr.msk.bf16.mxu1 %vm7444_vm0, %v7443_v0 }
0x2415   :  { %v4719_v50 = vpack.c.bf16 %v4718_v37, %v4718_v37  ;;  %v4728_v24 = vmul.f32 %v5971_v35, %v4718_v37  ;;  %7008 = vmatprep.subr.bf16.mxu1 %v7443_v0 }
0x2417   :  { %v9156_v29 = vadd.f32 %v4728_v24, %v9083_v30  ;;  %7003 = vmatmul.mubr.msk.bf16.vlgmr.msra.gmra.mrb[176].mxu0 %vm335_vm5, %v4719_v50 }
0x2418   :  { %7015 = vmatpush3.bf16.msra.mxu0 %v8882_v16  ;;  %7018 = vmatprep.mubr.msk.bf16.mxu0 %vm7444_vm0, %v7443_v0 }
0x2419   :  { %7016 = vmatprep.subr.bf16.mxu0 %v7443_v0  ;;  %7009 = vmatpush3.bf16.msra.mxu1 %v9166_v55 }
0x241a   :  { %7022 = vmatprep.subr.bf16.mxu1 %v7443_v0 }
0x241c   :  { %7017 = vmatpush3.bf16.msra.mxu0 %v8891_v15 }
0x241d   :  { %7030 = vmatprep.subr.bf16.mxu0 %v7443_v0 }
0x241f   :  { %7019 = vmatmul.mubr.msk.bf16.vlgmr.msra.gmra.mrb[180].mxu0 %vm335_vm5, %v4787_v42 }
0x2420   :  { %7031 = vmatpush3.bf16.msra.mxu0 %v8964_v31  ;;  %7034 = vmatprep.mubr.msk.bf16.mxu0 %vm7444_vm0, %v7443_v0 }
0x2421   :  { %7032 = vmatprep.subr.bf16.mxu0 %v7443_v0 }
0x2424   :  { %7033 = vmatpush3.bf16.msra.mxu0 %v8973_v63 }
0x2425   :  { %7046 = vmatprep.subr.bf16.mxu0 %v7443_v0 }
0x24e6   :  { %v4865_v30 = vpop.f32.mrb[172].mxu1 }
0x24e7   :  { %v4866_v46 = vadd.f32 %v4865_v30, %v4822_v6  ;;  %v6996_v19 = vpop.f32.mrb[173].mxu1 }
0x24e8   :  { %v4868_v43 = vpop.f32.mrb[174].mxu1 }
0x24e9   :  { %v4871_v41 = vadd.f32 %v9057_v18, %v4866_v46  ;;  %v6997_v38 = vpop.f32.mrb[175].mxu1 }
0x24ea   :  { %v9180_v58 = vpop.f32.mrb[176].mxu0 }
0x24eb   :  { %v4872_v27 = vmul.f32 %v4871_v41, %v7585_v21  ;;  %v7004_v45 = vpop.f32.mrb[177].mxu0 }
0x24ec   :  { %v4928_v54 = vpop.f32.mrb[178].mxu0 }
0x24ed   :  { %7358 = vtanh.f32 %v4872_v27  ;;  %v7005_v48 = vpop.f32.mrb[179].mxu0 }
0x24f2   :  { %v5036_v47 = vpop.f32.mrb[180].mxu0 }
0x24f3   :  { %v5042_v23 = vadd.f32 %v5036_v47, %v291_v4  ;;  %v7020_v14 = vpop.f32.mrb[181].mxu0 }
0x24f4   :  { %v5039_v6 = vpop.f32.mrb[182].mxu0 }
0x24f5   :  { %v5043_v57 = vmul.f32 %v5042_v23, %v7585_v21  ;;  %v7021_v20 = vpop.f32.mrb[183].mxu0 }
0x24f7   :  { %v7359_v61 = vpop.eup %7358  ;;  %7360 = vtanh.f32 %v5043_v57 }
0x24f8   :  { %v4874_v53 = vmul.f32 %v7359_v61, %v7585_v21 }
0x24fa   :  { %v4875_v40 = vadd.f32 %v4874_v53, %v7610_v33 }
0x24fc   :  { %4878 = vrot.lane.b32.xlu0 %v4875_v40, %s7449_s0  ;;  %4876 = vrot.lane.b32.xlu1 %v4875_v40, %s7448_s18 }
0x2501   :  { %v7361_v59 = vpop.eup %7360 }
0x2502   :  { %v5045_v8 = vmul.f32 %v7361_v59, %v7585_v21 }
0x2504   :  { %v5046_v10 = vadd.f32 %v5045_v8, %v7610_v33 }
0x2506   :  { %5049 = vrot.lane.b32.xlu0 %v5046_v10, %s7449_s0  ;;  %5047 = vrot.lane.b32.xlu1 %v5046_v10, %s7448_s18 }
0x250a   :  { %5051 = vrot.lane.b32.xlu0 %v5046_v10, %s7447_s17  ;;  %4880 = vrot.lane.b32.xlu1 %v4875_v40, %s7447_s17 }
0x256e   :  { %v4879_v62 = vpop.permute.xlu0 %4878  ;;  %v4877_v5 = vpop.permute.xlu1 %4876 }
0x256f   :  { %v4883_v32 = vmul.f32 %v4879_v62, %v4875_v40  ;;  %v4882_v22 = vmul.f32 %v4877_v5, %v9076_v49 }
0x2571   :  { %v9197_v17 = vadd.f32 %v4883_v32, %v4882_v22 }
0x2573   :  { %7362 = vtanh.f32 %v9197_v17 }
0x2578   :  { %v5050_v26 = vpop.permute.xlu0 %5049  ;;  %v5048_v56 = vpop.permute.xlu1 %5047 }
0x2579   :  { %v5054_v9 = vmul.f32 %v5050_v26, %v5046_v10  ;;  %v5053_v28 = vmul.f32 %v5048_v56, %v9135_v44 }
0x257b   :  { %v9201_v25 = vadd.f32 %v5054_v9, %v5053_v28 }
0x257c   :  { %v4881_v1 = vpop.permute.xlu1 %4880  ;;  %v5052_v12 = vpop.permute.xlu0 %5051 }
0x257d   :  { %v7363_v42 = vpop.eup %7362  ;;  %7364 = vtanh.f32 %v9201_v25 }
0x257e   :  { %v4886_v2 = vmul.f32 %v7363_v42, %v4881_v1 }
0x2580   :  { %v4887_v35 = vpack.c.bf16 %v4886_v2, %v4886_v2  ;;  %v5978_v2 = vld [vmem:[%s9431_s10 + $0x10] ss:$0 sm:$0xff] }
0x2582   :  { %7011 = vmatmul.mubr.msk.bf16.vlgmr.msra.gmra.mrb[176].mxu1 %vm335_vm5, %v4887_v35 }
0x2583   :  { %7023 = vmatpush3.bf16.msra.mxu1 %v9011_v36  ;;  %7026 = vmatprep.mubr.msk.bf16.mxu1 %vm7444_vm0, %v7443_v0 }
0x2584   :  { %7024 = vmatprep.subr.bf16.mxu1 %v7443_v0 }
0x2587   :  { %v7365_v49 = vpop.eup %7364  ;;  %7025 = vmatpush3.bf16.msra.mxu1 %v9020_v13 }
0x2588   :  { %v5057_v44 = vmul.f32 %v7365_v49, %v5052_v12  ;;  %7038 = vmatprep.subr.bf16.mxu1 %v7443_v0 }
0x258a   :  { %v9211_v37 = vpack.c.bf16 %v5057_v44, %v5057_v44  ;;  %7027 = vmatmul.mubr.msk.bf16.vlgmr.msra.gmra.mrb[180].mxu1 %vm335_vm5, %v4887_v35 }
0x258b   :  { %7039 = vmatpush3.bf16.msra.mxu1 %v9030_v39  ;;  %7042 = vmatprep.mubr.msk.bf16.mxu1 %vm7444_vm0, %v7443_v0 }
0x258c   :  { %7035 = vmatmul.mubr.msk.bf16.vlgmr.msra.gmra.mrb[184].mxu0 %vm335_vm5, %v9211_v37  ;;  %7040 = vmatprep.subr.bf16.mxu1 %v7443_v0 }
0x258d   :  { %7047 = vmatpush3.bf16.msra.mxu0 %v9149_v60  ;;  %7050 = vmatprep.mubr.msk.bf16.mxu0 %vm7444_vm0, %v7443_v0 }
0x258e   :  { %7048 = vmatprep.subr.bf16.mxu0 %v7443_v0 }
0x258f   :  { %7041 = vmatpush3.bf16.msra.mxu1 %v9045_v34 }
0x2590   :  { %7054 = vmatprep.subr.bf16.mxu1 %v7443_v0 }
0x2591   :  { %7049 = vmatpush3.bf16.msra.mxu0 %v9166_v55 }
0x2592   :  { %7062 = vmatprep.subr.bf16.mxu0 %v7443_v0 }
0x2655   :  { %v4968_v50 = vpop.f32.mrb[176].mxu1 }
0x2656   :  { %v4969_v24 = vadd.f32 %v4968_v50, %v9180_v58  ;;  %v7012_v30 = vpop.f32.mrb[177].mxu1 }
0x2657   :  { %v4971_v46 = vpop.f32.mrb[178].mxu1  ;;  %v296_v30 = vadd.f32 %v8984_v11, %v7683_v3 }
0x2658   :  { %v4974_v19 = vadd.f32 %v9120_v51, %v4969_v24  ;;  %v7013_v43 = vpop.f32.mrb[179].mxu1 }
0x265a   :  { %v4975_v41 = vmul.f32 %v4974_v19, %v7585_v21 }
0x265c   :  { %7366 = vtanh.f32 %v4975_v41 }
0x265d   :  { %v5093_v38 = vpop.f32.mrb[180].mxu1 }
0x265e   :  { %v7028_v27 = vpop.f32.mrb[181].mxu1 }
0x265f   :  { %v5096_v45 = vpop.f32.mrb[182].mxu1  ;;  %v5136_v54 = vpop.f32.mrb[184].mxu0 }
0x2660   :  { %v5137_v48 = vadd.f32 %v5136_v54, %v5093_v38  ;;  %v7029_v4 = vpop.f32.mrb[183].mxu1  ;;  %v7036_v47 = vpop.f32.mrb[185].mxu0 }
0x2661   :  { %v5139_v23 = vpop.f32.mrb[186].mxu0 }
0x2662   :  { %v5142_v14 = vadd.f32 %v9057_v18, %v5137_v48  ;;  %v7037_v6 = vpop.f32.mrb[187].mxu0 }
0x2664   :  { %v5143_v58 = vmul.f32 %v5142_v14, %v7585_v21 }
0x2666   :  { %v7367_v57 = vpop.eup %7366  ;;  %7368 = vtanh.f32 %v5143_v58 }
0x2667   :  { %v4977_v20 = vmul.f32 %v7367_v57, %v7585_v21 }
0x2669   :  { %v4978_v61 = vadd.f32 %v4977_v20, %v7610_v33 }
0x266b   :  { %4981 = vrot.lane.b32.xlu0 %v4978_v61, %s7449_s0  ;;  %4979 = vrot.lane.b32.xlu1 %v4978_v61, %s7448_s18 }
0x2670   :  { %v7369_v53 = vpop.eup %7368 }
0x2671   :  { %v5145_v40 = vmul.f32 %v7369_v53, %v7585_v21 }
0x2673   :  { %v5146_v59 = vadd.f32 %v5145_v40, %v7610_v33 }
0x2675   :  { %5149 = vrot.lane.b32.xlu0 %v5146_v59, %s7449_s0  ;;  %5147 = vrot.lane.b32.xlu1 %v5146_v59, %s7448_s18 }
0x2679   :  { %5151 = vrot.lane.b32.xlu0 %v5146_v59, %s7447_s17  ;;  %4983 = vrot.lane.b32.xlu1 %v4978_v61, %s7447_s17 }
0x26dd   :  { %v4982_v8 = vpop.permute.xlu0 %4981  ;;  %v4980_v10 = vpop.permute.xlu1 %4979 }
0x26de   :  { %v4986_v62 = vmul.f32 %v4982_v8, %v4978_v61  ;;  %v4985_v5 = vmul.f32 %v4980_v10, %v9139_v52 }
0x26e0   :  { %v9244_v32 = vadd.f32 %v4986_v62, %v4985_v5 }
0x26e2   :  { %7370 = vtanh.f32 %v9244_v32 }
0x26e7   :  { %v5150_v22 = vpop.permute.xlu0 %5149  ;;  %v5148_v26 = vpop.permute.xlu1 %5147 }
0x26e8   :  { %v5154_v56 = vmul.f32 %v5150_v22, %v5146_v59  ;;  %v5153_v9 = vmul.f32 %v5148_v26, %v9197_v17 }
0x26ea   :  { %v9248_v28 = vadd.f32 %v5154_v56, %v5153_v9 }
0x26eb   :  { %v4984_v1 = vpop.permute.xlu1 %4983  ;;  %v5152_v44 = vpop.permute.xlu0 %5151 }
0x26ec   :  { %v7371_v42 = vpop.eup %7370  ;;  %7372 = vtanh.f32 %v9248_v28 }
0x26ed   :  { %v4989_v52 = vmul.f32 %v7371_v42, %v4984_v1 }
0x26ef   :  { %v4990_v35 = vpack.c.bf16 %v4989_v52, %v4989_v52  ;;  %v4999_v49 = vmul.f32 %v5978_v2, %v4989_v52 }
0x26f1   :  { %v9255_v12 = vadd.f32 %v4999_v49, %v9156_v29  ;;  %7043 = vmatmul.mubr.msk.bf16.vlgmr.msra.gmra.mrb[184].mxu1 %vm335_vm5, %v4990_v35 }
0x26f2   :  { %7055 = vmatpush3.bf16.msra.mxu1 %v8882_v16  ;;  %7058 = vmatprep.mubr.msk.bf16.mxu1 %vm7444_vm0, %v7443_v0 }
0x26f3   :  { %7056 = vmatprep.subr.bf16.mxu1 %v7443_v0 }
0x26f6   :  { %v7373_v17 = vpop.eup %7372  ;;  %7057 = vmatpush3.bf16.msra.mxu1 %v8891_v15 }
0x26f7   :  { %v5157_v50 = vmul.f32 %v7373_v17, %v5152_v44  ;;  %7070 = vmatprep.subr.bf16.mxu1 %v7443_v0 }
0x26f9   :  { %v5158_v24 = vpack.c.bf16 %v5157_v50, %v5157_v50  ;;  %7059 = vmatmul.mubr.msk.bf16.vlgmr.msra.gmra.mrb[188].mxu1 %vm335_vm5, %v9211_v37 }
0x26fa   :  { %7071 = vmatpush3.bf16.msra.mxu1 %v8964_v31  ;;  %7074 = vmatprep.mubr.msk.bf16.mxu1 %vm7444_vm0, %v7443_v0 }
0x26fb   :  { %7051 = vmatmul.mubr.msk.bf16.vlgmr.msra.gmra.mrb[188].mxu0 %vm335_vm5, %v5158_v24  ;;  %7072 = vmatprep.subr.bf16.mxu1 %v7443_v0 }
0x26fc   :  { %7063 = vmatpush3.bf16.msra.mxu0 %v9011_v36  ;;  %7066 = vmatprep.mubr.msk.bf16.mxu0 %vm7444_vm0, %v7443_v0 }
0x26fd   :  { %7064 = vmatprep.subr.bf16.mxu0 %v7443_v0 }
0x26fe   :  { %7073 = vmatpush3.bf16.msra.mxu1 %v8973_v63 }
0x26ff   :  { %7086 = vmatprep.subr.bf16.mxu1 %v7443_v0 }
0x2700   :  { %7065 = vmatpush3.bf16.msra.mxu0 %v9020_v13 }
0x2701   :  { %7078 = vmatprep.subr.bf16.mxu0 %v7443_v0 }
0x2703   :  { %7067 = vmatmul.mubr.msk.bf16.vlgmr.msra.gmra.mrb[192].mxu0 %vm335_vm5, %v5158_v24 }
0x2704   :  { %7079 = vmatpush3.bf16.msra.mxu0 %v9030_v39  ;;  %7082 = vmatprep.mubr.msk.bf16.mxu0 %vm7444_vm0, %v7443_v0 }
0x2705   :  { %7080 = vmatprep.subr.bf16.mxu0 %v7443_v0 }
0x2708   :  { %7081 = vmatpush3.bf16.msra.mxu0 %v9045_v34 }
0x2709   :  { %7094 = vmatprep.subr.bf16.mxu0 %v7443_v0 }
0x27c4   :  { %v5196_v16 = vpop.f32.mrb[184].mxu1 }
0x27c5   :  { %v7044_v15 = vpop.f32.mrb[185].mxu1 }
0x27c6   :  { %v5199_v29 = vpop.f32.mrb[186].mxu1 }
0x27c7   :  { %v7045_v37 = vpop.f32.mrb[187].mxu1  ;;  %v7441_v29 = vld [vmem:[%s9422_s2] sm:$0xff]  }
0x27cc   :  { %v5307_v46 = vpop.f32.mrb[188].mxu1 }
0x27cd   :  { %v5313_v19 = vadd.f32 %v5307_v46, %v296_v30  ;;  %v7060_v43 = vpop.f32.mrb[189].mxu1 }
0x27ce   :  { %v5239_v41 = vpop.f32.mrb[188].mxu0  ;;  %v5310_v38 = vpop.f32.mrb[190].mxu1 }
0x27cf   :  { %v5314_v27 = vmul.f32 %v5313_v19, %v7585_v21  ;;  %v5240_v45 = vadd.f32 %v5239_v41, %v5196_v16  ;;  %v7052_v54 = vpop.f32.mrb[189].mxu0  ;;  %v7061_v48 = vpop.f32.mrb[191].mxu1 }
0x27d0   :  { %v5242_v4 = vpop.f32.mrb[190].mxu0 }
0x27d1   :  { %7374 = vtanh.f32 %v5314_v27  ;;  %v5245_v47 = vadd.f32 %v9120_v51, %v5240_v45  ;;  %v7053_v23 = vpop.f32.mrb[191].mxu0 }
0x27d3   :  { %v5246_v14 = vmul.f32 %v5245_v47, %v7585_v21 }
0x27d5   :  { %7376 = vtanh.f32 %v5246_v14 }
0x27d6   :  { %v5364_v6 = vpop.f32.mrb[192].mxu0 }
0x27d7   :  { %v7068_v3 = vpop.f32.mrb[193].mxu0 }
0x27d8   :  { %v5367_v58 = vpop.f32.mrb[194].mxu0 }
0x27d9   :  { %v7069_v57 = vpop.f32.mrb[195].mxu0 }
0x27db   :  { %v7375_v20 = vpop.eup %7374 }
0x27dc   :  { %v5316_v61 = vmul.f32 %v7375_v20, %v7585_v21 }
0x27de   :  { %v5317_v53 = vadd.f32 %v5316_v61, %v7610_v33 }
0x27df   :  { %v7377_v40 = vpop.eup %7376 }
0x27e0   :  { %5320 = vrot.lane.b32.xlu0 %v5317_v53, %s7449_s0  ;;  %5318 = vrot.lane.b32.xlu1 %v5317_v53, %s7448_s18  ;;  %v5248_v59 = vmul.f32 %v7377_v40, %v7585_v21 }
0x27e2   :  { %v5249_v8 = vadd.f32 %v5248_v59, %v7610_v33 }
0x27e4   :  { %5252 = vrot.lane.b32.xlu0 %v5249_v8, %s7449_s0  ;;  %5250 = vrot.lane.b32.xlu1 %v5249_v8, %s7448_s18 }
0x27e8   :  { %5254 = vrot.lane.b32.xlu0 %v5249_v8, %s7447_s17  ;;  %5322 = vrot.lane.b32.xlu1 %v5317_v53, %s7447_s17 }
0x2852   :  { %v5321_v10 = vpop.permute.xlu0 %5320  ;;  %v5319_v62 = vpop.permute.xlu1 %5318 }
0x2853   :  { %v5325_v5 = vmul.f32 %v5321_v10, %v5317_v53  ;;  %v5324_v22 = vmul.f32 %v5319_v62, %v9201_v25  ;;  %v5985_v25 = vld [vmem:[%s9431_s10 + $0x11] ss:$0 sm:$0xff] }
0x2855   :  { %v9302_v26 = vadd.f32 %v5325_v5, %v5324_v22 }
0x2856   :  { %v5253_v56 = vpop.permute.xlu0 %5252  ;;  %v5251_v9 = vpop.permute.xlu1 %5250 }
0x2857   :  { %7378 = vtanh.f32 %v9302_v26  ;;  %v5257_v1 = vmul.f32 %v5253_v56, %v5249_v8  ;;  %v5256_v42 = vmul.f32 %v5251_v9, %v9244_v32 }
0x2859   :  { %v9306_v2 = vadd.f32 %v5257_v1, %v5256_v42 }
0x285a   :  { %v5323_v35 = vpop.permute.xlu1 %5322  ;;  %v5255_v50 = vpop.permute.xlu0 %5254 }
0x285b   :  { %7380 = vtanh.f32 %v9306_v2 }
0x2861   :  { %v7379_v52 = vpop.eup %7378 }
0x2862   :  { %v5328_v49 = vmul.f32 %v7379_v52, %v5323_v35 }
0x2864   :  { %v5329_v17 = vpack.c.bf16 %v5328_v49, %v5328_v49 }
0x2865   :  { %v7381_v44 = vpop.eup %7380 }
0x2866   :  { %v5260_v24 = vmul.f32 %v7381_v44, %v5255_v50  ;;  %7075 = vmatmul.mubr.msk.bf16.vlgmr.msra.gmra.mrb[192].mxu1 %vm335_vm5, %v5329_v17 }
0x2867   :  { %7087 = vmatpush3.bf16.msra.mxu1 %v9149_v60  ;;  %7090 = vmatprep.mubr.msk.bf16.mxu1 %vm7444_vm0, %v7443_v0 }
0x2868   :  { %v5261_v32 = vpack.c.bf16 %v5260_v24, %v5260_v24  ;;  %v5270_v16 = vmul.f32 %v5985_v25, %v5260_v24  ;;  %7088 = vmatprep.subr.bf16.mxu1 %v7443_v0 }
0x286a   :  { %v9318_v15 = vadd.f32 %v5270_v16, %v9255_v12  ;;  %7083 = vmatmul.mubr.msk.bf16.vlgmr.msra.gmra.mrb[196].mxu0 %vm335_vm5, %v5261_v32  ;;  %v7442_v12 = vld [vmem:[%s9422_s2 + $0x8] sm:$0xff]  }
0x286b   :  { %7095 = vmatpush3.bf16.msra.mxu0 %v7441_v29  ;;  %7098 = vmatprep.mubr.msk.bf16.mxu0 %vm7444_vm0, %v7443_v0 }
0x286c   :  { %7096 = vmatprep.subr.bf16.mxu0 %v7443_v0  ;;  %7089 = vmatpush3.bf16.msra.mxu1 %v9166_v55 }
0x286d   :  { %7102 = vmatprep.subr.bf16.mxu1 %v7443_v0 }
0x286f   :  { %7097 = vmatpush3.bf16.msra.mxu0 %v7442_v12 }
0x2870   :  { %7110 = vmatprep.subr.bf16.mxu0 %v7443_v0 }
0x2872   :  { %7099 = vmatmul.mubr.msk.bf16.vlgmr.msra.gmra.mrb[200].mxu0 %vm335_vm5, %v5329_v17 }
0x2873   :  { %7111 = vmatpush3.bf16.msra.mxu0 %v8964_v31  ;;  %7114 = vmatprep.mubr.msk.bf16.mxu0 %vm7444_vm0, %v7443_v0 }
0x2874   :  { %7112 = vmatprep.subr.bf16.mxu0 %v7443_v0 }
0x2877   :  { %7113 = vmatpush3.bf16.msra.mxu0 %v8973_v63  ;;  %v299_v63 = vadd.f32 %v8984_v11, %v7687_v7 }
0x2878   :  { %7126 = vmatprep.subr.bf16.mxu0 %v7443_v0 }
0x2939   :  { %v5407_v37 = vpop.f32.mrb[192].mxu1 }
0x293a   :  { %v5408_v30 = vadd.f32 %v5407_v37, %v5364_v6  ;;  %v7076_v46 = vpop.f32.mrb[193].mxu1 }
0x293b   :  { %v5410_v19 = vpop.f32.mrb[194].mxu1 }
0x293c   :  { %v5413_v43 = vadd.f32 %v9057_v18, %v5408_v30  ;;  %v7077_v41 = vpop.f32.mrb[195].mxu1 }
0x293d   :  { %v9341_v38 = vpop.f32.mrb[196].mxu0 }
0x293e   :  { %v5414_v31 = vmul.f32 %v5413_v43, %v7585_v21  ;;  %v7084_v27 = vpop.f32.mrb[197].mxu0 }
0x293f   :  { %v5470_v45 = vpop.f32.mrb[198].mxu0 }
0x2940   :  { %7382 = vtanh.f32 %v5414_v31  ;;  %v7085_v54 = vpop.f32.mrb[199].mxu0 }
0x2945   :  { %v5578_v48 = vpop.f32.mrb[200].mxu0 }
0x2946   :  { %v5584_v4 = vadd.f32 %v5578_v48, %v299_v63  ;;  %v7100_v47 = vpop.f32.mrb[201].mxu0 }
0x2947   :  { %v5581_v23 = vpop.f32.mrb[202].mxu0 }
0x2948   :  { %v5585_v14 = vmul.f32 %v5584_v4, %v7585_v21  ;;  %v7101_v6 = vpop.f32.mrb[203].mxu0 }
0x294a   :  { %v7383_v3 = vpop.eup %7382  ;;  %7384 = vtanh.f32 %v5585_v14 }
0x294b   :  { %v5416_v58 = vmul.f32 %v7383_v3, %v7585_v21 }
0x294d   :  { %v5417_v57 = vadd.f32 %v5416_v58, %v7610_v33  ;;  %v5992_v58 = vld [vmem:[%s9431_s10 + $0x12] ss:$0 sm:$0xff] }
0x294f   :  { %5420 = vrot.lane.b32.xlu0 %v5417_v57, %s7449_s0  ;;  %5418 = vrot.lane.b32.xlu1 %v5417_v57, %s7448_s18 }
0x2954   :  { %v7385_v20 = vpop.eup %7384 }
0x2955   :  { %v5587_v7 = vmul.f32 %v7385_v20, %v7585_v21 }
0x2957   :  { %v5588_v11 = vadd.f32 %v5587_v7, %v7610_v33 }
0x2959   :  { %5591 = vrot.lane.b32.xlu0 %v5588_v11, %s7449_s0  ;;  %5589 = vrot.lane.b32.xlu1 %v5588_v11, %s7448_s18 }
0x295d   :  { %5593 = vrot.lane.b32.xlu0 %v5588_v11, %s7447_s17  ;;  %5422 = vrot.lane.b32.xlu1 %v5417_v57, %s7447_s17 }
0x29c1   :  { %v5421_v61 = vpop.permute.xlu0 %5420  ;;  %v5419_v53 = vpop.permute.xlu1 %5418 }
0x29c2   :  { %v5425_v40 = vmul.f32 %v5421_v61, %v5417_v57  ;;  %v5424_v59 = vmul.f32 %v5419_v53, %v9248_v28 }
0x29c4   :  { %v9358_v8 = vadd.f32 %v5425_v40, %v5424_v59 }
0x29c6   :  { %7386 = vtanh.f32 %v9358_v8 }
0x29cb   :  { %v5592_v10 = vpop.permute.xlu0 %5591  ;;  %v5590_v62 = vpop.permute.xlu1 %5589 }
0x29cc   :  { %v5596_v5 = vmul.f32 %v5592_v10, %v5588_v11  ;;  %v5595_v22 = vmul.f32 %v5590_v62, %v9302_v26 }
0x29ce   :  { %v5597_v56 = vadd.f32 %v5596_v5, %v5595_v22 }
0x29cf   :  { %v5423_v9 = vpop.permute.xlu1 %5422  ;;  %v5594_v35 = vpop.permute.xlu0 %5593 }
0x29d0   :  { %v7387_v1 = vpop.eup %7386  ;;  %7388 = vtanh.f32 %v5597_v56 }
0x29d1   :  { %v5428_v42 = vmul.f32 %v7387_v1, %v5423_v9 }
0x29d3   :  { %v5429_v52 = vpack.c.bf16 %v5428_v42, %v5428_v42 }
0x29d5   :  { %7091 = vmatmul.mubr.msk.bf16.vlgmr.msra.gmra.mrb[196].mxu1 %vm335_vm5, %v5429_v52 }
0x29d6   :  { %7103 = vmatpush3.bf16.msra.mxu1 %v9011_v36  ;;  %7106 = vmatprep.mubr.msk.bf16.mxu1 %vm7444_vm0, %v7443_v0 }
0x29d7   :  { %7104 = vmatprep.subr.bf16.mxu1 %v7443_v0 }
0x29da   :  { %v7389_v28 = vpop.eup %7388  ;;  %7105 = vmatpush3.bf16.msra.mxu1 %v9020_v13 }
0x29db   :  { %v5599_v26 = vmul.f32 %v7389_v28, %v5594_v35  ;;  %7118 = vmatprep.subr.bf16.mxu1 %v7443_v0 }
0x29dd   :  { %v5600_v49 = vpack.c.bf16 %v5599_v26, %v5599_v26  ;;  %7107 = vmatmul.mubr.msk.bf16.vlgmr.msra.gmra.mrb[200].mxu1 %vm335_vm5, %v5429_v52  ;;  %v17_v26 = vstv %s9432_s11 }
0x29de   :  { %7119 = vmatpush3.bf16.msra.mxu1 %v9030_v39  ;;  %7122 = vmatprep.mubr.msk.bf16.mxu1 %vm7444_vm0, %v7443_v0  ;;  %18 = vst [vmem:[#allocation3] sm:$0x1] %v17_v26 }
0x29df   :  { %7115 = vmatmul.mubr.msk.bf16.vlgmr.msra.gmra.mrb[204].mxu0 %vm335_vm5, %v5600_v49  ;;  %7120 = vmatprep.subr.bf16.mxu1 %v7443_v0 }
0x29e0   :  { %7127 = vmatpush3.bf16.msra.mxu0 %v9149_v60  ;;  %7130 = vmatprep.mubr.msk.bf16.mxu0 %vm7444_vm0, %v7443_v0 }
0x29e1   :  { %7128 = vmatprep.subr.bf16.mxu0 %v7443_v0 }
0x29e2   :  { %7121 = vmatpush3.bf16.msra.mxu1 %v9045_v34 }
0x29e4   :  { %7129 = vmatpush3.bf16.msra.mxu0 %v9166_v55 }
0x2aa8   :  { %v5510_v36 = vpop.f32.mrb[196].mxu1 }
0x2aa9   :  { %v5511_v13 = vadd.f32 %v5510_v36, %v9341_v38  ;;  %v7092_v39 = vpop.f32.mrb[197].mxu1 }
0x2aaa   :  { %v5513_v17 = vpop.f32.mrb[198].mxu1 }
0x2aab   :  { %v5516_v44 = vadd.f32 %v9120_v51, %v5511_v13  ;;  %v7093_v25 = vpop.f32.mrb[199].mxu1 }
0x2aad   :  { %v5517_v50 = vmul.f32 %v5516_v44, %v7585_v21 }
0x2aaf   :  { %7390 = vtanh.f32 %v5517_v50 }
0x2ab0   :  { %v5635_v60 = vpop.f32.mrb[200].mxu1 }
0x2ab1   :  { %v7108_v24 = vpop.f32.mrb[201].mxu1 }
0x2ab2   :  { %v5638_v32 = vpop.f32.mrb[202].mxu1  ;;  %v5678_v16 = vpop.f32.mrb[204].mxu0  ;;  %v6000_v24 = vld [vmem:[#allocation3] ss:$0 sm:$0xff] }
0x2ab3   :  { %v5679_v0 = vadd.f32 %v5678_v16, %v5635_v60  ;;  %v7109_v29 = vpop.f32.mrb[203].mxu1  ;;  %v7116_v34 = vpop.f32.mrb[205].mxu0 }
0x2ab4   :  { %v5681_v12 = vpop.f32.mrb[206].mxu0 }
0x2ab5   :  { %v5684_v55 = vadd.f32 %v9057_v18, %v5679_v0  ;;  %v7117_v37 = vpop.f32.mrb[207].mxu0 }
0x2ab7   :  { %v5685_v30 = vmul.f32 %v5684_v55, %v7585_v21 }
0x2ab9   :  { %v7391_v46 = vpop.eup %7390  ;;  %7392 = vtanh.f32 %v5685_v30 }
0x2aba   :  { %v5519_v19 = vmul.f32 %v7391_v46, %v7585_v21 }
0x2abc   :  { %v5520_v43 = vadd.f32 %v5519_v19, %v7610_v33 }
0x2abe   :  { %5523 = vrot.lane.b32.xlu0 %v5520_v43, %s7449_s0  ;;  %5521 = vrot.lane.b32.xlu1 %v5520_v43, %s7448_s18 }
0x2ac3   :  { %v7393_v41 = vpop.eup %7392 }
0x2ac4   :  { %v5687_v38 = vmul.f32 %v7393_v41, %v7585_v21 }
0x2ac6   :  { %v5688_v31 = vadd.f32 %v5687_v38, %v7610_v33 }
0x2ac8   :  { %5691 = vrot.lane.b32.xlu0 %v5688_v31, %s7449_s0  ;;  %5689 = vrot.lane.b32.xlu1 %v5688_v31, %s7448_s18 }
0x2acc   :  { %5693 = vrot.lane.b32.xlu0 %v5688_v31, %s7447_s17  ;;  %5525 = vrot.lane.b32.xlu1 %v5520_v43, %s7447_s17 }
0x2b30   :  { %v5524_v18 = vpop.permute.xlu0 %5523  ;;  %v5522_v27 = vpop.permute.xlu1 %5521 }
0x2b31   :  { %v5528_v45 = vmul.f32 %v5524_v18, %v5520_v43  ;;  %v5527_v54 = vmul.f32 %v5522_v27, %v9306_v2 }
0x2b33   :  { %v5529_v63 = vadd.f32 %v5528_v45, %v5527_v54 }
0x2b35   :  { %7394 = vtanh.f32 %v5529_v63 }
0x2b3a   :  { %v5692_v48 = vpop.permute.xlu0 %5691  ;;  %v5690_v4 = vpop.permute.xlu1 %5689 }
0x2b3b   :  { %v5696_v47 = vmul.f32 %v5692_v48, %v5688_v31  ;;  %v5695_v23 = vmul.f32 %v5690_v4, %v9358_v8 }
0x2b3d   :  { %v5697_v14 = vadd.f32 %v5696_v47, %v5695_v23 }
0x2b3e   :  { %v5526_v6 = vpop.permute.xlu1 %5525  ;;  %v5694_v61 = vpop.permute.xlu0 %5693 }
0x2b3f   :  { %v7395_v3 = vpop.eup %7394  ;;  %7396 = vtanh.f32 %v5697_v14 }
0x2b40   :  { %v5531_v57 = vmul.f32 %v7395_v3, %v5526_v6 }
0x2b42   :  { %v5532_v20 = vpack.c.bf16 %v5531_v57, %v5531_v57  ;;  %v5541_v7 = vmul.f32 %v5992_v58, %v5531_v57 }
0x2b44   :  { %v5542_v2 = vadd.f32 %v5541_v7, %v9318_v15  ;;  %7123 = vmatmul.mubr.msk.bf16.vlgmr.msra.gmra.mrb[204].mxu1 %vm335_vm5, %v5532_v20 }
0x2b49   :  { %v7397_v11 = vpop.eup %7396 }
0x2b4a   :  { %v5699_v53 = vmul.f32 %v7397_v11, %v5694_v61 }
0x2b4c   :  { %v5700_v40 = vpack.c.bf16 %v5699_v53, %v5699_v53 }
0x2b4e   :  { %7131 = vmatmul.mubr.msk.bf16.vlgmr.msra.gmra.mrb[208].mxu0 %vm335_vm5, %v5700_v40 }
0x2c17   :  { %v5738_v59 = vpop.f32.mrb[204].mxu1 }
0x2c18   :  { %v7124_v8 = vpop.f32.mrb[205].mxu1 }
0x2c19   :  { %v5741_v10 = vpop.f32.mrb[206].mxu1 }
0x2c1a   :  { %v7125_v62 = vpop.f32.mrb[207].mxu1 }
0x2c21   :  { %v5781_v5 = vpop.f32.mrb[208].mxu0 }
0x2c22   :  { %v5782_v22 = vadd.f32 %v5781_v5, %v5738_v59  ;;  %v7132_v56 = vpop.f32.mrb[209].mxu0 }
0x2c23   :  { %v5784_v9 = vpop.f32.mrb[210].mxu0 }
0x2c24   :  { %v5787_v1 = vadd.f32 %v9120_v51, %v5782_v22  ;;  %v7133_v42 = vpop.f32.mrb[211].mxu0 }
0x2c26   :  { %v5788_v15 = vmul.f32 %v5787_v1, %v7585_v21 }
0x2c28   :  { %7398 = vtanh.f32 %v5788_v15 }
0x2c32   :  { %v7399_v52 = vpop.eup %7398 }
0x2c33   :  { %v5790_v28 = vmul.f32 %v7399_v52, %v7585_v21 }
0x2c35   :  { %v5791_v35 = vadd.f32 %v5790_v28, %v7610_v33  ;;  %v5999_v33 = vld [vmem:[%s9431_s10 + $0x13] ss:$0 sm:$0xff] }
0x2c37   :  { %5794 = vrot.lane.b32.xlu0 %v5791_v35, %s7449_s0  ;;  %5792 = vrot.lane.b32.xlu1 %v5791_v35, %s7448_s18 }
0x2c3b   :  { %5796 = vrot.lane.b32.xlu1 %v5791_v35, %s7447_s17 }
0x2ca9   :  { %v5795_v51 = vpop.permute.xlu0 %5794  ;;  %v5793_v49 = vpop.permute.xlu1 %5792 }
0x2caa   :  { %v5799_v36 = vmul.f32 %v5795_v51, %v5791_v35  ;;  %v5798_v13 = vmul.f32 %v5793_v49, %v5529_v63 }
0x2cac   :  { %v5800_v39 = vadd.f32 %v5799_v36, %v5798_v13 }
0x2cad   :  { %v5797_v17 = vpop.permute.xlu1 %5796 }
0x2cae   :  { %7400 = vtanh.f32 %v5800_v39 }
0x2cb8   :  { %v7401_v21 = vpop.eup %7400 }
0x2cb9   :  { %v5802_v44 = vmul.f32 %v7401_v21, %v5797_v17 }
0x2cbb   :  { %v5811_v25 = vmul.f32 %v5999_v33, %v5802_v44 }
0x2cbd   :  { %v5812_v50 = vadd.f32 %v5811_v25, %v5542_v2 }
0x2cbf   :  { %v5813_v60 = vsel %vm335_vm5, %v5812_v50, 0.0 }
0x2cc0   :  { %5814 = vadd.xlane.f32.xlu0 %v5813_v60 }
0x2d4d   :  { %v5815_v32 = vpop.xlane.xlu0 %5814 }
0x2d4e   :  { %v5823_v16 = vadd.f32 %v6000_v24, %v5815_v32 }
0x2d50   :  { %5825 = vst.msk [vmem:[%s9433_s12] sm:$0xff] %vm5824_vm6, %v5823_v16 }

</bundles_post_ra>
